<compile_context>
chip_gen: v6e
topology: v6e:2x2x1
jax: 0.10.0
libtpu: 0.0.40
codegen_flags: <defaults>
</compile_context>

<pallas_src>
import functools
import numpy as np
import jax
import jax.numpy as jnp
from jax import lax
from jax.experimental import pallas as pl
from jax.experimental.pallas import tpu as pltpu

EPS = 1e-5
EXPANSION = 4


# ----------------------------- Pallas kernel ------------------------------ #
def _bottleneck_kernel(*refs, stride, has_down, H, W):
    it = iter(refs)
    x_ref = next(it)                                 # (1, HW, Cin)  bf16
    w1_ref = next(it)                                # (Cin, P)      bf16
    s1_ref = next(it); b1_ref = next(it)             # (1, P)        f32
    w2_ref = next(it)                                # (9P, P)       bf16
    s2_ref = next(it); b2_ref = next(it)             # (1, P)        f32
    w3_ref = next(it)                                # (P, 4P)       bf16
    s3_ref = next(it); b3_ref = next(it)             # (1, 4P)       f32
    if has_down:
        wd_ref = next(it)                            # (Cin, 4P)     bf16
        sd_ref = next(it); bd_ref = next(it)         # (1, 4P)       f32
    out_ref = next(it)                               # (1, HoWo, 4P) f32
    hext_ref = next(it)                              # (HW + 2*pad, P)  bf16 scratch
    tap_ref = next(it)                               # (HW, 9P)         bf16 scratch
    if stride > 1:
        pmain_ref = next(it)                         # (HW, P)    f32 scratch
        pid_ref = next(it)                           # (HW, Cin)  f32 scratch

    f32 = jnp.float32
    HW = H * W
    P = w1_ref.shape[1]
    pad = (hext_ref.shape[0] - HW) // 2
    Ho, Wo = H // stride, W // stride

    def avg_pool(val, buf_ref):
        """AvgPool2d(stride) on a flattened (HW, C) f32 map -> (HoWo, C)."""
        C = val.shape[-1]
        buf_ref[...] = val
        # pool along W: sum rows whose column index == dx (mod stride)
        acc = buf_ref[pl.ds(0, H * Wo, stride=stride), :]
        for dx in range(1, stride):
            acc = acc + buf_ref[pl.ds(dx, H * Wo, stride=stride), :]
        # pool along H: group rows by output row and sum the `stride` sub-rows
        acc = acc.reshape(Ho, stride * Wo, C)
        out = acc[:, 0:Wo, :]
        for dy in range(1, stride):
            out = out + acc[:, dy * Wo:(dy + 1) * Wo, :]
        return out.reshape(Ho * Wo, C) * (1.0 / (stride * stride))

    x = x_ref[0]                                      # (HW, Cin) bf16

    # ---- conv1 (1x1) + bn1 + relu --------------------------------------- #
    h = jnp.dot(x, w1_ref[...], preferred_element_type=f32)
    h = jnp.maximum(h * s1_ref[...] + b1_ref[...], 0.0)

    # ---- conv2 (3x3, padding=1) + bn2 + relu ----------------------------- #
    # Zero-padded activation buffer: shifted taps become static sublane
    # slices; only the column wrap needs a mask.
    zpad = jnp.zeros((pad, P), jnp.bfloat16)
    hext_ref[0:pad, :] = zpad
    hext_ref[pad + HW:, :] = zpad
    hext_ref[pad:pad + HW, :] = h.astype(jnp.bfloat16)

    col = lax.broadcasted_iota(jnp.int32, (HW, 1), 0) % W
    for k in range(9):
        dy, dx = k // 3 - 1, k % 3 - 1
        off = pad + dy * W + dx
        tap = hext_ref[off:off + HW, :]               # (HW, P) bf16
        if dx == -1:
            tap = jnp.where(col > 0, tap, 0.0)
        elif dx == 1:
            tap = jnp.where(col < W - 1, tap, 0.0)
        tap_ref[:, k * P:(k + 1) * P] = tap

    # single fused MXU matmul over K = 9*P
    h = jnp.dot(tap_ref[...], w2_ref[...], preferred_element_type=f32)
    h = jnp.maximum(h * s2_ref[...] + b2_ref[...], 0.0)

    # ---- avgpool(stride) on the main path -------------------------------- #
    if stride > 1:
        h = avg_pool(h, pmain_ref)

    # ---- conv3 (1x1) + bn3 ----------------------------------------------- #
    h = jnp.dot(h.astype(jnp.bfloat16), w3_ref[...], preferred_element_type=f32)
    h = h * s3_ref[...] + b3_ref[...]

    # ---- identity / downsample branch ------------------------------------ #
    if has_down:
        idt = x.astype(f32)
        if stride > 1:
            idt = avg_pool(idt, pid_ref)
        idt = jnp.dot(idt.astype(jnp.bfloat16), wd_ref[...],
                      preferred_element_type=f32)
        idt = idt * sd_ref[...] + bd_ref[...]
    else:
        idt = x.astype(f32)

    out_ref[0] = jnp.maximum(h + idt, 0.0)


# ------------------------------- glue / setup ----------------------------- #
def _fold_bn(gamma, beta, mean, var):
    scale = gamma / jnp.sqrt(var + EPS)
    shift = beta - mean * scale
    return scale[None, :].astype(jnp.float32), shift[None, :].astype(jnp.float32)


def bottleneck_pallas(x_nchw, params, stride):
    N, Cin, H, W = x_nchw.shape
    P = params['w1'].shape[0]
    C4 = P * EXPANSION
    HW = H * W
    Ho, Wo = H // stride, W // stride
    HoWo = Ho * Wo
    has_down = (stride > 1) or (Cin != C4)
    pad = ((W + 1 + 31) // 32) * 32                   # aligned zero padding

    bf16 = jnp.bfloat16
    x_k = jnp.transpose(x_nchw, (0, 2, 3, 1)).reshape(N, HW, Cin).astype(bf16)

    w1 = params['w1'][:, :, 0, 0].T.astype(bf16)                                # (Cin, P)
    w2 = jnp.transpose(params['w2'], (2, 3, 1, 0)).reshape(9 * P, P).astype(bf16)  # (9P, P)
    w3 = params['w3'][:, :, 0, 0].T.astype(bf16)                                # (P, 4P)
    s1, b1 = _fold_bn(*params['bn1'])
    s2, b2 = _fold_bn(*params['bn2'])
    s3, b3 = _fold_bn(*params['bn3'])

    def const(shape):
        return pl.BlockSpec(shape, lambda b, _n=len(shape): (0,) * _n)

    args = [x_k, w1, s1, b1, w2, s2, b2, w3, s3, b3]
    in_specs = [
        pl.BlockSpec((1, HW, Cin), lambda b: (b, 0, 0)),
        const((Cin, P)), const((1, P)), const((1, P)),
        const((9 * P, P)), const((1, P)), const((1, P)),
        const((P, C4)), const((1, C4)), const((1, C4)),
    ]
    if has_down:
        wd = params['wd'][:, :, 0, 0].T.astype(bf16)
        sd, bd = _fold_bn(*params['bnd'])
        args += [wd, sd, bd]
        in_specs += [const((Cin, C4)), const((1, C4)), const((1, C4))]

    scratch_shapes = [
        pltpu.VMEM((HW + 2 * pad, P), jnp.bfloat16),   # padded activation
        pltpu.VMEM((HW, 9 * P), jnp.bfloat16),         # fused 3x3 taps
    ]
    if stride > 1:
        scratch_shapes += [
            pltpu.VMEM((HW, P), jnp.float32),          # main-path pooling
            pltpu.VMEM((HW, Cin), jnp.float32),        # identity pooling
        ]

    flops_per_b = 2 * HW * Cin * P + 2 * HW * (9 * P) * P + 2 * HoWo * P * C4
    if has_down:
        flops_per_b += 2 * HoWo * Cin * C4
    bytes_in = sum(int(a.size) * a.dtype.itemsize for a in args)
    bytes_out = N * HoWo * C4 * 4
    cost = pl.CostEstimate(flops=int(N * flops_per_b), transcendentals=0,
                           bytes_accessed=int(bytes_in + bytes_out))

    kernel = functools.partial(_bottleneck_kernel, stride=stride,
                               has_down=has_down, H=H, W=W)
    out = pl.pallas_call(
        kernel,
        grid=(N,),
        in_specs=in_specs,
        out_specs=pl.BlockSpec((1, HoWo, C4), lambda b: (b, 0, 0)),
        out_shape=jax.ShapeDtypeStruct((N, HoWo, C4), jnp.float32),
        scratch_shapes=scratch_shapes,
        cost_estimate=cost,
        compiler_params=pltpu.CompilerParams(dimension_semantics=("parallel",)),
    )(*args)

    return jnp.transpose(out.reshape(N, Ho, Wo, C4), (0, 3, 1, 2))   # back to NCHW


# ------------------------------- reference -------------------------------- #
def bottleneck_reference(x, params, stride, compute_dtype=jnp.float32):
    """Pure-JAX reference. compute_dtype=bf16 reproduces the kernel's rounding
    points (bf16 matmul inputs, f32 accumulation); f32 uses HIGHEST precision."""
    prec = (lax.Precision.HIGHEST if compute_dtype == jnp.float32
            else lax.Precision.DEFAULT)

    def bn(y, p):
        g, b, m, v = p
        scale = (g / jnp.sqrt(v + EPS))[None, :, None, None]
        return (y - m[None, :, None, None]) * scale + b[None, :, None, None]

    def conv(y, w, padding):
        return lax.conv_general_dilated(
            y.astype(compute_dtype), w.astype(compute_dtype), (1, 1), padding,
            dimension_numbers=('NCHW', 'OIHW', 'NCHW'),
            precision=prec, preferred_element_type=jnp.float32)

    def avgpool(y, s):
        n, c, h, w = y.shape
        return y.reshape(n, c, h // s, s, w // s, s).mean(axis=(3, 5))

    Cin = x.shape[1]
    C4 = params['w1'].shape[0] * EXPANSION
    x_eff = x.astype(compute_dtype)

    out = jax.nn.relu(bn(conv(x_eff, params['w1'], 'VALID'), params['bn1']))
    out = jax.nn.relu(bn(conv(out, params['w2'], ((1, 1), (1, 1))), params['bn2']))
    if stride > 1:
        out = avgpool(out, stride)
    out = bn(conv(out, params['w3'], 'VALID'), params['bn3'])
    if stride > 1 or Cin != C4:
        idt = x_eff.astype(jnp.float32)
        if stride > 1:
            idt = avgpool(idt, stride)
        idt = bn(conv(idt, params['wd'], 'VALID'), params['bnd'])
    else:
        idt = x_eff.astype(jnp.float32)
    return jax.nn.relu(out + idt)


# ---------------------------- deterministic init --------------------------- #
def init_params(key, inplanes, planes):
    C4 = planes * EXPANSION
    ks = jax.random.split(key, 8)

    def w(k, shape, fan_in):
        return jax.random.normal(k, shape, jnp.float32) / np.sqrt(fan_in)

    def bn(k, c):
        k1, k2, k3, k4 = jax.random.split(k, 4)
        gamma = 1.0 + 0.1 * jax.random.normal(k1, (c,), jnp.float32)
        beta = 0.1 * jax.random.normal(k2, (c,), jnp.float32)
        mean = 0.1 * jax.random.normal(k3, (c,), jnp.float32)
        var = jax.random.uniform(k4, (c,), jnp.float32, minval=0.5, maxval=1.5)
        return (gamma, beta, mean, var)

    return {
        'w1': w(ks[0], (planes, inplanes, 1, 1), inplanes),
        'bn1': bn(ks[1], planes),
        'w2': w(ks[2], (planes, planes, 3, 3), planes * 9),
        'bn2': bn(ks[3], planes),
        'w3': w(ks[4], (C4, planes, 1, 1), planes),
        'bn3': bn(ks[5], C4),
        'wd': w(ks[6], (C4, inplanes, 1, 1), inplanes),
        'bnd': bn(ks[7], C4),
    }


if __name__ == "__main__":
    key = jax.random.PRNGKey(0)
    kx, kp = jax.random.split(key)

    inplanes, planes, stride = 4, 4, 2      # Bottleneck(inplanes=4, planes=4, stride=2)
    x = jax.random.normal(kx, (2, inplanes, 16, 16), jnp.float32)   # NCHW like PyTorch
    params = init_params(kp, inplanes, planes)

    out = jax.block_until_ready(bottleneck_pallas(x, params, stride))
    assert out.shape == (2, planes * EXPANSION, 16 // stride, 16 // stride), out.shape

    # precision-matched reference (bf16 matmul inputs, f32 accumulation)
    ref_matched = bottleneck_reference(x, params, stride, jnp.bfloat16)
    err_matched = float(jnp.max(jnp.abs(out - ref_matched)))
    assert err_matched < 2e-3, f"max abs error vs matched reference: {err_matched}"

    # loose sanity check vs the full-f32 reference (bf16 rounding noise only)
    ref_f32 = bottleneck_reference(x, params, stride, jnp.float32)
    err_f32 = float(jnp.max(jnp.abs(out - ref_f32)))
    assert err_f32 < 0.25, f"max abs error vs f32 reference: {err_f32}"

    print("KERNEL_OK")
</pallas_src>

<mosaic_0001>
module attributes {stable_mosaic.version = 11 : i64} {
  func.func @_bottleneck_kernel(%arg0: i32, %arg1: memref<1x256x4xbf16, #tpu.memory_space<vmem>>, %arg2: memref<4x4xbf16, #tpu.memory_space<vmem>>, %arg3: memref<1x4xf32, #tpu.memory_space<vmem>>, %arg4: memref<1x4xf32, #tpu.memory_space<vmem>>, %arg5: memref<36x4xbf16, #tpu.memory_space<vmem>>, %arg6: memref<1x4xf32, #tpu.memory_space<vmem>>, %arg7: memref<1x4xf32, #tpu.memory_space<vmem>>, %arg8: memref<4x16xbf16, #tpu.memory_space<vmem>>, %arg9: memref<1x16xf32, #tpu.memory_space<vmem>>, %arg10: memref<1x16xf32, #tpu.memory_space<vmem>>, %arg11: memref<4x16xbf16, #tpu.memory_space<vmem>>, %arg12: memref<1x16xf32, #tpu.memory_space<vmem>>, %arg13: memref<1x16xf32, #tpu.memory_space<vmem>>, %arg14: memref<1x64x16xf32, #tpu.memory_space<vmem>>, %arg15: memref<320x4xbf16, #tpu.memory_space<vmem>>, %arg16: memref<256x36xbf16, #tpu.memory_space<vmem>>, %arg17: memref<256x4xf32, #tpu.memory_space<vmem>>, %arg18: memref<256x4xf32, #tpu.memory_space<vmem>>) attributes {dimension_semantics = [#tpu.dimension_semantics<parallel>], iteration_bounds = array<i64: 2>, scalar_prefetch = 0 : i64, scratch_operands = 4 : i64, tpu.core_type = #tpu.core_type<tc>, window_params = [{transform_indices = @transform_0, window_bounds = array<i64: 1, 256, 4>}, {pipeline_mode = #tpu.pipeline_mode<synchronous>, transform_indices = @transform_1, window_bounds = array<i64: 4, 4>}, {pipeline_mode = #tpu.pipeline_mode<synchronous>, transform_indices = @transform_2, window_bounds = array<i64: 1, 4>}, {pipeline_mode = #tpu.pipeline_mode<synchronous>, transform_indices = @transform_3, window_bounds = array<i64: 1, 4>}, {pipeline_mode = #tpu.pipeline_mode<synchronous>, transform_indices = @transform_4, window_bounds = array<i64: 36, 4>}, {pipeline_mode = #tpu.pipeline_mode<synchronous>, transform_indices = @transform_5, window_bounds = array<i64: 1, 4>}, {pipeline_mode = #tpu.pipeline_mode<synchronous>, transform_indices = @transform_6, window_bounds = array<i64: 1, 4>}, {pipeline_mode = #tpu.pipeline_mode<synchronous>, transform_indices = @transform_7, window_bounds = array<i64: 4, 16>}, {pipeline_mode = #tpu.pipeline_mode<synchronous>, transform_indices = @transform_8, window_bounds = array<i64: 1, 16>}, {pipeline_mode = #tpu.pipeline_mode<synchronous>, transform_indices = @transform_9, window_bounds = array<i64: 1, 16>}, {pipeline_mode = #tpu.pipeline_mode<synchronous>, transform_indices = @transform_10, window_bounds = array<i64: 4, 16>}, {pipeline_mode = #tpu.pipeline_mode<synchronous>, transform_indices = @transform_11, window_bounds = array<i64: 1, 16>}, {pipeline_mode = #tpu.pipeline_mode<synchronous>, transform_indices = @transform_12, window_bounds = array<i64: 1, 16>}, {transform_indices = @transform_13, window_bounds = array<i64: 1, 64, 16>}]} {
    %c0 = arith.constant 0 : index
    %c0_0 = arith.constant 0 : index
    %c0_1 = arith.constant 0 : index
    %0 = vector.load %arg1[%c0, %c0_0, %c0_1] : memref<1x256x4xbf16, #tpu.memory_space<vmem>>, vector<1x256x4xbf16>
    %1 = vector.shape_cast %0 : vector<1x256x4xbf16> to vector<256x4xbf16>
    %c0_2 = arith.constant 0 : index
    %c0_3 = arith.constant 0 : index
    %2 = vector.load %arg2[%c0_2, %c0_3] : memref<4x4xbf16, #tpu.memory_space<vmem>>, vector<4x4xbf16>
    %cst = arith.constant dense<0.000000e+00> : vector<256x4xf32>
    %3 = tpu.matmul %1, %2, %cst {dimension_numbers = #tpu.dot_dimension_numbers<[1], [0], [0], [1], [0, 0, 1, 1], [], []>} : vector<256x4xbf16>, vector<4x4xbf16>, vector<256x4xf32> -> vector<256x4xf32>
    %c0_4 = arith.constant 0 : index
    %c0_5 = arith.constant 0 : index
    %4 = vector.load %arg3[%c0_4, %c0_5] : memref<1x4xf32, #tpu.memory_space<vmem>>, vector<1x4xf32>
    %5 = vector.broadcast %4 : vector<1x4xf32> to vector<256x4xf32>
    %6 = arith.mulf %3, %5 : vector<256x4xf32>
    %c0_6 = arith.constant 0 : index
    %c0_7 = arith.constant 0 : index
    %7 = vector.load %arg4[%c0_6, %c0_7] : memref<1x4xf32, #tpu.memory_space<vmem>>, vector<1x4xf32>
    %8 = vector.broadcast %7 : vector<1x4xf32> to vector<256x4xf32>
    %9 = arith.addf %6, %8 : vector<256x4xf32>
    %cst_8 = arith.constant 0.000000e+00 : f32
    %10 = vector.broadcast %cst_8 : f32 to vector<256x4xf32>
    %11 = arith.maximumf %9, %10 : vector<256x4xf32>
    %cst_9 = arith.constant 0.000000e+00 : bf16
    %12 = vector.broadcast %cst_9 : bf16 to vector<32x4xbf16>
    %c0_10 = arith.constant 0 : index
    %c0_11 = arith.constant 0 : index
    %13 = vector.load %arg15[%c0_10, %c0_11] : memref<320x4xbf16, #tpu.memory_space<vmem>>, vector<32x4xbf16>
    tpu.vector_store %arg15[%c0_10, %c0_11], %12 {strides = array<i32>} : memref<320x4xbf16, #tpu.memory_space<vmem>>, vector<32x4xbf16>,
    %c288 = arith.constant 288 : index
    %c0_12 = arith.constant 0 : index
    %14 = vector.load %arg15[%c288, %c0_12] : memref<320x4xbf16, #tpu.memory_space<vmem>>, vector<32x4xbf16>
    tpu.vector_store %arg15[%c288, %c0_12], %12 {strides = array<i32>} : memref<320x4xbf16, #tpu.memory_space<vmem>>, vector<32x4xbf16>,
    %15 = arith.truncf %11 : vector<256x4xf32> to vector<256x4xbf16>
    %c32 = arith.constant 32 : index
    %c0_13 = arith.constant 0 : index
    %16 = vector.load %arg15[%c32, %c0_13] : memref<320x4xbf16, #tpu.memory_space<vmem>>, vector<256x4xbf16>
    tpu.vector_store %arg15[%c32, %c0_13], %15 {strides = array<i32>} : memref<320x4xbf16, #tpu.memory_space<vmem>>, vector<256x4xbf16>,
    %17 = tpu.iota {dimensions = array<i32: 0>} : vector<256x1xi32>
    %c16_i32 = arith.constant 16 : i32
    %c0_i32 = arith.constant 0 : i32
    %18 = arith.cmpi eq, %c16_i32, %c0_i32 : i32
    %c1_i32 = arith.constant 1 : i32
    %19 = arith.select %18, %c1_i32, %c16_i32 : i32
    %20 = vector.broadcast %19 : i32 to vector<256x1xi32>
    %21 = arith.remsi %17, %20 : vector<256x1xi32>
    %c0_i32_14 = arith.constant 0 : i32
    %22 = vector.broadcast %c0_i32_14 : i32 to vector<256x1xi32>
    %23 = arith.cmpi ne, %21, %22 : vector<256x1xi32>
    %c0_i32_15 = arith.constant 0 : i32
    %24 = vector.broadcast %c0_i32_15 : i32 to vector<256x1xi32>
    %25 = arith.cmpi slt, %21, %24 : vector<256x1xi32>
    %c0_i32_16 = arith.constant 0 : i32
    %26 = arith.cmpi slt, %19, %c0_i32_16 : i32
    %27 = vector.broadcast %26 : i1 to vector<256x1xi1>
    %28 = vector.broadcast %27 : vector<256x1xi1> to vector<256x1xi1>
    %29 = arith.xori %25, %28 : vector<256x1xi1>
    %30 = arith.andi %29, %23 : vector<256x1xi1>
    %31 = vector.broadcast %19 : i32 to vector<256x1xi32>
    %32 = arith.addi %21, %31 : vector<256x1xi32>
    %33 = arith.select %30, %32, %21 : vector<256x1xi1>, vector<256x1xi32>
    %c15 = arith.constant 15 : index
    %c0_17 = arith.constant 0 : index
    %34 = vector.load %arg15[%c15, %c0_17] : memref<320x4xbf16, #tpu.memory_space<vmem>>, vector<256x4xbf16>
    %c0_i32_18 = arith.constant 0 : i32
    %35 = vector.broadcast %c0_i32_18 : i32 to vector<256x1xi32>
    %36 = arith.cmpi sgt, %33, %35 : vector<256x1xi32>
    %cst_19 = arith.constant 0.000000e+00 : f32
    %37 = arith.truncf %cst_19 : f32 to bf16
    %38 = vector.shape_cast %36 : vector<256x1xi1> to vector<256x1xi1>
    %39 = vector.broadcast %38 : vector<256x1xi1> to vector<256x4xi1>
    %40 = vector.broadcast %37 : bf16 to vector<256x4xbf16>
    %41 = arith.select %39, %34, %40 : vector<256x4xi1>, vector<256x4xbf16>
    %c0_20 = arith.constant 0 : index
    %c0_21 = arith.constant 0 : index
    %42 = vector.load %arg16[%c0_20, %c0_21] : memref<256x36xbf16, #tpu.memory_space<vmem>>, vector<256x4xbf16>
    tpu.vector_store %arg16[%c0_20, %c0_21], %41 {strides = array<i32>} : memref<256x36xbf16, #tpu.memory_space<vmem>>, vector<256x4xbf16>,
    %c16 = arith.constant 16 : index
    %c0_22 = arith.constant 0 : index
    %43 = vector.load %arg15[%c16, %c0_22] : memref<320x4xbf16, #tpu.memory_space<vmem>>, vector<256x4xbf16>
    %c0_23 = arith.constant 0 : index
    %c4 = arith.constant 4 : index
    %44 = vector.load %arg16[%c0_23, %c4] : memref<256x36xbf16, #tpu.memory_space<vmem>>, vector<256x4xbf16>
    tpu.vector_store %arg16[%c0_23, %c4], %43 {strides = array<i32>} : memref<256x36xbf16, #tpu.memory_space<vmem>>, vector<256x4xbf16>,
    %c17 = arith.constant 17 : index
    %c0_24 = arith.constant 0 : index
    %45 = vector.load %arg15[%c17, %c0_24] : memref<320x4xbf16, #tpu.memory_space<vmem>>, vector<256x4xbf16>
    %c15_i32 = arith.constant 15 : i32
    %46 = vector.broadcast %c15_i32 : i32 to vector<256x1xi32>
    %47 = arith.cmpi slt, %33, %46 : vector<256x1xi32>
    %cst_25 = arith.constant 0.000000e+00 : f32
    %48 = arith.truncf %cst_25 : f32 to bf16
    %49 = vector.shape_cast %47 : vector<256x1xi1> to vector<256x1xi1>
    %50 = vector.broadcast %49 : vector<256x1xi1> to vector<256x4xi1>
    %51 = vector.broadcast %48 : bf16 to vector<256x4xbf16>
    %52 = arith.select %50, %45, %51 : vector<256x4xi1>, vector<256x4xbf16>
    %c0_26 = arith.constant 0 : index
    %c8 = arith.constant 8 : index
    %53 = vector.load %arg16[%c0_26, %c8] : memref<256x36xbf16, #tpu.memory_space<vmem>>, vector<256x4xbf16>
    tpu.vector_store %arg16[%c0_26, %c8], %52 {strides = array<i32>} : memref<256x36xbf16, #tpu.memory_space<vmem>>, vector<256x4xbf16>,
    %c31 = arith.constant 31 : index
    %c0_27 = arith.constant 0 : index
    %54 = vector.load %arg15[%c31, %c0_27] : memref<320x4xbf16, #tpu.memory_space<vmem>>, vector<256x4xbf16>
    %c0_i32_28 = arith.constant 0 : i32
    %55 = vector.broadcast %c0_i32_28 : i32 to vector<256x1xi32>
    %56 = arith.cmpi sgt, %33, %55 : vector<256x1xi32>
    %cst_29 = arith.constant 0.000000e+00 : f32
    %57 = arith.truncf %cst_29 : f32 to bf16
    %58 = vector.shape_cast %56 : vector<256x1xi1> to vector<256x1xi1>
    %59 = vector.broadcast %58 : vector<256x1xi1> to vector<256x4xi1>
    %60 = vector.broadcast %57 : bf16 to vector<256x4xbf16>
    %61 = arith.select %59, %54, %60 : vector<256x4xi1>, vector<256x4xbf16>
    %c0_30 = arith.constant 0 : index
    %c12 = arith.constant 12 : index
    %62 = vector.load %arg16[%c0_30, %c12] : memref<256x36xbf16, #tpu.memory_space<vmem>>, vector<256x4xbf16>
    tpu.vector_store %arg16[%c0_30, %c12], %61 {strides = array<i32>} : memref<256x36xbf16, #tpu.memory_space<vmem>>, vector<256x4xbf16>,
    %c32_31 = arith.constant 32 : index
    %c0_32 = arith.constant 0 : index
    %63 = vector.load %arg15[%c32_31, %c0_32] : memref<320x4xbf16, #tpu.memory_space<vmem>>, vector<256x4xbf16>
    %c0_33 = arith.constant 0 : index
    %c16_34 = arith.constant 16 : index
    %64 = vector.load %arg16[%c0_33, %c16_34] : memref<256x36xbf16, #tpu.memory_space<vmem>>, vector<256x4xbf16>
    tpu.vector_store %arg16[%c0_33, %c16_34], %63 {strides = array<i32>} : memref<256x36xbf16, #tpu.memory_space<vmem>>, vector<256x4xbf16>,
    %c33 = arith.constant 33 : index
    %c0_35 = arith.constant 0 : index
    %65 = vector.load %arg15[%c33, %c0_35] : memref<320x4xbf16, #tpu.memory_space<vmem>>, vector<256x4xbf16>
    %c15_i32_36 = arith.constant 15 : i32
    %66 = vector.broadcast %c15_i32_36 : i32 to vector<256x1xi32>
    %67 = arith.cmpi slt, %33, %66 : vector<256x1xi32>
    %cst_37 = arith.constant 0.000000e+00 : f32
    %68 = arith.truncf %cst_37 : f32 to bf16
    %69 = vector.shape_cast %67 : vector<256x1xi1> to vector<256x1xi1>
    %70 = vector.broadcast %69 : vector<256x1xi1> to vector<256x4xi1>
    %71 = vector.broadcast %68 : bf16 to vector<256x4xbf16>
    %72 = arith.select %70, %65, %71 : vector<256x4xi1>, vector<256x4xbf16>
    %c0_38 = arith.constant 0 : index
    %c20 = arith.constant 20 : index
    %73 = vector.load %arg16[%c0_38, %c20] : memref<256x36xbf16, #tpu.memory_space<vmem>>, vector<256x4xbf16>
    tpu.vector_store %arg16[%c0_38, %c20], %72 {strides = array<i32>} : memref<256x36xbf16, #tpu.memory_space<vmem>>, vector<256x4xbf16>,
    %c47 = arith.constant 47 : index
    %c0_39 = arith.constant 0 : index
    %74 = vector.load %arg15[%c47, %c0_39] : memref<320x4xbf16, #tpu.memory_space<vmem>>, vector<256x4xbf16>
    %c0_i32_40 = arith.constant 0 : i32
    %75 = vector.broadcast %c0_i32_40 : i32 to vector<256x1xi32>
    %76 = arith.cmpi sgt, %33, %75 : vector<256x1xi32>
    %cst_41 = arith.constant 0.000000e+00 : f32
    %77 = arith.truncf %cst_41 : f32 to bf16
    %78 = vector.shape_cast %76 : vector<256x1xi1> to vector<256x1xi1>
    %79 = vector.broadcast %78 : vector<256x1xi1> to vector<256x4xi1>
    %80 = vector.broadcast %77 : bf16 to vector<256x4xbf16>
    %81 = arith.select %79, %74, %80 : vector<256x4xi1>, vector<256x4xbf16>
    %c0_42 = arith.constant 0 : index
    %c24 = arith.constant 24 : index
    %82 = vector.load %arg16[%c0_42, %c24] : memref<256x36xbf16, #tpu.memory_space<vmem>>, vector<256x4xbf16>
    tpu.vector_store %arg16[%c0_42, %c24], %81 {strides = array<i32>} : memref<256x36xbf16, #tpu.memory_space<vmem>>, vector<256x4xbf16>,
    %c48 = arith.constant 48 : index
    %c0_43 = arith.constant 0 : index
    %83 = vector.load %arg15[%c48, %c0_43] : memref<320x4xbf16, #tpu.memory_space<vmem>>, vector<256x4xbf16>
    %c0_44 = arith.constant 0 : index
    %c28 = arith.constant 28 : index
    %84 = vector.load %arg16[%c0_44, %c28] : memref<256x36xbf16, #tpu.memory_space<vmem>>, vector<256x4xbf16>
    tpu.vector_store %arg16[%c0_44, %c28], %83 {strides = array<i32>} : memref<256x36xbf16, #tpu.memory_space<vmem>>, vector<256x4xbf16>,
    %c49 = arith.constant 49 : index
    %c0_45 = arith.constant 0 : index
    %85 = vector.load %arg15[%c49, %c0_45] : memref<320x4xbf16, #tpu.memory_space<vmem>>, vector<256x4xbf16>
    %c15_i32_46 = arith.constant 15 : i32
    %86 = vector.broadcast %c15_i32_46 : i32 to vector<256x1xi32>
    %87 = arith.cmpi slt, %33, %86 : vector<256x1xi32>
    %cst_47 = arith.constant 0.000000e+00 : f32
    %88 = arith.truncf %cst_47 : f32 to bf16
    %89 = vector.shape_cast %87 : vector<256x1xi1> to vector<256x1xi1>
    %90 = vector.broadcast %89 : vector<256x1xi1> to vector<256x4xi1>
    %91 = vector.broadcast %88 : bf16 to vector<256x4xbf16>
    %92 = arith.select %90, %85, %91 : vector<256x4xi1>, vector<256x4xbf16>
    %c0_48 = arith.constant 0 : index
    %c32_49 = arith.constant 32 : index
    %93 = vector.load %arg16[%c0_48, %c32_49] : memref<256x36xbf16, #tpu.memory_space<vmem>>, vector<256x4xbf16>
    tpu.vector_store %arg16[%c0_48, %c32_49], %92 {strides = array<i32>} : memref<256x36xbf16, #tpu.memory_space<vmem>>, vector<256x4xbf16>,
    %c0_50 = arith.constant 0 : index
    %c0_51 = arith.constant 0 : index
    %94 = vector.load %arg16[%c0_50, %c0_51] : memref<256x36xbf16, #tpu.memory_space<vmem>>, vector<256x36xbf16>
    %c0_52 = arith.constant 0 : index
    %c0_53 = arith.constant 0 : index
    %95 = vector.load %arg5[%c0_52, %c0_53] : memref<36x4xbf16, #tpu.memory_space<vmem>>, vector<36x4xbf16>
    %cst_54 = arith.constant dense<0.000000e+00> : vector<256x4xf32>
    %96 = tpu.matmul %94, %95, %cst_54 {dimension_numbers = #tpu.dot_dimension_numbers<[1], [0], [0], [1], [0, 0, 1, 1], [], []>} : vector<256x36xbf16>, vector<36x4xbf16>, vector<256x4xf32> -> vector<256x4xf32>
    %c0_55 = arith.constant 0 : index
    %c0_56 = arith.constant 0 : index
    %97 = vector.load %arg6[%c0_55, %c0_56] : memref<1x4xf32, #tpu.memory_space<vmem>>, vector<1x4xf32>
    %98 = vector.broadcast %97 : vector<1x4xf32> to vector<256x4xf32>
    %99 = arith.mulf %96, %98 : vector<256x4xf32>
    %c0_57 = arith.constant 0 : index
    %c0_58 = arith.constant 0 : index
    %100 = vector.load %arg7[%c0_57, %c0_58] : memref<1x4xf32, #tpu.memory_space<vmem>>, vector<1x4xf32>
    %101 = vector.broadcast %100 : vector<1x4xf32> to vector<256x4xf32>
    %102 = arith.addf %99, %101 : vector<256x4xf32>
    %cst_59 = arith.constant 0.000000e+00 : f32
    %103 = vector.broadcast %cst_59 : f32 to vector<256x4xf32>
    %104 = arith.maximumf %102, %103 : vector<256x4xf32>
    %c0_60 = arith.constant 0 : index
    %c0_61 = arith.constant 0 : index
    %105 = vector.load %arg17[%c0_60, %c0_61] : memref<256x4xf32, #tpu.memory_space<vmem>>, vector<256x4xf32>
    tpu.vector_store %arg17[%c0_60, %c0_61], %104 {strides = array<i32>} : memref<256x4xf32, #tpu.memory_space<vmem>>, vector<256x4xf32>,
    %c0_62 = arith.constant 0 : index
    %c0_63 = arith.constant 0 : index
    %106 = tpu.strided_load %arg17[%c0_62, %c0_63] {strides = array<i32: 2, 1>} : memref<256x4xf32, #tpu.memory_space<vmem>>, vector<128x4xf32>
    %c1 = arith.constant 1 : index
    %c0_64 = arith.constant 0 : index
    %107 = tpu.strided_load %arg17[%c1, %c0_64] {strides = array<i32: 2, 1>} : memref<256x4xf32, #tpu.memory_space<vmem>>, vector<128x4xf32>
    %108 = arith.addf %106, %107 : vector<128x4xf32>
    %109 = vector.shape_cast %108 : vector<128x4xf32> to vector<8x16x4xf32>
    %110 = vector.extract_strided_slice %109 {offsets = [0, 0, 0], sizes = [8, 8, 4], strides = [1, 1, 1]} : vector<8x16x4xf32> to vector<8x8x4xf32>
    %111 = vector.extract_strided_slice %109 {offsets = [0, 8, 0], sizes = [8, 8, 4], strides = [1, 1, 1]} : vector<8x16x4xf32> to vector<8x8x4xf32>
    %112 = arith.addf %110, %111 : vector<8x8x4xf32>
    %113 = vector.shape_cast %112 : vector<8x8x4xf32> to vector<64x4xf32>
    %cst_65 = arith.constant 2.500000e-01 : f32
    %114 = vector.broadcast %cst_65 : f32 to vector<64x4xf32>
    %115 = arith.mulf %113, %114 : vector<64x4xf32>
    %116 = arith.truncf %115 : vector<64x4xf32> to vector<64x4xbf16>
    %c0_66 = arith.constant 0 : index
    %c0_67 = arith.constant 0 : index
    %117 = vector.load %arg8[%c0_66, %c0_67] : memref<4x16xbf16, #tpu.memory_space<vmem>>, vector<4x16xbf16>
    %cst_68 = arith.constant dense<0.000000e+00> : vector<64x16xf32>
    %118 = tpu.matmul %116, %117, %cst_68 {dimension_numbers = #tpu.dot_dimension_numbers<[1], [0], [0], [1], [0, 0, 1, 1], [], []>} : vector<64x4xbf16>, vector<4x16xbf16>, vector<64x16xf32> -> vector<64x16xf32>
    %c0_69 = arith.constant 0 : index
    %c0_70 = arith.constant 0 : index
    %119 = vector.load %arg9[%c0_69, %c0_70] : memref<1x16xf32, #tpu.memory_space<vmem>>, vector<1x16xf32>
    %120 = vector.broadcast %119 : vector<1x16xf32> to vector<64x16xf32>
    %121 = arith.mulf %118, %120 : vector<64x16xf32>
    %c0_71 = arith.constant 0 : index
    %c0_72 = arith.constant 0 : index
    %122 = vector.load %arg10[%c0_71, %c0_72] : memref<1x16xf32, #tpu.memory_space<vmem>>, vector<1x16xf32>
    %123 = vector.broadcast %122 : vector<1x16xf32> to vector<64x16xf32>
    %124 = arith.addf %121, %123 : vector<64x16xf32>
    %125 = arith.extf %1 : vector<256x4xbf16> to vector<256x4xf32>
    %c0_73 = arith.constant 0 : index
    %c0_74 = arith.constant 0 : index
    %126 = vector.load %arg18[%c0_73, %c0_74] : memref<256x4xf32, #tpu.memory_space<vmem>>, vector<256x4xf32>
    tpu.vector_store %arg18[%c0_73, %c0_74], %125 {strides = array<i32>} : memref<256x4xf32, #tpu.memory_space<vmem>>, vector<256x4xf32>,
    %c0_75 = arith.constant 0 : index
    %c0_76 = arith.constant 0 : index
    %127 = tpu.strided_load %arg18[%c0_75, %c0_76] {strides = array<i32: 2, 1>} : memref<256x4xf32, #tpu.memory_space<vmem>>, vector<128x4xf32>
    %c1_77 = arith.constant 1 : index
    %c0_78 = arith.constant 0 : index
    %128 = tpu.strided_load %arg18[%c1_77, %c0_78] {strides = array<i32: 2, 1>} : memref<256x4xf32, #tpu.memory_space<vmem>>, vector<128x4xf32>
    %129 = arith.addf %127, %128 : vector<128x4xf32>
    %130 = vector.shape_cast %129 : vector<128x4xf32> to vector<8x16x4xf32>
    %131 = vector.extract_strided_slice %130 {offsets = [0, 0, 0], sizes = [8, 8, 4], strides = [1, 1, 1]} : vector<8x16x4xf32> to vector<8x8x4xf32>
    %132 = vector.extract_strided_slice %130 {offsets = [0, 8, 0], sizes = [8, 8, 4], strides = [1, 1, 1]} : vector<8x16x4xf32> to vector<8x8x4xf32>
    %133 = arith.addf %131, %132 : vector<8x8x4xf32>
    %134 = vector.shape_cast %133 : vector<8x8x4xf32> to vector<64x4xf32>
    %cst_79 = arith.constant 2.500000e-01 : f32
    %135 = vector.broadcast %cst_79 : f32 to vector<64x4xf32>
    %136 = arith.mulf %134, %135 : vector<64x4xf32>
    %137 = arith.truncf %136 : vector<64x4xf32> to vector<64x4xbf16>
    %c0_80 = arith.constant 0 : index
    %c0_81 = arith.constant 0 : index
    %138 = vector.load %arg11[%c0_80, %c0_81] : memref<4x16xbf16, #tpu.memory_space<vmem>>, vector<4x16xbf16>
    %cst_82 = arith.constant dense<0.000000e+00> : vector<64x16xf32>
    %139 = tpu.matmul %137, %138, %cst_82 {dimension_numbers = #tpu.dot_dimension_numbers<[1], [0], [0], [1], [0, 0, 1, 1], [], []>} : vector<64x4xbf16>, vector<4x16xbf16>, vector<64x16xf32> -> vector<64x16xf32>
    %c0_83 = arith.constant 0 : index
    %c0_84 = arith.constant 0 : index
    %140 = vector.load %arg12[%c0_83, %c0_84] : memref<1x16xf32, #tpu.memory_space<vmem>>, vector<1x16xf32>
    %141 = vector.broadcast %140 : vector<1x16xf32> to vector<64x16xf32>
    %142 = arith.mulf %139, %141 : vector<64x16xf32>
    %c0_85 = arith.constant 0 : index
    %c0_86 = arith.constant 0 : index
    %143 = vector.load %arg13[%c0_85, %c0_86] : memref<1x16xf32, #tpu.memory_space<vmem>>, vector<1x16xf32>
    %144 = vector.broadcast %143 : vector<1x16xf32> to vector<64x16xf32>
    %145 = arith.addf %142, %144 : vector<64x16xf32>
    %146 = arith.addf %124, %145 : vector<64x16xf32>
    %cst_87 = arith.constant 0.000000e+00 : f32
    %147 = vector.broadcast %cst_87 : f32 to vector<64x16xf32>
    %148 = arith.maximumf %146, %147 : vector<64x16xf32>
    %c0_88 = arith.constant 0 : index
    %c0_89 = arith.constant 0 : index
    %c0_90 = arith.constant 0 : index
    %149 = vector.load %arg14[%c0_88, %c0_89, %c0_90] : memref<1x64x16xf32, #tpu.memory_space<vmem>>, vector<1x64x16xf32>
    %150 = vector.shape_cast %149 : vector<1x64x16xf32> to vector<64x16xf32>
    %151 = vector.shape_cast %148 : vector<64x16xf32> to vector<1x64x16xf32>
    tpu.vector_store %arg14[%c0_88, %c0_89, %c0_90], %151 {strides = array<i32>} : memref<1x64x16xf32, #tpu.memory_space<vmem>>, vector<1x64x16xf32>,
    return
  }
  func.func @transform_0(%arg0: i32) -> (i32, i32, i32) {
    %c0_i32 = arith.constant 0 : i32
    %c0_i32_0 = arith.constant 0 : i32
    %c0_i32_1 = arith.constant 0 : i32
    return %arg0, %c0_i32, %c0_i32_0 : i32, i32, i32
  }
  func.func @transform_1(%arg0: i32) -> (i32, i32) {
    %c0_i32 = arith.constant 0 : i32
    %c0_i32_0 = arith.constant 0 : i32
    %c0_i32_1 = arith.constant 0 : i32
    return %c0_i32, %c0_i32_0 : i32, i32
  }
  func.func @transform_2(%arg0: i32) -> (i32, i32) {
    %c0_i32 = arith.constant 0 : i32
    %c0_i32_0 = arith.constant 0 : i32
    %c0_i32_1 = arith.constant 0 : i32
    return %c0_i32, %c0_i32_0 : i32, i32
  }
  func.func @transform_3(%arg0: i32) -> (i32, i32) {
    %c0_i32 = arith.constant 0 : i32
    %c0_i32_0 = arith.constant 0 : i32
    %c0_i32_1 = arith.constant 0 : i32
    return %c0_i32, %c0_i32_0 : i32, i32
  }
  func.func @transform_4(%arg0: i32) -> (i32, i32) {
    %c0_i32 = arith.constant 0 : i32
    %c0_i32_0 = arith.constant 0 : i32
    %c0_i32_1 = arith.constant 0 : i32
    return %c0_i32, %c0_i32_0 : i32, i32
  }
  func.func @transform_5(%arg0: i32) -> (i32, i32) {
    %c0_i32 = arith.constant 0 : i32
    %c0_i32_0 = arith.constant 0 : i32
    %c0_i32_1 = arith.constant 0 : i32
    return %c0_i32, %c0_i32_0 : i32, i32
  }
  func.func @transform_6(%arg0: i32) -> (i32, i32) {
    %c0_i32 = arith.constant 0 : i32
    %c0_i32_0 = arith.constant 0 : i32
    %c0_i32_1 = arith.constant 0 : i32
    return %c0_i32, %c0_i32_0 : i32, i32
  }
  func.func @transform_7(%arg0: i32) -> (i32, i32) {
    %c0_i32 = arith.constant 0 : i32
    %c0_i32_0 = arith.constant 0 : i32
    %c0_i32_1 = arith.constant 0 : i32
    return %c0_i32, %c0_i32_0 : i32, i32
  }
  func.func @transform_8(%arg0: i32) -> (i32, i32) {
    %c0_i32 = arith.constant 0 : i32
    %c0_i32_0 = arith.constant 0 : i32
    %c0_i32_1 = arith.constant 0 : i32
    return %c0_i32, %c0_i32_0 : i32, i32
  }
  func.func @transform_9(%arg0: i32) -> (i32, i32) {
    %c0_i32 = arith.constant 0 : i32
    %c0_i32_0 = arith.constant 0 : i32
    %c0_i32_1 = arith.constant 0 : i32
    return %c0_i32, %c0_i32_0 : i32, i32
  }
  func.func @transform_10(%arg0: i32) -> (i32, i32) {
    %c0_i32 = arith.constant 0 : i32
    %c0_i32_0 = arith.constant 0 : i32
    %c0_i32_1 = arith.constant 0 : i32
    return %c0_i32, %c0_i32_0 : i32, i32
  }
  func.func @transform_11(%arg0: i32) -> (i32, i32) {
    %c0_i32 = arith.constant 0 : i32
    %c0_i32_0 = arith.constant 0 : i32
    %c0_i32_1 = arith.constant 0 : i32
    return %c0_i32, %c0_i32_0 : i32, i32
  }
  func.func @transform_12(%arg0: i32) -> (i32, i32) {
    %c0_i32 = arith.constant 0 : i32
    %c0_i32_0 = arith.constant 0 : i32
    %c0_i32_1 = arith.constant 0 : i32
    return %c0_i32, %c0_i32_0 : i32, i32
  }
  func.func @transform_13(%arg0: i32) -> (i32, i32, i32) {
    %c0_i32 = arith.constant 0 : i32
    %c0_i32_0 = arith.constant 0 : i32
    %c0_i32_1 = arith.constant 0 : i32
    return %arg0, %c0_i32, %c0_i32_0 : i32, i32, i32
  }
}

</mosaic_0001>

<bundles_post_ra>
// kernel: tpu_custom_call.1
= control target key start
LH: loop header
LB: loop body
LE: loop exit
PB: predicated region body
PF: predicated region fallthrough
CT: control target
= control target key end

     0   :  { %s7519_s25 = smov 0   ;;  %s12178_s0 = inlined_call_operand.vmem [shape: bf16[2,256,4], index: 0, kind: input, shape index: {}]   ;;  %s12179_s1 = inlined_call_operand.vmem [shape: bf16[4,4], index: 1, kind: input, shape index: {}]   ;;  %s12180_s2 = inlined_call_operand.vmem [shape: f32[1,4], index: 2, kind: input, shape index: {}]   ;;  %s12181_s3 = inlined_call_operand.vmem [shape: f32[1,4], index: 3, kind: input, shape index: {}]   ;;  %s12182_s4 = inlined_call_operand.vmem [shape: bf16[36,4], index: 4, kind: input, shape index: {}]   ;;  %s12183_s5 = inlined_call_operand.vmem [shape: f32[1,4], index: 5, kind: input, shape index: {}]   ;;  %s12184_s6 = inlined_call_operand.vmem [shape: f32[1,4], index: 6, kind: input, shape index: {}]   ;;  %s12185_s7 = inlined_call_operand.vmem [shape: bf16[4,16], index: 7, kind: input, shape index: {}]   ;;  %s12186_s8 = inlined_call_operand.vmem [shape: f32[1,16], index: 8, kind: input, shape index: {}]   ;;  %s12187_s9 = inlined_call_operand.vmem [shape: f32[1,16], index: 9, kind: input, shape index: {}]   ;;  %s12188_s10 = inlined_call_operand.vmem [shape: bf16[4,16], index: 10, kind: input, shape index: {}]   ;;  %s12189_s11 = inlined_call_operand.vmem [shape: f32[1,16], index: 11, kind: input, shape index: {}]   ;;  %s12190_s12 = inlined_call_operand.vmem [shape: f32[1,16], index: 12, kind: input, shape index: {}]   ;;  %s12191_s13 = inlined_call_operand.vmem [shape: f32[2,64,16], index: 13, kind: output, shape index: {}]  }
   0x1 LB: > { %s7048_s26 = sadd.s32 4294967295, %s7437_s25   ;;  %p7052_p0 = scmp.ge.s32.totalorder %s7437_s25, 1  ;;  %s7437_s25 = sphi %s7519_s25, %s23_s25  }
   0x2   : > { %p387_p1 = scmp.lt.s32.totalorder %s7437_s25, 3 }
   0x4   : > { %p388_p2 = pnand %p7052_p0, %p387_p1 }
   0x6   : > { %391 = sbr.rel (%p388_p2) target bundleno = 1319 (0x527), region = 72 }
   0xb   : > { %v476_v0 = vld [vmem:[%s12179_s1] sm:$0x3]  ;;  %vm12194_vm0 = vcmask 1041408   ;;  %p431_p3 = scmp.lt.s32.totalorder %s7048_s26, 1  ;;  %vm12195_vm1 = vcmask 31744   ;;  %v1050_v32 = vlaneseq  ;;  %vm12230_vm2 = vcmask 27648  }
   0xc   : > { %7349 = vmatprep.subr.msk.bf16.mxu0 %vm12194_vm0, %v476_v0  ;;  %v608_v1 = vsel %vm12194_vm0, %v476_v0, 0  ;;  %vm7439_vm3 = vmmov 1   ;;  %v12197_v36 = vmov 0   ;;  %vm2048_vm8 = vsmask.f32 256  ;;  %s7441_s16 = smov 4  }
   0xd   : > { %7258 = vmatpush3.bf16.msra.mxu0 %v608_v1  ;;  %s12846_s26 = smov (!%p431_p3, %s7048_s26), 1  ;;  %v7580_v33 = vshrl.u32 %v1050_v32, 7  ;;  %vm1597_vm4 = vmpackc.low %vm7439_vm3, %vm7439_vm3  ;;  %884 = vst.msk [vmem:[#allocation2 + $0x8] sm:$0xf] %vm12230_vm2, %v12197_v36  ;;  %vm2049_vm9 = vsmask.f32 4368 }
   0xe   : > { %s7177_s29 = sshll.u32 %s12846_s26, 7  ;;  %883 = vst.msk [vmem:[#allocation2 + $0x4] sm:$0xf] %vm12230_vm2, %v12197_v36  ;;  %885 = vst.msk [vmem:[#allocation2 + $0xc] sm:$0xf] %vm12230_vm2, %v12197_v36  ;;  %v7596_v37 = vsel %vm1597_vm4, 65537, %v12197_v36 }
   0xf   : > { %s7538_s15 = scalar_lea.vmem %s12178_s0, %s7177_s29  ;;  %12245 = vst [vmem:[#allocation6_spill] sm:$0xff] %v7580_v33  ;;  %v1052_v34 = vadd.s32 8, %v7580_v33  ;;  %886 = vst.msk [vmem:[#allocation2 + $0x90] sm:$0xf] %vm12230_vm2, %v12197_v36  ;;  %v1677_v38 = vshrl.u32 %v7596_v37, 16  ;;  %v1673_v39 = vshll.u32 %v7596_v37, 16 }
  0x10   : > { %v444_v2 = vld [vmem:[%s7538_s15] sm:$0xff]   ;;  %v446_v3 = vld [vmem:[%s7538_s15 + $0x8] sm:$0xff]   ;;  %v448_v4 = vld [vmem:[%s7538_s15 + $0x10] sm:$0xff]   ;;  %887 = vst.msk [vmem:[#allocation2 + $0x94] sm:$0xf] %vm12230_vm2, %v12197_v36  ;;  %s7442_s17 = smov 8  }
  0x11   : > { %v6694_v5 = vunpack.c.l.bf16 %v444_v2  ;;  %v6695_v6 = vunpack.c.h.bf16 %v444_v2  ;;  %v6696_v7 = vunpack.c.l.bf16 %v446_v3  ;;  %v6697_v8 = vunpack.c.h.bf16 %v446_v3  ;;  %v450_v10 = vld [vmem:[%s7538_s15 + $0x18] sm:$0xff]   ;;  %7259 = vmatprep.mubr.msk.bf16.mxu0 %vm12195_vm1, %v444_v2  ;;  %v452_v14 = vld [vmem:[%s7538_s15 + $0x20] sm:$0xff]   ;;  %v454_v17 = vld [vmem:[%s7538_s15 + $0x28] sm:$0xff]   ;;  %888 = vst.msk [vmem:[#allocation2 + $0x98] sm:$0xf] %vm12230_vm2, %v12197_v36  ;;  %s7443_s22 = smov 16  }
  0x12   : > { %v6698_v9 = vunpack.c.l.bf16 %v448_v4  ;;  %v6699_v11 = vunpack.c.h.bf16 %v448_v4  ;;  %v6700_v12 = vunpack.c.l.bf16 %v450_v10  ;;  %v6701_v13 = vunpack.c.h.bf16 %v450_v10  ;;  %7260 = vmatmul.mubr.msk.bf16.vlgmr.msra.gmra.mxu0 %vm12195_vm1, %v446_v3  ;;  %v456_v18 = vld [vmem:[%s7538_s15 + $0x30] sm:$0xff]   ;;  %v458_v22 = vld [vmem:[%s7538_s15 + $0x38] sm:$0xff]   ;;  %v460_v26 = vld [vmem:[%s7538_s15 + $0x40] sm:$0xff]   ;;  %s7444_s23 = smov 28   ;;  %s7445_s24 = smov 12  }
  0x13   : > { %6726 = vst.msk [vmem:[#allocation5] sm:$0xff] %vm12195_vm1, %v6694_v5  ;;  %6727 = vst.msk [vmem:[#allocation5 + $0x8] sm:$0xff] %vm12195_vm1, %v6695_v6  ;;  %v6702_v15 = vunpack.c.l.bf16 %v452_v14  ;;  %v6703_v16 = vunpack.c.h.bf16 %v452_v14  ;;  %7263 = vmatprep.mubr.msk.bf16.mxu0 %vm12195_vm1, %v448_v4  ;;  %v6704_v19 = vunpack.c.l.bf16 %v454_v17  ;;  %v6705_v20 = vunpack.c.h.bf16 %v454_v17  ;;  %v462_v29 = vld [vmem:[%s7538_s15 + $0x48] sm:$0xff]   ;;  %v464_v6 = vld [vmem:[%s7538_s15 + $0x50] sm:$0xff]   ;;  %s7446_s27 = smov 20   ;;  %s7447_s28 = smov 24  }
  0x14   : > { %6728 = vst.msk [vmem:[#allocation5 + $0x10] sm:$0xff] %vm12195_vm1, %v6696_v7  ;;  %6729 = vst.msk [vmem:[#allocation5 + $0x18] sm:$0xff] %vm12195_vm1, %v6697_v8  ;;  %v6706_v21 = vunpack.c.l.bf16 %v456_v18  ;;  %v6707_v23 = vunpack.c.h.bf16 %v456_v18  ;;  %v6708_v24 = vunpack.c.l.bf16 %v458_v22  ;;  %v6709_v25 = vunpack.c.h.bf16 %v458_v22  ;;  %v2600_v46 = vld [vmem:[#allocation2 + $0x8] sm:$0xf]  ;;  %s7448_s29 = smov 32  }
  0x15   : > { %6730 = vst.msk [vmem:[#allocation5 + $0x20] sm:$0xff] %vm12195_vm1, %v6698_v9  ;;  %6731 = vst.msk [vmem:[#allocation5 + $0x28] sm:$0xff] %vm12195_vm1, %v6699_v11  ;;  %v6710_v27 = vunpack.c.l.bf16 %v460_v26  ;;  %v6711_v28 = vunpack.c.h.bf16 %v460_v26  ;;  %v6712_v30 = vunpack.c.l.bf16 %v462_v29  ;;  %v6713_v31 = vunpack.c.h.bf16 %v462_v29  ;;  %v2407_v49 = vld [vmem:[#allocation2 + $0x8] sm:$0xf]  ;;  %v2601_v55 = vld [vmem:[#allocation2 + $0xc] sm:$0xf] }
  0x16   : > { %6732 = vst.msk [vmem:[#allocation5 + $0x30] sm:$0xff] %vm12195_vm1, %v6700_v12  ;;  %6733 = vst.msk [vmem:[#allocation5 + $0x38] sm:$0xff] %vm12195_vm1, %v6701_v13  ;;  %v1094_v35 = vand.u32 15, %v1052_v34  ;;  %v2796_v41 = vrot.slane %v1677_v38, 7  ;;  %2471 = vrot.lane.b32.xlu0 %v2407_v49, %s7441_s16  ;;  %v2408_v60 = vld [vmem:[#allocation2 + $0xc] sm:$0xf]  ;;  %v6714_v7 = vunpack.c.l.bf16 %v464_v6  ;;  %v6715_v8 = vunpack.c.h.bf16 %v464_v6 }
  0x17   : > { %6734 = vst.msk [vmem:[#allocation5 + $0x40] sm:$0xff] %vm12195_vm1, %v6702_v15  ;;  %6735 = vst.msk [vmem:[#allocation5 + $0x48] sm:$0xff] %vm12195_vm1, %v6703_v16  ;;  %vm1660_vm12 = vsmask.f32 3328  ;;  %vm1661_vm13 = vsmask.f32 7440 }
  0x18   : > { %6736 = vst.msk [vmem:[#allocation5 + $0x50] sm:$0xff] %vm12195_vm1, %v6704_v19  ;;  %6737 = vst.msk [vmem:[#allocation5 + $0x58] sm:$0xff] %vm12195_vm1, %v6705_v20  ;;  %vm2634_vm5 = vcmp.lt.s32.totalorder %v1094_v35, 15  ;;  %v7605_v43 = vor.u32 %v2796_v41, %v1673_v39  ;;  %v7610_v47 = vrot.slane %v2796_v41, 4  ;;  %v466_v9 = vld [vmem:[%s7538_s15 + $0x58] sm:$0xff]   ;;  %v1087_v12 = vand.u32 15, %v7580_v33 }
  0x19   : > { %6738 = vst.msk [vmem:[#allocation5 + $0x60] sm:$0xff] %vm12195_vm1, %v6706_v21  ;;  %6739 = vst.msk [vmem:[#allocation5 + $0x68] sm:$0xff] %vm12195_vm1, %v6707_v23  ;;  %v6717_v11 = vunpack.c.h.bf16 %v466_v9  ;;  %v1053_v13 = vadd.s32 16, %v7580_v33  ;;  %v468_v15 = vld [vmem:[%s7538_s15 + $0x60] sm:$0xff]   ;;  %v1679_v23 = vrot.slane %v1677_v38, 4  ;;  %v1055_v49 = vadd.s32 32, %v7580_v33 }
  0x1a   : > { %6740 = vst.msk [vmem:[#allocation5 + $0x70] sm:$0xff] %vm12195_vm1, %v6708_v24  ;;  %6741 = vst.msk [vmem:[#allocation5 + $0x78] sm:$0xff] %vm12195_vm1, %v6709_v25  ;;  %7264 = vmatmul.mubr.msk.bf16.gmra.mxu0 %vm12195_vm1, %v450_v10  ;;  %vm3080_vm7 = vcmp.ne.s16.totalorder %v7605_v43, 0  ;;  %2473 = vrot.lane.b32.xlu0 %v2408_v60, %s7441_s16  ;;  %v6716_v10 = vunpack.c.l.bf16 %v466_v9  ;;  %vm1500_vm15 = vcmp.gt.s32.totalorder %v1087_v12, 0  ;;  %v6718_v16 = vunpack.c.l.bf16 %v468_v15  ;;  %v7712_v12 = vld [vmem:[%s12180_s2] ss:$0 sm:$0xff] }
  0x1b   : > { %6742 = vst.msk [vmem:[#allocation5 + $0x80] sm:$0xff] %vm12195_vm1, %v6710_v27  ;;  %6743 = vst.msk [vmem:[#allocation5 + $0x88] sm:$0xff] %vm12195_vm1, %v6711_v28  ;;  %7267 = vmatprep.mubr.msk.bf16.mxu0 %vm12195_vm1, %v452_v14  ;;  %v3113_v51 = vsel %vm3080_vm7, %v2600_v46, 0  ;;  %v1101_v14 = vand.u32 15, %v1053_v13  ;;  %v1468_v46 = vld [vmem:[#allocation2 + $0x8] sm:$0xf] }
  0x1c   : > { %6744 = vst.msk [vmem:[#allocation5 + $0x90] sm:$0xff] %vm12195_vm1, %v6712_v30  ;;  %6745 = vst.msk [vmem:[#allocation5 + $0x98] sm:$0xff] %vm12195_vm1, %v6713_v31  ;;  %v3147_v53 = vshrl.u32 %v3113_v51, 16  ;;  %v3150_v54 = vshll.u32 %v3113_v51, 16 }
  0x1d   : > { %vm2730_vm6 = vmpackc.low %vm2634_vm5, %vm2634_vm5  ;;  %12246 = vst [vmem:[#allocation7_spill] sm:$0xff] %v7605_v43  ;;  %vm1502_vm4 = vcmp.gt.s32.totalorder %v1101_v14, 0  ;;  %v1057_v14 = vadd.s32 48, %v7580_v33 }
  0x1e   : > { %v2762_v40 = vsel %vm2730_vm6, 65537, %v12197_v36  ;;  %vm7613_vm10 = vmor %vm2048_vm8, %vm2049_vm9  ;;  %v3149_v58 = vrot.slane %v3147_v53, 4  ;;  %v3152_v59 = vrot.slane %v3150_v54, 5  ;;  %6746 = vst.msk [vmem:[#allocation5 + $0xa0] sm:$0xff] %vm12195_vm1, %v6714_v7  ;;  %v1054_v53 = vadd.s32 24, %v7580_v33 }
  0x1f   : > { %v2802_v42 = vshrl.u32 %v2762_v40, 16  ;;  %v2805_v45 = vshll.u32 %v2762_v40, 16  ;;  %vm7632_vm14 = vmor %vm1660_vm12, %vm1661_vm13  ;;  %6747 = vst.msk [vmem:[#allocation5 + $0xa8] sm:$0xff] %vm12195_vm1, %v6715_v8  ;;  %vm12193_vm12 = vcmask 60448  }
  0x20   : > { %v3153_v62 = vor.u32 %v3152_v59, %v3149_v58  ;;  %6748 = vst.msk [vmem:[#allocation5 + $0xb0] sm:$0xff] %vm12195_vm1, %v6716_v10  ;;  %6749 = vst.msk [vmem:[#allocation5 + $0xb8] sm:$0xff] %vm12195_vm1, %v6717_v11 }
  0x21   : > { %v7607_v44 = vrot.slane %v2802_v42, 7  ;;  %vm1596_vm3 = vmpackc.low %vm1500_vm15, %vm1500_vm15  ;;  %6750 = vst.msk [vmem:[#allocation5 + $0xc0] sm:$0xff] %vm12195_vm1, %v6718_v16  ;;  %vm12192_vm15 = vcmask 93248  }
  0x22   : > { %7268 = vmatmul.mubr.msk.bf16.gmra.mxu0 %vm12195_vm1, %v454_v17  ;;  %v3154_v1 = vrot.slane %v3153_v62, 4  ;;  %v6719_v17 = vunpack.c.h.bf16 %v468_v15  ;;  %v1628_v21 = vsel %vm1596_vm3, 65537, %v12197_v36  ;;  %vm1598_vm5 = vmpackc.low %vm1502_vm4, %vm1502_vm4 }
  0x23   : > { %7271 = vmatprep.mubr.msk.bf16.mxu0 %vm12195_vm1, %v456_v18  ;;  %v2807_v48 = vor.u32 %v2805_v45, %v7607_v44  ;;  %v470_v18 = vld [vmem:[%s7538_s15 + $0x68] sm:$0xff]   ;;  %v1664_v24 = vshll.u32 %v1628_v21, 16  ;;  %v1667_v25 = vshrl.u32 %v1628_v21, 16  ;;  %v1467_v45 = vld [vmem:[#allocation2 + $0x4] sm:$0x8] }
  0x24   : > { %6751 = vst.msk [vmem:[#allocation5 + $0xc8] sm:$0xff] %vm12195_vm1, %v6719_v17  ;;  %v6720_v19 = vunpack.c.l.bf16 %v470_v18  ;;  %v6721_v20 = vunpack.c.h.bf16 %v470_v18  ;;  %v7730_v17 = vld [vmem:[%s12181_s3] ss:$0 sm:$0xff] }
  0x25   : > { %v2808_v52 = vsel %vm7613_vm10, %v7610_v47, %v2807_v48  ;;  %v7671_v28 = vrot.slane %v1664_v24, 5  ;;  %12263 = vst [vmem:[#allocation10_spill] sm:$0xff] %v7730_v17  ;;  %v1129_v24 = vand.u32 15, %v1057_v14 }
  0x26   : > { %vm7623_vm11 = vcmp.ne.s16.totalorder %v2808_v52, 0  ;;  %6752 = vst.msk [vmem:[#allocation5 + $0xd0] sm:$0xff] %vm12195_vm1, %v6720_v19  ;;  %6753 = vst.msk [vmem:[#allocation5 + $0xd8] sm:$0xff] %vm12195_vm1, %v6721_v20 }
  0x27   : > { %v3114_v57 = vsel %vm7623_vm11, %v2601_v55, 0  ;;  %vm1982_vm9 = vcmp.ne.s16.totalorder %v7671_v28, 0 }
  0x28   : > { %v3156_v61 = vshll.u32 %v3114_v57, 16  ;;  %v3160_v3 = vshrl.u32 %v3114_v57, 16  ;;  %v2015_v51 = vsel %vm1982_vm9, %v1467_v45, 0 }
  0x29   : > { %v2052_v55 = vshrl.u32 %v2015_v51, 16 }
  0x2a   : > { %7272 = vmatmul.mubr.msk.bf16.gmra.mxu0 %vm12195_vm1, %v458_v22  ;;  %v7630_v63 = vrot.slane %v3156_v61, 5  ;;  %v7640_v4 = vrot.slane %v3160_v3, 4  ;;  %v7665_v22 = vrot.slane %v1673_v39, 5  ;;  %v1469_v39 = vld [vmem:[#allocation2 + $0xc] sm:$0xf] }
  0x2b   : > { %7275 = vmatprep.mubr.msk.bf16.mxu0 %vm12195_vm1, %v460_v26  ;;  %v1630_v26 = vsel %vm1598_vm5, 65537, %v12197_v36  ;;  %v7123_v59 = vrot.slane %v2052_v55, 11 }
  0x2c   : > { %v3159_v2 = vsel %vm7632_vm14, %v3154_v1, %v7630_v63  ;;  %v3163_v5 = vor.u32 %v7640_v4, %v7630_v63  ;;  %12253 = vst [vmem:[#allocation8_spill] sm:$0xff] %v7665_v22  ;;  %v1680_v27 = vor.u32 %v1679_v23, %v7665_v22  ;;  %v1683_v30 = vshll.u32 %v1630_v26, 16 }
  0x2d   : > { %3470 = vrot.lane.b32.xlu0 %v3159_v2, %s7442_s17  ;;  %v1115_v1 = vand.u32 15, %v1055_v49  ;;  %v1108_v2 = vand.u32 15, %v1054_v53  ;;  %v1056_v23 = vadd.s32 40, %v7580_v33 }
  0x2e   : > { %v7673_v31 = vrot.slane %v1680_v27, 4  ;;  %v7676_v34 = vrot.slane %v1683_v30, 5 }
  0x2f   : > { %vm7714_vm13 = vcmp.gt.s32.totalorder %v1115_v1, 0  ;;  %vm7721_vm3 = vcmp.lt.s32.totalorder %v1108_v2, 15  ;;  %v1122_v45 = vand.u32 15, %v1056_v23 }
  0x30   : > { %12254 = vst [vmem:[#allocation9_spill] sm:$0xff] %v7673_v31  ;;  %v1686_v35 = vsel %vm7632_vm14, %v7673_v31, %v7676_v34  ;;  %vm1600_vm4 = vmpackc.low %vm7714_vm13, %vm7714_vm13  ;;  %vm7753_vm13 = vcmp.gt.s32.totalorder %v1129_v24, 0  ;;  %v7802_v24 = vrot.slane %v3163_v5, 4 }
  0x31   : > { %vm7682_vm6 = vcmp.ne.s16.totalorder %v1686_v35, 0  ;;  %vm2732_vm5 = vmpackc.low %vm7721_vm3, %vm7721_vm3  ;;  %v7745_v30 = vsel %vm1600_vm4, 65537, %v12197_v36  ;;  %vm7775_vm4 = vcmp.lt.s32.totalorder %v1122_v45, 15 }
  0x32   : > { %7276 = vmatmul.mubr.msk.bf16.gmra.mxu0 %vm12195_vm1, %v462_v29  ;;  %v1669_v29 = vrot.slane %v1667_v25, 4  ;;  %v2017_v41 = vsel %vm7682_vm6, %v1469_v39, 0  ;;  %vm1602_vm3 = vmpackc.low %vm7753_vm13, %vm7753_vm13  ;;  %v1707_v1 = vshrl.u32 %v7745_v30, 16 }
  0x33   : > { %7279 = vmatprep.mubr.msk.bf16.mxu0 %vm12195_vm1, %v464_v6  ;;  %v2066_v48 = vshrl.u32 %v2017_v41, 16  ;;  %v2069_v62 = vshll.u32 %v2017_v41, 16  ;;  %vm2734_vm13 = vmpackc.low %vm7775_vm4, %vm7775_vm4 }
  0x34   : > { %v1670_v32 = vor.u32 %v1669_v29, %v7671_v28  ;;  %v2809_v29 = vrot.slane %v7607_v44, 4  ;;  %v7812_v4 = vsel %vm2734_vm13, 65537, %v12197_v36 }
  0x35   : > { %v7702_v61 = vrot.slane %v2066_v48, 7 }
  0x36   : > { %v1671_v37 = vrot.slane %v1670_v32, 4 }
  0x37   : > { %v2071_v6 = vor.u32 %v2069_v62, %v7702_v61 }
  0x38   : > { %v1676_v40 = vsel %vm7632_vm14, %v1671_v37, %v7665_v22 }
  0x39   : > { %vm7691_vm8 = vcmp.ne.s16.totalorder %v1676_v40, 0  ;;  %v7751_v40 = vsel %vm2732_vm5, 65537, %v12197_v36 }
  0x3a   : > { %7280 = vmatmul.mubr.msk.bf16.gmra.mxu0 %vm12195_vm1, %v466_v9  ;;  %v2016_v52 = vsel %vm7691_vm8, %v1468_v46, 0  ;;  %v1687_v9 = vshrl.u32 %v1630_v26, 16  ;;  %v2820_v55 = vshrl.u32 %v7751_v40, 16 }
  0x3b   : > { %7283 = vmatprep.mubr.msk.bf16.mxu0 %vm12195_vm1, %v468_v15  ;;  %v2057_v57 = vshrl.u32 %v2016_v52, 16  ;;  %v2060_v58 = vshll.u32 %v2016_v52, 16  ;;  %v7762_v52 = vsel %vm7613_vm10, %v2809_v29, %v7605_v43  ;;  %v1634_v15 = vsel %vm1602_vm3, 65537, %v12197_v36 }
  0x3c   : > { %vm12196_vm5 = vcmp.ne.s16.totalorder %v7762_v52, 0  ;;  %v7790_v14 = vrot.slane %v2820_v55, 7  ;;  %v1723_v5 = vshll.u32 %v1634_v15, 16 }
  0x3d   : > { %v2059_v60 = vrot.slane %v2057_v57, 7 }
  0x3f   : > { %v2062_v3 = vor.u32 %v2060_v58, %v2059_v60  ;;  %v2064_v8 = vrot.slane %v2059_v60, 4 }
  0x41   : > { %v2063_v10 = vsel %vm7613_vm10, %v7123_v59, %v2062_v3  ;;  %v2072_v11 = vsel %vm7613_vm10, %v2064_v8, %v2071_v6  ;;  %v1059_v3 = vadd.s32 64, %v7580_v33 }
  0x42   : > { %7284 = vmatmul.mubr.msk.bf16.gmra.mxu0 %vm12195_vm1, %v470_v18  ;;  %2375 = vst.msk [vmem:[#allocation3] sm:$0xf] %vm12230_vm2, %v2063_v10  ;;  %2376 = vst.msk [vmem:[#allocation3 + $0x4] sm:$0xf] %vm12230_vm2, %v2072_v11  ;;  %v1689_v18 = vrot.slane %v1687_v9, 4 }
  0x44   : > { %v1690_v32 = vor.u32 %v1689_v18, %v7676_v34 }
  0x46   : > { %v7764_v53 = vrot.slane %v1690_v32, 4 }
  0x48   : > { %v1696_v11 = vsel %vm7632_vm14, %v7764_v53, %v7665_v22 }
  0x49   : > { %vm7831_vm4 = vcmp.ne.s16.totalorder %v1696_v11, 0 }
  0x88   : > { %v2472_v54 = vpop.permute.xlu0 %2471 }
  0x89   : > { %2568 = vst.msk [vmem:[#allocation3] sm:$0xf] %vm12193_vm12, %v2472_v54  ;;  %v1703_v54 = vshll.u32 %v7745_v30, 16 }
  0x8b   : > { %v7788_v13 = vrot.slane %v1703_v54, 5 }
  0x8c   : > { %v2474_v7 = vpop.permute.xlu0 %2473 }
  0x8d   : > { %2569 = vst.msk [vmem:[#allocation3 + $0x4] sm:$0xf] %vm12193_vm12, %v2474_v7 }
  0x9f   : > { %v3471_v19 = vpop.permute.xlu0 %3470 }
  0xa0   : > { %3567 = vst.msk [vmem:[#allocation3] sm:$0xf] %vm12192_vm15, %v3471_v19 }
  0xd2   : > { %v7261_v16 = vpop.f32.mrf.mxu0 }
  0xd3   : > { %v780_v20 = vmul.f32 %v7261_v16, %v7712_v12 }
  0xd4   : > { %v644_v21 = vpop.f32.mrf.mxu0 }
  0xd5   : > { %v819_v25 = vadd.f32 %v7730_v17, %v780_v20  ;;  %v778_v26 = vmul.f32 %v7712_v12, %v644_v21  ;;  %v3599_v21 = vld [vmem:[#allocation2 + $0xc] sm:$0x8] }
  0xd6   : > { %v7262_v27 = vpop.f32.mrf.mxu0  ;;  %v3632_v63 = vsel %vm1982_vm9, %v3599_v21, 0 }
  0xd7   : > { %v851_v35 = vmax.f32 %v819_v25, 0.0  ;;  %v817_v37 = vadd.f32 %v7730_v17, %v778_v26  ;;  %v781_v39 = vmul.f32 %v7262_v27, %v7712_v12  ;;  %v2823_v25 = vshll.u32 %v7751_v40, 16 }
  0xd8   : > { %v647_v41 = vpop.f32.mrf.mxu0  ;;  %v1143_v26 = vand.u32 15, %v1059_v3  ;;  %v1058_v27 = vadd.s32 56, %v7580_v33  ;;  %v1727_v40 = vshrl.u32 %v1634_v15, 16  ;;  %v2838_v3 = vshrl.u32 %v7812_v4, 16 }
  0xd9   : > { %v7181_v44 = vpack.c.bf16 %v851_v35, %v851_v35  ;;  %v849_v48 = vmax.f32 %v817_v37, 0.0  ;;  %v820_v49 = vadd.f32 %v7730_v17, %v781_v39  ;;  %v779_v34 = vmul.f32 %v7712_v12, %v647_v41 }
  0xda   : > { %v7265_v51 = vpop.f32.mrf.mxu0  ;;  %v2825_v53 = vor.u32 %v2823_v25, %v7790_v14  ;;  %vm7823_vm3 = vcmp.gt.s32.totalorder %v1143_v26, 0  ;;  %v1136_v55 = vand.u32 15, %v1058_v27  ;;  %v1060_v25 = vadd.s32 72, %v7580_v33 }
  0xdb   : > { %1020 = vst.msk [vmem:[#allocation2 + $0x18] sm:$0xf] %vm12230_vm2, %v7181_v44  ;;  %v7179_v57 = vpack.c.bf16 %v849_v48, %v849_v48  ;;  %v852_v58 = vmax.f32 %v820_v49, 0.0  ;;  %v818_v59 = vadd.f32 %v7730_v17, %v779_v34  ;;  %v784_v60 = vmul.f32 %v7265_v51, %v7712_v12  ;;  %vm1604_vm13 = vmpackc.low %vm7823_vm3, %vm7823_vm3 }
  0xdc   : > { %v660_v62 = vpop.f32.mrf.mxu0  ;;  %v1706_v51 = vsel %vm7632_vm14, %v7673_v31, %v7788_v13  ;;  %vm7854_vm15 = vcmp.lt.s32.totalorder %v1136_v55, 15  ;;  %v12274_v27 = vmov 0 }
  0xdd   : > { %1018 = vst.msk [vmem:[#allocation2 + $0x10] sm:$0xf] %vm12230_vm2, %v7179_v57  ;;  %v7182_v6 = vpack.c.bf16 %v852_v58, %v852_v58  ;;  %v850_v7 = vmax.f32 %v818_v59, 0.0  ;;  %v823_v8 = vadd.f32 %v7730_v17, %v784_v60  ;;  %v782_v9 = vmul.f32 %v7712_v12, %v660_v62  ;;  %vm2736_vm3 = vmpackc.low %vm7854_vm15, %vm7854_vm15 }
  0xde   : > { %v7266_v10 = vpop.f32.mrf.mxu0  ;;  %vm7859_vm12 = vcmp.ne.s16.totalorder %v1706_v51, 0  ;;  %v1150_v51 = vand.u32 15, %v1060_v25 }
  0xdf   : > { %1021 = vst.msk [vmem:[#allocation2 + $0x1c] sm:$0xf] %vm12230_vm2, %v7182_v6  ;;  %v7180_v16 = vpack.c.bf16 %v850_v7, %v850_v7  ;;  %v855_v18 = vmax.f32 %v823_v8, 0.0  ;;  %v821_v19 = vadd.f32 %v7730_v17, %v782_v9  ;;  %v785_v20 = vmul.f32 %v7266_v10, %v7712_v12 }
  0xe0   : > { %v663_v23 = vpop.f32.mrf.mxu0  ;;  %v1729_v6 = vrot.slane %v1727_v40, 4  ;;  %v1709_v7 = vrot.slane %v1707_v1, 4  ;;  %v12275_v27 = vsel %vm7859_vm12, 4294967295, %v12274_v27  ;;  %vm7934_vm15 = vcmp.lt.s32.totalorder %v1150_v51, 15 }
  0xe1   : > { %1019 = vst.msk [vmem:[#allocation2 + $0x14] sm:$0xf] %vm12230_vm2, %v7180_v16  ;;  %v7185_v29 = vpack.c.bf16 %v855_v18, %v855_v18  ;;  %v853_v30 = vmax.f32 %v821_v19, 0.0  ;;  %v824_v32 = vadd.f32 %v7730_v17, %v785_v20  ;;  %v783_v35 = vmul.f32 %v7712_v12, %v663_v23  ;;  %12276 = vst [vmem:[#allocation11_spill] sm:$0xff] %v12275_v27 }
  0xe2   : > { %v4088_v37 = vld [vmem:[#allocation2 + $0x18] sm:$0xf]  ;;  %v7269_v39 = vpop.f32.mrf.mxu0  ;;  %v3666_v16 = vshrl.u32 %v3632_v63, 16  ;;  %v2826_v18 = vsel %vm7613_vm10, %v7610_v47, %v2825_v53  ;;  %v7850_v19 = vrot.slane %v1723_v5, 5 }
  0xe3   : > { %1024 = vst.msk [vmem:[#allocation2 + $0x28] sm:$0xf] %vm12230_vm2, %v7185_v29  ;;  %v7183_v41 = vpack.c.bf16 %v853_v30, %v853_v30  ;;  %4154 = vrot.lane.b32.xlu0 %v4088_v37, %s7443_s22  ;;  %v856_v45 = vmax.f32 %v824_v32, 0.0  ;;  %v822_v46 = vadd.f32 %v7730_v17, %v783_v35  ;;  %v788_v44 = vmul.f32 %v7269_v39, %v7712_v12  ;;  %v5285_v62 = vld [vmem:[#allocation2 + $0x18] sm:$0xf] }
  0xe4   : > { %v2409_v48 = vld [vmem:[#allocation2 + $0x10] sm:$0xf]  ;;  %v676_v49 = vpop.f32.mrf.mxu0  ;;  %v2411_v26 = vld [vmem:[#allocation2 + $0x18] sm:$0xf]  ;;  %v2840_v29 = vrot.slane %v2838_v3, 7  ;;  %v2841_v30 = vshll.u32 %v7812_v4, 16  ;;  %v1730_v5 = vor.u32 %v1729_v6, %v7850_v19  ;;  %v1710_v4 = vor.u32 %v1709_v7, %v7788_v13 }
  0xe5   : > { %v2602_v34 = vld [vmem:[#allocation2 + $0x10] sm:$0xf]  ;;  %1022 = vst.msk [vmem:[#allocation2 + $0x20] sm:$0xf] %vm12230_vm2, %v7183_v41  ;;  %2475 = vrot.lane.b32.xlu1 %v2409_v48, %s7441_s16  ;;  %v7186_v57 = vpack.c.bf16 %v856_v45, %v856_v45  ;;  %v854_v58 = vmax.f32 %v822_v46, 0.0  ;;  %v827_v59 = vadd.f32 %v7730_v17, %v788_v44  ;;  %v786_v60 = vmul.f32 %v7712_v12, %v676_v49 }
  0xe6   : > { %v7841_v15 = vsel %vm12196_vm5, %v2602_v34, 0  ;;  %v4089_v11 = vld [vmem:[#allocation2 + $0x1c] sm:$0xf]  ;;  %v1636_v32 = vsel %vm1604_vm13, 65537, %v12197_v36  ;;  %v3600_v39 = vld [vmem:[#allocation2 + $0x10] sm:$0xf] }
  0xe7   : > { %5349 = vrot.lane.b32.xlu0 %v5285_v62, %s7444_s23  ;;  %1025 = vst.msk [vmem:[#allocation2 + $0x2c] sm:$0xf] %vm12230_vm2, %v7186_v57  ;;  %v7184_v8 = vpack.c.bf16 %v854_v58, %v854_v58  ;;  %v859_v9 = vmax.f32 %v827_v59, 0.0  ;;  %v825_v10 = vadd.f32 %v7730_v17, %v786_v60  ;;  %v3166_v1 = vshll.u32 %v7841_v15, 16  ;;  %v4281_v63 = vld [vmem:[#allocation2 + $0x18] sm:$0xf] }
  0xe8   : > { %v5286_v40 = vld [vmem:[#allocation2 + $0x1c] sm:$0xf]  ;;  %v7876_v41 = vrot.slane %v3666_v16, 11  ;;  %vm7878_vm0 = vcmp.ne.s16.totalorder %v2826_v18, 0  ;;  %v2827_v46 = vrot.slane %v7790_v14, 4  ;;  %v1061_v44 = vadd.s32 80, %v7580_v33 }
  0xe9   : > { %4156 = vrot.lane.b32.xlu1 %v4089_v11, %s7443_s22  ;;  %1023 = vst.msk [vmem:[#allocation2 + $0x24] sm:$0xf] %vm12230_vm2, %v7184_v8  ;;  %v7189_v20 = vpack.c.bf16 %v859_v9, %v859_v9  ;;  %v857_v21 = vmax.f32 %v825_v10, 0.0  ;;  %v7872_v37 = vrot.slane %v3166_v1, 5  ;;  %v3602_v48 = vld [vmem:[#allocation2 + $0x18] sm:$0xf]  ;;  %v7899_v57 = vor.u32 %v2841_v30, %v2840_v29 }
  0xea   : > { %v1743_v49 = vshll.u32 %v1636_v32, 16  ;;  %v1747_v34 = vshrl.u32 %v1636_v32, 16  ;;  %v4086_v14 = vld [vmem:[#allocation2 + $0x10] sm:$0xf]  ;;  %v7895_v53 = vsel %vm7691_vm8, %v3600_v39, 0  ;;  %v4314_v55 = vsel %vm12196_vm5, %v4281_v63, 0 }
  0xeb   : > { %2479 = vrot.lane.b32.xlu0 %v2411_v26, %s7441_s16  ;;  %1028 = vst.msk [vmem:[#allocation2 + $0x38] sm:$0xf] %vm12230_vm2, %v7189_v20  ;;  %v7187_v35 = vpack.c.bf16 %v857_v21, %v857_v21  ;;  %v3169_v13 = vsel %vm7632_vm14, %v7802_v24, %v7872_v37  ;;  %v3603_v54 = vld [vmem:[#allocation2 + $0x1c] sm:$0xf]  ;;  %v2845_v58 = vrot.slane %v2840_v29, 4  ;;  %v7902_v59 = vrot.slane %v1730_v5, 4 }
  0xec   : > { %v7904_v60 = vrot.slane %v1710_v4, 4  ;;  %v7912_v62 = vsel %vm2736_vm3, 65537, %v12197_v36  ;;  %v2412_v3 = vld [vmem:[#allocation2 + $0x1c] sm:$0xf]  ;;  %v4092_v6 = vld [vmem:[#allocation2 + $0x28] sm:$0xf]  ;;  %v7921_v8 = vsel %vm7613_vm10, %v2827_v46, %v7605_v43 }
  0xed   : > { %5351 = vrot.lane.b32.xlu1 %v5286_v40, %s7444_s23  ;;  %1026 = vst.msk [vmem:[#allocation2 + $0x30] sm:$0xf] %vm12230_vm2, %v7187_v35  ;;  %v7916_v7 = vsel %vm7831_vm4, %v3602_v48, 0  ;;  %v1157_v9 = vand.u32 15, %v1061_v44  ;;  %v3671_v10 = vshrl.u32 %v7895_v53, 16  ;;  %v7927_v11 = vsel %vm7859_vm12, %v3603_v54, 0  ;;  %v7270_v48 = vpop.f32.mrf.mxu0 }
  0xee   : > { %v4282_v1 = vld [vmem:[#allocation2 + $0x1c] sm:$0xf]  ;;  %v4365_v16 = vshll.u32 %v4314_v55, 16  ;;  %v4369_v18 = vshrl.u32 %v4314_v55, 16  ;;  %v7929_v21 = vrot.slane %v1743_v49, 5  ;;  %v7931_v23 = vrot.slane %v1747_v34, 4 }
  0xef   : > { %4150 = vrot.lane.b32.xlu0 %v4086_v14, %s7443_s22  ;;  %v4800_v20 = vld [vmem:[#allocation2 + $0x1c] sm:$0xf]  ;;  %v2856_v25 = vshrl.u32 %v7912_v62, 16  ;;  %v2410_v29 = vld [vmem:[#allocation2 + $0x14] sm:$0xf]  ;;  %v2844_v35 = vsel %vm7613_vm10, %v7610_v47, %v7899_v57  ;;  %vm3084_vm13 = vcmp.ne.s16.totalorder %v7921_v8, 0  ;;  %v7947_v39 = vsel %vm7613_vm10, %v2845_v58, %v7605_v43 }
  0xf0   : > { %v5289_v30 = vld [vmem:[#allocation2 + $0x28] sm:$0xf]  ;;  %v4799_v32 = vld [vmem:[#allocation2 + $0x18] sm:$0xf]  ;;  %v3689_v4 = vshrl.u32 %v7916_v7, 16  ;;  %v3698_v40 = vshrl.u32 %v7927_v11, 16  ;;  %v789_v42 = vmul.f32 %v7270_v48, %v7712_v12  ;;  %v1746_v38 = vsel %vm7632_vm14, %v7673_v31, %v7929_v21 }
  0xf1   : > { %2481 = vrot.lane.b32.xlu1 %v2412_v3, %s7441_s16  ;;  %v7961_v46 = vsel %vm7878_vm0, %v4282_v1, 0  ;;  %v5478_v44 = vld [vmem:[#allocation2 + $0x18] sm:$0xf]  ;;  %vm7963_vm3 = vcmp.gt.s32.totalorder %v1157_v9, 0  ;;  %v7968_v34 = vrot.slane %v3671_v10, 7  ;;  %v7970_v51 = vrot.slane %v4365_v16, 5 }
  0xf2   : > { %v4371_v14 = vrot.slane %v4369_v18, 4  ;;  %v4833_v54 = vsel %vm7682_vm6, %v4800_v20, 0  ;;  %v7976_v55 = vsel %vm7691_vm8, %v4799_v32, 0  ;;  %v7982_v58 = vrot.slane %v2856_v25, 7  ;;  %vm2738_vm8 = vmpackc.low %vm7934_vm15, %vm7934_vm15  ;;  %v2415_v16 = vld [vmem:[#allocation2 + $0x28] sm:$0xf] }
  0xf3   : > { %4162 = vrot.lane.b32.xlu0 %v4092_v6, %s7443_s22  ;;  %v4087_v6 = vld [vmem:[#allocation2 + $0x14] sm:$0xf]  ;;  %v3674_v9 = vshll.u32 %v7895_v53, 16  ;;  %v5511_v10 = vsel %vm3080_vm7, %v5478_v44, 0  ;;  %v2859_v1 = vshll.u32 %v7912_v62, 16  ;;  %v7994_v18 = vrot.slane %v3689_v4, 7  ;;  %v679_v53 = vpop.f32.mrf.mxu0  ;;  %vm1606_vm1 = vmpackc.low %vm7963_vm3, %vm7963_vm3 }
  0xf4   : > { %v7996_v20 = vrot.slane %v3698_v40, 7  ;;  %v4375_v25 = vshll.u32 %v7961_v46, 16  ;;  %v4870_v32 = vshrl.u32 %v7976_v55, 16  ;;  %v3701_v40 = vshll.u32 %v7927_v11, 16  ;;  %v5479_v44 = vld [vmem:[#allocation2 + $0x1c] sm:$0xf] }
  0xf5   : > { %2477 = vrot.lane.b32.xlu1 %v2410_v29, %s7441_s16  ;;  %v4879_v29 = vshrl.u32 %v4833_v54, 16  ;;  %v3676_v62 = vor.u32 %v3674_v9, %v7968_v34  ;;  %v5545_v48 = vshrl.u32 %v5511_v10, 16  ;;  %v5548_v3 = vshll.u32 %v5511_v10, 16  ;;  %v7273_v4 = vpop.f32.mrf.mxu0  ;;  %v4096_v56 = vld [vmem:[#allocation2 + $0x38] sm:$0xf] }
  0xf6   : > { %vm8009_vm5 = vcmp.ne.s16.totalorder %v2844_v35, 0  ;;  %v12283_v5 = vmov 0  ;;  %v828_v11 = vadd.f32 %v7730_v17, %v789_v42  ;;  %v787_v9 = vmul.f32 %v7712_v12, %v679_v53 }
  0xf7   : > { %5357 = vrot.lane.b32.xlu0 %v5289_v30, %s7444_s23  ;;  %v4372_v30 = vor.u32 %v4371_v14, %v7970_v51  ;;  %v12284_v5 = vsel %vm8009_vm5, 4294967295, %v12283_v5  ;;  %v8019_v14 = vsel %vm2738_vm8, 65537, %v12197_v36  ;;  %v8025_v35 = vor.u32 %v2859_v1, %v7982_v58  ;;  %v692_v27 = vpop.f32.mrf.mxu0 }
  0xf8   : > { %12285 = vst [vmem:[#allocation12_spill] sm:$0xff] %v12284_v5  ;;  %v1638_v26 = vsel %vm1606_vm1, 65537, %v12197_v36  ;;  %v3696_v10 = vrot.slane %v7994_v18, 4  ;;  %v3703_v63 = vor.u32 %v3701_v40, %v7996_v20  ;;  %v8037_v57 = vrot.slane %v4879_v29, 7 }
  0xf9   : > { %4152 = vrot.lane.b32.xlu1 %v4087_v6, %s7443_s22  ;;  %v2604_v6 = vld [vmem:[#allocation2 + $0x18] sm:$0xf]  ;;  %v3677_v49 = vsel %vm7613_vm10, %v7876_v41, %v3676_v62  ;;  %v4373_v42 = vrot.slane %v4372_v30, 4  ;;  %v8048_v1 = vrot.slane %v4870_v32, 7  ;;  %v4882_v29 = vshll.u32 %v4833_v54, 16 }
  0xfa   : > { %v5547_v53 = vrot.slane %v5545_v48, 4  ;;  %v5550_v40 = vrot.slane %v5548_v3, 5  ;;  %v3117_v36 = vsel %vm3084_vm13, %v2604_v6, 0  ;;  %v860_v24 = vmax.f32 %v828_v11, 0.0 }
  0xfb   : > { %2487 = vrot.lane.b32.xlu0 %v2415_v16, %s7441_s16  ;;  %v8035_v16 = vrot.slane %v4375_v25, 5  ;;  %v8052_v25 = vsel %vm7623_vm11, %v5479_v44, 0  ;;  %v2874_v41 = vshrl.u32 %v8019_v14, 16  ;;  %v1767_v62 = vshrl.u32 %v1638_v26, 16 }
  0xfc   : > { %v3704_v30 = vsel %vm7613_vm10, %v3696_v10, %v3703_v63  ;;  %v4884_v32 = vor.u32 %v4882_v29, %v8037_v57  ;;  %v5554_v54 = vshll.u32 %v8052_v25, 16  ;;  %v4877_v48 = vrot.slane %v8048_v1, 4  ;;  %v3601_v63 = vld [vmem:[#allocation2 + $0x14] sm:$0xf] }
  0xfd   : > { %3472 = vrot.lane.b32.xlu1 %v3169_v13, %s7442_s17  ;;  %v1763_v13 = vshll.u32 %v1638_v26, 16  ;;  %v4378_v44 = vsel %vm7632_vm14, %v4373_v42, %v8035_v16  ;;  %v3186_v6 = vshll.u32 %v3117_v36, 16  ;;  %v7190_v11 = vpack.c.bf16 %v860_v24, %v860_v24 }
  0xfe   : > { %v5551_v26 = vor.u32 %v5550_v40, %v5547_v53  ;;  %v3190_v33 = vshrl.u32 %v3117_v36, 16  ;;  %v826_v10 = vadd.f32 %v7730_v17, %v787_v9  ;;  %v792_v29 = vmul.f32 %v7273_v4, %v7712_v12  ;;  %v4279_v9 = vld [vmem:[#allocation2 + $0x10] sm:$0xf] }
  0xff   : > { %3957 = vrot.lane.b32.xlu0 %v3677_v49, %s7445_s24  ;;  %v2605_v49 = vld [vmem:[#allocation2 + $0x1c] sm:$0xf]  ;;  %1029 = vst.msk [vmem:[#allocation2 + $0x3c] sm:$0xf] %vm12230_vm2, %v7190_v11  ;;  %v2877_v42 = vshll.u32 %v8019_v14, 16  ;;  %v8075_v3 = vrot.slane %v1763_v13, 5  ;;  %v4885_v36 = vsel %vm7613_vm10, %v4877_v48, %v4884_v32  ;;  %v790_v32 = vmul.f32 %v7712_v12, %v692_v27 }
 0x100   : > { %v1769_v53 = vrot.slane %v1767_v62, 4  ;;  %v8079_v40 = vrot.slane %v5554_v54, 5  ;;  %v858_v4 = vmax.f32 %v826_v10, 0.0  ;;  %v831_v24 = vadd.f32 %v7730_v17, %v792_v29  ;;  %v2603_v62 = vld [vmem:[#allocation2 + $0x14] sm:$0xf] }
 0x101   : > { %3963 = vrot.lane.b32.xlu1 %v3704_v30, %s7445_s24  ;;  %v8072_v30 = vrot.slane %v2874_v41, 7  ;;  %v8085_v41 = vsel %vm8009_vm5, %v2605_v49, 0  ;;  %v8087_v14 = vrot.slane %v3186_v6, 5  ;;  %v3634_v13 = vsel %vm7682_vm6, %v3601_v63, 0  ;;  %v5287_v54 = vld [vmem:[#allocation2 + $0x20] sm:$0xf] }
 0x102   : > { %v3192_v48 = vrot.slane %v3190_v33, 4  ;;  %v7188_v11 = vpack.c.bf16 %v858_v4, %v858_v4  ;;  %v863_v10 = vmax.f32 %v831_v24, 0.0  ;;  %v4312_v29 = vsel %vm3080_vm7, %v4279_v9, 0  ;;  %v4093_v6 = vld [vmem:[#allocation2 + $0x2c] sm:$0xf] }
 0x103   : > { %4673 = vrot.lane.b32.xlu0 %v4378_v44, %s7446_s27  ;;  %v5552_v44 = vrot.slane %v5551_v26, 4  ;;  %v829_v49 = vadd.f32 %v7730_v17, %v790_v32  ;;  %v3170_v33 = vshrl.u32 %v7841_v15, 16  ;;  %v3680_v26 = vshrl.u32 %v3634_v13, 16  ;;  %v4280_v4 = vld [vmem:[#allocation2 + $0x14] sm:$0xf] }
 0x104   : > { %v3116_v63 = vsel %vm7878_vm0, %v2603_v62, 0  ;;  %1027 = vst.msk [vmem:[#allocation2 + $0x34] sm:$0xf] %vm12230_vm2, %v7188_v11  ;;  %v3196_v9 = vshll.u32 %v8085_v41, 16  ;;  %v8111_v32 = vor.u32 %v2877_v42, %v8072_v30  ;;  %v3193_v62 = vor.u32 %v3192_v48, %v8087_v14 }
 0x105   : > { %5158 = vrot.lane.b32.xlu1 %v4885_v36, %s7447_s28  ;;  %v7193_v36 = vpack.c.bf16 %v863_v10, %v863_v10  ;;  %v861_v24 = vmax.f32 %v829_v49, 0.0  ;;  %v5557_v15 = vsel %vm7632_vm14, %v5552_v44, %v8079_v40  ;;  %v4346_v27 = vshrl.u32 %v4312_v29, 16  ;;  %v4798_v10 = vld [vmem:[#allocation2 + $0x14] sm:$0x8]  ;;  %v5290_v44 = vld [vmem:[#allocation2 + $0x2c] sm:$0xf] }
 0x106   : > { %v4349_v11 = vshll.u32 %v4312_v29, 16  ;;  %v3176_v49 = vshll.u32 %v3116_v63, 16  ;;  %v8127_v48 = vrot.slane %v3680_v26, 7  ;;  %v3172_v29 = vrot.slane %v3170_v33, 4  ;;  %v2413_v26 = vld [vmem:[#allocation2 + $0x20] sm:$0xf] }
 0x107   : > { %5353 = vrot.lane.b32.xlu0 %v5287_v54, %s7444_s23  ;;  %v1770_v54 = vor.u32 %v1769_v53, %v8075_v3  ;;  %1032 = vst.msk [vmem:[#allocation2 + $0x48] sm:$0xf] %vm12230_vm2, %v7193_v36  ;;  %v7191_v42 = vpack.c.bf16 %v861_v24, %v861_v24  ;;  %v12286_v53 = vrot.slane %v7982_v58, 4  ;;  %v4313_v36 = vsel %vm7623_vm11, %v4280_v4, 0 }
 0x108   : > { %v4831_v58 = vsel %vm1982_vm9, %v4798_v10, 0  ;;  %v4348_v4 = vrot.slane %v4346_v27, 4  ;;  %v4351_v24 = vrot.slane %v4349_v11, 5  ;;  %vm3086_vm1 = vcmp.ne.s16.totalorder %v7947_v39, 0 }
 0x109   : > { %4164 = vrot.lane.b32.xlu1 %v4093_v6, %s7443_s22  ;;  %v3180_v6 = vshrl.u32 %v3116_v63, 16  ;;  %v8125_v5 = vsel %vm7613_vm10, %v12286_v53, %v7605_v43  ;;  %v8137_v63 = vrot.slane %v3196_v9, 5  ;;  %1030 = vst.msk [vmem:[#allocation2 + $0x40] sm:$0xf] %vm12230_vm2, %v7191_v42  ;;  %v8146_v33 = vrot.slane %v1770_v54, 4 }
 0x10a   : > { %v8150_v28 = vrot.slane %v3176_v49, 5  ;;  %v4355_v9 = vshll.u32 %v4313_v36, 16  ;;  %v4359_v10 = vshrl.u32 %v4313_v36, 16  ;;  %v2416_v53 = vld [vmem:[#allocation2 + $0x2c] sm:$0xf]  ;;  %v3173_v54 = vor.u32 %v3172_v29, %v7872_v37 }
 0x10b   : > { %5868 = vrot.lane.b32.xlu0 %v5557_v15, %s7448_s29  ;;  %v12287_v15 = vor.u32 %v7931_v23, %v7929_v21  ;;  %12288 = vst [vmem:[#allocation13_spill] sm:$0xff] %v8146_v33  ;;  %v3194_v21 = vrot.slane %v3193_v62, 4  ;;  %v3683_v23 = vshll.u32 %v3634_v13, 16  ;;  %v3182_v42 = vrot.slane %v3180_v6, 4  ;;  %v5480_v36 = vld [vmem:[#allocation2 + $0x20] sm:$0xf] }
 0x10c   : > { %vm8154_vm7 = vcmp.ne.s16.totalorder %v1746_v38, 0  ;;  %v4379_v27 = vshrl.u32 %v7961_v46, 16  ;;  %v2881_v11 = vrot.slane %v8072_v30, 4  ;;  %v5558_v49 = vshrl.u32 %v8052_v25, 16  ;;  %v4283_v30 = vld [vmem:[#allocation2 + $0x20] sm:$0xf] }
 0x10d   : > { %v8134_v17 = vrot.slane %v12287_v15, 4  ;;  %5359 = vrot.lane.b32.xlu1 %v5290_v44, %s7444_s23  ;;  %v3685_v44 = vor.u32 %v3683_v23, %v8127_v48  ;;  %v4865_v15 = vshrl.u32 %v4831_v58, 16  ;;  %v3199_v46 = vsel %vm7632_vm14, %v3194_v21, %v8137_v63  ;;  %v5481_v37 = vld [vmem:[#allocation2 + $0x24] sm:$0xf] }
 0x10e   : > { %v3678_v6 = vrot.slane %v7968_v34, 4  ;;  %v4352_v29 = vor.u32 %v4351_v24, %v4348_v4  ;;  %v12291_v58 = vsel %vm7632_vm14, %v7902_v59, %v7665_v22  ;;  %v3200_v25 = vshrl.u32 %v8085_v41, 16  ;;  %v4801_v4 = vld [vmem:[#allocation2 + $0x20] sm:$0xf] }
 0x10f   : > { %2483 = vrot.lane.b32.xlu0 %v2413_v26, %s7441_s16  ;;  %vm8183_vm11 = vcmp.ne.s16.totalorder %v12291_v58, 0  ;;  %v12292_v26 = vmov 0  ;;  %v8189_v23 = vrot.slane %v4355_v9, 5  ;;  %v3183_v34 = vor.u32 %v3182_v42, %v8150_v28 }
 0x110   : > { %v12293_v26 = vsel %vm8183_vm11, 4294967295, %v12292_v26  ;;  %v4361_v21 = vrot.slane %v4359_v10, 4  ;;  %v12295_v24 = vsel %vm7632_vm14, %v7904_v60, %v7665_v22  ;;  %v3686_v41 = vsel %vm7613_vm10, %v3678_v6, %v3685_v44  ;;  %v4090_v10 = vld [vmem:[#allocation2 + $0x20] sm:$0xf] }
 0x111   : > { %2489 = vrot.lane.b32.xlu1 %v2416_v53, %s7441_s16  ;;  %12294 = vst [vmem:[#allocation14_spill] sm:$0xff] %v12293_v26  ;;  %vm8197_vm6 = vcmp.ne.s16.totalorder %v12295_v24, 0  ;;  %v3174_v53 = vrot.slane %v3173_v54, 4  ;;  %v4873_v9 = vshll.u32 %v7976_v55, 16  ;;  %v3687_v42 = vrot.slane %v8127_v48, 4 }
 0x112   : > { %v3692_v58 = vshll.u32 %v7916_v7, 16  ;;  %v8211_v60 = vsel %vm3084_vm13, %v4283_v30, 0  ;;  %vm12298_vm9 = vcmp.ne.s16.totalorder %v7762_v52, 0  ;;  %v4353_v44 = vrot.slane %v4352_v29, 4  ;;  %v2606_v6 = vld [vmem:[#allocation2 + $0x20] sm:$0xf] }
 0x113   : > { %3478 = vrot.lane.b32.xlu0 %v3199_v46, %s7442_s17  ;;  %v8203_v46 = vrot.slane %v4865_v15, 11  ;;  %v8215_v24 = vsel %vm12298_vm9, %v5480_v36, 0  ;;  %v4381_v54 = vrot.slane %v4379_v27, 4  ;;  %v5560_v15 = vrot.slane %v5558_v49, 4  ;;  %v5288_v48 = vld [vmem:[#allocation2 + $0x24] sm:$0xf] }
 0x114   : > { %v4834_v55 = vsel %vm7831_vm4, %v4801_v4, 0  ;;  %v8221_v7 = vor.u32 %v4873_v9, %v8048_v1  ;;  %v4362_v30 = vor.u32 %v4361_v21, %v8189_v23  ;;  %v8229_v52 = vsel %vm7613_vm10, %v2881_v11, %v7605_v43  ;;  %v3606_v36 = vld [vmem:[#allocation2 + $0x28] sm:$0xf]  ;;  %v4802_v26 = vld [vmem:[#allocation2 + $0x24] sm:$0xf] }
 0x115   : > { %3959 = vrot.lane.b32.xlu1 %v3686_v41, %s7445_s24  ;;  %v8223_v41 = vrot.slane %v3183_v34, 4  ;;  %v3179_v27 = vsel %vm7632_vm14, %v3174_v53, %v8150_v28  ;;  %v3694_v49 = vor.u32 %v3692_v58, %v7994_v18  ;;  %v4385_v29 = vshll.u32 %v8211_v60, 16  ;;  %v3607_v34 = vld [vmem:[#allocation2 + $0x2c] sm:$0xf]  ;;  %v3604_v18 = vld [vmem:[#allocation2 + $0x20] sm:$0xf] }
 0x116   : > { %v5564_v1 = vshll.u32 %v8215_v24, 16  ;;  %v4876_v11 = vsel %vm7613_vm10, %v8203_v46, %v8221_v7  ;;  %v8244_v21 = vsel %vm3086_vm1, %v2606_v6, 0  ;;  %v3202_v28 = vrot.slane %v3200_v25, 4 }
 0x117   : > { %4158 = vrot.lane.b32.xlu0 %v4090_v10, %s7443_s22  ;;  %v4888_v4 = vshrl.u32 %v4834_v55, 16  ;;  %v4358_v53 = vsel %vm7632_vm14, %v4353_v44, %v8189_v23  ;;  %v8251_v9 = vsel %vm7613_vm10, %v3687_v42, %v3694_v49  ;;  %v4382_v10 = vor.u32 %v4381_v54, %v8035_v16 }
 0x118   : > { %v5561_v58 = vor.u32 %v5560_v15, %v8079_v40  ;;  %v12299_v46 = vsel %vm7632_vm14, %v7673_v31, %v7850_v19  ;;  %v3189_v23 = vsel %vm7632_vm14, %v8223_v41, %v8087_v14  ;;  %v8269_v42 = vrot.slane %v4362_v30, 4  ;;  %v2414_v40 = vld [vmem:[#allocation2 + $0x24] sm:$0xf] }
 0x119   : > { %5355 = vrot.lane.b32.xlu1 %v5288_v48, %s7444_s23  ;;  %vm8260_vm15 = vcmp.ne.s16.totalorder %v12299_v46, 0  ;;  %v8273_v16 = vsel %vm8183_vm11, %v3606_v36, 0  ;;  %v8277_v19 = vsel %vm8154_vm7, %v3607_v34, 0  ;;  %v8279_v44 = vrot.slane %v4385_v29, 5 }
 0x11a   : > { %v8281_v54 = vrot.slane %v5564_v1, 5  ;;  %v3206_v15 = vshll.u32 %v8244_v21, 16  ;;  %v3637_v14 = vsel %vm8197_vm6, %v3604_v18, 0  ;;  %v3203_v48 = vor.u32 %v3202_v28, %v8137_v63  ;;  %v4803_v1 = vld [vmem:[#allocation2 + $0x28] sm:$0xf] }
 0x11b   : > { %3474 = vrot.lane.b32.xlu0 %v3179_v27, %s7442_s17  ;;  %v8289_v7 = vrot.slane %v4888_v4, 7  ;;  %v4891_v41 = vshll.u32 %v4834_v55, 16  ;;  %v8291_v30 = vrot.slane %v4382_v10, 4  ;;  %v8293_v27 = vrot.slane %v5561_v58, 4  ;;  %v1470_v18 = vld [vmem:[#allocation2 + $0x10] sm:$0xf] }
 0x11c   : > { %v3725_v49 = vshrl.u32 %v8273_v16, 16  ;;  %v3734_v29 = vshrl.u32 %v8277_v19, 16  ;;  %v4368_v36 = vsel %vm7632_vm14, %v8269_v42, %v7970_v51  ;;  %v5568_v63 = vshrl.u32 %v8215_v24, 16  ;;  %v4804_v58 = vld [vmem:[#allocation2 + $0x2c] sm:$0xf] }
 0x11d   : > { %2485 = vrot.lane.b32.xlu1 %v2414_v40, %s7441_s16  ;;  %v3707_v34 = vshrl.u32 %v3637_v14, 16  ;;  %v12302_v28 = vsel %vm7613_vm10, %v7610_v47, %v8025_v35  ;;  %v8321_v10 = vrot.slane %v3206_v15, 5  ;;  %v4886_v35 = vrot.slane %v8037_v57, 4  ;;  %v1471_v55 = vld [vmem:[#allocation2 + $0x14] sm:$0xf] }
 0x11e   : > { %vm8309_vm3 = vcmp.ne.s16.totalorder %v12302_v28, 0  ;;  %v8325_v46 = vrot.slane %v3203_v48, 4  ;;  %v4893_v42 = vor.u32 %v4891_v41, %v8289_v7  ;;  %v3737_v40 = vshll.u32 %v8277_v19, 16 }
 0x11f   : > { %4669 = vrot.lane.b32.xlu0 %v4358_v53, %s7446_s27  ;;  %v4091_v53 = vld [vmem:[#allocation2 + $0x24] sm:$0xf]  ;;  %v8331_v28 = vsel %vm8197_vm6, %v4803_v1, 0  ;;  %v8333_v38 = vrot.slane %v3725_v49, 7  ;;  %v8335_v15 = vrot.slane %v3734_v29, 7  ;;  %v3705_v57 = vrot.slane %v7996_v20, 4 }
 0x120   : > { %v8341_v48 = vrot.slane %v3707_v34, 7  ;;  %v3710_v41 = vshll.u32 %v3637_v14, 16  ;;  %v4837_v19 = vsel %vm8260_vm15, %v4804_v58, 0  ;;  %v4285_v1 = vld [vmem:[#allocation2 + $0x28] sm:$0xf]  ;;  %v4906_v20 = vshrl.u32 %v8331_v28, 16 }
 0x121   : > { %4160 = vrot.lane.b32.xlu1 %v4091_v53, %s7443_s22  ;;  %12305 = vst [vmem:[#allocation15_spill] sm:$0xff] %v8335_v15  ;;  %v2018_v53 = vsel %vm7831_vm4, %v1470_v18, 0  ;;  %v4286_v29 = vld [vmem:[#allocation2 + $0x2c] sm:$0xf]  ;;  %v8352_v2 = vsel %vm7878_vm0, %v5481_v37, 0  ;;  %v8357_v14 = vsel %vm7613_vm10, %v4886_v35, %v4893_v42  ;;  %v3732_v49 = vrot.slane %v8333_v38, 4 }
 0x122   : > { %v2075_v6 = vshrl.u32 %v2018_v53, 16  ;;  %v2078_v18 = vshll.u32 %v2018_v53, 16  ;;  %v5574_v58 = vshll.u32 %v8352_v2, 16  ;;  %v4915_v24 = vshrl.u32 %v4837_v19, 16  ;;  %v7274_v53 = vpop.f32.mrf.mxu0 }
 0x123   : > { %5156 = vrot.lane.b32.xlu0 %v4876_v11, %s7447_s28  ;;  %v5570_v11 = vrot.slane %v5568_v63, 4  ;;  %v4318_v45 = vsel %vm3086_vm1, %v4285_v1, 0  ;;  %v1472_v63 = vld [vmem:[#allocation2 + $0x18] sm:$0xf]  ;;  %v4918_v35 = vshll.u32 %v4837_v19, 16  ;;  %v8371_v13 = vrot.slane %v4906_v20, 7 }
 0x124   : > { %v8359_v34 = vrot.slane %v2075_v6, 7  ;;  %v3712_v6 = vor.u32 %v3710_v41, %v8341_v48  ;;  %v8375_v1 = vsel %vm8309_vm3, %v4286_v29, 0  ;;  %v8379_v51 = vrot.slane %v5574_v58, 5 }
 0x125   : > { %3476 = vrot.lane.b32.xlu1 %v3189_v23, %s7442_s17  ;;  %v5571_v37 = vor.u32 %v5570_v11, %v8281_v54  ;;  %v3739_v23 = vor.u32 %v3737_v40, %v8335_v15  ;;  %v5482_v40 = vld [vmem:[#allocation2 + $0x28] sm:$0xf]  ;;  %v12307_v41 = vrot.slane %v7702_v61, 4  ;;  %v8388_v20 = vsel %vm7859_vm12, %v1471_v55, 0 }
 0x126   : > { %v2080_v42 = vor.u32 %v2078_v18, %v8359_v34  ;;  %v2020_v29 = vsel %vm8197_vm6, %v1472_v63, 0  ;;  %vm3088_vm0 = vcmp.ne.s16.totalorder %v8125_v5, 0  ;;  %v8408_v55 = vsel %vm7613_vm10, %v3705_v57, %v3712_v6 }
 0x127   : > { %3961 = vrot.lane.b32.xlu0 %v8251_v9, %s7445_s24  ;;  %v8377_v11 = vrot.slane %v5571_v37, 4  ;;  %v4405_v9 = vshll.u32 %v4318_v45, 16  ;;  %v8392_v37 = vrot.slane %v4915_v24, 7  ;;  %v2093_v58 = vshrl.u32 %v2020_v29, 16 }
 0x128   : > { %v2081_v19 = vsel %vm7613_vm10, %v12307_v41, %v2080_v42  ;;  %v1473_v42 = vld [vmem:[#allocation2 + $0x1c] sm:$0xf]  ;;  %v8404_v59 = vsel %vm7613_vm10, %v3732_v49, %v3739_v23  ;;  %v4409_v24 = vshrl.u32 %v4318_v45, 16  ;;  %v4415_v63 = vshll.u32 %v8375_v1, 16  ;;  %v695_v41 = vpop.f32.mrf.mxu0  ;;  %v5483_v45 = vld [vmem:[#allocation2 + $0x2c] sm:$0xf] }
 0x129   : > { %12306 = vst [vmem:[#allocation16_spill] sm:$0xff] %v8377_v11  ;;  %4671 = vrot.lane.b32.xlu1 %v4368_v36, %s7446_s27  ;;  %2377 = vst.msk [vmem:[#allocation3 + $0x8] sm:$0xf] %vm12230_vm2, %v2081_v19  ;;  %v2084_v36 = vshrl.u32 %v8388_v20, 16  ;;  %v5293_v19 = vld [vmem:[#allocation2 + $0x38] sm:$0xf]  ;;  %v793_v11 = vmul.f32 %v7274_v53, %v7712_v12  ;;  %v4920_v12 = vor.u32 %v4918_v35, %v8392_v37 }
 0x12a   : > { %v2095_v43 = vrot.slane %v2093_v58, 7  ;;  %v2096_v15 = vshll.u32 %v2020_v29, 16  ;;  %v4913_v57 = vrot.slane %v8371_v13, 4  ;;  %v8419_v49 = vrot.slane %v4405_v9, 5  ;;  %v7277_v8 = vpop.f32.mrf.mxu0 }
 0x12b   : > { %4170 = vrot.lane.b32.xlu0 %v4096_v56, %s7443_s22  ;;  %v2086_v61 = vrot.slane %v2084_v36, 7  ;;  %v12309_v56 = vsel %vm7632_vm14, %v8291_v30, %v8279_v44  ;;  %v5515_v23 = vsel %vm3084_vm13, %v5482_v40, 0  ;;  %v2021_v6 = vsel %vm8260_vm15, %v1473_v42, 0  ;;  %v12310_v36 = vld [vmem:[#allocation10_spill] sm:$0xff] }
 0x12c   : > { %v2098_v29 = vor.u32 %v2096_v15, %v2095_v43  ;;  %v832_v58 = vadd.f32 %v12310_v36, %v793_v11  ;;  %v4411_v30 = vrot.slane %v4409_v24, 4  ;;  %v2102_v33 = vshrl.u32 %v2021_v6, 16  ;;  %v2419_v15 = vld [vmem:[#allocation2 + $0x38] sm:$0xf]  ;;  %v708_v18 = vpop.f32.mrf.mxu0 }
 0x12d   : > { %4675 = vrot.lane.b32.xlu1 %v12309_v56, %s7446_s27  ;;  %v2091_v53 = vrot.slane %v2086_v61, 4  ;;  %v8428_v56 = vrot.slane %v4415_v63, 5  ;;  %v12311_v40 = vsel %vm7632_vm14, %v8134_v17, %v7665_v22  ;;  %v8442_v42 = vsel %vm8009_vm5, %v5483_v45, 0 }
 0x12e   : > { %vm8436_vm4 = vcmp.ne.s16.totalorder %v12311_v40, 0  ;;  %v5584_v24 = vshll.u32 %v5515_v23, 16  ;;  %v12315_v63 = vsel %vm7613_vm10, %v7610_v47, %v8111_v32  ;;  %v864_v36 = vmax.f32 %v832_v58, 0.0 }
 0x12f   : > { %5365 = vrot.lane.b32.xlu0 %v5293_v19, %s7444_s23  ;;  %vm8449_vm13 = vcmp.ne.s16.totalorder %v12315_v63, 0  ;;  %v2099_v17 = vsel %vm7613_vm10, %v2091_v53, %v2098_v29  ;;  %v12318_v45 = vsel %vm7632_vm14, %v8293_v27, %v8281_v54  ;;  %v5588_v40 = vshrl.u32 %v5515_v23, 16  ;;  %v8467_v63 = vld [vmem:[%s12180_s2] ss:$0 sm:$0xff]  ;;  %v2608_v27 = vld [vmem:[#allocation2 + $0x28] sm:$0xf] }
 0x130   : > { %2379 = vst.msk [vmem:[#allocation3 + $0x10] sm:$0xf] %vm12230_vm2, %v2099_v17  ;;  %v8462_v9 = vrot.slane %v2102_v33, 7  ;;  %v2105_v32 = vshll.u32 %v2021_v6, 16  ;;  %12319 = vst [vmem:[#allocation11_spill] sm:$0xff] %v8467_v63  ;;  %v791_v53 = vmul.f32 %v8467_v63, %v695_v41  ;;  %v8472_v29 = vsel %vm7613_vm10, %v4913_v57, %v4920_v12 }
 0x131   : > { %5870 = vrot.lane.b32.xlu1 %v12318_v45, %s7448_s29  ;;  %v8476_v54 = vsel %vm7859_vm12, %v4802_v26, 0  ;;  %v7194_v33 = vpack.c.bf16 %v864_v36, %v864_v36  ;;  %v796_v23 = vmul.f32 %v8467_v63, %v7277_v8  ;;  %v4412_v6 = vor.u32 %v4411_v30, %v8419_v49  ;;  %v8485_v57 = vld [vmem:[%s12181_s3] ss:$0 sm:$0xff]  ;;  %v472_v30 = vld [vmem:[%s7538_s15 + $0x70] sm:$0xff]   ;;  %v1475_v17 = vld [vmem:[#allocation2 + $0x24] sm:$0xf] }
 0x132   : > { %v2100_v58 = vrot.slane %v2095_v43, 4  ;;  %v2107_v41 = vor.u32 %v2105_v32, %v8462_v9  ;;  %12320 = vst [vmem:[#allocation10_spill] sm:$0xff] %v8485_v57  ;;  %v830_v26 = vadd.f32 %v8485_v57, %v791_v53  ;;  %v8488_v12 = vrot.slane %v5584_v24, 5 }
 0x133   : > { %2495 = vrot.lane.b32.xlu0 %v2419_v15, %s7441_s16  ;;  %1033 = vst.msk [vmem:[#allocation2 + $0x4c] sm:$0xf] %vm12230_vm2, %v7194_v33  ;;  %v835_v8 = vadd.f32 %v8485_v57, %v796_v23  ;;  %v2087_v43 = vshll.u32 %v8388_v20, 16  ;;  %v12321_v15 = vsel %vm7632_vm14, %v8325_v46, %v8321_v10  ;;  %v8501_v36 = vrot.slane %v5588_v40, 4 }
 0x134   : > { %v3121_v24 = vsel %vm3088_vm0, %v2608_v27, 0  ;;  %v2108_v45 = vsel %vm7613_vm10, %v2100_v58, %v2107_v41  ;;  %v862_v32 = vmax.f32 %v830_v26, 0.0  ;;  %v2082_v53 = vrot.slane %v8359_v34, 4  ;;  %v2609_v58 = vld [vmem:[#allocation2 + $0x2c] sm:$0xf] }
 0x135   : > { %3480 = vrot.lane.b32.xlu1 %v12321_v15, %s7442_s17  ;;  %2380 = vst.msk [vmem:[#allocation3 + $0x14] sm:$0xf] %vm12230_vm2, %v2108_v45  ;;  %v867_v20 = vmax.f32 %v835_v8, 0.0  ;;  %v2089_v33 = vor.u32 %v2087_v43, %v2086_v61  ;;  %v794_v23 = vmul.f32 %v8467_v63, %v708_v18  ;;  %v4413_v46 = vrot.slane %v4412_v6, 4  ;;  %v1476_v15 = vld [vmem:[#allocation2 + $0x28] sm:$0xf] }
 0x136   : > { %v4897_v40 = vshrl.u32 %v8476_v54, 16  ;;  %v7192_v27 = vpack.c.bf16 %v862_v32, %v862_v32  ;;  %v3226_v41 = vshll.u32 %v3121_v24, 16  ;;  %v3230_v61 = vshrl.u32 %v3121_v24, 16  ;;  %v474_v43 = vld [vmem:[%s7538_s15 + $0x78] sm:$0xff]   ;;  %v3605_v32 = vld [vmem:[#allocation2 + $0x24] sm:$0xf] }
 0x137   : > { %5160 = vrot.lane.b32.xlu0 %v8357_v14, %s7447_s28  ;;  %v7197_v26 = vpack.c.bf16 %v867_v20, %v867_v20  ;;  %v2090_v8 = vsel %vm7613_vm10, %v2082_v53, %v2089_v33  ;;  %v833_v34 = vadd.f32 %v8485_v57, %v794_v23  ;;  %vm12322_vm12 = vcmask 31744   ;;  %v12331_v57 = vld [vmem:[#allocation6_spill] sm:$0xff] }
 0x138   : > { %1031 = vst.msk [vmem:[#allocation2 + $0x44] sm:$0xf] %vm12230_vm2, %v7192_v27  ;;  %2378 = vst.msk [vmem:[#allocation3 + $0xc] sm:$0xf] %vm12230_vm2, %v2090_v8  ;;  %7287 = vmatprep.mubr.msk.bf16.mxu0 %vm12322_vm12, %v472_v30  ;;  %v6722_v14 = vunpack.c.l.bf16 %v472_v30  ;;  %v6723_v6 = vunpack.c.h.bf16 %v472_v30  ;;  %v8523_v18 = vsel %vm8154_vm7, %v1475_v17, 0  ;;  %v4900_v45 = vshll.u32 %v8476_v54, 16 }
 0x139   : > { %3971 = vrot.lane.b32.xlu1 %v8404_v59, %s7445_s24  ;;  %1036 = vst.msk [vmem:[#allocation2 + $0x58] sm:$0xf] %vm12230_vm2, %v7197_v26  ;;  %v865_v59 = vmax.f32 %v833_v34, 0.0  ;;  %v2024_v24 = vsel %vm8436_vm4, %v1476_v15, 0  ;;  %v2120_v20 = vshrl.u32 %v8523_v18, 16  ;;  %v5591_v30 = vor.u32 %v8501_v36, %v8488_v12  ;;  %vm12323_vm8 = vmmov %vm12322_vm12 }
 0x13a   : > { %v8537_v17 = vsel %vm8449_vm13, %v2609_v58, 0  ;;  %v2607_v54 = vld [vmem:[#allocation2 + $0x24] sm:$0xf]  ;;  %6754 = vst.msk [vmem:[#allocation5 + $0xe0] sm:$0xff] %vm12323_vm8, %v6722_v14  ;;  %vm12324_vm6 = vmmov %vm12323_vm8  ;;  %v2129_v53 = vshrl.u32 %v2024_v24, 16  ;;  %v2132_v33 = vshll.u32 %v2024_v24, 16  ;;  %v4418_v23 = vsel %vm7632_vm14, %v4413_v46, %v8428_v56 }
 0x13b   : > { %3965 = vrot.lane.b32.xlu0 %v8408_v55, %s7445_s24  ;;  %6755 = vst.msk [vmem:[#allocation5 + $0xe8] sm:$0xff] %vm12324_vm6, %v6723_v6  ;;  %v8544_v27 = vrot.slane %v3226_v41, 5  ;;  %v4284_v55 = vld [vmem:[#allocation2 + $0x24] sm:$0xf]  ;;  %v7195_v15 = vpack.c.bf16 %v865_v59, %v865_v59  ;;  %v8546_v36 = vrot.slane %v2120_v20, 7  ;;  %v3232_v58 = vrot.slane %v3230_v61, 4  ;;  %vm12325_vm9 = vmmov %vm12324_vm6 }
 0x13c   : > { %v3638_v26 = vsel %vm8260_vm15, %v3605_v32, 0  ;;  %v8552_v8 = vrot.slane %v2129_v53, 7  ;;  %v3120_v34 = vsel %vm8309_vm3, %v2607_v54, 0  ;;  %v6724_v41 = vunpack.c.l.bf16 %v474_v43  ;;  %7288 = vmatmul.mubr.msk.bf16.gmra.mxu0 %vm12325_vm9, %v474_v43  ;;  %v4097_v32 = vld [vmem:[#allocation2 + $0x3c] sm:$0xf]  ;;  %vm12326_vm15 = vmmov %vm12324_vm6 }
 0x13d   : > { %5166 = vrot.lane.b32.xlu1 %v8472_v29, %s7447_s28  ;;  %1034 = vst.msk [vmem:[#allocation2 + $0x50] sm:$0xf] %vm12230_vm2, %v7195_v15  ;;  %v2127_v46 = vrot.slane %v8546_v36, 4  ;;  %v6725_v14 = vunpack.c.h.bf16 %v474_v43  ;;  %v8559_v6 = vrot.slane %v4897_v40, 7  ;;  %v3236_v29 = vshll.u32 %v8537_v17, 16  ;;  %vm12327_vm12 = vmmov %vm12324_vm6 }
 0x13e   : > { %v4317_v25 = vsel %vm8009_vm5, %v4284_v55, 0  ;;  %v2134_v61 = vor.u32 %v2132_v33, %v8552_v8  ;;  %v4895_v24 = vrot.slane %v8289_v7, 4  ;;  %v3716_v20 = vshrl.u32 %v3638_v26, 16  ;;  %6756 = vst.msk [vmem:[#allocation5 + $0xf0] sm:$0xff] %vm12326_vm15, %v6724_v41  ;;  %v5294_v41 = vld [vmem:[#allocation2 + $0x3c] sm:$0xf] }
 0x13f   : > { %4681 = vrot.lane.b32.xlu0 %v4418_v23, %s7446_s27  ;;  %v5578_v54 = vshrl.u32 %v8352_v2, 16  ;;  %6757 = vst.msk [vmem:[#allocation5 + $0xf8] sm:$0xff] %vm12327_vm12, %v6725_v14  ;;  %v12328_v11 = vshll.u32 %v8442_v42, 16  ;;  %v3216_v53 = vshll.u32 %v3120_v34, 16  ;;  %v3220_v43 = vshrl.u32 %v3120_v34, 16 }
 0x140   : > { %v2135_v33 = vsel %vm7613_vm10, %v2127_v46, %v2134_v61  ;;  %v5291_v23 = vld [vmem:[#allocation2 + $0x30] sm:$0xf]  ;;  %v5592_v7 = vrot.slane %v5591_v30, 4  ;;  %v3233_v55 = vor.u32 %v3232_v58, %v8544_v27  ;;  %v4395_v2 = vshll.u32 %v4317_v25, 16 }
 0x141   : > { %4172 = vrot.lane.b32.xlu1 %v4097_v32, %s7443_s22  ;;  %v8574_v40 = vrot.slane %v12328_v11, 5  ;;  %v4399_v15 = vshrl.u32 %v4317_v25, 16  ;;  %2383 = vst.msk [vmem:[#allocation3 + $0x20] sm:$0xf] %vm12230_vm2, %v2135_v33  ;;  %v4902_v14 = vor.u32 %v4900_v45, %v8559_v6  ;;  %v8582_v32 = vrot.slane %v3236_v29, 5 }
 0x142   : > { %v12329_v11 = vshrl.u32 %v8244_v21, 16  ;;  %v8587_v61 = vrot.slane %v3716_v20, 7  ;;  %v3719_v30 = vshll.u32 %v3638_v26, 16  ;;  %v12330_v58 = vshrl.u32 %v8211_v60, 16  ;;  %v4287_v33 = vld [vmem:[#allocation2 + $0x30] sm:$0xf] }
 0x143   : > { %5361 = vrot.lane.b32.xlu0 %v5291_v23, %s7444_s23  ;;  %v5580_v59 = vrot.slane %v5578_v54, 4  ;;  %v3714_v23 = vrot.slane %v8341_v48, 4  ;;  %v8593_v45 = vrot.slane %v3216_v53, 5  ;;  %v3222_v29 = vrot.slane %v3220_v43, 4 }
 0x144   : > { %v3212_v46 = vrot.slane %v12329_v11, 4  ;;  %v4391_v25 = vrot.slane %v12330_v58, 4  ;;  %v1063_v34 = vadd.s32 96, %v12331_v57  ;;  %v5597_v21 = vsel %vm7632_vm14, %v5592_v7, %v8574_v40  ;;  %v2420_v11 = vld [vmem:[#allocation2 + $0x3c] sm:$0xf] }
 0x145   : > { %5367 = vrot.lane.b32.xlu1 %v5294_v41, %s7444_s23  ;;  %v3234_v20 = vrot.slane %v3233_v55, 4  ;;  %v8599_v26 = vrot.slane %v4395_v2, 5  ;;  %v4401_v60 = vrot.slane %v4399_v15, 4  ;;  %v4320_v48 = vsel %vm3088_vm0, %v4287_v33, 0 }
 0x146   : > { %v3213_v54 = vor.u32 %v3212_v46, %v8321_v10  ;;  %v12332_v53 = vshrl.u32 %v8375_v1, 16  ;;  %vm3090_vm5 = vcmp.ne.s16.totalorder %v8229_v52, 0  ;;  %v1171_v41 = vand.u32 15, %v1063_v34  ;;  %v3610_v1 = vld [vmem:[#allocation2 + $0x38] sm:$0xf] }
 0x147   : > { %5876 = vrot.lane.b32.xlu0 %v5597_v21, %s7448_s29  ;;  %v3721_v7 = vor.u32 %v3719_v30, %v8587_v61  ;;  %v4392_v55 = vor.u32 %v4391_v25, %v8279_v44  ;;  %v5581_v2 = vor.u32 %v5580_v59, %v8379_v51  ;;  %v3728_v15 = vshll.u32 %v8273_v16, 16  ;;  %v2417_v59 = vld [vmem:[#allocation2 + $0x30] sm:$0xf]  ;;  %v4098_v52 = vld [vmem:[#allocation2 + $0x40] sm:$0xf] }
 0x148   : > { %v4421_v43 = vrot.slane %v12332_v53, 4  ;;  %v3223_v10 = vor.u32 %v3222_v29, %v8593_v45  ;;  %v4909_v46 = vshll.u32 %v8331_v28, 16  ;;  %vm8615_vm8 = vcmp.gt.s32.totalorder %v1171_v41, 0  ;;  %v5484_v53 = vld [vmem:[#allocation2 + $0x30] sm:$0xf] }
 0x149   : > { %2497 = vrot.lane.b32.xlu1 %v2420_v11, %s7441_s16  ;;  %v12335_v34 = vsel %vm7632_vm14, %v7673_v31, %v8075_v3  ;;  %v1062_v16 = vadd.s32 88, %v12331_v57  ;;  %v4903_v30 = vsel %vm7613_vm10, %v4895_v24, %v4902_v14  ;;  %v3239_v28 = vsel %vm7632_vm14, %v3234_v20, %v8582_v32  ;;  %vm1608_vm9 = vmpackc.low %vm8615_vm8, %vm8615_vm8 }
 0x14a   : > { %vm8624_vm6 = vcmp.ne.s16.totalorder %v12335_v34, 0  ;;  %v4402_v58 = vor.u32 %v4401_v60, %v8599_v26  ;;  %v4425_v25 = vshll.u32 %v4320_v48, 16  ;;  %v8636_v3 = vrot.slane %v3213_v54, 4  ;;  %v12343_v34 = vld [vmem:[#allocation13_spill] sm:$0xff] }
 0x14b   : > { %2491 = vrot.lane.b32.xlu0 %v2417_v59, %s7441_s16  ;;  %v4422_v33 = vor.u32 %v4421_v43, %v8428_v56  ;;  %v4429_v29 = vshrl.u32 %v4320_v48, 16  ;;  %v1164_v21 = vand.u32 15, %v1062_v16  ;;  %v8642_v24 = vrot.slane %v4392_v55, 4  ;;  %v2610_v55 = vld [vmem:[#allocation2 + $0x30] sm:$0xf] }
 0x14c   : > { %v8644_v14 = vrot.slane %v5581_v2, 4  ;;  %v3723_v20 = vrot.slane %v8587_v61, 4  ;;  %v3730_v60 = vor.u32 %v3728_v15, %v8333_v38  ;;  %v3722_v56 = vsel %vm7613_vm10, %v3714_v23, %v3721_v7 }
 0x14d   : > { %5162 = vrot.lane.b32.xlu1 %v4903_v30, %s7447_s28  ;;  %v8651_v54 = vrot.slane %v3223_v10, 4  ;;  %v4904_v48 = vrot.slane %v8559_v6, 4  ;;  %v4911_v43 = vor.u32 %v4909_v46, %v8371_v13  ;;  %v8655_v41 = vrot.slane %v4402_v58, 4  ;;  %v1474_v10 = vld [vmem:[#allocation2 + $0x20] sm:$0xf] }
 0x14e   : > { %v8657_v11 = vrot.slane %v4425_v25, 5  ;;  %v12338_v61 = vmov 0   ;;  %vm8662_vm15 = vcmp.lt.s32.totalorder %v1164_v21, 15  ;;  %v8667_v23 = vrot.slane %v4422_v33, 4  ;;  %v4094_v21 = vld [vmem:[#allocation2 + $0x30] sm:$0xf] }
 0x14f   : > { %v8660_v2 = vsel %vm1608_vm9, 65537, %v12338_v61  ;;  %3486 = vrot.lane.b32.xlu0 %v3239_v28, %s7442_s17  ;;  %v8669_v7 = vrot.slane %v4429_v29, 4  ;;  %v8673_v13 = vsel %vm3086_vm1, %v5484_v53, 0  ;;  %v12342_v6 = vshrl.u32 %v8442_v42, 16  ;;  %vm2740_vm12 = vmpackc.low %vm8662_vm15, %vm8662_vm15  ;;  %v1477_v29 = vld [vmem:[#allocation2 + $0x2c] sm:$0xf] }
 0x150   : > { %v8691_v42 = vsel %vm7613_vm10, %v3723_v20, %v3730_v60  ;;  %v12344_v16 = vsel %vm7632_vm14, %v12343_v34, %v7665_v22  ;;  %v8709_v28 = vsel %vm7613_vm10, %v4904_v48, %v4911_v43  ;;  %v12347_v58 = vshrl.u32 %v8537_v17, 16  ;;  %v5292_v34 = vld [vmem:[#allocation2 + $0x34] sm:$0xf]  ;;  %v4289_v17 = vld [vmem:[#allocation2 + $0x38] sm:$0xf] }
 0x151   : > { %12341 = vst [vmem:[#allocation12_spill] sm:$0xff] %v8669_v7  ;;  %v5600_v15 = vrot.slane %v12342_v6, 4  ;;  %vm8698_vm1 = vcmp.ne.s16.totalorder %v12344_v16, 0  ;;  %3967 = vrot.lane.b32.xlu1 %v3722_v56, %s7445_s24  ;;  %v1783_v33 = vshll.u32 %v8660_v2, 16  ;;  %v5604_v60 = vshll.u32 %v8673_v13, 16 }
 0x152   : > { %v3242_v25 = vrot.slane %v12347_v58, 4  ;;  %v3123_v53 = vsel %vm3090_vm5, %v2610_v55, 0  ;;  %v2022_v56 = vsel %vm8183_vm11, %v1474_v10, 0  ;;  %v7388_v55 = vld [vmem:[%s12182_s4 + $0x10] ss:$0 sps:$4 sm:$0x33]   ;;  %v12379_v62 = vsel %vm7632_vm14, %v8667_v23, %v8657_v11 }
 0x153   : > { %4166 = vrot.lane.b32.xlu0 %v4094_v21, %s7443_s22  ;;  %v5601_v38 = vor.u32 %v5600_v15, %v8574_v40  ;;  %v2111_v6 = vshrl.u32 %v2022_v56, 16  ;;  %v8739_v16 = vsel %vm2740_vm12, 65537, %v12338_v61  ;;  %v2114_v58 = vshll.u32 %v2022_v56, 16  ;;  %v4805_v15 = vld [vmem:[#allocation2 + $0x30] sm:$0xf] }
 0x154   : > { %v2025_v21 = vsel %vm8624_vm6, %v1477_v29, 0  ;;  %v3243_v40 = vor.u32 %v3242_v25, %v8582_v32  ;;  %v8747_v43 = vrot.slane %v1783_v33, 5  ;;  %vm12350_vm8 = vcmask 1041408   ;;  %v2418_v10 = vld [vmem:[#allocation2 + $0x34] sm:$0xf] }
 0x155   : > { %v8743_v48 = vpop.permute.xlu0 %4154  ;;  %5363 = vrot.lane.b32.xlu1 %v5292_v34, %s7444_s23  ;;  %v8749_v20 = vrot.slane %v2111_v6, 7  ;;  %v2138_v30 = vshrl.u32 %v2025_v21, 16  ;;  %7350 = vmatprep.subr.msk.bf16.mxu1 %vm12350_vm8, %v7388_v55  ;;  %v8752_v39 = vrot.slane %v5604_v60, 5  ;;  %v3246_v56 = vshll.u32 %v3123_v53, 16  ;;  %v12351_v32 = vld [vmem:[#allocation16_spill] sm:$0xff] }
 0x156   : > { %12349 = vst [vmem:[#allocation13_spill] sm:$0xff] %v8743_v48  ;;  %v2109_v29 = vrot.slane %v8462_v9, 4  ;;  %v2141_v46 = vshll.u32 %v2025_v21, 16  ;;  %v12352_v25 = vsel %vm7632_vm14, %v12351_v32, %v8379_v51  ;;  %v1786_v33 = vsel %vm7632_vm14, %v7673_v31, %v8747_v43  ;;  %v3608_v60 = vld [vmem:[#allocation2 + $0x30] sm:$0xf] }
 0x157   : > { %v2476_v48 = vpop.permute.xlu1 %2475  ;;  %5872 = vrot.lane.b32.xlu0 %v12352_v25, %s7448_s29  ;;  %v4807_v6 = vld [vmem:[#allocation2 + $0x38] sm:$0xf]  ;;  %v2892_v55 = vshrl.u32 %v8739_v16, 16  ;;  %v2116_v9 = vor.u32 %v2114_v58, %v8749_v20  ;;  %v8767_v34 = vrot.slane %v2138_v30, 7  ;;  %vm12354_vm9 = vcmask 60448  }
 0x158   : > { %2570 = vst.msk [vmem:[#allocation3 + $0x8] sm:$0xf] %vm12354_vm9, %v2476_v48  ;;  %v3250_v21 = vshrl.u32 %v3123_v53, 16  ;;  %v8772_v51 = vsel %vm8183_vm11, %v4805_v15, 0  ;;  %v4808_v25 = vld [vmem:[#allocation2 + $0x3c] sm:$0xf]  ;;  %v12360_v15 = vsel %vm7632_vm14, %v8636_v3, %v8593_v45 }
 0x159   : > { %12353 = vst [vmem:[#allocation14_spill] sm:$0xff] %v8767_v34  ;;  %v2136_v31 = vrot.slane %v8552_v8, 4  ;;  %v8776_v7 = vpop.permute.xlu0 %5349  ;;  %2493 = vrot.lane.b32.xlu1 %v2418_v10, %s7441_s16  ;;  %v8779_v63 = vrot.slane %v5601_v38, 4  ;;  %v8781_v30 = vrot.slane %v3243_v40, 4  ;;  %v8785_v53 = vsel %vm8698_vm1, %v3610_v1, 0 }
 0x15a   : > { %12355 = vst [vmem:[#allocation16_spill] sm:$0xff] %v8776_v7  ;;  %v2117_v48 = vsel %vm7613_vm10, %v2109_v29, %v2116_v9  ;;  %vm8789_vm11 = vcmp.ne.s16.totalorder %v1786_v33, 0  ;;  %v12356_v58 = vmov 0  ;;  %v3611_v8 = vld [vmem:[#allocation2 + $0x3c] sm:$0xf]  ;;  %v8795_v10 = vsel %vm8436_vm4, %v3608_v60, 0 }
 0x15b   : > { %v12357_v58 = vsel %vm8789_vm11, 4294967295, %v12356_v58  ;;  %v8799_v38 = vsel %vm8436_vm4, %v4807_v6, 0  ;;  %2381 = vst.msk [vmem:[#allocation3 + $0x18] sm:$0xf] %vm12230_vm2, %v2117_v48  ;;  %v2143_v1 = vor.u32 %v2141_v46, %v8767_v34  ;;  %v8803_v40 = vpop.permute.xlu1 %4156  ;;  %3482 = vrot.lane.b32.xlu0 %v12360_v15, %s7442_s17  ;;  %v8811_v29 = vrot.slane %v3246_v56, 5  ;;  %vm12361_vm4 = vmmov %vm12354_vm9 }
 0x15c   : > { %12358 = vst [vmem:[#allocation17_spill] sm:$0xff] %v12357_v58  ;;  %12359 = vst [vmem:[#allocation18_spill] sm:$0xff] %v8803_v40  ;;  %v8815_v35 = vsel %vm8624_vm6, %v4808_v25, 0  ;;  %v8817_v33 = vrot.slane %v2892_v55, 7  ;;  %v2895_v60 = vshll.u32 %v8739_v16, 16  ;;  %v8820_v6 = vrot.slane %v3250_v21, 4 }
 0x15d   : > { %v4095_v46 = vld [vmem:[#allocation2 + $0x34] sm:$0xf]  ;;  %v4924_v9 = vshrl.u32 %v8772_v51, 16  ;;  %v4322_v48 = vsel %vm3090_vm5, %v4289_v17, 0  ;;  %v2144_v45 = vsel %vm7613_vm10, %v2136_v31, %v2143_v1  ;;  %v2480_v3 = vpop.permute.xlu0 %2479  ;;  %v8830_v56 = vsel %vm8789_vm11, %v3611_v8, 0  ;;  %vm12366_vm15 = vmmov %vm12361_vm4 }
 0x15e   : > { %4168 = vrot.lane.b32.xlu1 %v4095_v46, %s7443_s22  ;;  %v3761_v16 = vshrl.u32 %v8785_v53, 16  ;;  %v3743_v55 = vshrl.u32 %v8795_v10, 16  ;;  %v4942_v21 = vshrl.u32 %v8799_v38, 16  ;;  %2384 = vst.msk [vmem:[#allocation3 + $0x24] sm:$0xf] %vm12230_vm2, %v2144_v45  ;;  %v1787_v25 = vshrl.u32 %v8660_v2, 16 }
 0x15f   : > { %2572 = vst.msk [vmem:[#allocation3 + $0x10] sm:$0xf] %vm12361_vm4, %v2480_v3  ;;  %v4951_v31 = vshrl.u32 %v8815_v35, 16  ;;  %v2118_v17 = vrot.slane %v8749_v20, 4  ;;  %v2123_v1 = vshll.u32 %v8523_v18, 16  ;;  %v8841_v8 = vpop.permute.xlu1 %5351  ;;  %v12363_v15 = vsel %vm7632_vm14, %v8642_v24, %v8599_v26 }
 0x160   : > { %12362 = vst [vmem:[#allocation19_spill] sm:$0xff] %v8841_v8  ;;  %4677 = vrot.lane.b32.xlu0 %v12363_v15, %s7446_s27  ;;  %v2897_v46 = vor.u32 %v2895_v60, %v8817_v33  ;;  %v4445_v45 = vshll.u32 %v4322_v48, 16  ;;  %v4449_v3 = vshrl.u32 %v4322_v48, 16  ;;  %v1064_v2 = vadd.s32 104, %v12331_v57 }
 0x161   : > { %v8851_v32 = vrot.slane %v4924_v9, 7  ;;  %v4927_v20 = vshll.u32 %v8772_v51, 16  ;;  %v3770_v18 = vshrl.u32 %v8830_v56, 16  ;;  %v2125_v8 = vor.u32 %v2123_v1, %v8546_v36  ;;  %v8856_v40 = vpop.permute.xlu0 %4150  ;;  %v5486_v51 = vld [vmem:[#allocation2 + $0x38] sm:$0xf] }
 0x162   : > { %v12364_v26 = vsel %vm7632_vm14, %v8644_v14, %v8488_v12  ;;  %v8864_v24 = vrot.slane %v3761_v16, 7  ;;  %v8866_v60 = vrot.slane %v3743_v55, 7  ;;  %v3746_v9 = vshll.u32 %v8795_v10, 16  ;;  %v5487_v55 = vld [vmem:[#allocation2 + $0x3c] sm:$0xf] }
 0x163   : > { %5874 = vrot.lane.b32.xlu1 %v12364_v26, %s7448_s29  ;;  %v1178_v48 = vand.u32 15, %v1064_v2  ;;  %v1789_v15 = vrot.slane %v1787_v25, 4  ;;  %v8869_v7 = vrot.slane %v4942_v21, 7  ;;  %v4954_v36 = vshll.u32 %v8815_v35, 16  ;;  %v2482_v34 = vpop.permute.xlu1 %2481  ;;  %v4290_v25 = vld [vmem:[#allocation2 + $0x3c] sm:$0xf] }
 0x164   : > { %v2126_v1 = vsel %vm7613_vm10, %v2118_v17, %v2125_v8  ;;  %3969 = vrot.lane.b32.xlu0 %v8691_v42, %s7445_s24  ;;  %v8876_v12 = vrot.slane %v4951_v31, 7  ;;  %v2898_v14 = vsel %vm7613_vm10, %v7610_v47, %v2897_v46  ;;  %v8881_v10 = vrot.slane %v4445_v45, 5  ;;  %2573 = vst.msk [vmem:[#allocation3 + $0x14] sm:$0xf] %vm12366_vm15, %v2482_v34  ;;  %v12372_v46 = vld [vmem:[#allocation15_spill] sm:$0xff]  ;;  %vm12380_vm15 = vmmov %vm12361_vm4 }
 0x165   : > { %v4451_v16 = vrot.slane %v4449_v3, 4  ;;  %2382 = vst.msk [vmem:[#allocation3 + $0x1c] sm:$0xf] %vm12230_vm2, %v2126_v1  ;;  %v8885_v35 = vrot.slane %v3770_v18, 7  ;;  %v3773_v21 = vshll.u32 %v8830_v56, 16  ;;  %v5519_v42 = vsel %vm3088_vm0, %v5486_v51, 0  ;;  %v8894_v17 = vpop.permute.xlu0 %4162 }
 0x166   : > { %12365 = vst [vmem:[#allocation20_spill] sm:$0xff] %v8881_v10  ;;  %vm8890_vm12 = vcmp.lt.s32.totalorder %v1178_v48, 15  ;;  %12370 = vst [vmem:[#allocation22_spill] sm:$0xff] %v8894_v17  ;;  %v12371_v34 = vsel %vm7632_vm14, %v8651_v54, %v8544_v27  ;;  %v4929_v5 = vor.u32 %v4927_v20, %v8851_v32  ;;  %v3768_v8 = vrot.slane %v8864_v24, 4  ;;  %v4100_v48 = vld [vmem:[#allocation2 + $0x48] sm:$0xf] }
 0x167   : > { %12367 = vst [vmem:[#allocation21_spill] sm:$0xff] %v8885_v35  ;;  %3484 = vrot.lane.b32.xlu1 %v12371_v34, %s7442_s17  ;;  %v3741_v45 = vrot.slane %v12372_v46, 4  ;;  %v1790_v3 = vor.u32 %v1789_v15, %v8747_v43  ;;  %vm8910_vm0 = vcmp.ne.s16.totalorder %v2898_v14, 0  ;;  %v8916_v27 = vsel %vm8449_vm13, %v5487_v55, 0  ;;  %v2478_v18 = vpop.permute.xlu1 %2477  ;;  %vm2742_vm9 = vmpackc.low %vm8890_vm12, %vm8890_vm12  ;;  %v4806_v1 = vld [vmem:[#allocation2 + $0x34] sm:$0xf] }
 0x168   : > { %v2899_v54 = vrot.slane %v8817_v33, 4  ;;  %5164 = vrot.lane.b32.xlu0 %v8709_v28, %s7447_s28  ;;  %vm12231_vm8 = vcmask 126048   ;;  %v3748_v20 = vor.u32 %v3746_v9, %v8866_v60  ;;  %v4323_v43 = vsel %vm8910_vm0, %v4290_v25, 0  ;;  %2571 = vst.msk [vmem:[#allocation3 + $0xc] sm:$0xf] %vm12361_vm4, %v2478_v18 }
 0x169   : > { %v5624_v26 = vshll.u32 %v5519_v42, 16  ;;  %v5628_v51 = vshrl.u32 %v5519_v42, 16  ;;  %v3775_v33 = vor.u32 %v3773_v21, %v8885_v35  ;;  %v4949_v15 = vrot.slane %v8869_v7, 4  ;;  %v8932_v14 = vpop.permute.xlu0 %5357  ;;  %v3609_v18 = vld [vmem:[#allocation2 + $0x34] sm:$0xf] }
 0x16a   : > { %v4956_v28 = vor.u32 %v4954_v36, %v8876_v12  ;;  %v4452_v9 = vor.u32 %v4451_v16, %v8881_v10  ;;  %12375 = vst [vmem:[#allocation15_spill] sm:$0xff] %v8932_v14  ;;  %v12376_v55 = vsel %vm7632_vm14, %v8655_v41, %v8419_v49  ;;  %v12377_v16 = vrot.slane %v8392_v37, 4  ;;  %v12378_v41 = vld [vmem:[#allocation7_spill] sm:$0xff]  ;;  %v1479_v36 = vld [vmem:[#allocation2 + $0x34] sm:$0xf] }
 0x16b   : > { %4679 = vrot.lane.b32.xlu1 %v12376_v55, %s7446_s27  ;;  %v5634_v42 = vshll.u32 %v8916_v27, 16  ;;  %v1791_v34 = vrot.slane %v1790_v3, 4  ;;  %v4455_v46 = vshll.u32 %v4323_v43, 16  ;;  %v8959_v49 = vsel %vm2742_vm9, 65537, %v12338_v61  ;;  %v5297_v21 = vld [vmem:[#allocation2 + $0x48] sm:$0xf] }
 0x16c   : > { %v8950_v25 = vsel %vm7613_vm10, %v12377_v16, %v4929_v5  ;;  %v8964_v37 = vsel %vm7613_vm10, %v2899_v54, %v12378_v41  ;;  %v8966_v5 = vpop.permute.xlu1 %4152  ;;  %4178 = vrot.lane.b32.xlu0 %v4100_v48, %s7443_s22  ;;  %v4459_v3 = vshrl.u32 %v4323_v43, 16  ;;  %v8969_v55 = vrot.slane %v5624_v26, 5  ;;  %v2612_v48 = vld [vmem:[#allocation2 + $0x38] sm:$0xf]  ;;  %v5485_v17 = vld [vmem:[#allocation2 + $0x34] sm:$0xf] }
 0x16d   : > { %v8971_v16 = vrot.slane %v5628_v51, 4  ;;  %v8975_v31 = vsel %vm8154_vm7, %v4806_v1, 0  ;;  %v8979_v54 = vsel %vm7613_vm10, %v3768_v8, %v3775_v33  ;;  %v8983_v56 = vsel %vm7613_vm10, %v3741_v45, %v3748_v20  ;;  %v2488_v51 = vpop.permute.xlu0 %2487 }
 0x16e   : > { %v8987_v43 = vsel %vm7613_vm10, %v4949_v15, %v4956_v28  ;;  %v8989_v26 = vrot.slane %v4452_v9, 4  ;;  %v8997_v8 = vrot.slane %v5634_v42, 5  ;;  %v2910_v45 = vshrl.u32 %v8959_v49, 16  ;;  %2576 = vst.msk [vmem:[#allocation3 + $0x20] sm:$0xf] %vm12380_vm15, %v2488_v51 }
 0x16f   : > { %4683 = vrot.lane.b32.xlu1 %v12379_v62, %s7446_s27  ;;  %vm12232_vm7 = vcmp.ne.s16.totalorder %v8964_v37, 0  ;;  %v9003_v20 = vsel %vm8624_vm6, %v3609_v18, 0  ;;  %v9006_v33 = vrot.slane %v4455_v46, 5  ;;  %v4933_v15 = vshrl.u32 %v8975_v31, 16  ;;  %v1480_v28 = vld [vmem:[#allocation2 + $0x38] sm:$0xf] }
 0x170   : > { %v1796_v23 = vsel %vm7632_vm14, %v1791_v34, %v7665_v22  ;;  %v9014_v9 = vsel %vm8789_vm11, %v1479_v36, 0  ;;  %v3473_v1 = vpop.permute.xlu1 %3472  ;;  %5373 = vrot.lane.b32.xlu0 %v5297_v21, %s7444_s23  ;;  %v9017_v44 = vrot.slane %v4459_v3, 4  ;;  %v5631_v42 = vor.u32 %v8971_v16, %v8969_v55  ;;  %v2423_v18 = vld [vmem:[#allocation2 + $0x48] sm:$0xf]  ;;  %v7278_v3 = vpop.f32.mrf.mxu0 }
 0x171   : > { %12381 = vst [vmem:[#allocation23_spill] sm:$0xff] %v9014_v9  ;;  %v5638_v46 = vshrl.u32 %v8916_v27, 16  ;;  %vm12229_vm6 = vcmask 158848   ;;  %vm12382_vm12 = vcmask 93248   ;;  %v3125_v34 = vsel %vm12232_vm7, %v2612_v48, 0  ;;  %v3958_v62 = vpop.permute.xlu0 %3957 }
 0x172   : > { %3568 = vst.msk [vmem:[#allocation3 + $0x4] sm:$0xf] %vm12382_vm12, %v3473_v1  ;;  %v3752_v36 = vshrl.u32 %v9003_v20, 16  ;;  %vm9026_vm9 = vcmp.ne.s16.totalorder %v1796_v23, 0  ;;  %v2156_v21 = vshrl.u32 %v9014_v9, 16  ;;  %v12385_v27 = vsel %vm7632_vm14, %v8779_v63, %v8752_v39  ;;  %vm12402_vm15 = vmmov %vm12382_vm12 }
 0x173   : > { %5878 = vrot.lane.b32.xlu1 %v12385_v27, %s7448_s29  ;;  %v4936_v16 = vshll.u32 %v8975_v31, 16  ;;  %v9038_v48 = vrot.slane %v2910_v45, 7  ;;  %v2913_v23 = vshll.u32 %v8959_v49, 16  ;;  %v2028_v1 = vsel %vm9026_vm9, %v1480_v28, 0  ;;  %4054 = vst.msk [vmem:[#allocation3] sm:$0xf] %vm12231_vm8, %v3958_v62 }
 0x174   : > { %v9044_v14 = vrot.slane %v4933_v15, 7  ;;  %v9046_v58 = vrot.slane %v2156_v21, 7  ;;  %v2165_v9 = vshrl.u32 %v2028_v1, 16  ;;  %v2168_v22 = vshll.u32 %v2028_v1, 16  ;;  %v9048_v63 = vpop.permute.xlu1 %3963  ;;  %2503 = vrot.lane.b32.xlu0 %v2423_v18, %s7441_s16  ;;  %4247 = vst.msk [vmem:[#allocation3] sm:$0xf] %vm12229_vm6, %v8856_v40  ;;  %v711_v18 = vpop.f32.mrf.mxu0 }
 0x175   : > { %v4931_v31 = vrot.slane %v8851_v32, 4  ;;  %v3266_v45 = vshll.u32 %v3125_v34, 16  ;;  %v3270_v28 = vshrl.u32 %v3125_v34, 16  ;;  %v9058_v15 = vrot.slane %v3752_v36, 7  ;;  %v9064_v1 = vpop.permute.xlu0 %4673 }
 0x176   : > { %12386 = vst [vmem:[#allocation24_spill] sm:$0xff] %v9046_v58  ;;  %v3755_v21 = vshll.u32 %v9003_v20, 16  ;;  %v2163_v62 = vrot.slane %v9046_v58, 4  ;;  %v9062_v27 = vrot.slane %v2165_v9, 7  ;;  %12387 = vst [vmem:[#allocation25_spill] sm:$0xff] %v9064_v1  ;;  %v12388_v32 = vsel %vm7632_vm14, %v8781_v30, %v8811_v29  ;;  %v12390_v9 = vld [vmem:[#allocation11_spill] sm:$0xff] }
 0x177   : > { %3488 = vrot.lane.b32.xlu1 %v12388_v32, %s7442_s17  ;;  %v2915_v40 = vor.u32 %v2913_v23, %v9038_v48  ;;  %v5518_v34 = vsel %vm8309_vm3, %v5485_v17, 0  ;;  %v12389_v20 = vshrl.u32 %v8673_v13, 16  ;;  %v797_v49 = vmul.f32 %v12390_v9, %v7278_v3  ;;  %v12392_v3 = vld [vmem:[#allocation10_spill] sm:$0xff] }
 0x178   : > { %v9078_v58 = vrot.slane %v5631_v42, 4  ;;  %v9080_v1 = vrot.slane %v5638_v46, 4  ;;  %v4938_v35 = vor.u32 %v4936_v16, %v9044_v14  ;;  %v2170_v10 = vor.u32 %v2168_v22, %v9062_v27  ;;  %v9084_v30 = vpop.permute.xlu1 %5158  ;;  %5168 = vrot.lane.b32.xlu0 %v8950_v25, %s7447_s28  ;;  %v2611_v16 = vld [vmem:[#allocation2 + $0x34] sm:$0xf] }
 0x179   : > { %v5610_v36 = vrot.slane %v12389_v20, 4  ;;  %12391 = vst [vmem:[#allocation11_spill] sm:$0xff] %v9084_v30  ;;  %v9090_v13 = vrot.slane %v3266_v45, 5  ;;  %v3272_v17 = vrot.slane %v3270_v28, 4  ;;  %v836_v42 = vadd.f32 %v12392_v3, %v797_v49  ;;  %v7281_v20 = vpop.f32.mrf.mxu0  ;;  %v9096_v30 = vpop.permute.xlu0 %5353 }
 0x17a   : > { %v3750_v46 = vrot.slane %v8866_v60, 4  ;;  %v5614_v23 = vshll.u32 %v5518_v34, 16  ;;  %v5618_v32 = vshrl.u32 %v5518_v34, 16  ;;  %v2171_v22 = vsel %vm7613_vm10, %v2163_v62, %v2170_v10  ;;  %v4288_v62 = vld [vmem:[#allocation2 + $0x34] sm:$0xf] }
 0x17b   : > { %3979 = vrot.lane.b32.xlu1 %v8979_v54, %s7445_s24  ;;  %v2916_v25 = vsel %vm7613_vm10, %v7610_v47, %v2915_v40  ;;  %v3757_v49 = vor.u32 %v3755_v21, %v9058_v15  ;;  %v5611_v60 = vor.u32 %v5610_v36, %v8752_v39  ;;  %2387 = vst.msk [vmem:[#allocation3 + $0x30] sm:$0xf] %vm12230_vm2, %v2171_v22  ;;  %v868_v45 = vmax.f32 %v836_v42, 0.0 }
 0x17c   : > { %v9114_v54 = vsel %vm7613_vm10, %v4931_v31, %v4938_v35  ;;  %v795_v21 = vmul.f32 %v12390_v9, %v711_v18  ;;  %v9117_v40 = vpop.permute.xlu1 %4164  ;;  %3973 = vrot.lane.b32.xlu0 %v8983_v56, %s7445_s24  ;;  %v3273_v39 = vor.u32 %v3272_v17, %v9090_v13  ;;  %v3124_v34 = vsel %vm8910_vm0, %v2611_v16, 0  ;;  %v2613_v31 = vld [vmem:[#allocation2 + $0x3c] sm:$0xf]  ;;  %v724_v17 = vpop.f32.mrf.mxu0 }
 0x17d   : > { %12393 = vst [vmem:[#allocation10_spill] sm:$0xff] %v9117_v40  ;;  %v12394_v36 = vor.u32 %v8820_v6, %v8811_v29  ;;  %v7198_v35 = vpack.c.bf16 %v868_v45, %v868_v45  ;;  %vm9129_vm3 = vcmp.ne.s16.totalorder %v2916_v25, 0  ;;  %v9133_v18 = vrot.slane %v5614_v23, 5  ;;  %v9136_v4 = vpop.permute.xlu0 %5868 }
 0x17e   : > { %v5620_v28 = vrot.slane %v5618_v32, 4  ;;  %v834_v56 = vadd.f32 %v12392_v3, %v795_v21  ;;  %v9142_v29 = vsel %vm7613_vm10, %v3750_v46, %v3757_v49  ;;  %v9144_v6 = vrot.slane %v5611_v60, 4  ;;  %v4101_v60 = vld [vmem:[#allocation2 + $0x4c] sm:$0xf] }
 0x17f   : > { %v9127_v42 = vrot.slane %v12394_v36, 4  ;;  %5174 = vrot.lane.b32.xlu1 %v8987_v43, %s7447_s28  ;;  %v4321_v16 = vsel %vm8449_vm13, %v4288_v62, 0  ;;  %1037 = vst.msk [vmem:[#allocation2 + $0x5c] sm:$0xf] %vm12230_vm2, %v7198_v35  ;;  %v800_v23 = vmul.f32 %v12390_v9, %v7281_v20  ;;  %v3256_v25 = vshll.u32 %v3124_v34, 16  ;;  %vm12399_vm13 = vmmov %vm12361_vm4 }
 0x180   : > { %v3260_v45 = vshrl.u32 %v3124_v34, 16  ;;  %v866_v21 = vmax.f32 %v834_v56, 0.0  ;;  %v9151_v36 = vpop.permute.xlu1 %5359  ;;  %v12398_v43 = vsel %vm7632_vm14, %v8989_v26, %v9006_v33  ;;  %v3126_v19 = vsel %vm9129_vm3, %v2613_v31, 0  ;;  %v12400_v26 = vld [vmem:[#allocation12_spill] sm:$0xff] }
 0x181   : > { %12397 = vst [vmem:[#allocation26_spill] sm:$0xff] %v9151_v36  ;;  %4689 = vrot.lane.b32.xlu0 %v12398_v43, %s7446_s27  ;;  %v9161_v46 = vrot.slane %v3273_v39, 4  ;;  %v839_v20 = vadd.f32 %v12392_v3, %v800_v23  ;;  %v798_v49 = vmul.f32 %v12390_v9, %v724_v17  ;;  %v4435_v62 = vshll.u32 %v4321_v16, 16  ;;  %v2484_v32 = vpop.permute.xlu0 %2483  ;;  %v5295_v9 = vld [vmem:[#allocation2 + $0x40] sm:$0xf] }
 0x182   : > { %v5621_v34 = vor.u32 %v5620_v28, %v9133_v18  ;;  %v3764_v35 = vshll.u32 %v8785_v53, 16  ;;  %v7196_v56 = vpack.c.bf16 %v866_v21, %v866_v21  ;;  %v4439_v39 = vshrl.u32 %v4321_v16, 16  ;;  %2574 = vst.msk [vmem:[#allocation3 + $0x18] sm:$0xf] %vm12399_vm13, %v2484_v32  ;;  %v12419_v36 = vld [vmem:[#allocation14_spill] sm:$0xff] }
 0x183   : > { %4180 = vrot.lane.b32.xlu1 %v4101_v60, %s7443_s22  ;;  %v871_v31 = vmax.f32 %v839_v20, 0.0  ;;  %v837_v23 = vadd.f32 %v12392_v3, %v798_v49  ;;  %v3276_v17 = vshll.u32 %v3126_v19, 16  ;;  %v9174_v28 = vrot.slane %v3256_v25, 5  ;;  %v4809_v3 = vld [vmem:[#allocation2 + $0x40] sm:$0xf] }
 0x184   : > { %v3262_v53 = vrot.slane %v3260_v45, 4  ;;  %1035 = vst.msk [vmem:[#allocation2 + $0x54] sm:$0xf] %vm12230_vm2, %v7196_v56  ;;  %v1066_v21 = vadd.s32 120, %v12331_v57  ;;  %v2490_v43 = vpop.permute.xlu1 %2489  ;;  %v3280_v60 = vshrl.u32 %v3126_v19, 16  ;;  %v12401_v16 = vor.u32 %v12400_v26, %v8657_v11 }
 0x185   : > { %5369 = vrot.lane.b32.xlu0 %v5295_v9, %s7444_s23  ;;  %v7201_v32 = vpack.c.bf16 %v871_v31, %v871_v31  ;;  %v869_v49 = vmax.f32 %v837_v23, 0.0  ;;  %2577 = vst.msk [vmem:[#allocation3 + $0x24] sm:$0xf] %vm12361_vm4, %v2490_v43  ;;  %v5298_v25 = vld [vmem:[#allocation2 + $0x4c] sm:$0xf]  ;;  %v9185_v45 = vrot.slane %v4435_v62, 5  ;;  %v3766_v9 = vor.u32 %v3764_v35, %v8864_v24  ;;  %v3479_v19 = vpop.permute.xlu0 %3478 }
 0x186   : > { %v9182_v20 = vrot.slane %v12401_v16, 4  ;;  %v9187_v56 = vrot.slane %v5621_v34, 4  ;;  %v3759_v10 = vrot.slane %v9058_v15, 4  ;;  %v4945_v11 = vshll.u32 %v8799_v38, 16  ;;  %3571 = vst.msk [vmem:[#allocation3 + $0x10] sm:$0xf] %vm12402_vm15, %v3479_v19 }
 0x187   : > { %5375 = vrot.lane.b32.xlu1 %v5298_v25, %s7444_s23  ;;  %v4441_v26 = vrot.slane %v4439_v39, 4  ;;  %1040 = vst.msk [vmem:[#allocation2 + $0x68] sm:$0xf] %vm12230_vm2, %v7201_v32  ;;  %v7199_v31 = vpack.c.bf16 %v869_v49, %v869_v49  ;;  %v1065_v23 = vadd.s32 112, %v12331_v57  ;;  %v9196_v62 = vrot.slane %v3276_v17, 5 }
 0x188   : > { %v3263_v15 = vor.u32 %v3262_v53, %v9174_v28  ;;  %v1192_v34 = vand.u32 15, %v1066_v21  ;;  %v3960_v35 = vpop.permute.xlu1 %3959  ;;  %v12403_v38 = vsel %vm7632_vm14, %v9078_v58, %v8997_v8  ;;  %v9209_v39 = vrot.slane %v3280_v60, 4  ;;  %v2424_v43 = vld [vmem:[#allocation2 + $0x4c] sm:$0xf]  ;;  %v4291_v19 = vld [vmem:[#allocation2 + $0x40] sm:$0xf] }
 0x189   : > { %5884 = vrot.lane.b32.xlu0 %v12403_v38, %s7448_s29  ;;  %vm4765_vm12 = vcmask 191648   ;;  %v9213_v17 = vsel %vm8698_vm1, %v4809_v3, 0  ;;  %1038 = vst.msk [vmem:[#allocation2 + $0x60] sm:$0xf] %vm12230_vm2, %v7199_v31  ;;  %v1067_v53 = vadd.s32 128, %v12331_v57  ;;  %v1185_v21 = vand.u32 15, %v1065_v23  ;;  %v9231_v32 = vpop.permute.xlu0 %4158 }
 0x18a   : > { %4055 = vst.msk [vmem:[#allocation3 + $0x4] sm:$0xf] %vm12231_vm8, %v3960_v35  ;;  %v9228_v16 = vsel %vm7613_vm10, %v3759_v10, %v3766_v9  ;;  %v4940_v3 = vrot.slane %v9044_v14, 4  ;;  %12404 = vst [vmem:[#allocation12_spill] sm:$0xff] %v9231_v32  ;;  %v4947_v49 = vor.u32 %v4945_v11, %v8869_v7  ;;  %v4442_v25 = vor.u32 %v4441_v26, %v9185_v45  ;;  %v3612_v31 = vld [vmem:[#allocation2 + $0x40] sm:$0xf] }
 0x18b   : > { %2505 = vrot.lane.b32.xlu1 %v2424_v43, %s7441_s16  ;;  %4248 = vst.msk [vmem:[#allocation3 + $0x4] sm:$0xf] %vm12229_vm6, %v8966_v5  ;;  %v1199_v23 = vand.u32 15, %v1067_v53  ;;  %vm1514_vm13 = vcmp.gt.s32.totalorder %v1185_v21, 0  ;;  %v2421_v35 = vld [vmem:[#allocation2 + $0x40] sm:$0xf]  ;;  %v3279_v14 = vsel %vm7632_vm14, %v9161_v46, %v9196_v62 }
 0x18c   : > { %v9242_v10 = vrot.slane %v3263_v15, 4  ;;  %v4960_v9 = vshrl.u32 %v9213_v17, 16  ;;  %vm9245_vm4 = vcmp.lt.s32.totalorder %v1192_v34, 15  ;;  %vm1610_vm15 = vmpackc.low %vm1514_vm13, %vm1514_vm13  ;;  %v9249_v7 = vpop.permute.xlu1 %5355  ;;  %vm12244_vm6 = vcmask 224448   ;;  %v4293_v21 = vld [vmem:[#allocation2 + $0x48] sm:$0xf] }
 0x18d   : > { %12407 = vst [vmem:[#allocation27_spill] sm:$0xff] %v9249_v7  ;;  %2499 = vrot.lane.b32.xlu0 %v2421_v35, %s7441_s16  ;;  %v12408_v46 = vrot.slane %v9038_v48, 4  ;;  %vm9261_vm2 = vcmp.gt.s32.totalorder %v1199_v23, 0  ;;  %v1642_v34 = vsel %vm1610_vm15, 65537, %v12338_v61  ;;  %v9268_v38 = vsel %vm12232_vm7, %v4291_v19, 0  ;;  %vm2744_vm15 = vmpackc.low %vm9245_vm4, %vm9245_vm4 }
 0x18e   : > { %v9272_v53 = vsel %vm9026_vm9, %v3612_v31, 0  ;;  %v5488_v48 = vld [vmem:[#allocation2 + $0x40] sm:$0xf]  ;;  %v1803_v43 = vshll.u32 %v1642_v34, 16  ;;  %v1807_v35 = vshrl.u32 %v1642_v34, 16  ;;  %v9278_v23 = vsel %vm7613_vm10, %v4940_v3, %v4947_v49  ;;  %vm1612_vm13 = vmpackc.low %vm9261_vm2, %vm9261_vm2 }
 0x18f   : > { %v9259_v26 = vsel %vm7613_vm10, %v12408_v46, %v12378_v41  ;;  %v3475_v46 = vpop.permute.xlu0 %3474  ;;  %5170 = vrot.lane.b32.xlu1 %v9114_v54, %s7447_s28  ;;  %v9280_v60 = vrot.slane %v4442_v25, 4  ;;  %v4963_v31 = vshll.u32 %v9213_v17, 16  ;;  %v1478_v34 = vld [vmem:[#allocation2 + $0x30] sm:$0xf]  ;;  %vm12412_vm7 = vcmask 93248  }
 0x190   : > { %12409 = vst [vmem:[#allocation28_spill] sm:$0xff] %v9259_v26  ;;  %3569 = vst.msk [vmem:[#allocation3 + $0x8] sm:$0xf] %vm12412_vm7, %v3475_v46  ;;  %v9292_v3 = vrot.slane %v4960_v9, 7  ;;  %vm3094_vm8 = vcmp.ne.s16.totalorder %v9259_v26, 0  ;;  %v1805_v17 = vrot.slane %v1803_v43, 5  ;;  %v2486_v25 = vpop.permute.xlu1 %2485  ;;  %v12413_v46 = vor.u32 %v9017_v44, %v9006_v33 }
 0x191   : > { %v2614_v49 = vld [vmem:[#allocation2 + $0x40] sm:$0xf]  ;;  %3494 = vrot.lane.b32.xlu0 %v3279_v14, %s7442_s17  ;;  %v3779_v9 = vshrl.u32 %v9272_v53, 16  ;;  %v4326_v19 = vsel %vm3094_vm8, %v4293_v21, 0  ;;  %v1481_v11 = vld [vmem:[#allocation2 + $0x3c] sm:$0xf] }
 0x192   : > { %v9302_v58 = vrot.slane %v12413_v46, 4  ;;  %vm12414_vm7 = vcmask 60448   ;;  %v9315_v14 = vsel %vm2744_vm15, 65537, %v12338_v61  ;;  %v1809_v33 = vrot.slane %v1807_v35, 4  ;;  %v12415_v44 = vld [vmem:[#allocation9_spill] sm:$0xff] }
 0x193   : > { %2575 = vst.msk [vmem:[#allocation3 + $0x1c] sm:$0xf] %vm12414_vm7, %v2486_v25  ;;  %v1806_v43 = vsel %vm7632_vm14, %v12415_v44, %v1805_v17  ;;  %v2026_v46 = vsel %vm8698_vm1, %v1478_v34, 0  ;;  %v4670_v21 = vpop.permute.xlu0 %4669  ;;  %3975 = vrot.lane.b32.xlu1 %v9142_v29, %s7445_s24  ;;  %v9326_v25 = vsel %vm3090_vm5, %v5488_v48, 0  ;;  %v9330_v5 = vsel %vm3094_vm8, %v2614_v49, 0 }
 0x194   : > { %v9338_v59 = vsel %vm1612_vm13, 65537, %v12338_v61  ;;  %vm9340_vm1 = vcmp.ne.s16.totalorder %v1806_v43, 0  ;;  %4766 = vst.msk [vmem:[#allocation3] sm:$0xf] %vm4765_vm12, %v4670_v21  ;;  %v4485_v29 = vshll.u32 %v4326_v19, 16  ;;  %v4489_v48 = vshrl.u32 %v4326_v19, 16  ;;  %v9347_v24 = vpop.permute.xlu1 %4160 }
 0x195   : > { %v2029_v34 = vsel %vm9340_vm1, %v1481_v11, 0  ;;  %v2147_v49 = vshrl.u32 %v2026_v46, 16  ;;  %12418 = vst [vmem:[#allocation9_spill] sm:$0xff] %v9347_v24  ;;  %4174 = vrot.lane.b32.xlu0 %v4098_v52, %s7443_s22  ;;  %v2928_v15 = vshrl.u32 %v9315_v14, 16  ;;  %v2145_v40 = vrot.slane %v12419_v36, 4 }
 0x196   : > { %v2174_v54 = vshrl.u32 %v2029_v34, 16  ;;  %v2177_v43 = vshll.u32 %v2029_v34, 16  ;;  %v5296_v7 = vld [vmem:[#allocation2 + $0x44] sm:$0xf]  ;;  %v1810_v26 = vor.u32 %v1809_v33, %v1805_v17  ;;  %v1823_v21 = vshll.u32 %v9338_v59, 16  ;;  %v12421_v34 = vld [vmem:[#allocation16_spill] sm:$0xff] }
 0x197   : > { %v9353_v61 = vrot.slane %v2147_v49, 7  ;;  %v2150_v19 = vshll.u32 %v2026_v46, 16  ;;  %v5157_v41 = vpop.permute.xlu0 %5156  ;;  %5371 = vrot.lane.b32.xlu1 %v5296_v7, %s7444_s23  ;;  %v4965_v11 = vor.u32 %v4963_v31, %v9292_v3  ;;  %v3782_v52 = vshll.u32 %v9272_v53, 16  ;;  %v2422_v49 = vld [vmem:[#allocation2 + $0x44] sm:$0xf] }
 0x198   : > { %v2172_v24 = vrot.slane %v9062_v27, 4  ;;  %v9359_v57 = vrot.slane %v2174_v54, 7  ;;  %5253 = vst.msk [vmem:[#allocation3] sm:$0xf] %vm12244_vm6, %v5157_v41  ;;  %v9362_v36 = vrot.slane %v3779_v9, 7  ;;  %v5644_v17 = vshll.u32 %v9326_v25, 16  ;;  %v3477_v7 = vpop.permute.xlu1 %3476 }
 0x199   : > { %v3286_v33 = vshll.u32 %v9330_v5, 16  ;;  %v2152_v46 = vor.u32 %v2150_v19, %v9353_v61  ;;  %vm12422_vm2 = vcmask 257248   ;;  %v12423_v27 = vsel %vm7632_vm14, %v9144_v6, %v9133_v18  ;;  %v5490_v9 = vld [vmem:[#allocation2 + $0x48] sm:$0xf] }
 0x19a   : > { %12420 = vst [vmem:[#allocation14_spill] sm:$0xff] %v9359_v57  ;;  %5446 = vst.msk [vmem:[#allocation3] sm:$0xf] %vm12422_vm2, %v12421_v34  ;;  %5880 = vrot.lane.b32.xlu0 %v12423_v27, %s7448_s29  ;;  %v9375_v41 = vrot.slane %v2928_v15, 7  ;;  %v2931_v53 = vshll.u32 %v9315_v14, 16  ;;  %v9378_v31 = vrot.slane %v4485_v29, 5  ;;  %v2179_v54 = vor.u32 %v2177_v43, %v9359_v57 }
 0x19b   : > { %vm12424_vm5 = vcmask 290048   ;;  %vm12425_vm4 = vcmask 93248   ;;  %v4491_v19 = vrot.slane %v4489_v48, 4  ;;  %v1811_v34 = vrot.slane %v1810_v26, 4  ;;  %v3962_v6 = vpop.permute.xlu0 %3961  ;;  %2501 = vrot.lane.b32.xlu1 %v2422_v49, %s7441_s16  ;;  %v12427_v14 = vld [vmem:[#allocation20_spill] sm:$0xff]  ;;  %v12429_v26 = vld [vmem:[#allocation21_spill] sm:$0xff] }
 0x19c   : > { %5965 = vst.msk [vmem:[#allocation3] sm:$0xf] %vm12424_vm5, %v9136_v4  ;;  %v9384_v32 = vrot.slane %v1823_v21, 5  ;;  %v2153_v18 = vsel %vm7613_vm10, %v2145_v40, %v2152_v46  ;;  %vm12426_vm13 = vcmask 126048   ;;  %v12428_v29 = vshll.u32 %v9268_v38, 16  ;;  %v4672_v49 = vpop.permute.xlu1 %4671 }
 0x19d   : > { %3570 = vst.msk [vmem:[#allocation3 + $0xc] sm:$0xf] %vm12425_vm4, %v3477_v7  ;;  %v3777_v15 = vrot.slane %v12429_v26, 4  ;;  %v2180_v40 = vsel %vm7613_vm10, %v2172_v24, %v2179_v54  ;;  %vm12430_vm15 = vcmask 27648   ;;  %vm12432_vm7 = vcmask 158848   ;;  %vm12433_vm2 = vmmov %vm12426_vm13  ;;  %v12436_v54 = vld [vmem:[#allocation13_spill] sm:$0xff] }
 0x19e   : > { %4057 = vst.msk [vmem:[#allocation3 + $0xc] sm:$0xf] %vm12426_vm13, %v9048_v63  ;;  %v9397_v48 = vrot.slane %v12428_v29, 5  ;;  %v12431_v63 = vld [vmem:[#allocation18_spill] sm:$0xff]  ;;  %v3784_v43 = vor.u32 %v3782_v52, %v9362_v36  ;;  %v12434_v21 = vor.u32 %v9080_v1, %v8997_v8  ;;  %v9412_v7 = vrot.slane %v5644_v17, 5  ;;  %vm12435_vm5 = vmmov %vm12430_vm15  ;;  %v12441_v29 = vld [vmem:[#allocation25_spill] sm:$0xff] }
 0x19f   : > { %2385 = vst.msk [vmem:[#allocation3 + $0x28] sm:$0xf] %vm12430_vm15, %v2153_v18  ;;  %v1826_v24 = vsel %vm7632_vm14, %v12415_v44, %v9384_v32  ;;  %v5491_v27 = vld [vmem:[#allocation2 + $0x4c] sm:$0xf]  ;;  %vm12437_vm4 = vmmov %vm12432_vm7  ;;  %v12438_v8 = vsel %vm7632_vm14, %v9127_v42, %v9174_v28  ;;  %v2933_v1 = vor.u32 %v2931_v53, %v9375_v41  ;;  %v12439_v52 = vor.u32 %v9209_v39, %v9196_v62  ;;  %v4099_v26 = vld [vmem:[#allocation2 + $0x44] sm:$0xf] }
 0x1a0   : > { %4250 = vst.msk [vmem:[#allocation3 + $0xc] sm:$0xf] %vm12432_vm7, %v12431_v63  ;;  %v9410_v46 = vrot.slane %v12434_v21, 4  ;;  %3490 = vrot.lane.b32.xlu0 %v12438_v8, %s7442_s17  ;;  %v9433_v18 = vrot.slane %v3286_v33, 5  ;;  %vm12440_vm13 = vcmp.ne.s16.totalorder %v8964_v37, 0  ;;  %v12442_v42 = vrot.slane %v8876_v12, 4  ;;  %4176 = vrot.lane.b32.xlu1 %v4099_v26, %s7443_s22 }
 0x1a1   : > { %4056 = vst.msk [vmem:[#allocation3 + $0x8] sm:$0xf] %vm12433_vm2, %v3962_v6  ;;  %v9431_v17 = vrot.slane %v12439_v52, 4  ;;  %v5523_v6 = vsel %vm12440_vm13, %v5490_v9, 0  ;;  %v4492_v39 = vor.u32 %v4491_v19, %v9378_v31  ;;  %v12443_v33 = vld [vmem:[#allocation8_spill] sm:$0xff]  ;;  %v12444_v9 = vld [vmem:[#allocation11_spill] sm:$0xff] }
 0x1a2   : > { %2388 = vst.msk [vmem:[#allocation3 + $0x34] sm:$0xf] %vm12435_vm5, %v2180_v40  ;;  %v9444_v28 = vsel %vm7613_vm10, %v12442_v42, %v4965_v11  ;;  %v1816_v37 = vsel %vm7632_vm14, %v1811_v34, %v12443_v33  ;;  %v3614_v53 = vld [vmem:[#allocation2 + $0x48] sm:$0xf]  ;;  %v9453_v40 = vpop.permute.xlu0 %4170  ;;  %v5648_v11 = vshrl.u32 %v9326_v25, 16  ;;  %vm9461_vm15 = vcmp.ne.s16.totalorder %v1826_v24, 0 }
 0x1a3   : > { %4249 = vst.msk [vmem:[#allocation3 + $0x8] sm:$0xf] %vm12437_vm4, %v12436_v54  ;;  %12445 = vst [vmem:[#allocation16_spill] sm:$0xff] %v9453_v40  ;;  %v3615_v34 = vld [vmem:[#allocation2 + $0x4c] sm:$0xf]  ;;  %v9467_v63 = vsel %vm9129_vm3, %v5491_v27, 0  ;;  %v9473_v54 = vsel %vm7613_vm10, %v3777_v15, %v3784_v43  ;;  %v12450_v27 = vsel %vm7632_vm14, %v9182_v20, %v9185_v45  ;;  %v2934_v15 = vsel %vm7613_vm10, %v7610_v47, %v2933_v1 }
 0x1a4   : > { %4768 = vst.msk [vmem:[#allocation3 + $0x8] sm:$0xf] %vm4765_vm12, %v12441_v29  ;;  %4767 = vst.msk [vmem:[#allocation3 + $0x4] sm:$0xf] %vm4765_vm12, %v4672_v49  ;;  %v12448_v21 = vld [vmem:[#allocation19_spill] sm:$0xff]  ;;  %vm12449_vm7 = vcmask 257248   ;;  %v4676_v29 = vpop.permute.xlu1 %4675  ;;  %4685 = vrot.lane.b32.xlu0 %v12450_v27, %s7446_s27  ;;  %v12474_v22 = vsel %vm7632_vm14, %v9410_v46, %v9412_v7 }
 0x1a5   : > { %5254 = vst.msk [vmem:[#allocation3 + $0x4] sm:$0xf] %vm12244_vm6, %v12444_v9  ;;  %v5664_v24 = vshll.u32 %v5523_v6, 16  ;;  %v5668_v49 = vshrl.u32 %v5523_v6, 16  ;;  %v4811_v8 = vld [vmem:[#allocation2 + $0x48] sm:$0xf] }
 0x1a6   : > { %5447 = vst.msk [vmem:[#allocation3 + $0x4] sm:$0xf] %vm12449_vm7, %v12448_v21  ;;  %v4812_v52 = vld [vmem:[#allocation2 + $0x4c] sm:$0xf]  ;;  %vm9493_vm2 = vcmp.ne.s16.totalorder %v1816_v37, 0  ;;  %v9498_v45 = vrot.slane %v4492_v39, 4  ;;  %v9509_v37 = vpop.permute.xlu0 %5365 }
 0x1a7   : > { %v4810_v42 = vld [vmem:[#allocation2 + $0x44] sm:$0xf]  ;;  %4769 = vst.msk [vmem:[#allocation3 + $0xc] sm:$0xf] %vm4765_vm12, %v4676_v29  ;;  %v4294_v20 = vld [vmem:[#allocation2 + $0x4c] sm:$0xf]  ;;  %v12454_v29 = vsel %vm7632_vm14, %v9187_v56, %v8969_v55 }
 0x1a8   : > { %v9502_v1 = vsel %vm9493_vm2, %v3614_v53, 0  ;;  %v9506_v9 = vsel %vm9461_vm15, %v3615_v34, 0  ;;  %v5674_v21 = vshll.u32 %v9467_v63, 16  ;;  %12453 = vst [vmem:[#allocation20_spill] sm:$0xff] %v9509_v37  ;;  %5882 = vrot.lane.b32.xlu1 %v12454_v29, %s7448_s29  ;;  %v9519_v39 = vsel %vm9026_vm9, %v4811_v8, 0  ;;  %v12455_v27 = vld [vmem:[#allocation23_spill] sm:$0xff]  ;;  %v5871_v29 = vpop.permute.xlu1 %5870  ;;  %3977 = vrot.lane.b32.xlu0 %v9228_v16, %s7445_s24 }
 0x1a9   : > { %v9523_v53 = vsel %vm9340_vm1, %v4812_v52, 0  ;;  %v2154_v34 = vrot.slane %v9353_v61, 4  ;;  %v2159_v43 = vshll.u32 %v12455_v27, 16  ;;  %vm12243_vm5 = vcmask 293888   ;;  %v3613_v8 = vld [vmem:[#allocation2 + $0x44] sm:$0xf] }
 0x1aa   : > { %vm9527_vm4 = vcmp.ne.s16.totalorder %v2934_v15, 0  ;;  %v9531_v62 = vrot.slane %v5664_v24, 5  ;;  %v5670_v55 = vrot.slane %v5668_v49, 4  ;;  %v9535_v51 = vsel %vm8789_vm11, %v4810_v42, 0  ;;  %v12459_v24 = vld [vmem:[#allocation24_spill] sm:$0xff]  ;;  %v2496_v12 = vpop.permute.xlu0 %2495  ;;  %v12475_v46 = vld [vmem:[#allocation6_spill] sm:$0xff] }
 0x1ab   : > { %v9541_v61 = vsel %vm9527_vm4, %v4294_v20, 0  ;;  %v3797_v52 = vshrl.u32 %v9502_v1, 16  ;;  %v3806_v15 = vshrl.u32 %v9506_v9, 16  ;;  %v2161_v27 = vor.u32 %v2159_v43, %v12459_v24  ;;  %v7389_v20 = vld [vmem:[%s12182_s4 + $0x8] sm:$0xff]  }
 0x1ac   : > { %vm12460_vm9 = vcmask 290048   ;;  %v9547_v49 = vrot.slane %v5674_v21, 5  ;;  %v4978_v56 = vshrl.u32 %v9519_v39, 16  ;;  %v4987_v16 = vshrl.u32 %v9523_v53, 16  ;;  %5172 = vrot.lane.b32.xlu0 %v9278_v23, %s7447_s28 }
 0x1ad   : > { %5966 = vst.msk [vmem:[#allocation3 + $0x4] sm:$0xf] %vm12460_vm9, %v5871_v29  ;;  %v12461_v43 = vsel %vm7632_vm14, %v9242_v10, %v9090_v13  ;;  %v4969_v21 = vshrl.u32 %v9535_v51, 16  ;;  %v5489_v29 = vld [vmem:[#allocation2 + $0x44] sm:$0xf]  ;;  %v5650_v24 = vrot.slane %v5648_v11, 4  ;;  %v2162_v6 = vsel %vm7613_vm10, %v2154_v34, %v2161_v27  ;;  %v3481_v11 = vpop.permute.xlu1 %3480 }
 0x1ae   : > { %3492 = vrot.lane.b32.xlu1 %v12461_v43, %s7442_s17  ;;  %v9564_v42 = vsel %vm9340_vm1, %v3613_v8, 0  ;;  %vm12462_vm11 = vcmask 60448   ;;  %v4495_v4 = vshll.u32 %v9541_v61, 16  ;;  %v1827_v37 = vshrl.u32 %v9338_v59, 16  ;;  %v2615_v8 = vld [vmem:[#allocation2 + $0x44] sm:$0xf] }
 0x1af   : > { %2580 = vst.msk [vmem:[#allocation3 + $0x30] sm:$0xf] %vm12462_vm11, %v2496_v12  ;;  %v5671_v13 = vor.u32 %v5670_v55, %v9531_v62  ;;  %vm12463_vm13 = vcmask 27648   ;;  %v7424_v10 = vld [vmem:[%s12182_s4 + $0x10] ss:$0 sps:$4 sm:$0x33]  }
 0x1b0   : > { %2386 = vst.msk [vmem:[#allocation3 + $0x2c] sm:$0xf] %vm12463_vm13, %v2162_v6  ;;  %vm12464_vm7 = vcmask 1041408   ;;  %v9579_v34 = vrot.slane %v3797_v52, 7  ;;  %v9581_v12 = vrot.slane %v3806_v15, 7  ;;  %v3809_v59 = vshll.u32 %v9506_v9, 16  ;;  %v5161_v52 = vpop.permute.xlu0 %5160  ;;  %5176 = vrot.lane.b32.xlu0 %v9444_v28, %s7447_s28 }
 0x1b1   : > { %v6179_v35 = vsel %vm12464_vm7, %v7424_v10, 0  ;;  %v4990_v55 = vshll.u32 %v9523_v53, 16  ;;  %vm12465_vm1 = vcmask 93248   ;;  %v9586_v6 = vrot.slane %v4978_v56, 7  ;;  %v7390_v9 = vld [vmem:[%s12182_s4] sm:$0xff]  }
 0x1b2   : > { %7292 = vmatpush3.bf16.msra.mxu1 %v6179_v35  ;;  %3572 = vst.msk [vmem:[#allocation3 + $0x14] sm:$0xf] %vm12465_vm1, %v3481_v11  ;;  %v9588_v27 = vrot.slane %v4987_v16, 7  ;;  %v5522_v43 = vsel %vm8910_vm0, %v5489_v29, 0  ;;  %v3788_v23 = vshrl.u32 %v9564_v42, 16  ;;  %v12466_v53 = vsel %vm7632_vm14, %v9280_v60, %v12427_v14  ;;  %v9618_v14 = vpop.permute.xlu1 %3971 }
 0x1b3   : > { %7293 = vmatprep.subr.bf16.mxu1 %v7389_v20  ;;  %4687 = vrot.lane.b32.xlu1 %v12466_v53, %s7446_s27  ;;  %v9603_v56 = vrot.slane %v4969_v21, 7  ;;  %v4972_v2 = vshll.u32 %v9535_v51, 16  ;;  %v5651_v16 = vor.u32 %v5650_v24, %v9412_v7  ;;  %5255 = vst.msk [vmem:[#allocation3 + $0x8] sm:$0xf] %vm12244_vm6, %v5161_v52  ;;  %v9608_v29 = vrot.slane %v4495_v4, 5 }
 0x1b4   : > { %v9610_v10 = vrot.slane %v1827_v37, 4  ;;  %v9612_v35 = vrot.slane %v5671_v13, 4  ;;  %v12467_v11 = vshrl.u32 %v9330_v5, 16  ;;  %vm12468_vm0 = vcmask 257248   ;;  %v7387_v51 = vld [vmem:[#allocation3] sm:$0xff]   ;;  %v3966_v53 = vpop.permute.xlu0 %3965  ;;  %3981 = vrot.lane.b32.xlu0 %v9473_v54, %s7445_s24 }
 0x1b5   : > { %5448 = vst.msk [vmem:[#allocation3 + $0x8] sm:$0xf] %vm12468_vm0, %v9096_v30  ;;  %v3804_v21 = vrot.slane %v9579_v34, 4  ;;  %v3811_v4 = vor.u32 %v3809_v59, %v9581_v12  ;;  %v5654_v37 = vshll.u32 %v5522_v43, 16  ;;  %v9626_v24 = vsel %vm9527_vm4, %v2615_v8, 0  ;;  %7297 = vmatprep.mubr.msk.bf16.mxu1 %vm12243_vm5, %v7387_v51 }
 0x1b6   : > { %v3292_v60 = vrot.slane %v12467_v11, 4  ;;  %7294 = vmatpush3.bf16.msra.mxu1 %v7389_v20  ;;  %v4985_v5 = vrot.slane %v9586_v6, 4  ;;  %v4992_v30 = vor.u32 %v4990_v55, %v9588_v27  ;;  %v9630_v13 = vrot.slane %v3788_v23, 7  ;;  %v4292_v28 = vld [vmem:[#allocation2 + $0x44] sm:$0xf] }
 0x1b7   : > { %v3791_v52 = vshll.u32 %v9564_v42, 16  ;;  %7295 = vmatprep.subr.bf16.mxu1 %v7390_v9  ;;  %v12469_v59 = vsel %vm7632_vm14, %v9302_v58, %v9397_v48  ;;  %v4967_v20 = vrot.slane %v9292_v3, 4  ;;  %v4974_v55 = vor.u32 %v4972_v2, %v9603_v56  ;;  %v12471_v2 = vld [vmem:[#allocation12_spill] sm:$0xff] }
 0x1b8   : > { %4691 = vrot.lane.b32.xlu1 %v12469_v59, %s7446_s27  ;;  %v9642_v8 = vrot.slane %v5651_v16, 4  ;;  %v5658_v23 = vshrl.u32 %v5522_v43, 16  ;;  %vm12470_vm9 = vcmask 126048   ;;  %v4498_v42 = vsel %vm7632_vm14, %v9498_v45, %v9608_v29  ;;  %v9657_v43 = vpop.permute.xlu1 %5166 }
 0x1b9   : > { %4058 = vst.msk [vmem:[#allocation3 + $0x10] sm:$0xf] %vm12470_vm9, %v3966_v53  ;;  %v3293_v11 = vor.u32 %v3292_v60, %v9433_v18  ;;  %v3296_v3 = vshll.u32 %v9626_v24, 16  ;;  %vm12472_vm11 = vcmask 158848   ;;  %v3812_v45 = vsel %vm7613_vm10, %v3804_v21, %v3811_v4  ;;  %v9676_v21 = vpop.permute.xlu0 %4681  ;;  %v1483_v4 = vld [vmem:[#allocation2 + $0x44] sm:$0xf]  ;;  %4697 = vrot.lane.b32.xlu0 %v4498_v42, %s7446_s27 }
 0x1ba   : > { %4251 = vst.msk [vmem:[#allocation3 + $0x10] sm:$0xf] %vm12472_vm11, %v12471_v2  ;;  %v9663_v16 = vrot.slane %v5654_v37, 5  ;;  %v4325_v51 = vsel %vm9129_vm3, %v4292_v28, 0  ;;  %v2935_v60 = vrot.slane %v9375_v41, 4  ;;  %7296 = vmatpush3.bf16.msra.mxu1 %v7390_v9  ;;  %v9670_v53 = vsel %vm7613_vm10, %v4985_v5, %v4992_v30 }
 0x1bb   : > { %v3786_v59 = vrot.slane %v9362_v36, 4  ;;  %v3793_v2 = vor.u32 %v3791_v52, %v9630_v13  ;;  %v12473_v54 = vshrl.u32 %v9268_v38, 16  ;;  %v9686_v41 = vsel %vm7613_vm10, %v4967_v20, %v4974_v55  ;;  %v12477_v20 = vld [vmem:[#allocation7_spill] sm:$0xff] }
 0x1bc   : > { %5886 = vrot.lane.b32.xlu1 %v12474_v22, %s7448_s29  ;;  %v3300_v38 = vshrl.u32 %v9626_v24, 16  ;;  %v5660_v9 = vrot.slane %v5658_v23, 4  ;;  %v9693_v37 = vrot.slane %v3293_v11, 4  ;;  %v9695_v5 = vrot.slane %v3296_v3, 5  ;;  %v9698_v52 = vpop.permute.xlu1 %4172  ;;  %v4813_v24 = vld [vmem:[#allocation2 + $0x50] sm:$0xf] }
 0x1bd   : > { %v4471_v15 = vrot.slane %v12473_v54, 4  ;;  %v4475_v30 = vshll.u32 %v4325_v51, 16  ;;  %v1068_v7 = vadd.s32 136, %v12475_v46  ;;  %12476 = vst [vmem:[#allocation21_spill] sm:$0xff] %v9698_v52  ;;  %v4479_v28 = vshrl.u32 %v4325_v51, 16 }
 0x1be   : > { %v9704_v55 = vsel %vm7613_vm10, %v2935_v60, %v12477_v20  ;;  %v1070_v23 = vadd.s32 152, %v12475_v46  ;;  %v1830_v11 = vor.u32 %v9610_v10, %v9384_v32  ;;  %v5299_v3 = vld [vmem:[#allocation2 + $0x50] sm:$0xf]  ;;  %v9711_v54 = vsel %vm7613_vm10, %v3786_v59, %v3793_v2  ;;  %v9718_v60 = vpop.permute.xlu0 %5361 }
 0x1bf   : > { %v4472_v22 = vor.u32 %v4471_v15, %v9397_v48  ;;  %v1206_v42 = vand.u32 15, %v1068_v7  ;;  %v9716_v51 = vsel %vm9461_vm15, %v1483_v4, 0  ;;  %12479 = vst [vmem:[#allocation13_spill] sm:$0xff] %v9718_v60  ;;  %v12480_v32 = vsel %vm7632_vm14, %v9431_v17, %v9433_v18  ;;  %v2616_v15 = vld [vmem:[#allocation2 + $0x48] sm:$0xf]  ;;  %5377 = vrot.lane.b32.xlu0 %v5299_v3, %s7444_s23  ;;  %v7282_v7 = vpop.f32.mrf.mxu0 }
 0x1c0   : > { %12478 = vst [vmem:[#allocation18_spill] sm:$0xff] %v9716_v51  ;;  %3496 = vrot.lane.b32.xlu1 %v12480_v32, %s7442_s17  ;;  %v3795_v10 = vrot.slane %v9630_v13, 4  ;;  %v3800_v59 = vshll.u32 %v9502_v1, 16  ;;  %v5661_v48 = vor.u32 %v5660_v9, %v9663_v16  ;;  %v1831_v2 = vrot.slane %v1830_v11, 4  ;;  %v1484_v17 = vld [vmem:[#allocation2 + $0x48] sm:$0xf]  ;;  %v9739_v13 = vpop.permute.xlu1 %5367 }
 0x1c1   : > { %vm3096_vm3 = vcmp.ne.s16.totalorder %v9704_v55, 0  ;;  %v9732_v4 = vsel %vm9493_vm2, %v4813_v24, 0  ;;  %vm9734_vm13 = vcmp.lt.s32.totalorder %v1206_v42, 15  ;;  %v2192_v18 = vshrl.u32 %v9716_v51, 16  ;;  %12483 = vst [vmem:[#allocation25_spill] sm:$0xff] %v9739_v13  ;;  %v12540_v55 = vld [vmem:[#allocation14_spill] sm:$0xff] }
 0x1c2   : > { %v3302_v9 = vrot.slane %v3300_v38, 4  ;;  %v1220_v11 = vand.u32 15, %v1070_v23  ;;  %v1836_v24 = vsel %vm7632_vm14, %v1831_v2, %v12443_v33  ;;  %v9749_v42 = vrot.slane %v4472_v22, 4  ;;  %vm2746_vm7 = vmpackc.low %vm9734_vm13, %vm9734_vm13  ;;  %v9762_v38 = vpop.permute.xlu0 %5876  ;;  %v5493_v60 = vld [vmem:[#allocation2 + $0x54] sm:$0xf] }
 0x1c3   : > { %v9751_v32 = vrot.slane %v4475_v30, 5  ;;  %vm9756_vm1 = vcmp.ne.s16.totalorder %v1836_v24, 0  ;;  %v9760_v36 = vrot.slane %v2192_v18, 7  ;;  %v9767_v23 = vsel %vm3096_vm3, %v2616_v15, 0  ;;  %v2425_v15 = vld [vmem:[#allocation2 + $0x50] sm:$0xf] }
 0x1c4   : > { %3987 = vrot.lane.b32.xlu1 %v3812_v45, %s7445_s24  ;;  %v4996_v30 = vshrl.u32 %v9732_v4, 16  ;;  %v4481_v22 = vrot.slane %v4479_v28, 4  ;;  %v2032_v2 = vsel %vm9756_vm1, %v1484_v17, 0  ;;  %v3802_v24 = vor.u32 %v3800_v59, %v9579_v34  ;;  %v2498_v13 = vpop.permute.xlu1 %2497  ;;  %v5492_v17 = vld [vmem:[#allocation2 + $0x50] sm:$0xf] }
 0x1c5   : > { %12486 = vst [vmem:[#allocation8_spill] sm:$0xff] %v9760_v36  ;;  %v9773_v1 = vrot.slane %v5661_v48, 4  ;;  %v4981_v18 = vshll.u32 %v9519_v39, 16  ;;  %v2201_v58 = vshrl.u32 %v2032_v2, 16  ;;  %v12487_v45 = vsel %vm7632_vm14, %v9612_v35, %v9547_v49 }
 0x1c6   : > { %5892 = vrot.lane.b32.xlu0 %v12487_v45, %s7448_s29  ;;  %v3303_v28 = vor.u32 %v3302_v9, %v9695_v5  ;;  %v12488_v52 = vmov 0   ;;  %vm9791_vm0 = vcmp.lt.s32.totalorder %v1220_v11, 15  ;;  %v2204_v59 = vshll.u32 %v2032_v2, 16  ;;  %v2492_v40 = vpop.permute.xlu0 %2491 }
 0x1c7   : > { %v9789_v34 = vsel %vm2746_vm7, 65537, %v12488_v52  ;;  %vm12491_vm9 = vcmask 60448   ;;  %v4976_v35 = vrot.slane %v9603_v56, 4  ;;  %v3306_v48 = vshll.u32 %v9767_v23, 16  ;;  %vm2748_vm13 = vmpackc.low %vm9791_vm0, %vm9791_vm0 }
 0x1c8   : > { %2581 = vst.msk [vmem:[#allocation3 + $0x34] sm:$0xf] %vm12491_vm9, %v2498_v13  ;;  %v2199_v9 = vrot.slane %v9760_v36, 4  ;;  %v9799_v45 = vrot.slane %v2201_v58, 7  ;;  %5182 = vrot.lane.b32.xlu1 %v9670_v53, %s7447_s28  ;;  %v9807_v13 = vrot.slane %v4996_v30, 7  ;;  %v4999_v56 = vshll.u32 %v9732_v4, 16  ;;  %vm12492_vm11 = vmmov %vm12491_vm9  ;;  %v5163_v4 = vpop.permute.xlu1 %5162 }
 0x1c9   : > { %v4482_v2 = vor.u32 %v4481_v22, %v9751_v32  ;;  %2578 = vst.msk [vmem:[#allocation3 + $0x28] sm:$0xf] %vm12492_vm11, %v2492_v40  ;;  %v9814_v58 = vsel %vm7613_vm10, %v3795_v10, %v3802_v24  ;;  %v4994_v53 = vrot.slane %v9588_v27, 4  ;;  %v2946_v36 = vshrl.u32 %v9789_v34, 16 }
 0x1ca   : > { %v2206_v30 = vor.u32 %v2204_v59, %v9799_v45  ;;  %2507 = vrot.lane.b32.xlu0 %v2425_v15, %s7441_s16  ;;  %v4983_v10 = vor.u32 %v4981_v18, %v9586_v6  ;;  %v9828_v22 = vrot.slane %v3303_v28, 4  ;;  %v5525_v24 = vsel %vm3094_vm8, %v5492_v17, 0  ;;  %5256 = vst.msk [vmem:[#allocation3 + $0xc] sm:$0xf] %vm12244_vm6, %v5163_v4  ;;  %v4295_v15 = vld [vmem:[#allocation2 + $0x50] sm:$0xf]  ;;  %v727_v18 = vpop.f32.mrf.mxu0  ;;  %v3487_v17 = vpop.permute.xlu0 %3486 }
 0x1cb   : > { %v9833_v11 = vrot.slane %v3306_v48, 5  ;;  %v9837_v59 = vsel %vm9527_vm4, %v5493_v60, 0  ;;  %v12494_v51 = vshrl.u32 %v9541_v61, 16  ;;  %v12495_v28 = vld [vmem:[#allocation27_spill] sm:$0xff]  ;;  %vm12496_vm7 = vcmask 257248  }
 0x1cc   : > { %v2207_v6 = vsel %vm7613_vm10, %v2199_v9, %v2206_v30  ;;  %5449 = vst.msk [vmem:[#allocation3 + $0xc] sm:$0xf] %vm12496_vm7, %v12495_v28  ;;  %5178 = vrot.lane.b32.xlu1 %v9686_v41, %s7447_s28  ;;  %v5001_v48 = vor.u32 %v4999_v56, %v9807_v13  ;;  %v9848_v25 = vrot.slane %v4482_v2, 4  ;;  %v9856_v61 = vsel %vm2748_vm13, 65537, %v12488_v52  ;;  %v3968_v39 = vpop.permute.xlu1 %3967 }
 0x1cd   : > { %v4501_v57 = vrot.slane %v12494_v51, 4  ;;  %vm12497_vm8 = vcmask 27648   ;;  %v9862_v51 = vld [vmem:[%s12180_s2] ss:$0 sm:$0xff]  ;;  %vm12498_vm4 = vcmask 93248   ;;  %v5684_v60 = vshll.u32 %v5525_v24, 16 }
 0x1ce   : > { %2391 = vst.msk [vmem:[#allocation3 + $0x40] sm:$0xf] %vm12497_vm8, %v2207_v6  ;;  %v801_v41 = vmul.f32 %v9862_v51, %v7282_v7  ;;  %v5688_v9 = vshrl.u32 %v5525_v24, 16  ;;  %v2948_v56 = vrot.slane %v2946_v36, 7  ;;  %v2949_v2 = vshll.u32 %v9789_v34, 16  ;;  %v9893_v24 = vpop.permute.xlu0 %4166 }
 0x1cf   : > { %3575 = vst.msk [vmem:[#allocation3 + $0x20] sm:$0xf] %vm12498_vm4, %v3487_v17  ;;  %v12499_v30 = vsel %vm7632_vm14, %v9642_v8, %v9663_v16  ;;  %v9875_v4 = vsel %vm7613_vm10, %v4976_v35, %v4983_v10  ;;  %v3310_v7 = vshrl.u32 %v9767_v23, 16  ;;  %v5694_v27 = vshll.u32 %v9837_v59, 16  ;;  %v7285_v23 = vpop.f32.mrf.mxu0  ;;  %v12501_v10 = vld [vmem:[#allocation9_spill] sm:$0xff] }
 0x1d0   : > { %5888 = vrot.lane.b32.xlu0 %v12499_v30, %s7448_s29  ;;  %v9881_v36 = vsel %vm3096_vm3, %v4295_v15, 0  ;;  %vm12500_vm0 = vcmask 126048   ;;  %v4502_v34 = vor.u32 %v4501_v57, %v9608_v29  ;;  %v2964_v35 = vshrl.u32 %v9856_v61, 16  ;;  %3983 = vrot.lane.b32.xlu1 %v9711_v54, %s7445_s24  ;;  %v9908_v29 = vld [vmem:[%s12181_s3] ss:$0 sm:$0xff] }
 0x1d1   : > { %4059 = vst.msk [vmem:[#allocation3 + $0x14] sm:$0xf] %vm12500_vm0, %v3968_v39  ;;  %vm12502_vm9 = vcmask 158848   ;;  %v9899_v15 = vsel %vm7613_vm10, %v4994_v53, %v5001_v48  ;;  %v840_v6 = vadd.f32 %v9908_v29, %v801_v41  ;;  %v1069_v28 = vadd.s32 144, %v12475_v46  ;;  %v9917_v39 = vpop.permute.xlu1 %5363  ;;  %v5300_v57 = vld [vmem:[#allocation2 + $0x54] sm:$0xf]  ;;  %v740_v40 = vpop.f32.mrf.mxu0 }
 0x1d2   : > { %4252 = vst.msk [vmem:[#allocation3 + $0x14] sm:$0xf] %vm12502_vm9, %v12501_v10  ;;  %v9912_v17 = vrot.slane %v5684_v60, 5  ;;  %v9914_v54 = vrot.slane %v5688_v9, 4  ;;  %v2951_v53 = vor.u32 %v2949_v2, %v2948_v56  ;;  %v799_v48 = vmul.f32 %v9862_v51, %v727_v18  ;;  %12503 = vst [vmem:[#allocation11_spill] sm:$0xff] %v9917_v39  ;;  %v5873_v39 = vpop.permute.xlu0 %5872 }
 0x1d3   : > { %v12504_v30 = vsel %vm7632_vm14, %v9693_v37, %v9695_v5  ;;  %v9925_v10 = vrot.slane %v5694_v27, 5  ;;  %v2953_v41 = vrot.slane %v2948_v56, 4  ;;  %v872_v16 = vmax.f32 %v840_v6, 0.0 }
 0x1d4   : > { %3498 = vrot.lane.b32.xlu0 %v12504_v30, %s7442_s17  ;;  %v1213_v60 = vand.u32 15, %v1069_v28  ;;  %v9927_v9 = vrot.slane %v4502_v34, 4  ;;  %v9929_v2 = vrot.slane %v2964_v35, 7  ;;  %v2967_v18 = vshll.u32 %v9856_v61, 16  ;;  %5379 = vrot.lane.b32.xlu1 %v5300_v57, %s7444_s23 }
 0x1d5   : > { %v838_v8 = vadd.f32 %v9908_v29, %v799_v48  ;;  %v4505_v37 = vshll.u32 %v9881_v36, 16  ;;  %v4509_v5 = vshrl.u32 %v9881_v36, 16  ;;  %v7202_v56 = vpack.c.bf16 %v872_v16, %v872_v16  ;;  %v2494_v6 = vpop.permute.xlu1 %2493 }
 0x1d6   : > { %vm1518_vm11 = vcmp.gt.s32.totalorder %v1213_v60, 0  ;;  %vm12505_vm13 = vcmask 290048   ;;  %v2952_v27 = vsel %vm7613_vm10, %v7610_v47, %v2951_v53  ;;  %v9940_v34 = vrot.slane %v3310_v7, 4  ;;  %v2426_v53 = vld [vmem:[#allocation2 + $0x54] sm:$0xf]  ;;  %v3483_v30 = vpop.permute.xlu0 %3482 }
 0x1d7   : > { %5967 = vst.msk [vmem:[#allocation3 + $0x8] sm:$0xf] %vm12505_vm13, %v5873_v39  ;;  %v12506_v61 = vshrl.u32 %v9467_v63, 16  ;;  %vm1614_vm7 = vmpackc.low %vm1518_vm11, %vm1518_vm11  ;;  %v870_v57 = vmax.f32 %v838_v8, 0.0  ;;  %v12507_v16 = vsel %vm7632_vm14, %v9749_v42, %v9751_v32  ;;  %v9955_v28 = vsel %vm7613_vm10, %v2953_v41, %v12477_v20  ;;  %v2617_v60 = vld [vmem:[#allocation2 + $0x4c] sm:$0xf] }
 0x1d8   : > { %4693 = vrot.lane.b32.xlu0 %v12507_v16, %s7446_s27  ;;  %1041 = vst.msk [vmem:[#allocation2 + $0x6c] sm:$0xf] %vm12497_vm8, %v7202_v56  ;;  %v1646_v63 = vsel %vm1614_vm7, 65537, %v12488_v52  ;;  %v804_v7 = vmul.f32 %v9862_v51, %v7285_v23  ;;  %v802_v8 = vmul.f32 %v9862_v51, %v740_v40  ;;  %vm12508_vm4 = vcmask 60448   ;;  %2509 = vrot.lane.b32.xlu1 %v2426_v53, %s7441_s16  ;;  %v3616_v40 = vld [vmem:[#allocation2 + $0x50] sm:$0xf]  ;;  %vm12512_vm13 = vmmov %vm12497_vm8 }
 0x1d9   : > { %v9944_v35 = vrot.slane %v12506_v61, 4  ;;  %2579 = vst.msk [vmem:[#allocation3 + $0x2c] sm:$0xf] %vm12508_vm4, %v2494_v6  ;;  %v2969_v48 = vor.u32 %v2967_v18, %v9929_v2  ;;  %v1843_v42 = vshll.u32 %v1646_v63, 16  ;;  %v1847_v32 = vshrl.u32 %v1646_v63, 16 }
 0x1da   : > { %v7200_v39 = vpack.c.bf16 %v870_v57, %v870_v57  ;;  %v5691_v41 = vor.u32 %v9914_v54, %v9912_v17  ;;  %vm9966_vm0 = vcmp.ne.s16.totalorder %v2952_v27, 0  ;;  %v843_v23 = vadd.f32 %v9908_v29, %v804_v7  ;;  %v2618_v57 = vld [vmem:[#allocation2 + $0x50] sm:$0xf]  ;;  %v9977_v54 = vpop.permute.xlu1 %4168 }
 0x1db   : > { %v841_v61 = vadd.f32 %v9908_v29, %v802_v8  ;;  %vm12511_vm9 = vcmask 93248   ;;  %v9973_v18 = vrot.slane %v4505_v37, 5  ;;  %vm3098_vm11 = vcmp.ne.s16.totalorder %v9955_v28, 0  ;;  %v4814_v37 = vld [vmem:[#allocation2 + $0x54] sm:$0xf] }
 0x1dc   : > { %3573 = vst.msk [vmem:[#allocation3 + $0x18] sm:$0xf] %vm12511_vm9, %v3483_v30  ;;  %v1845_v6 = vrot.slane %v1843_v42, 5  ;;  %v1849_v16 = vrot.slane %v1847_v32, 4  ;;  %3985 = vrot.lane.b32.xlu0 %v9814_v58, %s7445_s24  ;;  %v3313_v27 = vor.u32 %v9940_v34, %v9833_v11  ;;  %v5681_v63 = vor.u32 %v9944_v35, %v9547_v49 }
 0x1dd   : > { %1039 = vst.msk [vmem:[#allocation2 + $0x64] sm:$0xf] %vm12512_vm13, %v7200_v39  ;;  %v875_v7 = vmax.f32 %v843_v23, 0.0  ;;  %v873_v8 = vmax.f32 %v841_v61, 0.0  ;;  %v3130_v53 = vsel %vm9966_vm0, %v2617_v60, 0  ;;  %v2970_v42 = vsel %vm7613_vm10, %v7610_v47, %v2969_v48  ;;  %v4678_v39 = vpop.permute.xlu0 %4677 }
 0x1de   : > { %v9992_v32 = vsel %vm9756_vm1, %v3616_v40, 0  ;;  %v1850_v58 = vor.u32 %v1849_v16, %v1845_v6  ;;  %v12513_v49 = vsel %vm7632_vm14, %v9773_v1, %v9531_v62  ;;  %v10000_v34 = vrot.slane %v5691_v41, 4  ;;  %4770 = vst.msk [vmem:[#allocation3 + $0x10] sm:$0xf] %vm4765_vm12, %v4678_v39  ;;  %v5875_v1 = vpop.permute.xlu1 %5874  ;;  %v2619_v61 = vld [vmem:[#allocation2 + $0x54] sm:$0xf] }
 0x1df   : > { %5890 = vrot.lane.b32.xlu1 %v12513_v49, %s7448_s29  ;;  %v3131_v35 = vsel %vm3098_vm11, %v2618_v57, 0  ;;  %v7205_v30 = vpack.c.bf16 %v875_v7, %v875_v7  ;;  %v7203_v48 = vpack.c.bf16 %v873_v8, %v873_v8  ;;  %v4508_v60 = vsel %vm7632_vm14, %v9927_v9, %v9973_v18  ;;  %v1485_v39 = vld [vmem:[#allocation2 + $0x4c] sm:$0xf] }
 0x1e0   : > { %v3330_v40 = vshrl.u32 %v3131_v35, 16  ;;  %v10011_v23 = vsel %vm9461_vm15, %v4814_v37, 0  ;;  %v1846_v62 = vsel %vm7632_vm14, %v12415_v44, %v1845_v6  ;;  %5180 = vrot.lane.b32.xlu0 %v9875_v4, %s7447_s28  ;;  %v3316_v41 = vshll.u32 %v3130_v53, 16  ;;  %vm12516_vm15 = vmmov %vm12497_vm8 }
 0x1e1   : > { %vm10018_vm7 = vcmp.ne.s16.totalorder %v2970_v42, 0  ;;  %v3815_v16 = vshrl.u32 %v9992_v32, 16  ;;  %v1851_v7 = vrot.slane %v1850_v58, 4  ;;  %1044 = vst.msk [vmem:[#allocation2 + $0x78] sm:$0xf] %vm12497_vm8, %v7205_v30  ;;  %vm12517_vm4 = vcmask 290048   ;;  %v3970_v8 = vpop.permute.xlu0 %3969 }
 0x1e2   : > { %1042 = vst.msk [vmem:[#allocation2 + $0x70] sm:$0xf] %vm12516_vm15, %v7203_v48  ;;  %v10026_v19 = vrot.slane %v3313_v27, 4  ;;  %v3320_v6 = vshrl.u32 %v3130_v53, 16  ;;  %v10028_v37 = vrot.slane %v5681_v63, 4  ;;  %v3326_v4 = vshll.u32 %v3131_v35, 16  ;;  %v3485_v30 = vpop.permute.xlu1 %3484 }
 0x1e3   : > { %5968 = vst.msk [vmem:[#allocation3 + $0xc] sm:$0xf] %vm12517_vm4, %v5875_v1  ;;  %v12518_v42 = vsel %vm7632_vm14, %v9828_v22, %v9833_v11  ;;  %v5697_v58 = vsel %vm7632_vm14, %v10000_v34, %v9925_v10  ;;  %v5005_v27 = vshrl.u32 %v10011_v23, 16  ;;  %vm10041_vm9 = vcmp.ne.s16.totalorder %v1846_v62, 0  ;;  %v12522_v35 = vld [vmem:[#allocation22_spill] sm:$0xff] }
 0x1e4   : > { %3500 = vrot.lane.b32.xlu1 %v12518_v42, %s7442_s17  ;;  %v1071_v63 = vadd.s32 160, %v12475_v46  ;;  %vm12521_vm13 = vcmask 126048   ;;  %v10049_v11 = vsel %vm10018_vm7, %v2619_v61, 0  ;;  %v3332_v22 = vrot.slane %v3330_v40, 4  ;;  %5184 = vrot.lane.b32.xlu0 %v9899_v15, %s7447_s28  ;;  %v3617_v61 = vld [vmem:[#allocation2 + $0x54] sm:$0xf] }
 0x1e5   : > { %4060 = vst.msk [vmem:[#allocation3 + $0x18] sm:$0xf] %vm12521_vm13, %v3970_v8  ;;  %v3813_v49 = vrot.slane %v9581_v12, 4  ;;  %v3818_v34 = vshll.u32 %v9992_v32, 16  ;;  %vm12523_vm8 = vcmask 158848   ;;  %v3318_v48 = vrot.slane %v3316_v41, 5  ;;  %vm12525_vm4 = vmmov %vm12521_vm13 }
 0x1e6   : > { %4253 = vst.msk [vmem:[#allocation3 + $0x18] sm:$0xf] %vm12523_vm8, %v12522_v35  ;;  %v10057_v62 = vrot.slane %v3815_v16, 7  ;;  %v5008_v1 = vshll.u32 %v10011_v23, 16  ;;  %v1856_v40 = vsel %vm7632_vm14, %v1851_v7, %v12443_v33  ;;  %vm12524_vm15 = vcmask 93248   ;;  %v5165_v16 = vpop.permute.xlu0 %5164  ;;  %v12527_v35 = vld [vmem:[#allocation10_spill] sm:$0xff]  ;;  %vm12528_vm13 = vmmov %vm12523_vm8 }
 0x1e7   : > { %4772 = vst.msk [vmem:[#allocation3 + $0x18] sm:$0xf] %vm4765_vm12, %v9676_v21  ;;  %v10066_v32 = vrot.slane %v3326_v4, 5  ;;  %v3322_v8 = vrot.slane %v3320_v6, 4  ;;  %v3618_v42 = vld [vmem:[#allocation2 + $0x58] sm:$0xf]  ;;  %v12526_v21 = vsel %vm7632_vm14, %v9848_v25, %v9378_v31 }
 0x1e8   : > { %3574 = vst.msk [vmem:[#allocation3 + $0x1c] sm:$0xf] %vm12524_vm15, %v3485_v30  ;;  %v1227_v15 = vand.u32 15, %v1071_v63  ;;  %v2033_v41 = vsel %vm10041_vm9, %v1485_v39, 0  ;;  %4695 = vrot.lane.b32.xlu1 %v12526_v21, %s7446_s27  ;;  %v3336_v7 = vshll.u32 %v10049_v11, 16  ;;  %v10079_v4 = vrot.slane %v5005_v27, 7  ;;  %5896 = vrot.lane.b32.xlu0 %v5697_v58, %s7448_s29 }
 0x1e9   : > { %4061 = vst.msk [vmem:[#allocation3 + $0x1c] sm:$0xf] %vm12525_vm4, %v9618_v14  ;;  %v2210_v6 = vshrl.u32 %v2033_v41, 16  ;;  %v2213_v63 = vshll.u32 %v2033_v41, 16  ;;  %v3333_v14 = vor.u32 %v3332_v22, %v10066_v32  ;;  %vm10085_vm8 = vcmp.ne.s16.totalorder %v1856_v40, 0  ;;  %v12533_v30 = vld [vmem:[#allocation15_spill] sm:$0xff]  ;;  %v4680_v41 = vpop.permute.xlu1 %4679 }
 0x1ea   : > { %4254 = vst.msk [vmem:[#allocation3 + $0x1c] sm:$0xf] %vm12528_vm13, %v12527_v35  ;;  %v10091_v31 = vsel %vm10041_vm9, %v3617_v61, 0  ;;  %vm10093_vm15 = vcmp.gt.s32.totalorder %v1227_v15, 0  ;;  %v1482_v27 = vld [vmem:[#allocation2 + $0x40] sm:$0xf]  ;;  %v5687_v40 = vsel %vm7632_vm14, %v10028_v37, %v9912_v17  ;;  %v3323_v58 = vor.u32 %v3322_v8, %v3318_v48  ;;  %v10124_v21 = vpop.permute.xlu0 %4178 }
 0x1eb   : > { %5257 = vst.msk [vmem:[#allocation3 + $0x10] sm:$0xf] %vm12244_vm6, %v5165_v16  ;;  %vm12534_vm4 = vcmask 257248   ;;  %v7391_v22 = vld [vmem:[#allocation3 + $0x8] sm:$0xff]   ;;  %v10106_v61 = vsel %vm10085_vm8, %v3618_v42, 0  ;;  %vm1616_vm13 = vmpackc.low %vm10093_vm15, %vm10093_vm15  ;;  %v2208_v15 = vrot.slane %v9799_v45, 4  ;;  %v3820_v17 = vor.u32 %v3818_v34, %v10057_v62 }
 0x1ec   : > { %5450 = vst.msk [vmem:[#allocation3 + $0x10] sm:$0xf] %vm12534_vm4, %v12533_v30  ;;  %v10112_v16 = vrot.slane %v2210_v6, 7  ;;  %vm12535_vm4 = vcmask 290048   ;;  %v2971_v37 = vrot.slane %v9929_v2, 4  ;;  %v10120_v42 = vsel %vm1616_vm13, 65537, %v12488_v52  ;;  %4699 = vrot.lane.b32.xlu1 %v4508_v60, %s7446_s27  ;;  %7298 = vmatmul.mubr.msk.bf16.vlgmr.msra.gmra.mxu1 %vm12243_vm5, %v7391_v22 }
 0x1ed   : > { %5969 = vst.msk [vmem:[#allocation3 + $0x10] sm:$0xf] %vm12535_vm4, %v9762_v38  ;;  %v3319_v38 = vsel %vm7632_vm14, %v10026_v19, %v3318_v48  ;;  %v3340_v45 = vshrl.u32 %v10049_v11, 16  ;;  %v5494_v2 = vld [vmem:[#allocation2 + $0x58] sm:$0xf]  ;;  %v12536_v8 = vld [vmem:[#allocation26_spill] sm:$0xff]  ;;  %v4684_v25 = vpop.permute.xlu1 %4683  ;;  %vm12541_vm13 = vmmov %vm12535_vm4 }
 0x1ee   : > { %4771 = vst.msk [vmem:[#allocation3 + $0x14] sm:$0xf] %vm4765_vm12, %v4680_v41  ;;  %v2215_v34 = vor.u32 %v2213_v63, %v10112_v16  ;;  %vm12537_vm15 = vcmask 257248   ;;  %v3334_v6 = vrot.slane %v3333_v14, 4  ;;  %v3824_v9 = vshrl.u32 %v10091_v31, 16  ;;  %3502 = vrot.lane.b32.xlu0 %v3319_v38, %s7442_s17  ;;  %v10163_v41 = vpop.permute.xlu0 %5373 }
 0x1ef   : > { %5258 = vst.msk [vmem:[#allocation3 + $0x14] sm:$0xf] %vm12244_vm6, %v9657_v43  ;;  %v1863_v43 = vshll.u32 %v10120_v42, 16  ;;  %v3833_v60 = vshrl.u32 %v10106_v61, 16  ;;  %v2030_v35 = vsel %vm9493_vm2, %v1482_v27, 0  ;;  %v10146_v19 = vrot.slane %v3336_v7, 5 }
 0x1f0   : > { %5451 = vst.msk [vmem:[#allocation3 + $0x14] sm:$0xf] %vm12537_vm15, %v12536_v8  ;;  %v2216_v11 = vsel %vm7613_vm10, %v2208_v15, %v2215_v34  ;;  %v2183_v48 = vshrl.u32 %v2030_v35, 16  ;;  %v2186_v63 = vshll.u32 %v2030_v35, 16  ;;  %v3324_v14 = vrot.slane %v3323_v58, 4  ;;  %5894 = vrot.lane.b32.xlu1 %v5687_v40, %s7448_s29 }
 0x1f1   : > { %4773 = vst.msk [vmem:[#allocation3 + $0x1c] sm:$0xf] %vm4765_vm12, %v4684_v25  ;;  %v10153_v30 = vsel %vm3096_vm3, %v5494_v2, 0  ;;  %v12538_v26 = vshrl.u32 %v9837_v59, 16  ;;  %v10160_v7 = vsel %vm7613_vm10, %v2971_v37, %v12477_v20  ;;  %vm12539_vm2 = vcmask 27648   ;;  %v5879_v8 = vpop.permute.xlu1 %5878 }
 0x1f2   : > { %2392 = vst.msk [vmem:[#allocation3 + $0x44] sm:$0xf] %vm12539_vm2, %v2216_v11  ;;  %v3342_v22 = vrot.slane %v3340_v45, 4  ;;  %v10166_v15 = vrot.slane %v1863_v43, 5  ;;  %v2181_v58 = vrot.slane %v12540_v55, 4  ;;  %v10169_v38 = vrot.slane %v2183_v48, 7  ;;  %v2504_v25 = vpop.permute.xlu0 %2503 }
 0x1f3   : > { %v5700_v27 = vrot.slane %v12538_v26, 4  ;;  %v3339_v59 = vsel %vm7632_vm14, %v3334_v6, %v10146_v19  ;;  %v10174_v2 = vrot.slane %v3824_v9, 7  ;;  %v10176_v37 = vrot.slane %v3833_v60, 7  ;;  %v2620_v45 = vld [vmem:[#allocation2 + $0x58] sm:$0xf] }
 0x1f4   : > { %v3836_v34 = vshll.u32 %v10106_v61, 16  ;;  %3506 = vrot.lane.b32.xlu0 %v3339_v59, %s7442_s17  ;;  %v5003_v40 = vrot.slane %v9807_v13, 4  ;;  %vm3100_vm3 = vcmp.ne.s16.totalorder %v10160_v7, 0  ;;  %v1866_v43 = vsel %vm7632_vm14, %v12415_v44, %v10166_v15  ;;  %5970 = vst.msk [vmem:[#allocation3 + $0x14] sm:$0xf] %vm12541_vm13, %v5879_v8  ;;  %v12546_v8 = vld [vmem:[#allocation18_spill] sm:$0xff] }
 0x1f5   : > { %v2188_v6 = vor.u32 %v2186_v63, %v10169_v38  ;;  %v3329_v61 = vsel %vm7632_vm14, %v3324_v14, %v10066_v32  ;;  %v5010_v13 = vor.u32 %v5008_v1, %v10079_v4  ;;  %v5701_v9 = vor.u32 %v5700_v27, %v9925_v10  ;;  %v4297_v35 = vld [vmem:[#allocation2 + $0x58] sm:$0xf]  ;;  %v4296_v32 = vld [vmem:[#allocation2 + $0x54] sm:$0xf]  ;;  %v2623_v7 = vld [vmem:[#allocation2 + $0x64] sm:$0xf] }
 0x1f6   : > { %v5704_v60 = vshll.u32 %v10153_v30, 16  ;;  %3504 = vrot.lane.b32.xlu1 %v3329_v61, %s7442_s17  ;;  %v3821_v11 = vsel %vm7613_vm10, %v3813_v49, %v3820_v17  ;;  %v3343_v48 = vor.u32 %v3342_v22, %v10146_v19  ;;  %vm12542_vm4 = vcmask 60448   ;;  %v3619_v49 = vld [vmem:[#allocation2 + $0x5c] sm:$0xf]  ;;  %v3489_v17 = vpop.permute.xlu1 %3488  ;;  %v5169_v59 = vpop.permute.xlu0 %5168 }
 0x1f7   : > { %v2189_v23 = vsel %vm7613_vm10, %v2181_v58, %v2188_v6  ;;  %2584 = vst.msk [vmem:[#allocation3 + $0x40] sm:$0xf] %vm12542_vm4, %v2504_v25  ;;  %v3831_v10 = vrot.slane %v10174_v2, 4  ;;  %v3838_v1 = vor.u32 %v3836_v34, %v10176_v37  ;;  %v10209_v63 = vsel %vm3100_vm3, %v2620_v45, 0  ;;  %v4815_v58 = vld [vmem:[#allocation2 + $0x58] sm:$0xf] }
 0x1f8   : > { %vm10211_vm15 = vcmp.ne.s16.totalorder %v1866_v43, 0  ;;  %2389 = vst.msk [vmem:[#allocation3 + $0x38] sm:$0xf] %vm12539_vm2, %v2189_v23  ;;  %3989 = vrot.lane.b32.xlu0 %v3821_v11, %s7445_s24  ;;  %v4511_v19 = vrot.slane %v4509_v5, 4  ;;  %v4330_v14 = vsel %vm3098_vm11, %v4297_v35, 0  ;;  %vm12545_vm13 = vcmask 93248  }
 0x1f9   : > { %3576 = vst.msk [vmem:[#allocation3 + $0x24] sm:$0xf] %vm12545_vm13, %v3489_v17  ;;  %v5011_v26 = vsel %vm7613_vm10, %v5003_v40, %v5010_v13  ;;  %v5702_v27 = vrot.slane %v5701_v9, 4  ;;  %v10224_v22 = vrot.slane %v5704_v60, 5  ;;  %v10228_v55 = vsel %vm9966_vm0, %v4296_v32, 0  ;;  %v12547_v9 = vld [vmem:[#allocation13_spill] sm:$0xff] }
 0x1fa   : > { %5186 = vrot.lane.b32.xlu1 %v5011_v26, %s7447_s28  ;;  %v3346_v36 = vshll.u32 %v10209_v63, 16  ;;  %v10234_v5 = vsel %vm10211_vm15, %v3619_v49, 0  ;;  %v2190_v34 = vrot.slane %v10169_v38, 4  ;;  %v2195_v40 = vshll.u32 %v12546_v8, 16  ;;  %5259 = vst.msk [vmem:[#allocation3 + $0x18] sm:$0xf] %vm12244_vm6, %v5169_v59  ;;  %v10243_v60 = vpop.permute.xlu1 %3979  ;;  %v3974_v49 = vpop.permute.xlu0 %3973 }
 0x1fb   : > { %v3839_v45 = vsel %vm7613_vm10, %v3831_v10, %v3838_v1  ;;  %v3344_v43 = vrot.slane %v3343_v48, 4  ;;  %v4298_v6 = vld [vmem:[#allocation2 + $0x5c] sm:$0xf]  ;;  %v4525_v61 = vshll.u32 %v4330_v14, 16  ;;  %v4529_v13 = vshrl.u32 %v4330_v14, 16  ;;  %v7392_v35 = vld [vmem:[#allocation3 + $0x10] sm:$0xff]  }
 0x1fc   : > { %vm12548_vm4 = vcmask 257248   ;;  %3993 = vrot.lane.b32.xlu0 %v3839_v45, %s7445_s24  ;;  %v3827_v38 = vshll.u32 %v10091_v31, 16  ;;  %v4512_v25 = vor.u32 %v4511_v19, %v9973_v18  ;;  %v4848_v11 = vsel %vm9756_vm1, %v4815_v58, 0  ;;  %v12549_v32 = vld [vmem:[#allocation8_spill] sm:$0xff]  ;;  %7301 = vmatprep.mubr.msk.bf16.mxu1 %vm12243_vm5, %v7392_v35  ;;  %v4817_v17 = vld [vmem:[#allocation2 + $0x60] sm:$0xf] }
 0x1fd   : > { %5452 = vst.msk [vmem:[#allocation3 + $0x18] sm:$0xf] %vm12548_vm4, %v12547_v9  ;;  %v2197_v48 = vor.u32 %v2195_v40, %v12549_v32  ;;  %v5707_v23 = vsel %vm7632_vm14, %v5702_v27, %v10224_v22  ;;  %v4515_v10 = vshll.u32 %v10228_v55, 16  ;;  %v3842_v1 = vshrl.u32 %v10234_v5, 16  ;;  %v4102_v31 = vld [vmem:[#allocation2 + $0x50] sm:$0xf] }
 0x1fe   : > { %5898 = vrot.lane.b32.xlu1 %v5707_v23, %s7448_s29  ;;  %v10258_v18 = vrot.slane %v3346_v36, 5  ;;  %v3822_v3 = vrot.slane %v10057_v62, 4  ;;  %vm12550_vm1 = vcmask 126048   ;;  %v4331_v14 = vsel %vm10018_vm7, %v4298_v6, 0  ;;  %v4816_v59 = vld [vmem:[#allocation2 + $0x5c] sm:$0xf]  ;;  %v10271_v62 = vpop.permute.xlu1 %5174 }
 0x1ff   : > { %v2198_v19 = vsel %vm7613_vm10, %v2190_v34, %v2197_v48  ;;  %4062 = vst.msk [vmem:[#allocation3 + $0x20] sm:$0xf] %vm12550_vm1, %v3974_v49  ;;  %v10266_v26 = vrot.slane %v4525_v61, 5  ;;  %v4531_v27 = vrot.slane %v4529_v13, 4  ;;  %v5014_v58 = vshrl.u32 %v4848_v11, 16  ;;  %v10286_v13 = vpop.permute.xlu0 %4689 }
 0x200   : > { %2390 = vst.msk [vmem:[#allocation3 + $0x3c] sm:$0xf] %vm12539_vm2, %v2198_v19  ;;  %vm12551_vm13 = vcmask 158848   ;;  %4182 = vrot.lane.b32.xlu0 %v4102_v31, %s7443_s22  ;;  %v3349_v36 = vsel %vm7632_vm14, %v3344_v43, %v10258_v18  ;;  %v3829_v34 = vor.u32 %v3827_v38, %v10174_v2  ;;  %v4513_v8 = vrot.slane %v4512_v25, 4  ;;  %v4104_v35 = vld [vmem:[#allocation2 + $0x58] sm:$0xf] }
 0x201   : > { %4255 = vst.msk [vmem:[#allocation3 + $0x20] sm:$0xf] %vm12551_vm13, %v9893_v24  ;;  %v4519_v40 = vshrl.u32 %v10228_v55, 16  ;;  %v10279_v45 = vrot.slane %v4515_v10, 5  ;;  %v10281_v6 = vrot.slane %v3842_v1, 7  ;;  %v3845_v61 = vshll.u32 %v10234_v5, 16 }
 0x202   : > { %v4850_v24 = vsel %vm10085_vm8, %v4817_v17, 0  ;;  %3508 = vrot.lane.b32.xlu1 %v3349_v36, %s7442_s17  ;;  %v4535_v9 = vshll.u32 %v4331_v14, 16  ;;  %v4539_v43 = vshrl.u32 %v4331_v14, 16  ;;  %v10291_v2 = vsel %vm10041_vm9, %v4816_v59, 0  ;;  %v10297_v32 = vpop.permute.xlu1 %4180  ;;  %v4299_v10 = vld [vmem:[#allocation2 + $0x60] sm:$0xf] }
 0x203   : > { %v1072_v55 = vadd.s32 168, %v12475_v46  ;;  %v4532_v38 = vor.u32 %v4531_v27, %v10266_v26  ;;  %v10295_v25 = vrot.slane %v5014_v58, 7  ;;  %v5017_v5 = vshll.u32 %v4848_v11, 16  ;;  %v10308_v19 = vpop.permute.xlu0 %5369 }
 0x204   : > { %4186 = vrot.lane.b32.xlu0 %v4104_v35, %s7443_s22  ;;  %v3830_v48 = vsel %vm7613_vm10, %v3822_v3, %v3829_v34  ;;  %v4518_v53 = vsel %vm7632_vm14, %v4513_v8, %v10279_v45  ;;  %v5032_v23 = vshrl.u32 %v4850_v24, 16  ;;  %v3840_v49 = vrot.slane %v10176_v37, 4 }
 0x205   : > { %v1234_v1 = vand.u32 15, %v1072_v55  ;;  %v3847_v31 = vor.u32 %v3845_v61, %v10281_v6  ;;  %v5023_v11 = vshrl.u32 %v10291_v2, 16  ;;  %v4521_v17 = vrot.slane %v4519_v40, 4  ;;  %v5496_v55 = vld [vmem:[#allocation2 + $0x60] sm:$0xf] }
 0x206   : > { %3991 = vrot.lane.b32.xlu1 %v3830_v48, %s7445_s24  ;;  %v4537_v14 = vrot.slane %v4535_v9, 5  ;;  %v4541_v3 = vrot.slane %v4539_v43, 4  ;;  %v1074_v58 = vadd.s32 184, %v12475_v46  ;;  %v4533_v59 = vrot.slane %v4532_v38, 4  ;;  %v10323_v40 = vpop.permute.xlu1 %5375  ;;  %v7286_v43 = vpop.f32.mrf.mxu0 }
 0x207   : > { %vm10311_vm9 = vcmp.lt.s32.totalorder %v1234_v1, 15  ;;  %v5012_v37 = vrot.slane %v10079_v4, 4  ;;  %v5019_v36 = vor.u32 %v5017_v5, %v10295_v25  ;;  %v10320_v34 = vsel %vm3100_vm3, %v4299_v10, 0 }
 0x208   : > { %v5708_v8 = vshrl.u32 %v10153_v30, 16  ;;  %4701 = vrot.lane.b32.xlu0 %v4518_v53, %s7446_s27  ;;  %v10326_v61 = vrot.slane %v5032_v23, 7  ;;  %v5035_v9 = vshll.u32 %v4850_v24, 16  ;;  %v3848_v4 = vsel %vm7613_vm10, %v3840_v49, %v3847_v31  ;;  %vm2750_vm4 = vmpackc.low %vm10311_vm9, %vm10311_vm9  ;;  %v10335_v30 = vpop.permute.xlu0 %5884  ;;  %v5495_v53 = vld [vmem:[#allocation2 + $0x5c] sm:$0xf] }
 0x209   : > { %v5025_v35 = vrot.slane %v5023_v11, 7  ;;  %v4522_v38 = vor.u32 %v4521_v17, %v10279_v45  ;;  %v4542_v24 = vor.u32 %v4541_v3, %v4537_v14  ;;  %v4545_v48 = vshll.u32 %v10320_v34, 16  ;;  %v4818_v3 = vld [vmem:[#allocation2 + $0x64] sm:$0xf] }
 0x20a   : > { %3995 = vrot.lane.b32.xlu1 %v3848_v4, %s7445_s24  ;;  %v1248_v23 = vand.u32 15, %v1074_v58  ;;  %v4538_v10 = vsel %vm7632_vm14, %v4533_v59, %v4537_v14  ;;  %v5020_v45 = vsel %vm7613_vm10, %v5012_v37, %v5019_v36  ;;  %v805_v49 = vmul.f32 %v9862_v51, %v7286_v43  ;;  %v2506_v31 = vpop.permute.xlu1 %2505  ;;  %v743_v59 = vpop.f32.mrf.mxu0  ;;  %v4103_v37 = vld [vmem:[#allocation2 + $0x54] sm:$0xf] }
 0x20b   : > { %v5030_v1 = vrot.slane %v5025_v35, 4  ;;  %v5037_v11 = vor.u32 %v5035_v9, %v10326_v61  ;;  %v5026_v17 = vshll.u32 %v10291_v2, 16  ;;  %v10354_v14 = vsel %vm2750_vm4, 65537, %v12488_v52 }
 0x20c   : > { %4705 = vrot.lane.b32.xlu0 %v4538_v10, %s7446_s27  ;;  %v1073_v58 = vadd.s32 176, %v12475_v46  ;;  %vm12554_vm1 = vcmask 60448   ;;  %v4523_v36 = vrot.slane %v4522_v38, 4  ;;  %v10360_v9 = vsel %vm9966_vm0, %v5495_v53, 0  ;;  %v2500_v4 = vpop.permute.xlu0 %2499 }
 0x20d   : > { %2585 = vst.msk [vmem:[#allocation3 + $0x44] sm:$0xf] %vm12554_vm1, %v2506_v31  ;;  %v5710_v2 = vrot.slane %v5708_v8, 4  ;;  %v844_v43 = vadd.f32 %v9908_v29, %v805_v49  ;;  %v10364_v27 = vrot.slane %v4542_v24, 4  ;;  %v10366_v10 = vrot.slane %v4545_v48, 5  ;;  %vm12557_vm13 = vmmov %vm12554_vm1 }
 0x20e   : > { %4184 = vrot.lane.b32.xlu1 %v4103_v37, %s7443_s22  ;;  %vm10368_vm2 = vcmp.lt.s32.totalorder %v1248_v23, 15  ;;  %v1241_v38 = vand.u32 15, %v1073_v58  ;;  %2582 = vst.msk [vmem:[#allocation3 + $0x38] sm:$0xf] %vm12557_vm13, %v2500_v4  ;;  %v10375_v56 = vsel %vm10211_vm15, %v4818_v3, 0  ;;  %v2982_v53 = vshrl.u32 %v10354_v14, 16  ;;  %v5171_v48 = vpop.permute.xlu1 %5170 }
 0x20f   : > { %v5497_v8 = vld [vmem:[#allocation2 + $0x64] sm:$0xf]  ;;  %v876_v49 = vmax.f32 %v844_v43, 0.0  ;;  %v803_v24 = vmul.f32 %v9862_v51, %v743_v59  ;;  %v5021_v23 = vrot.slane %v10295_v25, 4  ;;  %v5028_v31 = vor.u32 %v5026_v17, %v5025_v35  ;;  %5260 = vst.msk [vmem:[#allocation3 + $0x1c] sm:$0xf] %vm12244_vm6, %v5171_v48  ;;  %vm2752_vm9 = vmpackc.low %vm10368_vm2, %vm10368_vm2  ;;  %v7289_v35 = vpop.f32.mrf.mxu0 }
 0x210   : > { %5188 = vrot.lane.b32.xlu0 %v5020_v45, %s7447_s28  ;;  %v5714_v58 = vshll.u32 %v10360_v9, 16  ;;  %vm10382_vm0 = vcmp.gt.s32.totalorder %v1241_v38, 0  ;;  %v4105_v3 = vld [vmem:[#allocation2 + $0x5c] sm:$0xf]  ;;  %v5038_v43 = vsel %vm7613_vm10, %v5030_v1, %v5037_v11  ;;  %v4528_v59 = vsel %vm7632_vm14, %v4523_v36, %v10266_v26  ;;  %v12560_v17 = vld [vmem:[#allocation11_spill] sm:$0xff]  ;;  %v3495_v4 = vpop.permute.xlu0 %3494 }
 0x211   : > { %v5711_v45 = vor.u32 %v5710_v2, %v10224_v22  ;;  %v5718_v25 = vshrl.u32 %v10360_v9, 16  ;;  %vm12561_vm4 = vcmask 257248   ;;  %v4548_v26 = vsel %vm7632_vm14, %v10364_v27, %v10366_v10  ;;  %vm1618_vm1 = vmpackc.low %vm10382_vm0, %vm10382_vm0  ;;  %v756_v5 = vpop.f32.mrf.mxu0 }
 0x212   : > { %5453 = vst.msk [vmem:[#allocation3 + $0x1c] sm:$0xf] %vm12561_vm4, %v12560_v17  ;;  %4188 = vrot.lane.b32.xlu1 %v4105_v3, %s7443_s22  ;;  %v5041_v22 = vshrl.u32 %v10375_v56, 16  ;;  %v5529_v1 = vsel %vm3098_vm11, %v5496_v55, 0  ;;  %v10409_v11 = vsel %vm10018_vm7, %v5497_v8, 0  ;;  %vm12562_vm13 = vcmask 93248   ;;  %v3976_v48 = vpop.permute.xlu1 %3975 }
 0x213   : > { %3579 = vst.msk [vmem:[#allocation3 + $0x30] sm:$0xf] %vm12562_vm13, %v3495_v4  ;;  %v2984_v36 = vrot.slane %v2982_v53, 7  ;;  %v2985_v2 = vshll.u32 %v10354_v14, 16  ;;  %v7206_v38 = vpack.c.bf16 %v876_v49, %v876_v49  ;;  %v842_v27 = vadd.f32 %v9908_v29, %v803_v24 }
 0x214   : > { %5192 = vrot.lane.b32.xlu0 %v5038_v43, %s7447_s28  ;;  %v5029_v28 = vsel %vm7613_vm10, %v5021_v23, %v5028_v31  ;;  %v10420_v57 = vrot.slane %v5714_v58, 5  ;;  %v5039_v55 = vrot.slane %v10326_v61, 4  ;;  %v10429_v14 = vsel %vm2752_vm9, 65537, %v12488_v52  ;;  %v10444_v23 = vpop.permute.xlu0 %4174 }
 0x215   : > { %vm12563_vm11 = vcmask 126048   ;;  %v10432_v8 = vrot.slane %v5711_v45, 4  ;;  %v5044_v53 = vshll.u32 %v10375_v56, 16  ;;  %v5728_v49 = vshrl.u32 %v5529_v1, 16  ;;  %v5301_v45 = vld [vmem:[#allocation2 + $0x58] sm:$0xf] }
 0x216   : > { %4063 = vst.msk [vmem:[#allocation3 + $0x24] sm:$0xf] %vm12563_vm11, %v3976_v48  ;;  %vm12564_vm7 = vcmask 27648   ;;  %v1650_v24 = vsel %vm1618_vm1, 65537, %v12488_v52  ;;  %vm12565_vm2 = vcmask 158848   ;;  %4703 = vrot.lane.b32.xlu1 %v4528_v59, %s7446_s27  ;;  %v10447_v31 = vrot.slane %v5041_v22, 7  ;;  %v10453_v48 = vpop.permute.xlu1 %5371 }
 0x217   : > { %1045 = vst.msk [vmem:[#allocation2 + $0x7c] sm:$0xf] %vm12564_vm7, %v7206_v38  ;;  %v5724_v56 = vshll.u32 %v5529_v1, 16  ;;  %v12566_v3 = vshrl.u32 %v10120_v42, 16  ;;  %v2987_v37 = vor.u32 %v2985_v2, %v2984_v36  ;;  %v2989_v17 = vrot.slane %v2984_v36, 4  ;;  %vm12568_vm9 = vmmov %vm12564_vm7 }
 0x218   : > { %4256 = vst.msk [vmem:[#allocation3 + $0x24] sm:$0xf] %vm12565_vm2, %v9977_v54  ;;  %v3000_v4 = vshrl.u32 %v10429_v14, 16  ;;  %v874_v38 = vmax.f32 %v842_v27, 0.0  ;;  %5381 = vrot.lane.b32.xlu0 %v5301_v45, %s7444_s23  ;;  %v1883_v54 = vshll.u32 %v1650_v24, 16  ;;  %v1887_v59 = vshrl.u32 %v1650_v24, 16  ;;  %v5881_v27 = vpop.permute.xlu0 %5880 }
 0x219   : > { %v1869_v43 = vrot.slane %v12566_v3, 4  ;;  %v808_v22 = vmul.f32 %v9862_v51, %v7289_v35  ;;  %v806_v1 = vmul.f32 %v9862_v51, %v756_v5  ;;  %v5717_v42 = vsel %vm7632_vm14, %v10432_v8, %v10420_v57  ;;  %v1486_v5 = vld [vmem:[#allocation2 + $0x50] sm:$0xf]  ;;  %v5303_v45 = vld [vmem:[#allocation2 + $0x60] sm:$0xf] }
 0x21a   : > { %v5730_v2 = vrot.slane %v5728_v49, 4  ;;  %v5738_v36 = vshrl.u32 %v10409_v11, 16  ;;  %v7204_v3 = vpack.c.bf16 %v874_v38, %v874_v38  ;;  %4707 = vrot.lane.b32.xlu1 %v4548_v26, %s7446_s27  ;;  %v10464_v58 = vrot.slane %v5724_v56, 5 }
 0x21b   : > { %v3003_v24 = vshll.u32 %v10429_v14, 16  ;;  %v847_v35 = vadd.f32 %v9908_v29, %v808_v22  ;;  %v845_v51 = vadd.f32 %v9908_v29, %v806_v1  ;;  %vm12567_vm0 = vcmask 290048   ;;  %v2502_v29 = vpop.permute.xlu1 %2501 }
 0x21c   : > { %5971 = vst.msk [vmem:[#allocation3 + $0x18] sm:$0xf] %vm12567_vm0, %v5881_v27  ;;  %v2988_v8 = vsel %vm7613_vm10, %v7610_v47, %v2987_v37  ;;  %v10476_v26 = vsel %vm7613_vm10, %v2989_v17, %v12477_v20  ;;  %v10478_v49 = vrot.slane %v3000_v4, 7  ;;  %v1870_v14 = vor.u32 %v1869_v43, %v10166_v15  ;;  %5385 = vrot.lane.b32.xlu0 %v5303_v45, %s7444_s23  ;;  %v3491_v43 = vpop.permute.xlu0 %3490  ;;  %vm12575_vm2 = vmmov %vm12567_vm0 }
 0x21d   : > { %1043 = vst.msk [vmem:[#allocation2 + $0x74] sm:$0xf] %vm12568_vm9, %v7204_v3  ;;  %v10483_v56 = vrot.slane %v1883_v54, 5  ;;  %v1889_v38 = vrot.slane %v1887_v59, 4  ;;  %v879_v22 = vmax.f32 %v847_v35, 0.0  ;;  %v877_v1 = vmax.f32 %v845_v51, 0.0  ;;  %vm12576_vm0 = vmmov %vm12564_vm7 }
 0x21e   : > { %vm12569_vm4 = vcmask 60448   ;;  %v5046_v37 = vor.u32 %v5044_v53, %v10447_v31  ;;  %v5731_v17 = vor.u32 %v5730_v2, %v10464_v58  ;;  %v5720_v4 = vrot.slane %v5718_v25, 4  ;;  %5190 = vrot.lane.b32.xlu1 %v5029_v28, %s7447_s28  ;;  %v2622_v54 = vld [vmem:[#allocation2 + $0x60] sm:$0xf]  ;;  %3577 = vst.msk [vmem:[#allocation3 + $0x28] sm:$0xf] %vm12562_vm13, %v3491_v43 }
 0x21f   : > { %2583 = vst.msk [vmem:[#allocation3 + $0x3c] sm:$0xf] %vm12569_vm4, %v2502_v29  ;;  %v2034_v15 = vsel %vm10085_vm8, %v1486_v5, 0  ;;  %vm3102_vm1 = vcmp.ne.s16.totalorder %v10476_v26, 0  ;;  %v7209_v59 = vpack.c.bf16 %v879_v22, %v879_v22  ;;  %v7207_v3 = vpack.c.bf16 %v877_v1, %v877_v1  ;;  %v2621_v53 = vld [vmem:[#allocation2 + $0x5c] sm:$0xf]  ;;  %v10500_v35 = vpop.permute.xlu1 %4176  ;;  %vm12572_vm8 = vmmov %vm12564_vm7 }
 0x220   : > { %v2219_v27 = vshrl.u32 %v2034_v15, 16  ;;  %vm10495_vm11 = vcmp.ne.s16.totalorder %v2988_v8, 0  ;;  %v3005_v9 = vor.u32 %v3003_v24, %v10478_v49  ;;  %v1871_v39 = vrot.slane %v1870_v14, 4  ;;  %5900 = vrot.lane.b32.xlu0 %v5717_v42, %s7448_s29  ;;  %v5498_v29 = vld [vmem:[#allocation2 + $0x68] sm:$0xf] }
 0x221   : > { %v2222_v25 = vshll.u32 %v2034_v15, 16  ;;  %v1890_v28 = vor.u32 %v1889_v38, %v10483_v56  ;;  %1048 = vst.msk [vmem:[#allocation2 + $0x88] sm:$0xf] %vm12572_vm8, %v7209_v59  ;;  %v2217_v51 = vrot.slane %v10112_v16, 4  ;;  %v5047_v24 = vsel %vm7613_vm10, %v5039_v55, %v5046_v37  ;;  %v4686_v38 = vpop.permute.xlu0 %4685 }
 0x222   : > { %1046 = vst.msk [vmem:[#allocation2 + $0x80] sm:$0xf] %vm12564_vm7, %v7207_v3  ;;  %v10507_v5 = vrot.slane %v2219_v27, 7  ;;  %v5721_v45 = vor.u32 %v5720_v4, %v10420_v57  ;;  %v12573_v8 = vshrl.u32 %v10209_v63, 16  ;;  %v3135_v14 = vsel %vm3102_vm1, %v2622_v54, 0  ;;  %5194 = vrot.lane.b32.xlu1 %v5047_v24, %s7447_s28 }
 0x223   : > { %v12574_v16 = vshll.u32 %v10409_v11, 16  ;;  %v10525_v61 = vsel %vm10495_vm11, %v2621_v53, 0  ;;  %v3370_v55 = vshrl.u32 %v3135_v14, 16  ;;  %4774 = vst.msk [vmem:[#allocation3 + $0x20] sm:$0xf] %vm4765_vm12, %v4686_v38  ;;  %v5732_v1 = vrot.slane %v5731_v17, 4  ;;  %v5883_v43 = vpop.permute.xlu1 %5882 }
 0x224   : > { %v3352_v42 = vrot.slane %v12573_v8, 4  ;;  %v2224_v57 = vor.u32 %v2222_v25, %v10507_v5  ;;  %v2427_v63 = vld [vmem:[#allocation2 + $0x58] sm:$0xf]  ;;  %v3006_v37 = vsel %vm7613_vm10, %v7610_v47, %v3005_v9  ;;  %v10534_v4 = vrot.slane %v5738_v36, 4  ;;  %v3620_v17 = vld [vmem:[#allocation2 + $0x60] sm:$0xf] }
 0x225   : > { %v10521_v22 = vrot.slane %v12574_v16, 5  ;;  %v1876_v15 = vsel %vm7632_vm14, %v1871_v39, %v12443_v33  ;;  %2511 = vrot.lane.b32.xlu0 %v2427_v63, %s7441_s16  ;;  %v3366_v54 = vshll.u32 %v3135_v14, 16  ;;  %v10542_v59 = vsel %vm3100_vm3, %v5498_v29, 0  ;;  %5972 = vst.msk [vmem:[#allocation3 + $0x1c] sm:$0xf] %vm12575_vm2, %v5883_v43  ;;  %v3978_v39 = vpop.permute.xlu0 %3977  ;;  %v12582_v29 = vld [vmem:[#allocation16_spill] sm:$0xff] }
 0x226   : > { %v1891_v3 = vrot.slane %v1890_v28, 4  ;;  %v2225_v27 = vsel %vm7613_vm10, %v2217_v51, %v2224_v57  ;;  %v5302_v11 = vld [vmem:[#allocation2 + $0x5c] sm:$0xf]  ;;  %v10547_v36 = vrot.slane %v5721_v45, 4  ;;  %v3353_v53 = vor.u32 %v3352_v42, %v10258_v18  ;;  %v1487_v14 = vld [vmem:[#allocation2 + $0x54] sm:$0xf] }
 0x227   : > { %v3356_v9 = vshll.u32 %v10525_v61, 16  ;;  %2393 = vst.msk [vmem:[#allocation3 + $0x48] sm:$0xf] %vm12576_vm0, %v2225_v27  ;;  %5383 = vrot.lane.b32.xlu1 %v5302_v11, %s7444_s23  ;;  %vm10553_vm3 = vcmp.ne.s16.totalorder %v3006_v37, 0  ;;  %v10557_v28 = vrot.slane %v3370_v55, 4  ;;  %vm10559_vm9 = vcmp.ne.s16.totalorder %v1876_v15, 0  ;;  %v3493_v38 = vpop.permute.xlu1 %3492 }
 0x228   : > { %v1075_v18 = vadd.s32 192, %v12475_v46  ;;  %vm12581_vm4 = vcmask 126048   ;;  %v5737_v24 = vsel %vm7632_vm14, %v5732_v1, %v10521_v22  ;;  %v5741_v45 = vor.u32 %v10534_v4, %v10521_v22  ;;  %v5304_v16 = vld [vmem:[#allocation2 + $0x64] sm:$0xf]  ;;  %v3622_v1 = vld [vmem:[#allocation2 + $0x68] sm:$0xf] }
 0x229   : > { %4064 = vst.msk [vmem:[#allocation3 + $0x28] sm:$0xf] %vm12581_vm4, %v3978_v39  ;;  %v5744_v8 = vshll.u32 %v10542_v59, 16  ;;  %v10573_v42 = vsel %vm10559_vm9, %v3620_v17, 0  ;;  %vm12583_vm13 = vcmask 158848   ;;  %5904 = vrot.lane.b32.xlu0 %v5737_v24, %s7448_s29  ;;  %v10578_v55 = vrot.slane %v3366_v54, 5  ;;  %vm12585_vm7 = vmmov %vm12581_vm4 }
 0x22a   : > { %4257 = vst.msk [vmem:[#allocation3 + $0x28] sm:$0xf] %vm12583_vm13, %v12582_v29  ;;  %v1886_v57 = vsel %vm7632_vm14, %v12415_v44, %v10483_v56  ;;  %v1896_v63 = vsel %vm7632_vm14, %v1891_v3, %v12443_v33  ;;  %v1255_v37 = vand.u32 15, %v1075_v18  ;;  %vm12584_vm8 = vcmask 93248   ;;  %v3621_v56 = vld [vmem:[#allocation2 + $0x64] sm:$0xf]  ;;  %v5173_v3 = vpop.permute.xlu0 %5172  ;;  %vm12589_vm0 = vmmov %vm12583_vm13 }
 0x22b   : > { %4776 = vst.msk [vmem:[#allocation3 + $0x28] sm:$0xf] %vm4765_vm12, %v10286_v13  ;;  %v3354_v15 = vrot.slane %v3353_v53, 4  ;;  %v10590_v43 = vrot.slane %v3356_v9, 5  ;;  %v3360_v54 = vshrl.u32 %v10525_v61, 16  ;;  %v10595_v17 = vsel %vm10553_vm3, %v2623_v7, 0  ;;  %5387 = vrot.lane.b32.xlu1 %v5304_v16, %s7444_s23  ;;  %v4688_v18 = vpop.permute.xlu1 %4687 }
 0x22c   : > { %3578 = vst.msk [vmem:[#allocation3 + $0x2c] sm:$0xf] %vm12584_vm8, %v3493_v38  ;;  %v3373_v13 = vor.u32 %v10557_v28, %v10578_v55  ;;  %v3851_v27 = vshrl.u32 %v10573_v42, 16  ;;  %vm10603_vm2 = vcmp.gt.s32.totalorder %v1255_v37, 0  ;;  %v2035_v61 = vsel %vm10211_vm15, %v1487_v14, 0  ;;  %v12588_v53 = vld [vmem:[#allocation21_spill] sm:$0xff] }
 0x22d   : > { %4065 = vst.msk [vmem:[#allocation3 + $0x2c] sm:$0xf] %vm12585_vm7, %v10243_v60  ;;  %v2429_v60 = vld [vmem:[#allocation2 + $0x60] sm:$0xf]  ;;  %vm10612_vm4 = vcmp.ne.s16.totalorder %v1886_v57, 0  ;;  %v12590_v9 = vmov 0  ;;  %vm1620_vm8 = vmpackc.low %vm10603_vm2, %vm10603_vm2  ;;  %v5727_v24 = vsel %vm7632_vm14, %v10547_v36, %v10464_v58 }
 0x22e   : > { %4258 = vst.msk [vmem:[#allocation3 + $0x2c] sm:$0xf] %vm12589_vm0, %v12588_v53  ;;  %v12591_v9 = vsel %vm10612_vm4, 4294967295, %v12590_v9  ;;  %vm10616_vm13 = vcmp.ne.s16.totalorder %v1896_v63, 0  ;;  %v12593_v39 = vmov 0  ;;  %v2228_v12 = vshrl.u32 %v2035_v61, 16  ;;  %2515 = vrot.lane.b32.xlu0 %v2429_v60, %s7441_s16 }
 0x22f   : > { %5261 = vst.msk [vmem:[#allocation3 + $0x20] sm:$0xf] %vm12244_vm6, %v5173_v3  ;;  %12592 = vst [vmem:[#allocation19_spill] sm:$0xff] %v12591_v9  ;;  %v12594_v39 = vsel %vm10616_vm13, 4294967295, %v12593_v39  ;;  %v2231_v7 = vshll.u32 %v2035_v61, 16  ;;  %v12596_v28 = vld [vmem:[#allocation20_spill] sm:$0xff]  ;;  %5902 = vrot.lane.b32.xlu1 %v5727_v24, %s7448_s29 }
 0x230   : > { %12595 = vst [vmem:[#allocation23_spill] sm:$0xff] %v12594_v39  ;;  %vm12597_vm15 = vcmask 257248   ;;  %v7393_v14 = vld [vmem:[#allocation3 + $0x18] sm:$0xff]   ;;  %v10632_v29 = vsel %vm10612_vm4, %v3621_v56, 0  ;;  %v3655_v38 = vsel %vm10616_vm13, %v3622_v1, 0  ;;  %v10637_v16 = vsel %vm1620_vm8, 65537, %v12488_v52  ;;  %v5177_v1 = vpop.permute.xlu0 %5176 }
 0x231   : > { %5454 = vst.msk [vmem:[#allocation3 + $0x20] sm:$0xf] %vm12597_vm15, %v12596_v28  ;;  %vm12598_vm7 = vcmask 290048   ;;  %v3376_v57 = vshll.u32 %v10595_v17, 16  ;;  %v3007_v58 = vrot.slane %v10478_v49, 4  ;;  %v2226_v36 = vrot.slane %v10507_v5, 4  ;;  %7302 = vmatmul.mubr.msk.bf16.gmra.mxu1 %vm12243_vm5, %v7393_v14  ;;  %vm12600_vm2 = vmmov %vm12597_vm15 }
 0x232   : > { %5973 = vst.msk [vmem:[#allocation3 + $0x20] sm:$0xf] %vm12598_vm7, %v10335_v30  ;;  %v10645_v63 = vrot.slane %v2228_v12, 7  ;;  %v3359_v30 = vsel %vm7632_vm14, %v3354_v15, %v10590_v43  ;;  %v10654_v37 = vrot.slane %v3851_v27, 7  ;;  %v3854_v49 = vshll.u32 %v10573_v42, 16  ;;  %v12599_v56 = vld [vmem:[#allocation25_spill] sm:$0xff]  ;;  %vm12601_vm0 = vmmov %vm12600_vm2  ;;  %v4692_v15 = vpop.permute.xlu1 %4691 }
 0x233   : > { %4775 = vst.msk [vmem:[#allocation3 + $0x24] sm:$0xf] %vm4765_vm12, %v4688_v18  ;;  %v1903_v5 = vshll.u32 %v10637_v16, 16  ;;  %v3860_v3 = vshrl.u32 %v10632_v29, 16  ;;  %v3869_v11 = vshrl.u32 %v3655_v38, 16  ;;  %3510 = vrot.lane.b32.xlu0 %v3359_v30, %s7442_s17  ;;  %v3380_v42 = vshrl.u32 %v10595_v17, 16 }
 0x234   : > { %5262 = vst.msk [vmem:[#allocation3 + $0x24] sm:$0xf] %vm12244_vm6, %v10271_v62  ;;  %5263 = vst.msk [vmem:[#allocation3 + $0x28] sm:$0xf] %vm12244_vm6, %v5177_v1  ;;  %v3374_v62 = vrot.slane %v3373_v13, 4  ;;  %v2233_v61 = vor.u32 %v2231_v7, %v10645_v63  ;;  %v5742_v27 = vrot.slane %v5741_v45, 4  ;;  %v10674_v12 = vsel %vm7613_vm10, %v3007_v58, %v12477_v20  ;;  %v3982_v7 = vpop.permute.xlu0 %3981 }
 0x235   : > { %5455 = vst.msk [vmem:[#allocation3 + $0x24] sm:$0xf] %vm12600_vm2, %v12599_v56  ;;  %v2428_v13 = vld [vmem:[#allocation2 + $0x5c] sm:$0xf]  ;;  %v3378_v53 = vrot.slane %v3376_v57, 5  ;;  %v3362_v60 = vrot.slane %v3360_v54, 4  ;;  %v3856_v45 = vor.u32 %v3854_v49, %v10654_v37 }
 0x236   : > { %5456 = vst.msk [vmem:[#allocation3 + $0x28] sm:$0xf] %vm12601_vm0, %v10308_v19  ;;  %v2234_v19 = vsel %vm7613_vm10, %v2226_v36, %v2233_v61  ;;  %2513 = vrot.lane.b32.xlu1 %v2428_v13, %s7441_s16  ;;  %v10681_v22 = vrot.slane %v5744_v8, 5  ;;  %v3849_v4 = vrot.slane %v10281_v6, 4  ;;  %v10685_v54 = vrot.slane %v1903_v5, 5  ;;  %v5887_v6 = vpop.permute.xlu1 %5886 }
 0x237   : > { %4777 = vst.msk [vmem:[#allocation3 + $0x2c] sm:$0xf] %vm4765_vm12, %v4692_v15  ;;  %vm12602_vm8 = vcmask 27648   ;;  %vm12603_vm15 = vcmask 126048   ;;  %v3379_v17 = vsel %vm7632_vm14, %v3374_v62, %v3378_v53  ;;  %v10691_v28 = vrot.slane %v3860_v3, 7 }
 0x238   : > { %2394 = vst.msk [vmem:[#allocation3 + $0x4c] sm:$0xf] %vm12602_vm8, %v2234_v19  ;;  %v10693_v18 = vrot.slane %v3869_v11, 7  ;;  %v3872_v24 = vshll.u32 %v3655_v38, 16  ;;  %v2624_v8 = vld [vmem:[#allocation2 + $0x68] sm:$0xf]  ;;  %3514 = vrot.lane.b32.xlu0 %v3379_v17, %s7442_s17  ;;  %v1906_v58 = vsel %vm7632_vm14, %v12415_v44, %v10685_v54  ;;  %v3363_v38 = vor.u32 %v3362_v60, %v10590_v43  ;;  %v10709_v36 = vpop.permute.xlu0 %4697 }
 0x239   : > { %4066 = vst.msk [vmem:[#allocation3 + $0x30] sm:$0xf] %vm12603_vm15, %v3982_v7  ;;  %v4549_v14 = vshrl.u32 %v10320_v34, 16  ;;  %vm12604_vm7 = vcmask 158848   ;;  %vm3104_vm2 = vcmp.ne.s16.totalorder %v10674_v12, 0  ;;  %v3382_v57 = vrot.slane %v3380_v42, 4 }
 0x23a   : > { %4259 = vst.msk [vmem:[#allocation3 + $0x30] sm:$0xf] %vm12604_vm7, %v10444_v23  ;;  %vm12605_vm0 = vcmask 290048   ;;  %v5747_v34 = vsel %vm7632_vm14, %v5742_v27, %v10681_v22  ;;  %v4301_v23 = vld [vmem:[#allocation2 + $0x68] sm:$0xf]  ;;  %v3857_v1 = vsel %vm7613_vm10, %v3849_v4, %v3856_v45  ;;  %v3867_v30 = vrot.slane %v10691_v28, 4  ;;  %v3497_v62 = vpop.permute.xlu1 %3496 }
 0x23b   : > { %5974 = vst.msk [vmem:[#allocation3 + $0x24] sm:$0xf] %vm12605_vm0, %v5887_v6  ;;  %5906 = vrot.lane.b32.xlu1 %v5747_v34, %s7448_s29  ;;  %v3874_v49 = vor.u32 %v3872_v24, %v10693_v18  ;;  %v10718_v5 = vsel %vm3104_vm2, %v2624_v8, 0  ;;  %vm10720_vm8 = vcmp.ne.s16.totalorder %v1906_v58, 0  ;;  %v3623_v43 = vld [vmem:[#allocation2 + $0x6c] sm:$0xf]  ;;  %v3383_v3 = vor.u32 %v3382_v57, %v3378_v53 }
 0x23c   : > { %3997 = vrot.lane.b32.xlu0 %v3857_v1, %s7445_s24  ;;  %v4551_v11 = vrot.slane %v4549_v14, 4  ;;  %v4334_v61 = vsel %vm3102_vm1, %v4301_v23, 0  ;;  %vm12608_vm15 = vcmask 93248   ;;  %v2430_v15 = vld [vmem:[#allocation2 + $0x64] sm:$0xf]  ;;  %v3364_v42 = vrot.slane %v3363_v38, 4  ;;  %v10728_v13 = vpop.permute.xlu0 %5377  ;;  %v7290_v23 = vpop.f32.mrf.mxu0 }
 0x23d   : > { %3580 = vst.msk [vmem:[#allocation3 + $0x34] sm:$0xf] %vm12608_vm15, %v3497_v62  ;;  %v4300_v27 = vld [vmem:[#allocation2 + $0x64] sm:$0xf]  ;;  %v3386_v60 = vshll.u32 %v10718_v5, 16  ;;  %v10734_v19 = vsel %vm10720_vm8, %v3623_v43, 0  ;;  %v3875_v53 = vsel %vm7613_vm10, %v3867_v30, %v3874_v49 }
 0x23e   : > { %v4302_v7 = vld [vmem:[#allocation2 + $0x6c] sm:$0xf]  ;;  %v4565_v4 = vshll.u32 %v4334_v61, 16  ;;  %v4569_v45 = vshrl.u32 %v4334_v61, 16  ;;  %v4819_v17 = vld [vmem:[#allocation2 + $0x68] sm:$0xf]  ;;  %v10738_v24 = vpop.permute.xlu1 %3987  ;;  %v4552_v58 = vor.u32 %v4551_v11, %v10366_v10  ;;  %v3369_v34 = vsel %vm7632_vm14, %v3364_v42, %v10578_v55 }
 0x23f   : > { %2517 = vrot.lane.b32.xlu1 %v2430_v15, %s7441_s16  ;;  %v3384_v14 = vrot.slane %v3383_v3, 4  ;;  %v3863_v6 = vshll.u32 %v10632_v29, 16  ;;  %v10744_v57 = vsel %vm10495_vm11, %v4300_v27, 0  ;;  %v3878_v38 = vshrl.u32 %v10734_v19, 16  ;;  %v4821_v10 = vld [vmem:[#allocation2 + $0x70] sm:$0xf] }
 0x240   : > { %4001 = vrot.lane.b32.xlu0 %v3875_v53, %s7445_s24  ;;  %v10751_v1 = vpop.permute.xlu0 %5892  ;;  %v10755_v29 = vrot.slane %v3386_v60, 5  ;;  %v10759_v30 = vsel %vm10553_vm3, %v4302_v7, 0  ;;  %v1076_v49 = vadd.s32 200, %v12475_v46  ;;  %v10765_v55 = vld [vmem:[%s12180_s2] ss:$0 sm:$0xff]  ;;  %v4555_v3 = vshll.u32 %v10744_v57, 16 }
 0x241   : > { %v809_v43 = vmul.f32 %v10765_v55, %v7290_v23  ;;  %v4106_v62 = vld [vmem:[#allocation2 + $0x60] sm:$0xf]  ;;  %v10769_v11 = vrot.slane %v4565_v4, 5  ;;  %v4571_v61 = vrot.slane %v4569_v45, 4  ;;  %v10773_v15 = vsel %vm10559_vm9, %v4819_v17, 0 }
 0x242   : > { %v7394_v8 = vld [vmem:[#allocation3 + $0x20] sm:$0xff]   ;;  %v10775_v42 = vpop.permute.xlu1 %5182  ;;  %v3389_v27 = vsel %vm7632_vm14, %v3384_v14, %v10755_v29  ;;  %v3858_v60 = vrot.slane %v10654_v37, 4  ;;  %v3865_v53 = vor.u32 %v3863_v6, %v10691_v28  ;;  %v4553_v7 = vrot.slane %v4552_v58, 4  ;;  %v4820_v4 = vld [vmem:[#allocation2 + $0x6c] sm:$0xf] }
 0x243   : > { %3512 = vrot.lane.b32.xlu1 %v3369_v34, %s7442_s17  ;;  %7305 = vmatprep.mubr.msk.bf16.mxu1 %vm12243_vm5, %v7394_v8  ;;  %v10783_v8 = vrot.slane %v3878_v38, 7  ;;  %v3881_v45 = vshll.u32 %v10734_v19, 16  ;;  %v4575_v17 = vshll.u32 %v10759_v30, 16  ;;  %v10789_v34 = vsel %vm10616_vm13, %v4821_v10, 0  ;;  %v10797_v6 = vld [vmem:[%s12181_s3] ss:$0 sm:$0xff] }
 0x244   : > { %4190 = vrot.lane.b32.xlu0 %v4106_v62, %s7443_s22  ;;  %v2508_v23 = vpop.permute.xlu0 %2507  ;;  %v4559_v14 = vshrl.u32 %v10744_v57, 16  ;;  %v5050_v37 = vshrl.u32 %v10773_v15, 16  ;;  %v1262_v28 = vand.u32 15, %v1076_v49  ;;  %v848_v19 = vadd.f32 %v10797_v6, %v809_v43  ;;  %v4108_v58 = vld [vmem:[#allocation2 + $0x68] sm:$0xf] }
 0x245   : > { %12609 = vst [vmem:[#allocation17_spill] sm:$0xff] %v10783_v8  ;;  %vm12610_vm7 = vcmask 60448   ;;  %v10801_v38 = vrot.slane %v4555_v3, 5  ;;  %v4572_v10 = vor.u32 %v4571_v61, %v10769_v11  ;;  %v10806_v57 = vsel %vm10612_vm4, %v4820_v4, 0 }
 0x246   : > { %2586 = vst.msk [vmem:[#allocation3 + $0x48] sm:$0xf] %vm12610_vm7, %v2508_v23  ;;  %v1078_v49 = vadd.s32 216, %v12475_v46  ;;  %v5179_v62 = vpop.permute.xlu1 %5178  ;;  %v3876_v43 = vrot.slane %v10693_v18, 4  ;;  %v4579_v23 = vshrl.u32 %v10759_v30, 16  ;;  %v5068_v3 = vshrl.u32 %v10789_v34, 16 }
 0x247   : > { %3516 = vrot.lane.b32.xlu1 %v3389_v27, %s7442_s17  ;;  %v3866_v27 = vsel %vm7613_vm10, %v3858_v60, %v3865_v53  ;;  %5264 = vst.msk [vmem:[#allocation3 + $0x2c] sm:$0xf] %vm12244_vm6, %v5179_v62  ;;  %v4558_v61 = vsel %vm7632_vm14, %v4553_v7, %v10801_v38  ;;  %v3883_v4 = vor.u32 %v3881_v45, %v10783_v8  ;;  %v10820_v39 = vrot.slane %v4575_v17, 5  ;;  %v759_v8 = vpop.f32.mrf.mxu0 }
 0x248   : > { %4194 = vrot.lane.b32.xlu0 %v4108_v58, %s7443_s22  ;;  %v5053_v58 = vshll.u32 %v10773_v15, 16  ;;  %vm12611_vm0 = vcmask 257248   ;;  %v5889_v18 = vpop.permute.xlu0 %5888  ;;  %v10826_v30 = vrot.slane %v5050_v37, 7  ;;  %v5059_v60 = vshrl.u32 %v10806_v57, 16  ;;  %v4303_v15 = vld [vmem:[#allocation2 + $0x70] sm:$0xf] }
 0x249   : > { %5457 = vst.msk [vmem:[#allocation3 + $0x2c] sm:$0xf] %vm12611_vm0, %v10453_v48  ;;  %vm10829_vm15 = vcmp.lt.s32.totalorder %v1262_v28, 15  ;;  %v880_v7 = vmax.f32 %v848_v19, 0.0  ;;  %vm12614_vm7 = vcmask 290048   ;;  %v4573_v45 = vrot.slane %v4572_v10, 4 }
 0x24a   : > { %5975 = vst.msk [vmem:[#allocation3 + $0x28] sm:$0xf] %vm12614_vm7, %v5889_v18  ;;  %v4561_v17 = vrot.slane %v4559_v14, 4  ;;  %v1276_v62 = vand.u32 15, %v1078_v49  ;;  %v1077_v48 = vadd.s32 208, %v12475_v46  ;;  %v3984_v9 = vpop.permute.xlu1 %3983  ;;  %v10836_v37 = vrot.slane %v5068_v3, 7  ;;  %vm2754_vm7 = vmpackc.low %vm10829_vm15, %vm10829_vm15 }
 0x24b   : > { %3999 = vrot.lane.b32.xlu1 %v3866_v27, %s7445_s24  ;;  %v5071_v28 = vshll.u32 %v10789_v34, 16  ;;  %v7210_v27 = vpack.c.bf16 %v880_v7, %v880_v7  ;;  %vm12615_vm0 = vcmask 126048   ;;  %v3884_v19 = vsel %vm7613_vm10, %v3876_v43, %v3883_v4  ;;  %v4107_v18 = vld [vmem:[#allocation2 + $0x64] sm:$0xf] }
 0x24c   : > { %4709 = vrot.lane.b32.xlu0 %v4558_v61, %s7446_s27  ;;  %4067 = vst.msk [vmem:[#allocation3 + $0x34] sm:$0xf] %vm12615_vm0, %v3984_v9  ;;  %v5048_v14 = vrot.slane %v10447_v31, 4  ;;  %v4581_v10 = vrot.slane %v4579_v23, 4  ;;  %vm12616_vm5 = vcmask 158848   ;;  %v3499_v49 = vpop.permute.xlu0 %3498  ;;  %v5055_v34 = vor.u32 %v5053_v58, %v10826_v30 }
 0x24d   : > { %4260 = vst.msk [vmem:[#allocation3 + $0x34] sm:$0xf] %vm12616_vm5, %v10500_v35  ;;  %v5061_v3 = vrot.slane %v5059_v60, 7  ;;  %v10852_v9 = vsel %vm3104_vm2, %v4303_v15, 0  ;;  %vm12617_vm0 = vcmask 27648   ;;  %v807_v31 = vmul.f32 %v10765_v55, %v759_v8 }
 0x24e   : > { %1049 = vst.msk [vmem:[#allocation2 + $0x8c] sm:$0xf] %vm12617_vm0, %v7210_v27  ;;  %vm12618_vm6 = vcmask 93248   ;;  %v4578_v35 = vsel %vm7632_vm14, %v4573_v45, %v10820_v39  ;;  %v4562_v43 = vor.u32 %v4561_v17, %v10801_v38  ;;  %vm10861_vm5 = vcmp.lt.s32.totalorder %v1276_v62, 15  ;;  %v10865_v4 = vpop.permute.xlu1 %5379  ;;  %v5499_v8 = vld [vmem:[#allocation2 + $0x6c] sm:$0xf] }
 0x24f   : > { %4003 = vrot.lane.b32.xlu1 %v3884_v19, %s7445_s24  ;;  %3581 = vst.msk [vmem:[#allocation3 + $0x38] sm:$0xf] %vm12618_vm6, %v3499_v49  ;;  %v1269_v61 = vand.u32 15, %v1077_v48  ;;  %v5066_v58 = vrot.slane %v5061_v3, 4  ;;  %v5073_v55 = vor.u32 %v5071_v28, %v10836_v37  ;;  %v10875_v38 = vsel %vm2754_vm7, 65537, %v12488_v52  ;;  %vm2756_vm6 = vmpackc.low %vm10861_vm5, %vm10861_vm5 }
 0x250   : > { %4713 = vrot.lane.b32.xlu0 %v4578_v35, %s7446_s27  ;;  %v4582_v60 = vor.u32 %v4581_v10, %v10820_v39  ;;  %v4585_v7 = vshll.u32 %v10852_v9, 16  ;;  %v5748_v45 = vshrl.u32 %v10542_v59, 16  ;;  %v4694_v17 = vpop.permute.xlu0 %4693  ;;  %v5056_v15 = vsel %vm7613_vm10, %v5048_v14, %v5055_v34  ;;  %v4822_v48 = vld [vmem:[#allocation2 + $0x74] sm:$0xf]  ;;  %v5500_v35 = vld [vmem:[#allocation2 + $0x70] sm:$0xf] }
 0x251   : > { %v846_v53 = vadd.f32 %v10797_v6, %v807_v31  ;;  %4778 = vst.msk [vmem:[#allocation3 + $0x30] sm:$0xf] %vm4765_vm12, %v4694_v17  ;;  %v4563_v62 = vrot.slane %v4562_v43, 4  ;;  %v5532_v39 = vsel %vm10495_vm11, %v5499_v8, 0  ;;  %v3018_v59 = vshrl.u32 %v10875_v38, 16 }
 0x252   : > { %vm10891_vm15 = vcmp.gt.s32.totalorder %v1269_v61, 0  ;;  %v3390_v27 = vshrl.u32 %v10718_v5, 16  ;;  %v1907_v19 = vshrl.u32 %v10637_v16, 16  ;;  %v2510_v14 = vpop.permute.xlu1 %2509  ;;  %v4109_v6 = vld [vmem:[#allocation2 + $0x6c] sm:$0xf]  ;;  %v5074_v10 = vsel %vm7613_vm10, %v5066_v58, %v5073_v55 }
 0x253   : > { %4192 = vrot.lane.b32.xlu1 %v4107_v18, %s7443_s22  ;;  %v5062_v2 = vshll.u32 %v10806_v57, 16  ;;  %vm12623_vm11 = vcmask 60448   ;;  %v4583_v49 = vrot.slane %v4582_v60, 4  ;;  %v10902_v34 = vrot.slane %v4585_v7, 5  ;;  %vm1622_vm7 = vmpackc.low %vm10891_vm15, %vm10891_vm15  ;;  %v5501_v18 = vld [vmem:[#allocation2 + $0x74] sm:$0xf] }
 0x254   : > { %5196 = vrot.lane.b32.xlu0 %v5056_v15, %s7447_s28  ;;  %2587 = vst.msk [vmem:[#allocation3 + $0x4c] sm:$0xf] %vm12623_vm11, %v2510_v14  ;;  %v5057_v31 = vrot.slane %v10826_v30, 4  ;;  %v10911_v16 = vsel %vm2756_vm6, 65537, %v12488_v52  ;;  %v3986_v43 = vpop.permute.xlu0 %3985  ;;  %v5750_v57 = vrot.slane %v5748_v45, 4  ;;  %v5754_v61 = vshll.u32 %v5532_v39, 16 }
 0x255   : > { %v10916_v58 = vsel %vm10720_vm8, %v4822_v48, 0  ;;  %v878_v55 = vmax.f32 %v846_v53, 0.0  ;;  %vm12624_vm0 = vcmask 126048   ;;  %v4568_v23 = vsel %vm7632_vm14, %v4563_v62, %v10769_v11  ;;  %v5305_v14 = vld [vmem:[#allocation2 + $0x68] sm:$0xf] }
 0x256   : > { %4068 = vst.msk [vmem:[#allocation3 + $0x38] sm:$0xf] %vm12624_vm0, %v3986_v43  ;;  %v5758_v8 = vshrl.u32 %v5532_v39, 16  ;;  %v3020_v60 = vrot.slane %v3018_v59, 7  ;;  %v3021_v7 = vshll.u32 %v10875_v38, 16  ;;  %vm12625_vm5 = vcmask 158848   ;;  %v5891_v45 = vpop.permute.xlu1 %5890 }
 0x257   : > { %4196 = vrot.lane.b32.xlu1 %v4109_v6, %s7443_s22  ;;  %4261 = vst.msk [vmem:[#allocation3 + $0x38] sm:$0xf] %vm12625_vm5, %v10124_v21  ;;  %v5064_v17 = vor.u32 %v5062_v2, %v5061_v3  ;;  %v5533_v15 = vsel %vm3102_vm1, %v5500_v35, 0  ;;  %v3036_v53 = vshrl.u32 %v10911_v16, 16  ;;  %v7208_v48 = vpack.c.bf16 %v878_v55, %v878_v55 }
 0x258   : > { %5200 = vrot.lane.b32.xlu0 %v5074_v10, %s7447_s28  ;;  %4780 = vst.msk [vmem:[#allocation3 + $0x38] sm:$0xf] %vm4765_vm12, %v10709_v36  ;;  %vm12626_vm6 = vcmask 290048   ;;  %v4588_v11 = vsel %vm7632_vm14, %v4583_v49, %v10902_v34  ;;  %v5077_v21 = vshrl.u32 %v10916_v58, 16  ;;  %v5768_v38 = vshrl.u32 %v5533_v15, 16  ;;  %v5181_v3 = vpop.permute.xlu0 %5180 }
 0x259   : > { %5976 = vst.msk [vmem:[#allocation3 + $0x2c] sm:$0xf] %vm12626_vm6, %v5891_v45  ;;  %v1654_v26 = vsel %vm1622_vm7, 65537, %v12488_v52  ;;  %v5751_v36 = vor.u32 %v5750_v57, %v10681_v22  ;;  %v10947_v62 = vrot.slane %v5754_v61, 5  ;;  %v10951_v39 = vsel %vm10553_vm3, %v5501_v18, 0  ;;  %vm12630_vm3 = vmmov %vm12626_vm6 }
 0x25a   : > { %v1909_v59 = vrot.slane %v1907_v19, 4  ;;  %vm12627_vm1 = vcmask 27648   ;;  %vm12628_vm11 = vcmask 224448   ;;  %v5764_v28 = vshll.u32 %v5533_v15, 16  ;;  %v3501_v22 = vpop.permute.xlu1 %3500 }
 0x25b   : > { %4711 = vrot.lane.b32.xlu1 %v4568_v23, %s7446_s27  ;;  %1047 = vst.msk [vmem:[#allocation2 + $0x84] sm:$0xf] %vm12627_vm1, %v7208_v48  ;;  %v5760_v6 = vrot.slane %v5758_v8, 4  ;;  %v3023_v10 = vor.u32 %v3021_v7, %v3020_v60  ;;  %v3039_v2 = vshll.u32 %v10911_v16, 16  ;;  %vm12629_vm15 = vcmask 257248   ;;  %vm12632_vm6 = vmmov %vm12628_vm11 }
 0x25c   : > { %5265 = vst.msk [vmem:[#allocation3 + $0x30] sm:$0xf] %vm12628_vm11, %v5181_v3  ;;  %5389 = vrot.lane.b32.xlu0 %v5305_v14, %s7444_s23  ;;  %v3025_v25 = vrot.slane %v3020_v60, 4  ;;  %v10959_v49 = vrot.slane %v3036_v53, 7  ;;  %v1923_v19 = vshll.u32 %v1654_v26, 16  ;;  %v1927_v35 = vshrl.u32 %v1654_v26, 16  ;;  %v5185_v61 = vpop.permute.xlu0 %5184  ;;  %vm12633_vm1 = vmmov %vm12629_vm15 }
 0x25d   : > { %5458 = vst.msk [vmem:[#allocation3 + $0x30] sm:$0xf] %vm12629_vm15, %v10163_v41  ;;  %vm12631_vm7 = vcmask 93248   ;;  %v5075_v43 = vrot.slane %v10836_v37, 4  ;;  %v10965_v57 = vrot.slane %v5077_v21, 7  ;;  %v5080_v16 = vshll.u32 %v10916_v58, 16  ;;  %vm12634_vm11 = vmmov %vm12632_vm6 }
 0x25e   : > { %5977 = vst.msk [vmem:[#allocation3 + $0x30] sm:$0xf] %vm12630_vm3, %v10751_v1  ;;  %v5770_v41 = vrot.slane %v5768_v38, 4  ;;  %v5752_v55 = vrot.slane %v5751_v36, 4  ;;  %v5774_v23 = vshll.u32 %v10951_v39, 16  ;;  %v5778_v1 = vshrl.u32 %v10951_v39, 16 }
 0x25f   : > { %3582 = vst.msk [vmem:[#allocation3 + $0x3c] sm:$0xf] %vm12631_vm7, %v3501_v22  ;;  %4715 = vrot.lane.b32.xlu1 %v4588_v11, %s7446_s27  ;;  %v1910_v8 = vor.u32 %v1909_v59, %v10685_v54  ;;  %v5307_v37 = vld [vmem:[#allocation2 + $0x70] sm:$0xf]  ;;  %v10977_v58 = vrot.slane %v5764_v28, 5  ;;  %v3024_v18 = vsel %vm7613_vm10, %v7610_v47, %v3023_v10  ;;  %v3392_v60 = vrot.slane %v3390_v27, 4  ;;  %v4696_v54 = vpop.permute.xlu1 %4695  ;;  %vm12638_vm7 = vmmov %vm12633_vm1 }
 0x260   : > { %4069 = vst.msk [vmem:[#allocation3 + $0x3c] sm:$0xf] %vm12624_vm0, %v10738_v24  ;;  %v5761_v24 = vor.u32 %v5760_v6, %v10947_v62  ;;  %v5502_v7 = vld [vmem:[#allocation2 + $0x78] sm:$0xf]  ;;  %5393 = vrot.lane.b32.xlu0 %v5307_v37, %s7444_s23  ;;  %v10991_v45 = vsel %vm7613_vm10, %v3025_v25, %v12477_v20  ;;  %v3041_v15 = vor.u32 %v3039_v2, %v10959_v49  ;;  %v10994_v53 = vrot.slane %v1923_v19, 5  ;;  %v5897_v21 = vpop.permute.xlu0 %5896 }
 0x261   : > { %4262 = vst.msk [vmem:[#allocation3 + $0x3c] sm:$0xf] %vm12625_vm5, %v10297_v32  ;;  %v7395_v32 = vld [vmem:[#allocation3 + $0x28] sm:$0xff]   ;;  %v1929_v48 = vrot.slane %v1927_v35, 4  ;;  %v5065_v5 = vsel %vm7613_vm10, %v5057_v31, %v5064_v17  ;;  %v5771_v27 = vor.u32 %v5770_v41, %v10977_v58  ;;  %v1079_v11 = vadd.s32 224, %v12475_v46 }
 0x262   : > { %5267 = vst.msk [vmem:[#allocation3 + $0x38] sm:$0xf] %vm12632_vm6, %v5185_v61  ;;  %vm12635_vm15 = vcmask 293888   ;;  %v5757_v30 = vsel %vm7632_vm14, %v5752_v55, %v10947_v62  ;;  %v2625_v38 = vld [vmem:[#allocation2 + $0x6c] sm:$0xf]  ;;  %vm11011_vm3 = vcmp.ne.s16.totalorder %v3024_v18, 0  ;;  %v3393_v59 = vor.u32 %v3392_v60, %v10755_v29 }
 0x263   : > { %5460 = vst.msk [vmem:[#allocation3 + $0x38] sm:$0xf] %vm12633_vm1, %v10728_v13  ;;  %v5082_v13 = vor.u32 %v5080_v16, %v10965_v57  ;;  %5198 = vrot.lane.b32.xlu1 %v5065_v5, %s7447_s28  ;;  %7306 = vmatmul.mubr.msk.bf16.gmra.mxu1 %vm12635_vm15, %v7395_v32  ;;  %v1911_v17 = vrot.slane %v1910_v8, 4  ;;  %vm12639_vm0 = vcmask 290048   ;;  %v2626_v26 = vld [vmem:[#allocation2 + $0x70] sm:$0xf]  ;;  %v4700_v62 = vpop.permute.xlu1 %4699  ;;  %v1930_v14 = vor.u32 %v1929_v48, %v10994_v53 }
 0x264   : > { %4779 = vst.msk [vmem:[#allocation3 + $0x34] sm:$0xf] %vm4765_vm12, %v4696_v54  ;;  %vm3106_vm5 = vcmp.ne.s16.totalorder %v10991_v45, 0  ;;  %v11021_v3 = vsel %vm3104_vm2, %v5502_v7, 0  ;;  %v5780_v36 = vrot.slane %v5778_v1, 4  ;;  %5908 = vrot.lane.b32.xlu0 %v5757_v30, %s7448_s29  ;;  %v11024_v39 = vrot.slane %v5761_v24, 4  ;;  %v3503_v22 = vpop.permute.xlu0 %3502  ;;  %vm12643_vm1 = vmmov %vm12639_vm0 }
 0x265   : > { %5266 = vst.msk [vmem:[#allocation3 + $0x34] sm:$0xf] %vm12634_vm11, %v10775_v42  ;;  %v5776_v42 = vrot.slane %v5774_v23, 5  ;;  %v5083_v12 = vsel %vm7613_vm10, %v5075_v43, %v5082_v13  ;;  %v2431_v28 = vld [vmem:[#allocation2 + $0x68] sm:$0xf]  ;;  %v5772_v6 = vrot.slane %v5771_v27, 4  ;;  %v1916_v25 = vsel %vm7632_vm14, %v1911_v17, %v12443_v33 }
 0x266   : > { %5459 = vst.msk [vmem:[#allocation3 + $0x34] sm:$0xf] %vm12638_vm7, %v10323_v40  ;;  %v3042_v40 = vsel %vm7613_vm10, %v7610_v47, %v3041_v15  ;;  %v11036_v10 = vsel %vm11011_vm3, %v2625_v38, 0  ;;  %v1283_v2 = vand.u32 15, %v1079_v11  ;;  %v3139_v29 = vsel %vm3106_vm5, %v2626_v26, 0 }
 0x267   : > { %5979 = vst.msk [vmem:[#allocation3 + $0x38] sm:$0xf] %vm12639_vm0, %v5897_v21  ;;  %5202 = vrot.lane.b32.xlu1 %v5083_v12, %s7447_s28  ;;  %v3624_v19 = vld [vmem:[#allocation2 + $0x70] sm:$0xf]  ;;  %v1488_v35 = vld [vmem:[#allocation2 + $0x58] sm:$0xf]  ;;  %v5781_v61 = vor.u32 %v5780_v36, %v5776_v42  ;;  %v5895_v23 = vpop.permute.xlu1 %5894  ;;  %v5767_v1 = vsel %vm7632_vm14, %v11024_v39, %v10977_v58  ;;  %v5777_v60 = vsel %vm7632_vm14, %v5772_v6, %v5776_v42 }
 0x268   : > { %4781 = vst.msk [vmem:[#allocation3 + $0x3c] sm:$0xf] %vm4765_vm12, %v4700_v62  ;;  %vm12640_vm2 = vcmask 93248   ;;  %v2627_v43 = vld [vmem:[#allocation2 + $0x74] sm:$0xf]  ;;  %vm11045_vm6 = vcmp.ne.s16.totalorder %v3042_v40, 0  ;;  %2519 = vrot.lane.b32.xlu0 %v2431_v28, %s7441_s16  ;;  %v3507_v15 = vpop.permute.xlu0 %3506  ;;  %v1926_v13 = vsel %vm7632_vm14, %v12415_v44, %v10994_v53 }
 0x269   : > { %3583 = vst.msk [vmem:[#allocation3 + $0x40] sm:$0xf] %vm12640_vm2, %v3503_v22  ;;  %v3410_v41 = vshrl.u32 %v3139_v29, 16  ;;  %v5784_v55 = vshll.u32 %v11021_v3, 16  ;;  %v11055_v8 = vrot.slane %v3393_v59, 4  ;;  %v3396_v37 = vshll.u32 %v11036_v10, 16  ;;  %vm12648_vm7 = vmmov %vm12640_vm2 }
 0x26a   : > { %v1931_v24 = vrot.slane %v1930_v14, 4  ;;  %5978 = vst.msk [vmem:[#allocation3 + $0x34] sm:$0xf] %vm12643_vm1, %v5895_v23  ;;  %v5306_v18 = vld [vmem:[#allocation2 + $0x6c] sm:$0xf]  ;;  %v3406_v7 = vshll.u32 %v3139_v29, 16  ;;  %vm12649_vm0 = vmmov %vm12640_vm2 }
 0x26b   : > { %vm11061_vm11 = vcmp.ne.s16.totalorder %v1916_v25, 0  ;;  %vm11065_vm15 = vcmp.gt.s32.totalorder %v1283_v2, 0  ;;  %5391 = vrot.lane.b32.xlu1 %v5306_v18, %s7444_s23  ;;  %v11072_v48 = vsel %vm11045_vm6, %v2627_v43, 0  ;;  %v2036_v27 = vsel %vm10559_vm9, %v1488_v35, 0  ;;  %3585 = vst.msk [vmem:[#allocation3 + $0x48] sm:$0xf] %vm12648_vm7, %v3507_v15  ;;  %v3505_v26 = vpop.permute.xlu1 %3504 }
 0x26c   : > { %v11076_v5 = vsel %vm11061_vm11, %v3624_v19, 0  ;;  %v3400_v11 = vshrl.u32 %v11036_v10, 16  ;;  %v3412_v21 = vrot.slane %v3410_v41, 4  ;;  %v11086_v30 = vrot.slane %v5781_v61, 4  ;;  %v3625_v38 = vld [vmem:[#allocation2 + $0x74] sm:$0xf]  ;;  %5912 = vrot.lane.b32.xlu0 %v5777_v60, %s7448_s29  ;;  %vm1624_vm9 = vmpackc.low %vm11065_vm15, %vm11065_vm15  ;;  %v3990_v6 = vpop.permute.xlu0 %3989 }
 0x26d   : > { %v3043_v17 = vrot.slane %v10959_v49, 4  ;;  %v1489_v42 = vld [vmem:[#allocation2 + $0x5c] sm:$0xf]  ;;  %v11090_v36 = vrot.slane %v3396_v37, 5  ;;  %v1936_v51 = vsel %vm7632_vm14, %v1931_v24, %v12443_v33  ;;  %v3626_v53 = vld [vmem:[#allocation2 + $0x78] sm:$0xf] }
 0x26e   : > { %v2237_v62 = vshrl.u32 %v2036_v27, 16  ;;  %v2240_v59 = vshll.u32 %v2036_v27, 16  ;;  %3584 = vst.msk [vmem:[#allocation3 + $0x44] sm:$0xf] %vm12649_vm0, %v3505_v26  ;;  %v5308_v49 = vld [vmem:[#allocation2 + $0x74] sm:$0xf] }
 0x26f   : > { %v11099_v40 = vrot.slane %v3406_v7, 5  ;;  %v3416_v14 = vshll.u32 %v11072_v48, 16  ;;  %v3887_v12 = vshrl.u32 %v11076_v5, 16  ;;  %vm11103_vm2 = vcmp.ne.s16.totalorder %v1926_v13, 0  ;;  %5395 = vrot.lane.b32.xlu1 %v5308_v49, %s7444_s23  ;;  %v1490_v25 = vld [vmem:[#allocation2 + $0x60] sm:$0xf]  ;;  %v5187_v61 = vpop.permute.xlu1 %5186 }
 0x270   : > { %v3420_v10 = vshrl.u32 %v11072_v48, 16  ;;  %v11111_v2 = vsel %vm11103_vm2, %v3625_v38, 0  ;;  %v2235_v22 = vrot.slane %v10645_v63, 4  ;;  %v11114_v29 = vrot.slane %v2237_v62, 7  ;;  %v2433_v19 = vld [vmem:[#allocation2 + $0x70] sm:$0xf]  ;;  %v3994_v27 = vpop.permute.xlu0 %3993 }
 0x271   : > { %vm12652_vm1 = vcmask 126048   ;;  %v3413_v35 = vor.u32 %v3412_v21, %v11099_v40  ;;  %v3890_v43 = vshll.u32 %v11076_v5, 16  ;;  %vm11119_vm7 = vcmp.ne.s16.totalorder %v1936_v51, 0  ;;  %2523 = vrot.lane.b32.xlu0 %v2433_v19, %s7441_s16  ;;  %v7396_v23 = vld [vmem:[#allocation3 + $0x30] sm:$0xff]   ;;  %v12662_v26 = vld [vmem:[#allocation17_spill] sm:$0xff] }
 0x272   : > { %4070 = vst.msk [vmem:[#allocation3 + $0x40] sm:$0xf] %vm12652_vm1, %v3990_v6  ;;  %v11129_v63 = vsel %vm1624_vm9, 65537, %v12488_v52  ;;  %v11134_v37 = vsel %vm11119_vm7, %v3626_v53, 0  ;;  %v3402_v24 = vrot.slane %v3400_v11, 4  ;;  %v2242_v18 = vor.u32 %v2240_v59, %v11114_v29 }
 0x273   : > { %v11139_v7 = vsel %vm10612_vm4, %v1489_v42, 0  ;;  %vm12656_vm0 = vcmask 224448   ;;  %v11142_v32 = vrot.slane %v3887_v12, 7  ;;  %v3896_v15 = vshrl.u32 %v11111_v2, 16  ;;  %5910 = vrot.lane.b32.xlu1 %v5767_v1, %s7448_s29  ;;  %v5899_v1 = vpop.permute.xlu1 %5898  ;;  %v2432_v49 = vld [vmem:[#allocation2 + $0x6c] sm:$0xf] }
 0x274   : > { %5268 = vst.msk [vmem:[#allocation3 + $0x3c] sm:$0xf] %vm12656_vm0, %v5187_v61  ;;  %v11148_v48 = vsel %vm7613_vm10, %v3043_v17, %v12477_v20  ;;  %v2038_v13 = vsel %vm10616_vm13, %v1490_v25, 0  ;;  %vm12658_vm15 = vcmask 257248   ;;  %vm12659_vm4 = vcmask 293888   ;;  %vm12660_vm13 = vmmov %vm12652_vm1 }
 0x275   : > { %5461 = vst.msk [vmem:[#allocation3 + $0x3c] sm:$0xf] %vm12658_vm15, %v10865_v4  ;;  %7309 = vmatprep.mubr.msk.bf16.mxu1 %vm12659_vm4, %v7396_v23  ;;  %v1943_v11 = vshll.u32 %v11129_v63, 16  ;;  %v2243_v21 = vsel %vm7613_vm10, %v2235_v22, %v2242_v18  ;;  %v2246_v38 = vshrl.u32 %v11139_v7, 16  ;;  %v2255_v17 = vshrl.u32 %v2038_v13, 16  ;;  %v4183_v22 = vpop.permute.xlu0 %4182 }
 0x276   : > { %4072 = vst.msk [vmem:[#allocation3 + $0x48] sm:$0xf] %vm12660_vm13, %v3994_v27  ;;  %v3399_v4 = vsel %vm7632_vm14, %v11055_v8, %v11090_v36  ;;  %v3414_v42 = vrot.slane %v3413_v35, 4  ;;  %v3905_v58 = vshrl.u32 %v11134_v37, 16  ;;  %vm12661_vm9 = vcmask 27648  }
 0x277   : > { %2395 = vst.msk [vmem:[#allocation3 + $0x50] sm:$0xf] %vm12661_vm9, %v2243_v21  ;;  %v2258_v39 = vshll.u32 %v2038_v13, 16  ;;  %3518 = vrot.lane.b32.xlu0 %v3399_v4, %s7442_s17  ;;  %v3885_v51 = vrot.slane %v12662_v26, 4  ;;  %v3403_v53 = vor.u32 %v3402_v24, %v11090_v36  ;;  %v2248_v62 = vrot.slane %v2246_v38, 7  ;;  %2521 = vrot.lane.b32.xlu1 %v2432_v49, %s7441_s16  ;;  %v3509_v60 = vpop.permute.xlu1 %3508  ;;  %vm12666_vm13 = vmmov %vm12661_vm9 }
 0x278   : > { %v11175_v59 = vrot.slane %v2255_v17, 7  ;;  %vm12663_vm1 = vcmask 290048   ;;  %v11178_v8 = vrot.slane %v3416_v14, 5  ;;  %v3892_v12 = vor.u32 %v3890_v43, %v11142_v32  ;;  %v2628_v36 = vld [vmem:[#allocation2 + $0x78] sm:$0xf] }
 0x279   : > { %5980 = vst.msk [vmem:[#allocation3 + $0x3c] sm:$0xf] %vm12663_vm1, %v5899_v1  ;;  %vm3108_vm0 = vcmp.ne.s16.totalorder %v11148_v48, 0  ;;  %v11182_v6 = vrot.slane %v3420_v10, 4  ;;  %v11185_v25 = vrot.slane %v3896_v15, 7  ;;  %v11187_v19 = vrot.slane %v1943_v11, 5  ;;  %v4187_v21 = vpop.permute.xlu0 %4186 }
 0x27a   : > { %v2253_v35 = vrot.slane %v2248_v62, 4  ;;  %v2260_v61 = vor.u32 %v2258_v39, %v11175_v59  ;;  %vm12664_vm15 = vcmask 158848   ;;  %v3419_v14 = vsel %vm7632_vm14, %v3414_v42, %v11178_v8  ;;  %v1491_v24 = vld [vmem:[#allocation2 + $0x64] sm:$0xf]  ;;  %v4305_v13 = vld [vmem:[#allocation2 + $0x78] sm:$0xf] }
 0x27b   : > { %4263 = vst.msk [vmem:[#allocation3 + $0x40] sm:$0xf] %vm12664_vm15, %v4183_v22  ;;  %v11196_v10 = vrot.slane %v5784_v55, 5  ;;  %v11198_v43 = vrot.slane %v3905_v58, 7  ;;  %v3908_v23 = vshll.u32 %v11134_v37, 16  ;;  %v4589_v18 = vshrl.u32 %v10852_v9, 16  ;;  %3522 = vrot.lane.b32.xlu0 %v3419_v14, %s7442_s17  ;;  %vm12667_vm9 = vmmov %vm12664_vm15 }
 0x27c   : > { %v11203_v15 = vrot.slane %v3403_v53, 4  ;;  %v1946_v5 = vsel %vm7632_vm14, %v12415_v44, %v11187_v19  ;;  %v2261_v55 = vsel %vm7613_vm10, %v2253_v35, %v2260_v61  ;;  %vm12665_vm4 = vcmask 93248   ;;  %v4304_v4 = vld [vmem:[#allocation2 + $0x74] sm:$0xf]  ;;  %4265 = vst.msk [vmem:[#allocation3 + $0x48] sm:$0xf] %vm12667_vm9, %v4187_v21 }
 0x27d   : > { %3586 = vst.msk [vmem:[#allocation3 + $0x4c] sm:$0xf] %vm12665_vm4, %v3509_v60  ;;  %v5787_v9 = vsel %vm7632_vm14, %v11086_v30, %v11196_v10  ;;  %v11218_v37 = vsel %vm3108_vm0, %v2628_v36, 0  ;;  %v2244_v27 = vrot.slane %v11114_v29, 4  ;;  %v2249_v11 = vshll.u32 %v11139_v7, 16  ;;  %v4702_v35 = vpop.permute.xlu0 %4701  ;;  %vm12672_vm4 = vmmov %vm12666_vm13 }
 0x27e   : > { %2397 = vst.msk [vmem:[#allocation3 + $0x58] sm:$0xf] %vm12666_vm13, %v2261_v55  ;;  %5914 = vrot.lane.b32.xlu1 %v5787_v9, %s7448_s29  ;;  %v3893_v38 = vsel %vm7613_vm10, %v3885_v51, %v3892_v12  ;;  %v3903_v17 = vrot.slane %v11185_v25, 4  ;;  %v3423_v30 = vor.u32 %v11182_v6, %v11178_v8  ;;  %v2039_v42 = vsel %vm10720_vm8, %v1491_v24, 0  ;;  %v3627_v58 = vld [vmem:[#allocation2 + $0x7c] sm:$0xf]  ;;  %v3992_v51 = vpop.permute.xlu1 %3991  ;;  %vm12674_vm9 = vmmov %vm12672_vm4 }
 0x27f   : > { %v3910_v29 = vor.u32 %v3908_v23, %v11198_v43  ;;  %vm11233_vm1 = vcmp.ne.s16.totalorder %v1946_v5, 0  ;;  %v4338_v39 = vsel %vm3106_vm5, %v4305_v13, 0  ;;  %v4823_v1 = vld [vmem:[#allocation2 + $0x78] sm:$0xf]  ;;  %v2251_v26 = vor.u32 %v2249_v11, %v2248_v62  ;;  %4005 = vrot.lane.b32.xlu0 %v3893_v38, %s7445_s24  ;;  %v2434_v12 = vld [vmem:[#allocation2 + $0x74] sm:$0xf] }
 0x280   : > { %v7397_v53 = vld [vmem:[#allocation3 + $0x38] sm:$0xff]   ;;  %v3409_v56 = vsel %vm7632_vm14, %v11203_v15, %v11099_v40  ;;  %v3426_v49 = vshll.u32 %v11218_v37, 16  ;;  %v4591_v8 = vrot.slane %v4589_v18, 4  ;;  %vm12670_vm8 = vcmask 126048   ;;  %4782 = vst.msk [vmem:[#allocation3 + $0x40] sm:$0xf] %vm4765_vm12, %v4702_v35 }
 0x281   : > { %4071 = vst.msk [vmem:[#allocation3 + $0x44] sm:$0xf] %vm12670_vm8, %v3992_v51  ;;  %v3899_v6 = vshll.u32 %v11111_v2, 16  ;;  %v11249_v62 = vsel %vm11011_vm3, %v4304_v4, 0  ;;  %v2252_v22 = vsel %vm7613_vm10, %v2244_v27, %v2251_v26  ;;  %v2264_v36 = vshrl.u32 %v2039_v42, 16  ;;  %vm12673_vm13 = vmmov %vm12670_vm8 }
 0x282   : > { %2525 = vrot.lane.b32.xlu1 %v2434_v12, %s7441_s16  ;;  %vm12671_vm15 = vcmask 293888   ;;  %v11257_v40 = vsel %vm11233_vm1, %v3627_v58, 0  ;;  %v4605_v61 = vshll.u32 %v4338_v39, 16  ;;  %v4609_v14 = vshrl.u32 %v4338_v39, 16  ;;  %v4825_v2 = vld [vmem:[#allocation2 + $0x80] sm:$0xf]  ;;  %v3996_v13 = vpop.permute.xlu1 %3995 }
 0x283   : > { %7310 = vmatmul.mubr.msk.bf16.gmra.mxu1 %vm12671_vm15, %v7397_v53  ;;  %2396 = vst.msk [vmem:[#allocation3 + $0x54] sm:$0xf] %vm12672_vm4, %v2252_v22  ;;  %v2267_v23 = vshll.u32 %v2039_v42, 16  ;;  %v3911_v24 = vsel %vm7613_vm10, %v3903_v17, %v3910_v29  ;;  %v3424_v18 = vrot.slane %v3423_v30, 4  ;;  %v4306_v60 = vld [vmem:[#allocation2 + $0x7c] sm:$0xf]  ;;  %v4592_v9 = vor.u32 %v4591_v8, %v10902_v34  ;;  %v4706_v34 = vpop.permute.xlu0 %4705 }
 0x284   : > { %v2262_v15 = vrot.slane %v11175_v59, 4  ;;  %v11264_v5 = vrot.slane %v2264_v36, 7  ;;  %4009 = vrot.lane.b32.xlu0 %v3911_v24, %s7445_s24  ;;  %v11267_v55 = vrot.slane %v3426_v49, 5  ;;  %v4595_v27 = vshll.u32 %v11249_v62, 16  ;;  %v4824_v21 = vld [vmem:[#allocation2 + $0x7c] sm:$0xf] }
 0x285   : > { %v11273_v11 = vsel %vm11061_vm11, %v4823_v1, 0  ;;  %4073 = vst.msk [vmem:[#allocation3 + $0x4c] sm:$0xf] %vm12673_vm13, %v3996_v13  ;;  %v3914_v59 = vshrl.u32 %v11257_v40, 16  ;;  %v11279_v38 = vsel %vm11119_vm7, %v4825_v2, 0  ;;  %v1080_v30 = vadd.s32 232, %v12475_v46 }
 0x286   : > { %v2269_v17 = vor.u32 %v2267_v23, %v11264_v5  ;;  %3520 = vrot.lane.b32.xlu1 %v3409_v56, %s7442_s17  ;;  %v11286_v4 = vsel %vm11045_vm6, %v4306_v60, 0  ;;  %v11288_v42 = vrot.slane %v4605_v61, 5  ;;  %v4611_v29 = vrot.slane %v4609_v14, 4  ;;  %4784 = vst.msk [vmem:[#allocation3 + $0x48] sm:$0xf] %vm4765_vm12, %v4706_v34  ;;  %v4185_v56 = vpop.permute.xlu1 %4184 }
 0x287   : > { %v1082_v58 = vadd.s32 248, %v12475_v46  ;;  %v4110_v39 = vld [vmem:[#allocation2 + $0x70] sm:$0xf]  ;;  %v4599_v1 = vshrl.u32 %v11249_v62, 16  ;;  %v5086_v26 = vshrl.u32 %v11273_v11, 16  ;;  %v11296_v51 = vsel %vm11103_vm2, %v4824_v21, 0  ;;  %v5189_v14 = vpop.permute.xlu0 %5188 }
 0x288   : > { %v2270_v53 = vsel %vm7613_vm10, %v2262_v15, %v2269_v17  ;;  %4198 = vrot.lane.b32.xlu0 %v4110_v39, %s7443_s22  ;;  %v3429_v49 = vsel %vm7632_vm14, %v3424_v18, %v11267_v55  ;;  %v3894_v8 = vrot.slane %v11142_v32, 4  ;;  %v3901_v12 = vor.u32 %v3899_v6, %v11185_v25  ;;  %v4112_v23 = vld [vmem:[#allocation2 + $0x78] sm:$0xf] }
 0x289   : > { %v5104_v62 = vshrl.u32 %v11279_v38, 16  ;;  %2398 = vst.msk [vmem:[#allocation3 + $0x5c] sm:$0xf] %vm12674_vm9, %v2270_v53  ;;  %vm12675_vm8 = vcmask 158848   ;;  %v11309_v22 = vrot.slane %v3914_v59, 7  ;;  %v3917_v36 = vshll.u32 %v11257_v40, 16 }
 0x28a   : > { %4264 = vst.msk [vmem:[#allocation3 + $0x44] sm:$0xf] %vm12675_vm8, %v4185_v56  ;;  %v4615_v35 = vshll.u32 %v11286_v4, 16  ;;  %v1290_v61 = vand.u32 15, %v1080_v30  ;;  %3524 = vrot.lane.b32.xlu1 %v3429_v49, %s7442_s17  ;;  %v4593_v2 = vrot.slane %v4592_v9, 4  ;;  %v4612_v32 = vor.u32 %v4611_v29, %v11288_v42  ;;  %v4189_v15 = vpop.permute.xlu1 %4188  ;;  %vm12677_vm4 = vmmov %vm12675_vm8 }
 0x28b   : > { %v5095_v25 = vshrl.u32 %v11296_v51, 16  ;;  %v1304_v6 = vand.u32 15, %v1082_v58  ;;  %vm12676_vm15 = vcmask 224448   ;;  %v4597_v24 = vrot.slane %v4595_v27, 5  ;;  %4266 = vst.msk [vmem:[#allocation3 + $0x4c] sm:$0xf] %vm12677_vm4, %v4189_v15  ;;  %v5193_v29 = vpop.permute.xlu0 %5192 }
 0x28c   : > { %5269 = vst.msk [vmem:[#allocation3 + $0x40] sm:$0xf] %vm12676_vm15, %v5189_v14  ;;  %v11317_v18 = vrot.slane %v5086_v26, 7  ;;  %v5089_v40 = vshll.u32 %v11273_v11, 16  ;;  %v4601_v60 = vrot.slane %v4599_v1, 4  ;;  %4202 = vrot.lane.b32.xlu0 %v4112_v23, %s7443_s22  ;;  %v3902_v13 = vsel %vm7613_vm10, %v3894_v8, %v3901_v12  ;;  %vm12682_vm8 = vmmov %vm12676_vm15 }
 0x28d   : > { %v4619_v9 = vshrl.u32 %v11286_v4, 16  ;;  %v11324_v21 = vrot.slane %v5104_v62, 7  ;;  %v5107_v59 = vshll.u32 %v11279_v38, 16  ;;  %v3912_v27 = vrot.slane %v11198_v43, 4  ;;  %v4307_v30 = vld [vmem:[#allocation2 + $0x80] sm:$0xf] }
 0x28e   : > { %v3919_v17 = vor.u32 %v3917_v36, %v11309_v22  ;;  %v11330_v11 = vrot.slane %v4615_v35, 5  ;;  %vm11332_vm13 = vcmp.lt.s32.totalorder %v1290_v61, 15  ;;  %4007 = vrot.lane.b32.xlu1 %v3902_v13, %s7445_s24  ;;  %v4613_v4 = vrot.slane %v4612_v32, 4  ;;  %5271 = vst.msk [vmem:[#allocation3 + $0x48] sm:$0xf] %vm12682_vm8, %v5193_v29  ;;  %v4704_v49 = vpop.permute.xlu1 %4703 }
 0x28f   : > { %v11337_v58 = vrot.slane %v5095_v25, 7  ;;  %vm11339_vm9 = vcmp.lt.s32.totalorder %v1304_v6, 15  ;;  %v1081_v43 = vadd.s32 240, %v12475_v46  ;;  %v4598_v39 = vsel %vm7632_vm14, %v4593_v2, %v4597_v24  ;;  %v5503_v56 = vld [vmem:[#allocation2 + $0x7c] sm:$0xf]  ;;  %vm2758_vm15 = vmpackc.low %vm11332_vm13, %vm11332_vm13  ;;  %v5382_v14 = vpop.permute.xlu0 %5381 }
 0x290   : > { %v5084_v1 = vrot.slane %v10965_v57, 4  ;;  %v5091_v26 = vor.u32 %v5089_v40, %v11317_v18  ;;  %v4602_v53 = vor.u32 %v4601_v60, %v4597_v24  ;;  %4717 = vrot.lane.b32.xlu0 %v4598_v39, %s7446_s27  ;;  %v5109_v12 = vor.u32 %v5107_v59, %v11324_v21  ;;  %4783 = vst.msk [vmem:[#allocation3 + $0x44] sm:$0xf] %vm4765_vm12, %v4704_v49  ;;  %v5504_v61 = vld [vmem:[#allocation2 + $0x80] sm:$0xf]  ;;  %vm2760_vm4 = vmpackc.low %vm11339_vm9, %vm11339_vm9 }
 0x291   : > { %v5102_v8 = vrot.slane %v11337_v58, 4  ;;  %v11354_v46 = vsel %vm3108_vm0, %v4307_v30, 0  ;;  %v4621_v62 = vrot.slane %v4619_v9, 4  ;;  %v5788_v57 = vshrl.u32 %v11021_v3, 16  ;;  %v4826_v25 = vld [vmem:[#allocation2 + $0x84] sm:$0xf] }
 0x292   : > { %v3430_v36 = vshrl.u32 %v11218_v37, 16  ;;  %v3920_v35 = vsel %vm7613_vm10, %v3912_v27, %v3919_v17  ;;  %v1947_v2 = vshrl.u32 %v11129_v63, 16  ;;  %v4618_v3 = vsel %vm7632_vm14, %v4613_v4, %v11330_v11  ;;  %v5505_v40 = vld [vmem:[#allocation2 + $0x84] sm:$0xf]  ;;  %v4708_v60 = vpop.permute.xlu1 %4707  ;;  %v4111_v27 = vld [vmem:[#allocation2 + $0x74] sm:$0xf] }
 0x293   : > { %4011 = vrot.lane.b32.xlu1 %v3920_v35, %s7445_s24  ;;  %v5536_v32 = vsel %vm11011_vm3, %v5503_v56, 0  ;;  %v1297_v6 = vand.u32 15, %v1081_v43  ;;  %vm12683_vm8 = vcmask 257248   ;;  %v5092_v23 = vsel %vm7613_vm10, %v5084_v1, %v5091_v26  ;;  %4785 = vst.msk [vmem:[#allocation3 + $0x4c] sm:$0xf] %vm4765_vm12, %v4708_v60  ;;  %v5386_v45 = vpop.permute.xlu0 %5385 }
 0x294   : > { %5462 = vst.msk [vmem:[#allocation3 + $0x40] sm:$0xf] %vm12683_vm8, %v5382_v14  ;;  %v11377_v24 = vrot.slane %v4602_v53, 4  ;;  %v4625_v63 = vshll.u32 %v11354_v46, 16  ;;  %v11386_v31 = vsel %vm2758_vm15, 65537, %v12488_v52  ;;  %4721 = vrot.lane.b32.xlu0 %v4618_v3, %s7446_s27  ;;  %v5110_v15 = vsel %vm7613_vm10, %v5102_v8, %v5109_v12 }
 0x295   : > { %v4622_v13 = vor.u32 %v4621_v62, %v11330_v11  ;;  %v5537_v9 = vsel %vm3106_vm5, %v5504_v61, 0  ;;  %v11400_v59 = vsel %vm2760_vm4, 65537, %v12488_v52  ;;  %v5794_v17 = vshll.u32 %v5536_v32, 16  ;;  %vm12686_vm5 = vmmov %vm12683_vm8  ;;  %v4113_v62 = vld [vmem:[#allocation2 + $0x7c] sm:$0xf] }
 0x296   : > { %v5798_v30 = vshrl.u32 %v5536_v32, 16  ;;  %v11405_v34 = vsel %vm11233_vm1, %v4826_v25, 0  ;;  %v5808_v11 = vshrl.u32 %v5537_v9, 16  ;;  %v5538_v29 = vsel %vm11045_vm6, %v5505_v40, 0  ;;  %5464 = vst.msk [vmem:[#allocation3 + $0x48] sm:$0xf] %vm12686_vm5, %v5386_v45  ;;  %v5191_v53 = vpop.permute.xlu1 %5190 }
 0x297   : > { %4200 = vrot.lane.b32.xlu1 %v4111_v27, %s7443_s22  ;;  %v3054_v4 = vshrl.u32 %v11386_v31, 16  ;;  %v1949_v38 = vrot.slane %v1947_v2, 4  ;;  %vm11411_vm3 = vcmp.gt.s32.totalorder %v1297_v6, 0  ;;  %v4608_v39 = vsel %vm7632_vm14, %v11377_v24, %v11288_v42  ;;  %v5901_v2 = vpop.permute.xlu0 %5900  ;;  %v5506_v40 = vld [vmem:[#allocation2 + $0x88] sm:$0xf] }
 0x298   : > { %v11420_v1 = vrot.slane %v4625_v63, 5  ;;  %v5804_v26 = vshll.u32 %v5537_v9, 16  ;;  %v3072_v16 = vshrl.u32 %v11400_v59, 16  ;;  %5204 = vrot.lane.b32.xlu0 %v5092_v23, %s7447_s28  ;;  %v4623_v56 = vrot.slane %v4622_v13, 4  ;;  %vm1626_vm13 = vmpackc.low %vm11411_vm3, %vm11411_vm3 }
 0x299   : > { %v5093_v49 = vrot.slane %v11317_v18, 4  ;;  %v5790_v8 = vrot.slane %v5788_v57, 4  ;;  %v5113_v12 = vshrl.u32 %v11405_v34, 16  ;;  %vm12687_vm6 = vcmask 224448  }
 0x29a   : > { %5270 = vst.msk [vmem:[#allocation3 + $0x44] sm:$0xf] %vm12687_vm6, %v5191_v53  ;;  %v11427_v35 = vrot.slane %v5794_v17, 5  ;;  %v5810_v42 = vrot.slane %v5808_v11, 4  ;;  %v5814_v61 = vshll.u32 %v5538_v29, 16  ;;  %v5800_v14 = vrot.slane %v5798_v30, 4  ;;  %v5195_v60 = vpop.permute.xlu1 %5194  ;;  %vm12689_vm15 = vmmov %vm12687_vm6 }
 0x29b   : > { %4204 = vrot.lane.b32.xlu1 %v4113_v62, %s7443_s22  ;;  %v5818_v3 = vshrl.u32 %v5538_v29, 16  ;;  %v3056_v32 = vrot.slane %v3054_v4, 7  ;;  %v3057_v57 = vshll.u32 %v11386_v31, 16  ;;  %v1950_v25 = vor.u32 %v1949_v38, %v11187_v19  ;;  %5272 = vst.msk [vmem:[#allocation3 + $0x4c] sm:$0xf] %vm12689_vm15, %v5195_v60  ;;  %v2512_v27 = vpop.permute.xlu0 %2511 }
 0x29c   : > { %vm12688_vm9 = vcmask 290048   ;;  %v5098_v6 = vshll.u32 %v11296_v51, 16  ;;  %v11437_v23 = vrot.slane %v5804_v26, 5  ;;  %v11439_v24 = vrot.slane %v3072_v16, 7  ;;  %5208 = vrot.lane.b32.xlu0 %v5110_v15, %s7447_s28  ;;  %v5309_v11 = vld [vmem:[#allocation2 + $0x78] sm:$0xf] }
 0x29d   : > { %5981 = vst.msk [vmem:[#allocation3 + $0x40] sm:$0xf] %vm12688_vm9, %v5901_v2  ;;  %v3075_v63 = vshll.u32 %v11400_v59, 16  ;;  %v5791_v13 = vor.u32 %v5790_v8, %v11196_v10  ;;  %v11444_v9 = vrot.slane %v5113_v12, 7  ;;  %v5116_v19 = vshll.u32 %v11405_v34, 16  ;;  %vm12692_vm8 = vmmov %vm12688_vm9 }
 0x29e   : > { %v1658_v51 = vsel %vm1626_vm13, 65537, %v12488_v52  ;;  %v5811_v31 = vor.u32 %v5810_v42, %v11437_v23  ;;  %v11455_v59 = vrot.slane %v5814_v61, 5  ;;  %v5801_v15 = vor.u32 %v5800_v14, %v11427_v35  ;;  %v5384_v37 = vpop.permute.xlu1 %5383  ;;  %v5311_v42 = vld [vmem:[#allocation2 + $0x80] sm:$0xf]  ;;  %v3631_v60 = vld [vmem:[#allocation2 + $0x8c] sm:$0xf] }
 0x29f   : > { %v3432_v10 = vrot.slane %v3430_v36, 4  ;;  %4719 = vrot.lane.b32.xlu1 %v4608_v39, %s7446_s27  ;;  %v3059_v17 = vor.u32 %v3057_v57, %v3056_v32  ;;  %v11463_v30 = vsel %vm3108_vm0, %v5506_v40, 0  ;;  %v5820_v52 = vrot.slane %v5818_v3, 4  ;;  %vm12691_vm0 = vmmov %vm12686_vm5  ;;  %v5905_v12 = vpop.permute.xlu0 %5904  ;;  %v1492_v3 = vld [vmem:[#allocation2 + $0x68] sm:$0xf] }
 0x2a0   : > { %v1951_v34 = vrot.slane %v1950_v25, 4  ;;  %vm12690_vm4 = vcmask 60448   ;;  %v3061_v45 = vrot.slane %v3056_v32, 4  ;;  %v3077_v29 = vor.u32 %v3075_v63, %v11439_v24  ;;  %5397 = vrot.lane.b32.xlu0 %v5309_v11, %s7444_s23  ;;  %5463 = vst.msk [vmem:[#allocation3 + $0x44] sm:$0xf] %vm12691_vm0, %v5384_v37  ;;  %vm12693_vm3 = vmmov %vm12691_vm0 }
 0x2a1   : > { %2588 = vst.msk [vmem:[#allocation3 + $0x50] sm:$0xf] %vm12690_vm4, %v2512_v27  ;;  %v1963_v4 = vshll.u32 %v1658_v51, 16  ;;  %v1967_v38 = vshrl.u32 %v1658_v51, 16  ;;  %v5100_v36 = vor.u32 %v5098_v6, %v11337_v58  ;;  %v5792_v43 = vrot.slane %v5791_v13, 4  ;;  %vm12700_vm0 = vmmov %vm12692_vm8 }
 0x2a2   : > { %v5111_v48 = vrot.slane %v11324_v21, 4  ;;  %v5118_v39 = vor.u32 %v5116_v19, %v11444_v9  ;;  %v4628_v26 = vsel %vm7632_vm14, %v4623_v56, %v11420_v1  ;;  %v11475_v16 = vrot.slane %v5811_v31, 4  ;;  %5983 = vst.msk [vmem:[#allocation3 + $0x48] sm:$0xf] %vm12692_vm8, %v5905_v12  ;;  %v5388_v57 = vpop.permute.xlu1 %5387  ;;  %v2629_v6 = vld [vmem:[#allocation2 + $0x7c] sm:$0xf]  ;;  %vm12702_vm8 = vmmov %vm12690_vm4 }
 0x2a3   : > { %v11477_v53 = vrot.slane %v5801_v15, 4  ;;  %v3433_v8 = vor.u32 %v3432_v10, %v11267_v55  ;;  %4723 = vrot.lane.b32.xlu1 %v4628_v26, %s7446_s27  ;;  %v3060_v21 = vsel %vm7613_vm10, %v7610_v47, %v3059_v17  ;;  %v5821_v58 = vor.u32 %v5820_v52, %v11455_v59  ;;  %v3628_v63 = vld [vmem:[#allocation2 + $0x80] sm:$0xf]  ;;  %5465 = vst.msk [vmem:[#allocation3 + $0x4c] sm:$0xf] %vm12693_vm3, %v5388_v57  ;;  %v2516_v13 = vpop.permute.xlu0 %2515  ;;  %vm12705_vm3 = vmmov %vm12700_vm0 }
 0x2a4   : > { %v5824_v62 = vshll.u32 %v11463_v30, 16  ;;  %v1956_v56 = vsel %vm7632_vm14, %v1951_v34, %v12443_v33  ;;  %v11493_v55 = vsel %vm7613_vm10, %v3061_v45, %v12477_v20  ;;  %v3078_v61 = vsel %vm7613_vm10, %v7610_v47, %v3077_v29  ;;  %5401 = vrot.lane.b32.xlu0 %v5311_v42, %s7444_s23  ;;  %v2630_v40 = vld [vmem:[#allocation2 + $0x80] sm:$0xf]  ;;  %v2631_v19 = vld [vmem:[#allocation2 + $0x84] sm:$0xf] }
 0x2a5   : > { %v11498_v14 = vrot.slane %v1963_v4, 5  ;;  %v1969_v2 = vrot.slane %v1967_v38, 4  ;;  %v4629_v32 = vshrl.u32 %v11354_v46, 16  ;;  %v5101_v25 = vsel %vm7613_vm10, %v5093_v49, %v5100_v36  ;;  %2590 = vst.msk [vmem:[#allocation3 + $0x58] sm:$0xf] %vm12690_vm4, %v2516_v13 }
 0x2a6   : > { %v5797_v20 = vsel %vm7632_vm14, %v5792_v43, %v11427_v35  ;;  %v5119_v47 = vsel %vm7613_vm10, %v5111_v48, %v5118_v39  ;;  %v5817_v46 = vsel %vm7632_vm14, %v11475_v16, %v11455_v59  ;;  %v5807_v18 = vsel %vm7632_vm14, %v11477_v53, %v11437_v23  ;;  %v5903_v52 = vpop.permute.xlu1 %5902  ;;  %v1493_v4 = vld [vmem:[#allocation2 + $0x6c] sm:$0xf]  ;;  %v1494_v48 = vld [vmem:[#allocation2 + $0x70] sm:$0xf]  ;;  %v5310_v57 = vld [vmem:[#allocation2 + $0x7c] sm:$0xf] }
 0x2a7   : > { %vm11520_vm5 = vcmp.ne.s16.totalorder %v3060_v21, 0  ;;  %v11524_v35 = vrot.slane %v3433_v8, 4  ;;  %5206 = vrot.lane.b32.xlu1 %v5101_v25, %s7447_s28  ;;  %vm3110_vm6 = vcmp.ne.s16.totalorder %v11493_v55, 0  ;;  %vm11528_vm13 = vcmp.ne.s16.totalorder %v3078_v61, 0  ;;  %5982 = vst.msk [vmem:[#allocation3 + $0x44] sm:$0xf] %vm12700_vm0, %v5903_v52  ;;  %v3511_v39 = vpop.permute.xlu0 %3510 }
 0x2a8   : > { %vm11532_vm9 = vcmp.ne.s16.totalorder %v1956_v56, 0  ;;  %vm2014_vm15 = vcmp.ne.s16.totalorder %v12415_v44, 0  ;;  %v11538_v15 = vrot.slane %v5821_v58, 4  ;;  %v11540_v10 = vrot.slane %v5824_v62, 5  ;;  %5916 = vrot.lane.b32.xlu0 %v5797_v20, %s7448_s29  ;;  %v2435_v21 = vld [vmem:[#allocation2 + $0x78] sm:$0xf] }
 0x2a9   : > { %v11544_v27 = vsel %vm11532_vm9, %v3628_v63, 0  ;;  %v1970_v17 = vor.u32 %v1969_v2, %v11498_v14  ;;  %v3142_v34 = vsel %vm11520_vm5, %v2629_v6, 0  ;;  %v3921_v11 = vrot.slane %v11309_v22, 4 }
 0x2aa   : > { %v11551_v45 = vrot.slane %v4629_v32, 4  ;;  %v2040_v29 = vsel %vm11061_vm11, %v1492_v3, 0  ;;  %v3143_v38 = vsel %vm3110_vm6, %v2630_v40, 0  ;;  %v11560_v37 = vsel %vm11528_vm13, %v2631_v19, 0  ;;  %v2514_v61 = vpop.permute.xlu1 %2513  ;;  %v3629_v19 = vld [vmem:[#allocation2 + $0x84] sm:$0xf] }
 0x2ab   : > { %v11564_v36 = vsel %vm2014_vm15, %v3631_v60, 0  ;;  %v2273_v43 = vshrl.u32 %v2040_v29, 16  ;;  %5210 = vrot.lane.b32.xlu1 %v5119_v47, %s7447_s28  ;;  %v3450_v54 = vshrl.u32 %v3143_v38, 16  ;;  %v3923_v26 = vshrl.u32 %v11544_v27, 16  ;;  %2589 = vst.msk [vmem:[#allocation3 + $0x54] sm:$0xf] %vm12702_vm8, %v2514_v61  ;;  %v3515_v6 = vpop.permute.xlu0 %3514 }
 0x2ac   : > { %v3079_v8 = vrot.slane %v11439_v24, 4  ;;  %v2276_v12 = vshll.u32 %v2040_v29, 16  ;;  %vm12701_vm11 = vcmask 93248   ;;  %v3436_v58 = vshll.u32 %v3142_v34, 16  ;;  %2527 = vrot.lane.b32.xlu0 %v2435_v21, %s7441_s16  ;;  %v3630_v60 = vld [vmem:[#allocation2 + $0x88] sm:$0xf] }
 0x2ad   : > { %3587 = vst.msk [vmem:[#allocation3 + $0x50] sm:$0xf] %vm12701_vm11, %v3511_v39  ;;  %v1971_v62 = vrot.slane %v1970_v17, 4  ;;  %v2271_v56 = vrot.slane %v11264_v5, 4  ;;  %v11571_v42 = vrot.slane %v2273_v43, 7  ;;  %v3440_v2 = vshrl.u32 %v3142_v34, 16 }
 0x2ae   : > { %v3446_v3 = vshll.u32 %v3143_v38, 16  ;;  %v3456_v32 = vshll.u32 %v11560_v37, 16  ;;  %v11577_v24 = vsel %vm11103_vm2, %v1493_v4, 0  ;;  %v3460_v25 = vshrl.u32 %v11560_v37, 16  ;;  %vm12703_vm2 = vmmov %vm12701_vm11  ;;  %v2632_v17 = vld [vmem:[#allocation2 + $0x88] sm:$0x1]  ;;  %v5907_v4 = vpop.permute.xlu1 %5906 }
 0x2af   : > { %v2278_v5 = vor.u32 %v2276_v12, %v11571_v42  ;;  %v2042_v20 = vsel %vm11119_vm7, %v1494_v48, 0  ;;  %v2282_v47 = vshrl.u32 %v11577_v24, 16  ;;  %5399 = vrot.lane.b32.xlu1 %v5310_v57, %s7444_s23  ;;  %v11586_v63 = vrot.slane %v3450_v54, 4  ;;  %3589 = vst.msk [vmem:[#allocation3 + $0x58] sm:$0xf] %vm12703_vm2, %v3515_v6  ;;  %v3998_v54 = vpop.permute.xlu0 %3997 }
 0x2b0   : > { %v11588_v28 = vrot.slane %v3923_v26, 7  ;;  %v1966_v40 = vsel %vm7632_vm14, %v12415_v44, %v11498_v14  ;;  %v2291_v13 = vshrl.u32 %v2042_v20, 16  ;;  %v1976_v41 = vsel %vm7632_vm14, %v1971_v62, %v12443_v33  ;;  %5920 = vrot.lane.b32.xlu0 %v5817_v46, %s7448_s29  ;;  %v7398_v14 = vld [vmem:[#allocation3 + $0x40] sm:$0xff]   ;;  %5984 = vst.msk [vmem:[#allocation3 + $0x4c] sm:$0xf] %vm12705_vm3, %v5907_v4 }
 0x2b1   : > { %v2279_v52 = vsel %vm7613_vm10, %v2271_v56, %v2278_v5  ;;  %v2284_v34 = vrot.slane %v2282_v47, 7  ;;  %v2294_v29 = vshll.u32 %v2042_v20, 16  ;;  %v3438_v38 = vrot.slane %v3436_v58, 5  ;;  %v5312_v48 = vld [vmem:[#allocation2 + $0x84] sm:$0xf] }
 0x2b2   : > { %v5827_v33 = vsel %vm7632_vm14, %v11538_v15, %v11540_v10  ;;  %v3442_v37 = vrot.slane %v3440_v2, 4  ;;  %vm12704_vm7 = vcmask 27648   ;;  %v11611_v43 = vrot.slane %v2291_v13, 7  ;;  %v2437_v58 = vld [vmem:[#allocation2 + $0x80] sm:$0xf] }
 0x2b3   : > { %2399 = vst.msk [vmem:[#allocation3 + $0x60] sm:$0xf] %vm12704_vm7, %v2279_v52  ;;  %v11614_v39 = vrot.slane %v3446_v3, 5  ;;  %vm11616_vm4 = vcmp.ne.s16.totalorder %v1966_v40, 0  ;;  %vm11620_vm0 = vcmp.ne.s16.totalorder %v3079_v8, 0  ;;  %v2289_v46 = vrot.slane %v2284_v34, 4  ;;  %5403 = vrot.lane.b32.xlu1 %v5312_v48, %s7444_s23  ;;  %v2518_v3 = vpop.permute.xlu1 %2517  ;;  %v4002_v13 = vpop.permute.xlu0 %4001 }
 0x2b4   : > { %vm12710_vm11 = vcmask 293888   ;;  %v3926_v26 = vshll.u32 %v11544_v27, 16  ;;  %vm11627_vm8 = vcmp.ne.s16.totalorder %v1976_v41, 0  ;;  %v11633_v21 = vsel %vm11616_vm4, %v3629_v19, 0  ;;  %v1495_v2 = vld [vmem:[#allocation2 + $0x74] sm:$0xf]  ;;  %2531 = vrot.lane.b32.xlu0 %v2437_v58, %s7441_s16 }
 0x2b5   : > { %7313 = vmatprep.mubr.msk.bf16.mxu1 %vm12710_vm11, %v7398_v14  ;;  %v2296_v8 = vor.u32 %v2294_v29, %v11611_v43  ;;  %vm12713_vm2 = vcmask 126048   ;;  %v3453_v62 = vor.u32 %v11586_v63, %v11614_v39  ;;  %v11639_v56 = vrot.slane %v3456_v32, 5  ;;  %v11651_v57 = vld [vmem:[%s12183_s5] ss:$0 sm:$0xff] }
 0x2b6   : > { %4074 = vst.msk [vmem:[#allocation3 + $0x50] sm:$0xf] %vm12713_vm2, %v3998_v54  ;;  %v11643_v27 = vsel %vm11627_vm8, %v3630_v60, 0  ;;  %v4632_v61 = vor.u32 %v11551_v45, %v11420_v1  ;;  %v3443_v5 = vor.u32 %v3442_v37, %v3438_v38  ;;  %v3145_v32 = vsel %vm11620_vm0, %v2632_v17, 0  ;;  %v11674_v41 = vld [vmem:[%s12184_s6] ss:$0 sm:$0xff]  ;;  %vm12716_vm11 = vmmov %vm12713_vm2 }
 0x2b7   : > { %v11655_v20 = vrot.slane %v3460_v25, 4  ;;  %v2297_v47 = vsel %vm7613_vm10, %v2289_v46, %v2296_v8  ;;  %vm12714_vm7 = vcmask 60448   ;;  %v3932_v6 = vshrl.u32 %v11633_v21, 16  ;;  %5918 = vrot.lane.b32.xlu1 %v5807_v18, %s7448_s29  ;;  %v7299_v25 = vpop.f32.mrf.mxu1  ;;  %4076 = vst.msk [vmem:[#allocation3 + $0x58] sm:$0xf] %vm12716_vm11, %v4002_v13  ;;  %v3513_v29 = vpop.permute.xlu1 %3512 }
 0x2b8   : > { %2591 = vst.msk [vmem:[#allocation3 + $0x5c] sm:$0xf] %vm12714_vm7, %v2518_v3  ;;  %v3950_v63 = vshrl.u32 %v11564_v36, 16  ;;  %vm12715_vm3 = vcmask 27648   ;;  %v2280_v40 = vrot.slane %v11571_v42, 4  ;;  %v2285_v60 = vshll.u32 %v11577_v24, 16  ;;  %v4191_v8 = vpop.permute.xlu0 %4190 }
 0x2b9   : > { %2401 = vst.msk [vmem:[#allocation3 + $0x68] sm:$0xf] %vm12715_vm3, %v2297_v47  ;;  %v3439_v42 = vsel %vm7632_vm14, %v11524_v35, %v3438_v38  ;;  %v3928_v24 = vor.u32 %v3926_v26, %v11588_v28  ;;  %v3941_v19 = vshrl.u32 %v11643_v27, 16  ;;  %v2043_v17 = vsel %vm11233_vm1, %v1495_v2, 0  ;;  %v6215_v4 = vpop.f32.mrf.mxu1  ;;  %v7399_v35 = vld [vmem:[#allocation3 + $0x48] sm:$0xff]   ;;  %vm12719_vm7 = vmmov %vm12715_vm3 }
 0x2ba   : > { %v6351_v23 = vmul.f32 %v7299_v25, %v11651_v57  ;;  %v3454_v53 = vrot.slane %v3453_v62, 4  ;;  %v11685_v18 = vshll.u32 %v3145_v32, 16  ;;  %v2287_v52 = vor.u32 %v2285_v60, %v2284_v34  ;;  %3526 = vrot.lane.b32.xlu0 %v3439_v42, %s7442_s17  ;;  %v2436_v54 = vld [vmem:[#allocation2 + $0x7c] sm:$0xf]  ;;  %v4308_v3 = vld [vmem:[#allocation2 + $0x84] sm:$0xf] }
 0x2bb   : > { %v11688_v14 = vrot.slane %v3443_v5, 4  ;;  %v3463_v38 = vor.u32 %v11655_v20, %v11639_v56  ;;  %v2300_v7 = vshrl.u32 %v2043_v17, 16  ;;  %v2303_v37 = vshll.u32 %v2043_v17, 16  ;;  %2529 = vrot.lane.b32.xlu1 %v2436_v54, %s7441_s16  ;;  %v7300_v58 = vpop.f32.mrf.mxu1  ;;  %v4309_v60 = vld [vmem:[#allocation2 + $0x88] sm:$0xf] }
 0x2bc   : > { %v6390_v48 = vadd.f32 %v11674_v41, %v6351_v23  ;;  %vm12717_vm1 = vcmask 93248   ;;  %v6349_v46 = vmul.f32 %v11651_v57, %v6215_v4  ;;  %v11695_v34 = vrot.slane %v3932_v6, 7  ;;  %v2438_v54 = vld [vmem:[#allocation2 + $0x84] sm:$0xf] }
 0x2bd   : > { %3588 = vst.msk [vmem:[#allocation3 + $0x54] sm:$0xf] %vm12717_vm1, %v3513_v29  ;;  %v2288_v26 = vsel %vm7613_vm10, %v2280_v40, %v2287_v52  ;;  %vm12718_vm2 = vcmask 293888   ;;  %v11701_v62 = vrot.slane %v3941_v19, 7  ;;  %v3944_v2 = vshll.u32 %v11643_v27, 16  ;;  %v3517_v27 = vpop.permute.xlu1 %3516  ;;  %v6218_v13 = vpop.f32.mrf.mxu1 }
 0x2be   : > { %7314 = vmatmul.mubr.msk.bf16.gmra.mxu1 %vm12718_vm2, %v7399_v35  ;;  %2400 = vst.msk [vmem:[#allocation3 + $0x64] sm:$0xf] %vm12719_vm7, %v2288_v26  ;;  %v2298_v5 = vrot.slane %v11611_v43, 4  ;;  %v11706_v32 = vrot.slane %v2300_v7, 7  ;;  %v6422_v20 = vmax.f32 %v6390_v48, 0.0  ;;  %v6388_v47 = vadd.f32 %v11674_v41, %v6349_v46 }
 0x2bf   : > { %vm12720_vm3 = vcmask 158848   ;;  %v6352_v6 = vmul.f32 %v7300_v58, %v11651_v57  ;;  %v3459_v40 = vsel %vm7632_vm14, %v3454_v53, %v11639_v56  ;;  %v3929_v43 = vsel %vm7613_vm10, %v3921_v11, %v3928_v24  ;;  %3590 = vst.msk [vmem:[#allocation3 + $0x5c] sm:$0xf] %vm12717_vm1, %v3517_v27  ;;  %v1496_v11 = vld [vmem:[#allocation2 + $0x78] sm:$0xf]  ;;  %v4195_v53 = vpop.permute.xlu0 %4194  ;;  %5922 = vrot.lane.b32.xlu1 %v5827_v33, %s7448_s29 }
 0x2c0   : > { %4267 = vst.msk [vmem:[#allocation3 + $0x50] sm:$0xf] %vm12720_vm3, %v4191_v8  ;;  %3530 = vrot.lane.b32.xlu0 %v3459_v40, %s7442_s17  ;;  %v3468_v25 = vrot.slane %v11685_v18, 5  ;;  %v3930_v42 = vrot.slane %v11588_v28, 4  ;;  %v2305_v19 = vor.u32 %v2303_v37, %v11706_v32  ;;  %vm12721_vm11 = vcmask 31744   ;;  %vm12723_vm7 = vmmov %vm12720_vm3 }
 0x2c1   : > { %6454 = vst.msk [vmem:[#allocation4 + $0x10] sm:$0xff] %vm12721_vm11, %v6422_v20  ;;  %v6420_v17 = vmax.f32 %v6388_v47, 0.0  ;;  %v6391_v56 = vadd.f32 %v11674_v41, %v6352_v6  ;;  %v6350_v23 = vmul.f32 %v11651_v57, %v6218_v13  ;;  %v11728_v22 = vsel %vm11520_vm5, %v4308_v3, 0  ;;  %v1497_v24 = vld [vmem:[#allocation2 + $0x7c] sm:$0xf]  ;;  %vm12722_vm2 = vmmov %vm12721_vm11  ;;  %v4000_v46 = vpop.permute.xlu1 %3999 }
 0x2c2   : > { %v3939_v52 = vrot.slane %v11695_v34, 4  ;;  %v3946_v29 = vor.u32 %v3944_v2, %v11701_v62  ;;  %v4342_v4 = vsel %vm3110_vm6, %v4309_v60, 0  ;;  %v2306_v35 = vsel %vm7613_vm10, %v2298_v5, %v2305_v19  ;;  %4269 = vst.msk [vmem:[#allocation3 + $0x58] sm:$0xf] %vm12723_vm7, %v4195_v53  ;;  %v1498_v48 = vld [vmem:[#allocation2 + $0x80] sm:$0xf]  ;;  %vm12725_vm11 = vmmov %vm12722_vm2 }
 0x2c3   : > { %6452 = vst.msk [vmem:[#allocation4] sm:$0xff] %vm12722_vm2, %v6420_v17  ;;  %v6423_v7 = vmax.f32 %v6391_v56, 0.0  ;;  %v6389_v37 = vadd.f32 %v11674_v41, %v6350_v23  ;;  %v3449_v15 = vsel %vm7632_vm14, %v11688_v14, %v11614_v39  ;;  %v11749_v33 = vrot.slane %v3463_v38, 4  ;;  %v1499_v5 = vld [vmem:[#allocation2 + $0x84] sm:$0xf]  ;;  %v4710_v20 = vpop.permute.xlu0 %4709  ;;  %2533 = vrot.lane.b32.xlu1 %v2438_v54, %s7441_s16 }
 0x2c4   : > { %vm12724_vm3 = vcmask 27648   ;;  %4013 = vrot.lane.b32.xlu0 %v3929_v43, %s7445_s24  ;;  %v3935_v26 = vshll.u32 %v11633_v21, 16  ;;  %v4635_v8 = vshll.u32 %v11728_v22, 16  ;;  %v2044_v58 = vsel %vm11532_vm9, %v1496_v11, 0  ;;  %v4310_v47 = vld [vmem:[#allocation2 + $0x8c] sm:$0xf] }
 0x2c5   : > { %2402 = vst.msk [vmem:[#allocation3 + $0x6c] sm:$0xf] %vm12724_vm3, %v2306_v35  ;;  %v2045_v2 = vsel %vm11616_vm4, %v1497_v24, 0  ;;  %v6421_v39 = vmax.f32 %v6389_v37, 0.0  ;;  %vm12726_vm1 = vcmask 126048   ;;  %v4645_v14 = vshll.u32 %v4342_v4, 16  ;;  %v4004_v17 = vpop.permute.xlu1 %4003 }
 0x2c6   : > { %6455 = vst.msk [vmem:[#allocation4 + $0x18] sm:$0xff] %vm12725_vm11, %v6423_v7  ;;  %v4649_v38 = vshrl.u32 %v4342_v4, 16  ;;  %v2309_v3 = vshrl.u32 %v2044_v58, 16  ;;  %v3947_v21 = vsel %vm7613_vm10, %v3939_v52, %v3946_v29  ;;  %v2312_v6 = vshll.u32 %v2044_v58, 16  ;;  %vm12727_vm7 = vmmov %vm12726_vm1 }
 0x2c7   : > { %4075 = vst.msk [vmem:[#allocation3 + $0x54] sm:$0xf] %vm12726_vm1, %v4000_v46  ;;  %v2046_v40 = vsel %vm11627_vm8, %v1498_v48, 0  ;;  %v2318_v60 = vshrl.u32 %v2045_v2, 16  ;;  %v2307_v27 = vrot.slane %v11706_v32, 4  ;;  %v3952_v56 = vrot.slane %v3950_v63, 7  ;;  %v4714_v35 = vpop.permute.xlu0 %4713  ;;  %3528 = vrot.lane.b32.xlu1 %v3449_v15, %s7442_s17  ;;  %vm12730_vm1 = vmmov %vm12724_vm3 }
 0x2c8   : > { %6453 = vst.msk [vmem:[#allocation4 + $0x8] sm:$0xff] %vm12722_vm2, %v6421_v39  ;;  %v2311_v13 = vrot.slane %v2309_v3, 7  ;;  %v2327_v43 = vshrl.u32 %v2046_v40, 16  ;;  %v2330_v19 = vshll.u32 %v2046_v40, 16  ;;  %4017 = vrot.lane.b32.xlu0 %v3947_v21, %s7445_s24  ;;  %v2321_v11 = vshll.u32 %v2045_v2, 16 }
 0x2c9   : > { %4786 = vst.msk [vmem:[#allocation3 + $0x50] sm:$0xf] %vm4765_vm12, %v4710_v20  ;;  %v2320_v23 = vrot.slane %v2318_v60, 7  ;;  %v2047_v24 = vsel %vm2014_vm15, %v1499_v5, 0  ;;  %v11777_v53 = vsel %vm11528_vm13, %v4310_v47, 0  ;;  %v11781_v54 = vrot.slane %v4645_v14, 5  ;;  %v4193_v3 = vpop.permute.xlu1 %4192 }
 0x2ca   : > { %4077 = vst.msk [vmem:[#allocation3 + $0x5c] sm:$0xf] %vm12727_vm7, %v4004_v17  ;;  %v4827_v32 = vld [vmem:[#allocation2 + $0x88] sm:$0xf]  ;;  %v2314_v52 = vor.u32 %v2312_v6, %v2311_v13  ;;  %v2329_v29 = vrot.slane %v2327_v43, 7  ;;  %v2316_v4 = vrot.slane %v2311_v13, 4  ;;  %v3937_v47 = vor.u32 %v3935_v26, %v11695_v34 }
 0x2cb   : > { %v2325_v7 = vrot.slane %v2320_v23, 4  ;;  %v2323_v63 = vor.u32 %v2321_v11, %v2320_v23  ;;  %v2336_v37 = vshrl.u32 %v2047_v24, 16  ;;  %v2339_v48 = vshll.u32 %v2047_v24, 16  ;;  %4788 = vst.msk [vmem:[#allocation3 + $0x58] sm:$0xf] %vm4765_vm12, %v4714_v35  ;;  %v5197_v40 = vpop.permute.xlu0 %5196 }
 0x2cc   : > { %v4114_v46 = vld [vmem:[#allocation2 + $0x80] sm:$0xf]  ;;  %v4651_v58 = vrot.slane %v4649_v38, 4  ;;  %v2315_v2 = vsel %vm7613_vm10, %v2307_v27, %v2314_v52  ;;  %v2332_v39 = vor.u32 %v2330_v19, %v2329_v29  ;;  %v4860_v15 = vsel %vm11532_vm9, %v4827_v32, 0  ;;  %v4829_v5 = vld [vmem:[#allocation2 + $0x90] sm:$0xf]  ;;  %vm12729_vm9 = vmmov %vm12724_vm3 }
 0x2cd   : > { %4206 = vrot.lane.b32.xlu0 %v4114_v46, %s7443_s22  ;;  %2403 = vst.msk [vmem:[#allocation3 + $0x70] sm:$0xf] %vm12724_vm3, %v2315_v2  ;;  %v2324_v20 = vsel %vm7613_vm10, %v2316_v4, %v2323_v63  ;;  %v2334_v21 = vrot.slane %v2329_v29, 4  ;;  %v2338_v14 = vrot.slane %v2336_v37, 7  ;;  %vm12728_vm11 = vcmask 158848   ;;  %v4197_v13 = vpop.permute.xlu1 %4196 }
 0x2ce   : > { %4268 = vst.msk [vmem:[#allocation3 + $0x54] sm:$0xf] %vm12728_vm11, %v4193_v3  ;;  %v3469_v38 = vsel %vm7632_vm14, %v11749_v33, %v3468_v25  ;;  %v3953_v31 = vshll.u32 %v11564_v36, 16  ;;  %v2333_v6 = vsel %vm7613_vm10, %v2325_v7, %v2332_v39  ;;  %v4633_v18 = vrot.slane %v4632_v61, 4  ;;  %v4828_v60 = vld [vmem:[#allocation2 + $0x8c] sm:$0xf]  ;;  %vm12732_vm7 = vmmov %vm12728_vm11 }
 0x2cf   : > { %2404 = vst.msk [vmem:[#allocation3 + $0x74] sm:$0xf] %vm12729_vm9, %v2324_v20  ;;  %3532 = vrot.lane.b32.xlu1 %v3469_v38, %s7442_s17  ;;  %v2341_v25 = vor.u32 %v2339_v48, %v2338_v14  ;;  %vm12731_vm2 = vcmask 224448   ;;  %v4116_v34 = vld [vmem:[#allocation2 + $0x88] sm:$0xf]  ;;  %v4652_v36 = vor.u32 %v4651_v58, %v11781_v54  ;;  %v4655_v33 = vshll.u32 %v11777_v53, 16 }
 0x2d0   : > { %2405 = vst.msk [vmem:[#allocation3 + $0x78] sm:$0xf] %vm12730_vm1, %v2333_v6  ;;  %v5122_v26 = vshrl.u32 %v4860_v15, 16  ;;  %v4862_v27 = vsel %vm11627_vm8, %v4829_v5, 0  ;;  %v4637_v1 = vrot.slane %v4635_v8, 5  ;;  %v4639_v45 = vshrl.u32 %v11728_v22, 16  ;;  %vm12733_vm8 = vmmov %vm12730_vm1  ;;  %v5201_v22 = vpop.permute.xlu0 %5200 }
 0x2d1   : > { %5273 = vst.msk [vmem:[#allocation3 + $0x50] sm:$0xf] %vm12731_vm2, %v5197_v40  ;;  %4210 = vrot.lane.b32.xlu0 %v4116_v34, %s7443_s22  ;;  %v2342_v61 = vsel %vm7613_vm10, %v2334_v21, %v2341_v25  ;;  %v3938_v43 = vsel %vm7613_vm10, %v3930_v42, %v3937_v47  ;;  %v3948_v12 = vrot.slane %v11701_v62, 4  ;;  %v3955_v19 = vor.u32 %v3953_v31, %v3952_v56  ;;  %vm12734_vm3 = vmmov %vm12731_vm2  ;;  %v4712_v56 = vpop.permute.xlu1 %4711  ;;  %v4311_v7 = vld [vmem:[#allocation2 + $0x90] sm:$0x1]  ;;  %s7178_s17 = sshll.u32 %s12846_s26, 6 }
 0x2d2   : > { %4270 = vst.msk [vmem:[#allocation3 + $0x5c] sm:$0xf] %vm12732_vm7, %v4197_v13  ;;  %v11826_v17 = vsel %vm11616_vm4, %v4828_v60, 0  ;;  %v4638_v8 = vsel %vm7632_vm14, %v4633_v18, %v4637_v1  ;;  %v5140_v23 = vshrl.u32 %v4862_v27, 16  ;;  %v4653_v28 = vrot.slane %v4652_v36, 4  ;;  %vm12737_vm9 = vmmov %vm12731_vm2 }
 0x2d3   : > { %2406 = vst.msk [vmem:[#allocation3 + $0x7c] sm:$0xf] %vm12733_vm8, %v2342_v61  ;;  %4015 = vrot.lane.b32.xlu1 %v3938_v43, %s7445_s24  ;;  %v4657_v42 = vrot.slane %v4655_v33, 5  ;;  %v11833_v11 = vrot.slane %v5122_v26, 7  ;;  %v5125_v62 = vshll.u32 %v4860_v15, 16  ;;  %v5131_v59 = vshrl.u32 %v11826_v17, 16 }
 0x2d4   : > { %5275 = vst.msk [vmem:[#allocation3 + $0x58] sm:$0xf] %vm12734_vm3, %v5201_v22  ;;  %v4641_v24 = vrot.slane %v4639_v45, 4  ;;  %v3956_v32 = vsel %vm7613_vm10, %v3948_v12, %v3955_v19  ;;  %v4659_v52 = vshrl.u32 %v11777_v53, 16  ;;  %v5390_v29 = vpop.permute.xlu0 %5389  ;;  %v11842_v4 = vrot.slane %v5140_v23, 7 }
 0x2d5   : > { %4725 = vrot.lane.b32.xlu0 %v4638_v8, %s7446_s27  ;;  %4787 = vst.msk [vmem:[#allocation3 + $0x54] sm:$0xf] %vm4765_vm12, %v4712_v56  ;;  %v5143_v35 = vshll.u32 %v4862_v27, 16  ;;  %vm12735_vm4 = vcmask 257248   ;;  %v4658_v63 = vsel %vm7632_vm14, %v4653_v28, %v4657_v42  ;;  %v5120_v37 = vrot.slane %v11444_v9, 4  ;;  %v4716_v46 = vpop.permute.xlu1 %4715 }
 0x2d6   : > { %5466 = vst.msk [vmem:[#allocation3 + $0x50] sm:$0xf] %vm12735_vm4, %v5390_v29  ;;  %v5127_v48 = vor.u32 %v5125_v62, %v11833_v11  ;;  %v4115_v53 = vld [vmem:[#allocation2 + $0x84] sm:$0xf]  ;;  %v5133_v58 = vrot.slane %v5131_v59, 7  ;;  %v4642_v2 = vor.u32 %v4641_v24, %v4637_v1  ;;  %v4344_v39 = vsel %vm11620_vm0, %v4311_v7, 0  ;;  %vm12736_vm11 = vmmov %vm12735_vm4 }
 0x2d7   : > { %4019 = vrot.lane.b32.xlu1 %v3956_v32, %s7445_s24  ;;  %4789 = vst.msk [vmem:[#allocation3 + $0x5c] sm:$0xf] %vm4765_vm12, %v4716_v46  ;;  %v4661_v3 = vrot.slane %v4659_v52, 4  ;;  %v4830_v15 = vld [vmem:[#allocation2 + $0x94] sm:$0xf]  ;;  %v5145_v21 = vor.u32 %v5143_v35, %v11842_v4  ;;  %v5828_v14 = vshrl.u32 %v11463_v30, 16  ;;  %vm12743_vm7 = vmmov %vm12735_vm4 }
 0x2d8   : > { %v5508_v5 = vld [vmem:[#allocation2 + $0x90] sm:$0xf]  ;;  %v5394_v20 = vpop.permute.xlu0 %5393  ;;  %v5138_v9 = vrot.slane %v5133_v58, 4  ;;  %v5128_v38 = vsel %vm7613_vm10, %v5120_v37, %v5127_v48  ;;  %v4643_v31 = vrot.slane %v4642_v2, 4  ;;  %v4665_v6 = vshll.u32 %v4344_v39, 16 }
 0x2d9   : > { %4729 = vrot.lane.b32.xlu0 %v4658_v63, %s7446_s27  ;;  %5468 = vst.msk [vmem:[#allocation3 + $0x58] sm:$0xf] %vm12736_vm11, %v5394_v20  ;;  %v5199_v47 = vpop.permute.xlu1 %5198  ;;  %v5507_v40 = vld [vmem:[#allocation2 + $0x8c] sm:$0xf]  ;;  %v4863_v18 = vsel %vm2014_vm15, %v4830_v15, 0  ;;  %v5541_v60 = vsel %vm3110_vm6, %v5508_v5, 0  ;;  %v4662_v25 = vor.u32 %v4661_v3, %v4657_v42  ;;  %vm12740_vm15 = vmmov %vm12731_vm2 }
 0x2da   : > { %5274 = vst.msk [vmem:[#allocation3 + $0x54] sm:$0xf] %vm12737_vm9, %v5199_v47  ;;  %v4117_v30 = vld [vmem:[#allocation2 + $0x8c] sm:$0xf]  ;;  %v5848_v34 = vshrl.u32 %v5541_v60, 16  ;;  %v5146_v33 = vsel %vm7613_vm10, %v5138_v9, %v5145_v21  ;;  %vm12738_vm1 = vcmask 290048   ;;  %v4648_v45 = vsel %vm7632_vm14, %v4643_v31, %v11781_v54 }
 0x2db   : > { %4208 = vrot.lane.b32.xlu1 %v4115_v53, %s7443_s22  ;;  %v5540_v44 = vsel %vm11520_vm5, %v5507_v40, 0  ;;  %v5830_v26 = vrot.slane %v5828_v14, 4  ;;  %v5149_v27 = vshrl.u32 %v4863_v18, 16  ;;  %v5844_v55 = vshll.u32 %v5541_v60, 16  ;;  %v6583_v13 = vld [vmem:[%s12185_s7] sm:$0x3]  ;;  %vm12744_vm8 = vmmov %vm12738_vm1 }
 0x2dc   : > { %v5909_v36 = vpop.permute.xlu0 %5908  ;;  %v4667_v61 = vrot.slane %v4665_v6, 5  ;;  %vm12739_vm6 = vcmask 1041408   ;;  %v4663_v49 = vrot.slane %v4662_v25, 4  ;;  %v5134_v43 = vshll.u32 %v11826_v17, 16  ;;  %v5509_v12 = vld [vmem:[#allocation2 + $0x94] sm:$0xf] }
 0x2dd   : > { %5212 = vrot.lane.b32.xlu0 %v5128_v38, %s7447_s28  ;;  %5985 = vst.msk [vmem:[#allocation3 + $0x50] sm:$0xf] %vm12738_vm1, %v5909_v36  ;;  %v5203_v1 = vpop.permute.xlu1 %5202  ;;  %7351 = vmatprep.subr.msk.bf16.mxu0 %vm12739_vm6, %v6583_v13  ;;  %v5850_v19 = vrot.slane %v5848_v34, 4  ;;  %vm12741_vm5 = vmmov %vm12739_vm6  ;;  %v5834_v23 = vshll.u32 %v5540_v44, 16  ;;  %vm12742_vm2 = vcmask 60448   ;;  %v5831_v28 = vor.u32 %v5830_v26, %v11540_v10 }
 0x2de   : > { %5276 = vst.msk [vmem:[#allocation3 + $0x5c] sm:$0xf] %vm12740_vm15, %v5203_v1  ;;  %v6597_v22 = vsel %vm12741_vm5, %v6583_v13, 0  ;;  %v5313_v54 = vld [vmem:[#allocation2 + $0x88] sm:$0xf]  ;;  %v5151_v42 = vrot.slane %v5149_v27, 7  ;;  %v4668_v24 = vsel %vm7632_vm14, %v4663_v49, %v4667_v61  ;;  %v5136_v29 = vor.u32 %v5134_v43, %v5133_v58  ;;  %vm12746_vm3 = vmmov %vm12742_vm2 }
 0x2df   : > { %4212 = vrot.lane.b32.xlu1 %v4117_v30, %s7443_s22  ;;  %7330 = vmatpush3.bf16.msra.mxu0 %v6597_v22  ;;  %v5152_v62 = vshll.u32 %v4863_v18, 16  ;;  %v11885_v56 = vrot.slane %v5844_v55, 5  ;;  %v5542_v17 = vsel %vm11528_vm13, %v5509_v12, 0  ;;  %v5315_v32 = vld [vmem:[#allocation2 + $0x90] sm:$0xf]  ;;  %v5129_v52 = vrot.slane %v11833_v11, 4  ;;  %vm12745_vm13 = vmmov %vm12735_vm4 }
 0x2e0   : > { %v2520_v8 = vpop.permute.xlu0 %2519  ;;  %v5147_v7 = vrot.slane %v11842_v4, 4  ;;  %v5832_v51 = vrot.slane %v5831_v28, 4  ;;  %v5836_v63 = vrot.slane %v5834_v23, 5  ;;  %v5854_v48 = vshll.u32 %v5542_v17, 16  ;;  %vm12747_vm4 = vmmov %vm12738_vm1  ;;  %v5510_v21 = vld [vmem:[#allocation2 + $0x98] sm:$0x1] }
 0x2e1   : > { %5216 = vrot.lane.b32.xlu0 %v5146_v33, %s7447_s28  ;;  %2592 = vst.msk [vmem:[#allocation3 + $0x60] sm:$0xf] %vm12742_vm2, %v2520_v8  ;;  %v5392_v59 = vpop.permute.xlu1 %5391  ;;  %v5851_v10 = vor.u32 %v5850_v19, %v11885_v56  ;;  %v5154_v37 = vor.u32 %v5152_v62, %v5151_v42  ;;  %v5137_v11 = vsel %vm7613_vm10, %v5129_v52, %v5136_v29  ;;  %v5838_v53 = vshrl.u32 %v5540_v44, 16  ;;  %v5314_v31 = vld [vmem:[#allocation2 + $0x8c] sm:$0xf]  ;;  %vm12753_vm15 = vmmov %vm12742_vm2 }
 0x2e2   : > { %5467 = vst.msk [vmem:[#allocation3 + $0x54] sm:$0xf] %vm12743_vm7, %v5392_v59  ;;  %v5837_v4 = vsel %vm7632_vm14, %v5832_v51, %v5836_v63  ;;  %v5856_v3 = vrot.slane %v5854_v48, 5  ;;  %v5858_v15 = vshrl.u32 %v5542_v17, 16  ;;  %vm12748_vm11 = vcmask 93248  }
 0x2e3   : > { %4727 = vrot.lane.b32.xlu1 %v4648_v45, %s7446_s27  ;;  %v5852_v58 = vrot.slane %v5851_v10, 4  ;;  %v5155_v39 = vsel %vm7613_vm10, %v5147_v7, %v5154_v37  ;;  %v5840_v20 = vrot.slane %v5838_v53, 4  ;;  %v5543_v47 = vsel %vm11620_vm0, %v5510_v21, 0  ;;  %vm12749_vm10 = vmmov %vm12742_vm2  ;;  %v5316_v18 = vld [vmem:[#allocation2 + $0x94] sm:$0xf] }
 0x2e4   : > { %v5913_v35 = vpop.permute.xlu0 %5912  ;;  %v5860_v38 = vrot.slane %v5858_v15, 4  ;;  %vm12750_vm9 = vmmov %vm12748_vm11  ;;  %v5864_v30 = vshll.u32 %v5543_v47, 16  ;;  %vm12751_vm0 = vcmask 293888   ;;  %vm12752_vm6 = vcmask 126048   ;;  %v6857_v10 = vld [vmem:[%s12188_s10] sm:$0x3] }
 0x2e5   : > { %5405 = vrot.lane.b32.xlu0 %v5313_v54, %s7444_s23  ;;  %5987 = vst.msk [vmem:[#allocation3 + $0x58] sm:$0xf] %vm12744_vm8, %v5913_v35  ;;  %v5396_v46 = vpop.permute.xlu1 %5395  ;;  %v5857_v9 = vsel %vm7632_vm14, %v5852_v58, %v5856_v3  ;;  %v5841_v6 = vor.u32 %v5840_v20, %v5836_v63  ;;  %vm12754_vm5 = vmmov %vm12752_vm6  ;;  %vm12757_vm8 = vcmask 158848   ;;  %v6484_v63 = vld [vmem:[#allocation4] ss:$2 sm:$0xff] }
 0x2e6   : > { %5469 = vst.msk [vmem:[#allocation3 + $0x5c] sm:$0xf] %vm12745_vm13, %v5396_v46  ;;  %v5861_v60 = vor.u32 %v5860_v38, %v5856_v3  ;;  %v5866_v44 = vrot.slane %v5864_v30, 5  ;;  %vm12755_vm2 = vmmov %vm12750_vm9  ;;  %v6516_v37 = vld [vmem:[#allocation4 + $0x1] ss:$2 sm:$0xff] }
 0x2e7   : > { %4731 = vrot.lane.b32.xlu1 %v4668_v24, %s7446_s27  ;;  %v5842_v36 = vrot.slane %v5841_v6, 4  ;;  %vm12756_vm7 = vmmov %vm12751_vm0  ;;  %v6486_v46 = vld [vmem:[#allocation4 + $0x10] ss:$2 sm:$0xff]  ;;  %v6547_v53 = vadd.f32 %v6516_v37, %v6484_v63 }
 0x2e8   : > { %v2524_v2 = vpop.permute.xlu0 %2523  ;;  %v5862_v16 = vrot.slane %v5861_v60, 4  ;;  %vm12759_vm13 = vmmov %vm12755_vm2 }
 0x2e9   : > { %5409 = vrot.lane.b32.xlu0 %v5315_v32, %s7444_s23  ;;  %2594 = vst.msk [vmem:[#allocation3 + $0x68] sm:$0xf] %vm12746_vm3, %v2524_v2  ;;  %v5911_v5 = vpop.permute.xlu1 %5910  ;;  %v5847_v27 = vsel %vm7632_vm14, %v5842_v36, %v11885_v56 }
 0x2ea   : > { %5986 = vst.msk [vmem:[#allocation3 + $0x54] sm:$0xf] %vm12747_vm4, %v5911_v5  ;;  %v5867_v45 = vsel %vm7632_vm14, %v5862_v16, %v5866_v44  ;;  %vm12758_vm14 = vcmask 31744   ;;  %vm12761_vm4 = vmmov %vm12757_vm8 }
 0x2eb   : > { %5214 = vrot.lane.b32.xlu1 %v5137_v11, %s7447_s28  ;;  %vm12760_vm3 = vmmov %vm12758_vm14  ;;  %v6518_v11 = vld [vmem:[#allocation4 + $0x11] ss:$2 sm:$0xff] }
 0x2ec   : > { %v3519_v14 = vpop.permute.xlu0 %3518 }
 0x2ed   : > { %5924 = vrot.lane.b32.xlu0 %v5837_v4, %s7448_s29  ;;  %3591 = vst.msk [vmem:[#allocation3 + $0x60] sm:$0xf] %vm12748_vm11, %v3519_v14  ;;  %v2522_v50 = vpop.permute.xlu1 %2521  ;;  %vm12762_vm11 = vmmov %vm12760_vm3 }
 0x2ee   : > { %2593 = vst.msk [vmem:[#allocation3 + $0x64] sm:$0xf] %vm12749_vm10, %v2522_v50  ;;  %vm12763_vm10 = vmmov %vm12754_vm5 }
 0x2ef   : > { %5218 = vrot.lane.b32.xlu1 %v5155_v39, %s7447_s28  ;;  %v6548_v39 = vadd.f32 %v6518_v11, %v6486_v46 }
 0x2f0   : > { %v3523_v40 = vpop.permute.xlu0 %3522 }
 0x2f1   : > { %5928 = vrot.lane.b32.xlu0 %v5857_v9, %s7448_s29  ;;  %3593 = vst.msk [vmem:[#allocation3 + $0x68] sm:$0xf] %vm12750_vm9, %v3523_v40  ;;  %v5915_v25 = vpop.permute.xlu1 %5914  ;;  %v7400_v34 = vld [vmem:[#allocation3 + $0x50] sm:$0xff]   ;;  %v7303_v13 = vpop.f32.mrf.mxu1  ;;  %vm12764_vm9 = vcmask 1041408   ;;  %v6563_v21 = vadd.f32 %v6548_v39, %v6547_v53 }
 0x2f2   : > { %5988 = vst.msk [vmem:[#allocation3 + $0x5c] sm:$0xf] %vm12738_vm1, %v5915_v25  ;;  %7317 = vmatprep.mubr.msk.bf16.mxu1 %vm12751_vm0, %v7400_v34  ;;  %v6355_v1 = vmul.f32 %v7303_v13, %v11651_v57  ;;  %7352 = vmatprep.subr.msk.bf16.mxu1 %vm12764_vm9, %v6857_v10  ;;  %vm12765_vm1 = vmmov %vm12764_vm9 }
 0x2f3   : > { %5407 = vrot.lane.b32.xlu1 %v5314_v31, %s7444_s23  ;;  %v6231_v49 = vpop.f32.mrf.mxu1  ;;  %v6871_v7 = vsel %vm12765_vm1, %v6857_v10, 0  ;;  %vm12766_vm0 = vmmov %vm12760_vm3  ;;  %v6571_v47 = vmul.f32 0.25, %v6563_v21 }
 0x2f4   : > { %v4006_v33 = vpop.permute.xlu0 %4005  ;;  %v6394_v12 = vadd.f32 %v11674_v41, %v6355_v1  ;;  %v6353_v19 = vmul.f32 %v11651_v57, %v6231_v49  ;;  %7340 = vmatpush3.bf16.msra.mxu1 %v6871_v7 }
 0x2f5   : > { %4078 = vst.msk [vmem:[#allocation3 + $0x60] sm:$0xf] %vm12752_vm6, %v4006_v33  ;;  %v2526_v26 = vpop.permute.xlu1 %2525  ;;  %v7304_v8 = vpop.f32.mrf.mxu1  ;;  %vm12767_vm6 = vmmov %vm12754_vm5 }
 0x2f6   : > { %2595 = vst.msk [vmem:[#allocation3 + $0x6c] sm:$0xf] %vm12753_vm15, %v2526_v26  ;;  %v6426_v23 = vmax.f32 %v6394_v12, 0.0  ;;  %v6392_v54 = vadd.f32 %v11674_v41, %v6353_v19  ;;  %v6356_v0 = vmul.f32 %v7304_v8, %v11651_v57  ;;  %vm12768_vm15 = vmmov %vm12761_vm4 }
 0x2f7   : > { %5411 = vrot.lane.b32.xlu1 %v5316_v18, %s7444_s23  ;;  %v6234_v42 = vpop.f32.mrf.mxu1  ;;  %s12136_s23 = scalar_lea.vmem %s12191_s13, %s7178_s17 }
 0x2f8   : > { %v4010_v55 = vpop.permute.xlu0 %4009  ;;  %6458 = vst.msk [vmem:[#allocation4 + $0x30] sm:$0xff] %vm12758_vm14, %v6426_v23  ;;  %v6424_v62 = vmax.f32 %v6392_v54, 0.0  ;;  %v6395_v56 = vadd.f32 %v11674_v41, %v6356_v0  ;;  %v6354_v59 = vmul.f32 %v11651_v57, %v6234_v42  ;;  %vm12773_vm14 = vmmov %vm12766_vm0 }
 0x2f9   : > { %4080 = vst.msk [vmem:[#allocation3 + $0x68] sm:$0xf] %vm12754_vm5, %v4010_v55  ;;  %v3521_v61 = vpop.permute.xlu1 %3520  ;;  %v7401_v43 = vld [vmem:[#allocation3 + $0x58] sm:$0xff]   ;;  %vm12769_vm5 = vcmask 224448  }
 0x2fa   : > { %3592 = vst.msk [vmem:[#allocation3 + $0x64] sm:$0xf] %vm12755_vm2, %v3521_v61  ;;  %7318 = vmatmul.mubr.msk.bf16.gmra.mxu1 %vm12756_vm7, %v7401_v43  ;;  %v6427_v24 = vmax.f32 %v6395_v56, 0.0  ;;  %v6393_v32 = vadd.f32 %v11674_v41, %v6354_v59  ;;  %vm12770_vm2 = vmmov %vm12761_vm4 }
 0x2fb   : > { %5926 = vrot.lane.b32.xlu1 %v5847_v27, %s7448_s29  ;;  %6456 = vst.msk [vmem:[#allocation4 + $0x20] sm:$0xff] %vm12760_vm3, %v6424_v62  ;;  %vm12771_vm7 = vmmov %vm12769_vm5 }
 0x2fc   : > { %v4199_v22 = vpop.permute.xlu0 %4198  ;;  %6459 = vst.msk [vmem:[#allocation4 + $0x38] sm:$0xff] %vm12762_vm11, %v6427_v24  ;;  %v6425_v29 = vmax.f32 %v6393_v32, 0.0  ;;  %vm12775_vm3 = vmmov %vm12769_vm5 }
 0x2fd   : > { %4271 = vst.msk [vmem:[#allocation3 + $0x60] sm:$0xf] %vm12757_vm8, %v4199_v22  ;;  %v3525_v28 = vpop.permute.xlu1 %3524  ;;  %vm12772_vm8 = vcmask 257248   ;;  %vm12777_vm11 = vmmov %vm12775_vm3 }
 0x2fe   : > { %3594 = vst.msk [vmem:[#allocation3 + $0x6c] sm:$0xf] %vm12759_vm13, %v3525_v28  ;;  %vm12774_vm13 = vmmov %vm12772_vm8 }
 0x2ff   : > { %5930 = vrot.lane.b32.xlu1 %v5867_v45, %s7448_s29  ;;  %6457 = vst.msk [vmem:[#allocation4 + $0x28] sm:$0xff] %vm12766_vm0, %v6425_v29  ;;  %vm12779_vm9 = vmmov %vm12772_vm8 }
 0x300   : > { %v4203_v17 = vpop.permute.xlu0 %4202  ;;  %vm12781_vm0 = vmmov %vm12772_vm8 }
 0x301   : > { %4273 = vst.msk [vmem:[#allocation3 + $0x68] sm:$0xf] %vm12761_vm4, %v4203_v17  ;;  %v4008_v52 = vpop.permute.xlu1 %4007  ;;  %vm12776_vm4 = vcmask 290048  }
 0x302   : > { %4079 = vst.msk [vmem:[#allocation3 + $0x64] sm:$0xf] %vm12763_vm10, %v4008_v52  ;;  %vm12778_vm10 = vcmask 60448   ;;  %vm12780_vm1 = vmmov %vm12776_vm4 }
 0x303   : > { %v6490_v2 = vld [vmem:[#allocation4 + $0x30] ss:$2 sm:$0xff]  ;;  %v6522_v4 = vld [vmem:[#allocation4 + $0x31] ss:$2 sm:$0xff] }
 0x304   : > { %v4718_v35 = vpop.permute.xlu0 %4717  ;;  %v6550_v9 = vadd.f32 %v6522_v4, %v6490_v2 }
 0x305   : > { %4790 = vst.msk [vmem:[#allocation3 + $0x60] sm:$0xf] %vm4765_vm12, %v4718_v35  ;;  %v4012_v51 = vpop.permute.xlu1 %4011 }
 0x306   : > { %4081 = vst.msk [vmem:[#allocation3 + $0x6c] sm:$0xf] %vm12767_vm6, %v4012_v51  ;;  %v6488_v15 = vld [vmem:[#allocation4 + $0x20] ss:$2 sm:$0xff]  ;;  %v6520_v5 = vld [vmem:[#allocation4 + $0x21] ss:$2 sm:$0xff]  ;;  %vm12782_vm6 = vmmov %vm12778_vm10 }
 0x307   : > { %v6549_v20 = vadd.f32 %v6520_v5, %v6488_v15 }
 0x308   : > { %v4722_v48 = vpop.permute.xlu0 %4721 }
 0x309   : > { %4792 = vst.msk [vmem:[#allocation3 + $0x68] sm:$0xf] %vm4765_vm12, %v4722_v48  ;;  %v4201_v58 = vpop.permute.xlu1 %4200  ;;  %v6564_v38 = vadd.f32 %v6550_v9, %v6549_v20 }
 0x30a   : > { %4272 = vst.msk [vmem:[#allocation3 + $0x64] sm:$0xf] %vm12768_vm15, %v4201_v58  ;;  %vm12783_vm15 = vmmov %vm12780_vm1 }
 0x30b   : > { %v6572_v31 = vmul.f32 0.25, %v6564_v38 }
 0x30c   : > { %v5205_v3 = vpop.permute.xlu0 %5204 }
 0x30d   : > { %5277 = vst.msk [vmem:[#allocation3 + $0x60] sm:$0xf] %vm12769_vm5, %v5205_v3  ;;  %v4205_v14 = vpop.permute.xlu1 %4204  ;;  %v6579_v40 = vpack.c.bf16 %v6572_v31, %v6571_v47  ;;  %vm12784_vm5 = vcmask 93248  }
 0x30e   : > { %4274 = vst.msk [vmem:[#allocation3 + $0x6c] sm:$0xf] %vm12770_vm2, %v4205_v14  ;;  %vm12785_vm2 = vmmov %vm12773_vm14 }
 0x30f   : > { %7331 = vmatprep.mubr.msk.bf16.mxu0 %vm12773_vm14, %v6579_v40  ;;  %vm12788_vm14 = vmmov %vm12784_vm5 }
 0x310   : > { %v5209_v50 = vpop.permute.xlu0 %5208 }
 0x311   : > { %5279 = vst.msk [vmem:[#allocation3 + $0x68] sm:$0xf] %vm12771_vm7, %v5209_v50  ;;  %v4720_v6 = vpop.permute.xlu1 %4719  ;;  %vm12786_vm7 = vmmov %vm12782_vm6 }
 0x312   : > { %4791 = vst.msk [vmem:[#allocation3 + $0x64] sm:$0xf] %vm4765_vm12, %v4720_v6 }
 0x314   : > { %v5398_v18 = vpop.permute.xlu0 %5397 }
 0x315   : > { %5470 = vst.msk [vmem:[#allocation3 + $0x60] sm:$0xf] %vm12772_vm8, %v5398_v18  ;;  %v4724_v60 = vpop.permute.xlu1 %4723  ;;  %vm12787_vm8 = vmmov %vm12785_vm2 }
 0x316   : > { %4793 = vst.msk [vmem:[#allocation3 + $0x6c] sm:$0xf] %vm4765_vm12, %v4724_v60 }
 0x318   : > { %v5402_v30 = vpop.permute.xlu0 %5401 }
 0x319   : > { %5472 = vst.msk [vmem:[#allocation3 + $0x68] sm:$0xf] %vm12774_vm13, %v5402_v30  ;;  %v5207_v25 = vpop.permute.xlu1 %5206  ;;  %vm12789_vm13 = vmmov %vm12785_vm2 }
 0x31a   : > { %5278 = vst.msk [vmem:[#allocation3 + $0x64] sm:$0xf] %vm12775_vm3, %v5207_v25  ;;  %vm12790_vm3 = vmmov %vm12780_vm1 }
 0x31c   : > { %v5917_v34 = vpop.permute.xlu0 %5916 }
 0x31d   : > { %5989 = vst.msk [vmem:[#allocation3 + $0x60] sm:$0xf] %vm12776_vm4, %v5917_v34  ;;  %v5211_v36 = vpop.permute.xlu1 %5210  ;;  %vm12791_vm4 = vcmask 293888  }
 0x31e   : > { %5280 = vst.msk [vmem:[#allocation3 + $0x6c] sm:$0xf] %vm12777_vm11, %v5211_v36  ;;  %vm12792_vm11 = vmmov %vm12785_vm2 }
 0x320   : > { %v2528_v33 = vpop.permute.xlu0 %2527 }
 0x321   : > { %2596 = vst.msk [vmem:[#allocation3 + $0x70] sm:$0xf] %vm12778_vm10, %v2528_v33  ;;  %v5400_v16 = vpop.permute.xlu1 %5399  ;;  %vm12793_vm10 = vcmask 126048  }
 0x322   : > { %5471 = vst.msk [vmem:[#allocation3 + $0x64] sm:$0xf] %vm12779_vm9, %v5400_v16  ;;  %vm12794_vm9 = vmmov %vm12782_vm6 }
 0x323   : > { %v7307_v55 = vpop.f32.mrf.mxu1 }
 0x324   : > { %v5921_v44 = vpop.permute.xlu0 %5920  ;;  %v6359_v13 = vmul.f32 %v7307_v55, %v11651_v57 }
 0x325   : > { %5991 = vst.msk [vmem:[#allocation3 + $0x68] sm:$0xf] %vm12780_vm1, %v5921_v44  ;;  %v5404_v26 = vpop.permute.xlu1 %5403  ;;  %v6247_v45 = vpop.f32.mrf.mxu1  ;;  %vm12795_vm1 = vmmov %vm12793_vm10 }
 0x326   : > { %5473 = vst.msk [vmem:[#allocation3 + $0x6c] sm:$0xf] %vm12781_vm0, %v5404_v26  ;;  %v6398_v61 = vadd.f32 %v11674_v41, %v6359_v13  ;;  %v6357_v49 = vmul.f32 %v11651_v57, %v6247_v45  ;;  %vm12796_vm0 = vmmov %vm12784_vm5 }
 0x327   : > { %v7308_v12 = vpop.f32.mrf.mxu1 }
 0x328   : > { %v2532_v27 = vpop.permute.xlu0 %2531  ;;  %v6430_v19 = vmax.f32 %v6398_v61, 0.0  ;;  %v6396_v22 = vadd.f32 %v11674_v41, %v6357_v49  ;;  %v6360_v8 = vmul.f32 %v7308_v12, %v11651_v57 }
 0x329   : > { %2598 = vst.msk [vmem:[#allocation3 + $0x78] sm:$0xf] %vm12782_vm6, %v2532_v27  ;;  %v5919_v1 = vpop.permute.xlu1 %5918  ;;  %v6250_v54 = vpop.f32.mrf.mxu1  ;;  %vm12797_vm6 = vmmov %vm12791_vm4 }
 0x32a   : > { %5990 = vst.msk [vmem:[#allocation3 + $0x64] sm:$0xf] %vm12783_vm15, %v5919_v1  ;;  %v6428_v0 = vmax.f32 %v6396_v22, 0.0  ;;  %v6399_v28 = vadd.f32 %v11674_v41, %v6360_v8  ;;  %v6358_v42 = vmul.f32 %v11651_v57, %v6250_v54  ;;  %vm12798_vm15 = vcmask 158848  }
 0x32b   : > { %6462 = vst.msk [vmem:[#allocation4 + $0x50] sm:$0xff] %vm12785_vm2, %v6430_v19  ;;  %vm12800_vm2 = vmmov %vm12798_vm15 }
 0x32c   : > { %v3527_v43 = vpop.permute.xlu0 %3526  ;;  %6460 = vst.msk [vmem:[#allocation4 + $0x40] sm:$0xff] %vm12787_vm8, %v6428_v0  ;;  %v6431_v56 = vmax.f32 %v6399_v28, 0.0  ;;  %v6397_v59 = vadd.f32 %v11674_v41, %v6358_v42  ;;  %vm12802_vm8 = vmmov %vm12795_vm1 }
 0x32d   : > { %3595 = vst.msk [vmem:[#allocation3 + $0x70] sm:$0xf] %vm12784_vm5, %v3527_v43  ;;  %v2530_v23 = vpop.permute.xlu1 %2529  ;;  %vm12799_vm5 = vmmov %vm12796_vm0 }
 0x32e   : > { %2597 = vst.msk [vmem:[#allocation3 + $0x74] sm:$0xf] %vm12786_vm7, %v2530_v23  ;;  %v6429_v32 = vmax.f32 %v6397_v59, 0.0  ;;  %vm12801_vm7 = vmmov %vm12795_vm1  ;;  %v6762_v59 = vld [vmem:[#allocation5 + $0x20] ss:$2 sm:$0xff] }
 0x32f   : > { %6463 = vst.msk [vmem:[#allocation4 + $0x58] sm:$0xff] %vm12789_vm13, %v6431_v56  ;;  %vm12804_vm13 = vmmov %vm12800_vm2  ;;  %v6760_v56 = vld [vmem:[#allocation5 + $0x10] ss:$2 sm:$0xff] }
 0x330   : > { %6461 = vst.msk [vmem:[#allocation4 + $0x48] sm:$0xff] %vm12792_vm11, %v6429_v32 }
 0x331   : > { %v5923_v17 = vpop.permute.xlu1 %5922  ;;  %v7402_v24 = vld [vmem:[#allocation3 + $0x60] sm:$0xff]  }
 0x332   : > { %v3531_v62 = vpop.permute.xlu0 %3530  ;;  %5992 = vst.msk [vmem:[#allocation3 + $0x6c] sm:$0xf] %vm12790_vm3, %v5923_v17  ;;  %7321 = vmatprep.mubr.msk.bf16.mxu1 %vm12791_vm4, %v7402_v24  ;;  %vm12805_vm3 = vmmov %vm12792_vm11  ;;  %vm12806_vm4 = vcmask 224448   ;;  %v6764_v17 = vld [vmem:[#allocation5 + $0x30] ss:$2 sm:$0xff] }
 0x333   : > { %3597 = vst.msk [vmem:[#allocation3 + $0x78] sm:$0xf] %vm12788_vm14, %v3531_v62  ;;  %vm12803_vm14 = vmmov %vm12792_vm11  ;;  %v6758_v62 = vld [vmem:[#allocation5] ss:$2 sm:$0xff]  ;;  %v6790_v24 = vld [vmem:[#allocation5 + $0x1] ss:$2 sm:$0xff] }
 0x334   : > { %vm12807_vm11 = vmmov %vm12805_vm3 }
 0x335   : > { %v2534_v29 = vpop.permute.xlu1 %2533 }
 0x336   : > { %v4014_v52 = vpop.permute.xlu0 %4013  ;;  %2599 = vst.msk [vmem:[#allocation3 + $0x7c] sm:$0xf] %vm12794_vm9, %v2534_v29  ;;  %vm12809_vm9 = vmmov %vm12805_vm3  ;;  %v6526_v33 = vld [vmem:[#allocation4 + $0x51] ss:$2 sm:$0xff]  ;;  %v6794_v29 = vld [vmem:[#allocation5 + $0x21] ss:$2 sm:$0xff] }
 0x337   : > { %4082 = vst.msk [vmem:[#allocation3 + $0x70] sm:$0xf] %vm12793_vm10, %v4014_v52  ;;  %vm12808_vm10 = vmmov %vm12800_vm2  ;;  %v6492_v25 = vld [vmem:[#allocation4 + $0x40] ss:$2 sm:$0xff]  ;;  %v6524_v34 = vld [vmem:[#allocation4 + $0x41] ss:$2 sm:$0xff] }
 0x338   : > { %v6551_v16 = vadd.f32 %v6524_v34, %v6492_v25  ;;  %v6792_v52 = vld [vmem:[#allocation5 + $0x11] ss:$2 sm:$0xff]  ;;  %v12041_v34 = vld [vmem:[%s12183_s5] ss:$0 sm:$0xff] }
 0x339   : > { %v3529_v35 = vpop.permute.xlu1 %3528  ;;  %v7403_v7 = vld [vmem:[#allocation3 + $0x68] sm:$0xff]  }
 0x33a   : > { %v4018_v10 = vpop.permute.xlu0 %4017  ;;  %3596 = vst.msk [vmem:[#allocation3 + $0x74] sm:$0xf] %vm12796_vm0, %v3529_v35  ;;  %7322 = vmatmul.mubr.msk.bf16.gmra.mxu1 %vm12797_vm6, %v7403_v7  ;;  %vm12811_vm0 = vcmask 257248   ;;  %v6821_v35 = vadd.f32 %v6790_v24, %v6758_v62  ;;  %v6822_v7 = vadd.f32 %v6792_v52, %v6760_v56 }
 0x33b   : > { %4084 = vst.msk [vmem:[#allocation3 + $0x78] sm:$0xf] %vm12795_vm1, %v4018_v10  ;;  %vm12810_vm1 = vmmov %vm12806_vm4  ;;  %v6796_v10 = vld [vmem:[#allocation5 + $0x31] ss:$2 sm:$0xff] }
 0x33c   : > { %vm12812_vm6 = vmmov %vm12811_vm0 }
 0x33f   : > { %v4207_v51 = vpop.permute.xlu0 %4206 }
 0x340   : > { %4275 = vst.msk [vmem:[#allocation3 + $0x70] sm:$0xf] %vm12798_vm15, %v4207_v51  ;;  %vm12813_vm15 = vmmov %vm12810_vm1  ;;  %v6823_v51 = vadd.f32 %v6794_v29, %v6762_v59 }
 0x341   : > { %v3533_v63 = vpop.permute.xlu1 %3532 }
 0x342   : > { %3598 = vst.msk [vmem:[#allocation3 + $0x7c] sm:$0xf] %vm12799_vm5, %v3533_v63  ;;  %vm12814_vm5 = vcmask 290048   ;;  %v6824_v63 = vadd.f32 %v6796_v10, %v6764_v17 }
 0x343   : > { %v4211_v37 = vpop.permute.xlu0 %4210  ;;  %v7311_v11 = vpop.f32.mrf.mxu1 }
 0x344   : > { %4277 = vst.msk [vmem:[#allocation3 + $0x78] sm:$0xf] %vm12800_vm2, %v4211_v37  ;;  %v6363_v53 = vmul.f32 %v7311_v11, %v11651_v57  ;;  %vm12816_vm2 = vmmov %vm12805_vm3  ;;  %v6770_v11 = vld [vmem:[#allocation5 + $0x60] ss:$2 sm:$0xff] }
 0x345   : > { %v4016_v48 = vpop.permute.xlu1 %4015  ;;  %v6263_v2 = vpop.f32.mrf.mxu1 }
 0x346   : > { %4083 = vst.msk [vmem:[#allocation3 + $0x74] sm:$0xf] %vm12801_vm7, %v4016_v48  ;;  %v6402_v4 = vadd.f32 %v11674_v41, %v6363_v53  ;;  %v6361_v39 = vmul.f32 %v11651_v57, %v6263_v2  ;;  %vm12817_vm7 = vmmov %vm12814_vm5  ;;  %v6766_v48 = vld [vmem:[#allocation5 + $0x40] ss:$2 sm:$0xff]  ;;  %v6772_v53 = vld [vmem:[#allocation5 + $0x70] ss:$2 sm:$0xff]  ;;  %v6837_v2 = vadd.f32 %v6822_v7, %v6821_v35 }
 0x347   : > { %v4726_v46 = vpop.permute.xlu0 %4725  ;;  %v7312_v15 = vpop.f32.mrf.mxu1 }
 0x348   : > { %4794 = vst.msk [vmem:[#allocation3 + $0x70] sm:$0xf] %vm4765_vm12, %v4726_v46  ;;  %v6434_v5 = vmax.f32 %v6402_v4, 0.0  ;;  %v6400_v20 = vadd.f32 %v11674_v41, %v6361_v39  ;;  %v6364_v9 = vmul.f32 %v7312_v15, %v11651_v57  ;;  %v6768_v46 = vld [vmem:[#allocation5 + $0x50] ss:$2 sm:$0xff]  ;;  %v6838_v4 = vadd.f32 %v6824_v63, %v6823_v51 }
 0x349   : > { %v4020_v58 = vpop.permute.xlu1 %4019  ;;  %v6266_v14 = vpop.f32.mrf.mxu1  ;;  %v6800_v39 = vld [vmem:[#allocation5 + $0x51] ss:$2 sm:$0xff] }
 0x34a   : > { %4085 = vst.msk [vmem:[#allocation3 + $0x7c] sm:$0xf] %vm12802_vm8, %v4020_v58  ;;  %v6432_v38 = vmax.f32 %v6400_v20, 0.0  ;;  %v6403_v50 = vadd.f32 %v11674_v41, %v6364_v9  ;;  %v6362_v47 = vmul.f32 %v11651_v57, %v6266_v14  ;;  %vm12818_vm8 = vmmov %vm12811_vm0  ;;  %v6798_v58 = vld [vmem:[#allocation5 + $0x41] ss:$2 sm:$0xff]  ;;  %v6826_v9 = vadd.f32 %v6800_v39, %v6768_v46 }
 0x34b   : > { %v4730_v3 = vpop.permute.xlu0 %4729  ;;  %6466 = vst.msk [vmem:[#allocation4 + $0x70] sm:$0xff] %vm12803_vm14, %v6434_v5  ;;  %vm12819_vm14 = vmmov %vm12811_vm0  ;;  %v6804_v15 = vld [vmem:[#allocation5 + $0x71] ss:$2 sm:$0xff]  ;;  %v6825_v20 = vadd.f32 %v6798_v58, %v6766_v48  ;;  %v6778_v39 = vld [vmem:[#allocation5 + $0xa0] ss:$2 sm:$0xff] }
 0x34c   : > { %4796 = vst.msk [vmem:[#allocation3 + $0x78] sm:$0xf] %vm4765_vm12, %v4730_v3  ;;  %v6435_v6 = vmax.f32 %v6403_v50, 0.0  ;;  %v6401_v40 = vadd.f32 %v11674_v41, %v6362_v47  ;;  %v6494_v41 = vld [vmem:[#allocation4 + $0x50] ss:$2 sm:$0xff]  ;;  %v6828_v14 = vadd.f32 %v6804_v15, %v6772_v53  ;;  %v6846_v50 = vmul.f32 0.25, %v6838_v4 }
 0x34d   : > { %v4209_v21 = vpop.permute.xlu1 %4208  ;;  %6464 = vst.msk [vmem:[#allocation4 + $0x60] sm:$0xff] %vm12805_vm3, %v6432_v38  ;;  %v6552_v55 = vadd.f32 %v6526_v33, %v6494_v41  ;;  %v6802_v3 = vld [vmem:[#allocation5 + $0x61] ss:$2 sm:$0xff]  ;;  %vm12821_vm3 = vmmov %vm12814_vm5  ;;  %v6845_v38 = vmul.f32 0.25, %v6837_v2  ;;  %v12047_v33 = vld [vmem:[%s12184_s6] ss:$0 sm:$0xff] }
 0x34e   : > { %4276 = vst.msk [vmem:[#allocation3 + $0x74] sm:$0xf] %vm12804_vm13, %v4209_v21  ;;  %v6433_v60 = vmax.f32 %v6401_v40, 0.0  ;;  %vm12820_vm13 = vmmov %vm12814_vm5  ;;  %v6827_v21 = vadd.f32 %v6802_v3, %v6770_v11  ;;  %v6774_v2 = vld [vmem:[#allocation5 + $0x80] ss:$2 sm:$0xff] }
 0x34f   : > { %v5213_v31 = vpop.permute.xlu0 %5212  ;;  %6467 = vst.msk [vmem:[#allocation4 + $0x78] sm:$0xff] %vm12807_vm11, %v6435_v6  ;;  %v6565_v43 = vadd.f32 %v6552_v55, %v6551_v16  ;;  %v6853_v40 = vpack.c.bf16 %v6846_v50, %v6845_v38  ;;  %v6776_v4 = vld [vmem:[#allocation5 + $0x90] ss:$2 sm:$0xff]  ;;  %v6810_v38 = vld [vmem:[#allocation5 + $0xa1] ss:$2 sm:$0xff] }
 0x350   : > { %5281 = vst.msk [vmem:[#allocation3 + $0x70] sm:$0xf] %vm12806_vm4, %v5213_v31  ;;  %vm12822_vm4 = vcmask 293888   ;;  %v6839_v31 = vadd.f32 %v6826_v9, %v6825_v20  ;;  %v6840_v6 = vadd.f32 %v6828_v14, %v6827_v21  ;;  %v6806_v21 = vld [vmem:[#allocation5 + $0x81] ss:$2 sm:$0xff] }
 0x351   : > { %v4213_v18 = vpop.permute.xlu1 %4212  ;;  %6465 = vst.msk [vmem:[#allocation4 + $0x68] sm:$0xff] %vm12809_vm9, %v6433_v60  ;;  %v6573_v8 = vmul.f32 0.25, %v6565_v43  ;;  %vm12823_vm11 = vmmov %vm12822_vm4  ;;  %v6808_v14 = vld [vmem:[#allocation5 + $0x91] ss:$2 sm:$0xff] }
 0x352   : > { %4278 = vst.msk [vmem:[#allocation3 + $0x7c] sm:$0xf] %vm12808_vm10, %v4213_v18  ;;  %v6847_v60 = vmul.f32 0.25, %v6839_v31  ;;  %vm12824_vm10 = vmmov %vm12816_vm2  ;;  %v6812_v50 = vld [vmem:[#allocation5 + $0xb1] ss:$2 sm:$0xff]  ;;  %v6830_v31 = vadd.f32 %v6808_v14, %v6776_v4 }
 0x353   : > { %v5217_v30 = vpop.permute.xlu0 %5216  ;;  %vm12825_vm9 = vmmov %vm12816_vm2  ;;  %v12101_v14 = vld [vmem:[%s12189_s11] ss:$0 sm:$0xff] }
 0x354   : > { %5283 = vst.msk [vmem:[#allocation3 + $0x78] sm:$0xf] %vm12810_vm1, %v5217_v30  ;;  %v6848_v30 = vmul.f32 0.25, %v6840_v6  ;;  %v6831_v6 = vadd.f32 %v6810_v38, %v6778_v39  ;;  %v12094_v39 = vld [vmem:[%s12186_s8] ss:$0 sm:$0xff] }
 0x355   : > { %v4728_v57 = vpop.permute.xlu1 %4727 }
 0x356   : > { %4795 = vst.msk [vmem:[#allocation3 + $0x74] sm:$0xf] %vm4765_vm12, %v4728_v57  ;;  %v6498_v26 = vld [vmem:[#allocation4 + $0x70] ss:$2 sm:$0xff]  ;;  %v6530_v27 = vld [vmem:[#allocation4 + $0x71] ss:$2 sm:$0xff]  ;;  %v6854_v25 = vpack.c.bf16 %v6848_v30, %v6847_v60 }
 0x357   : > { %v5406_v36 = vpop.permute.xlu0 %5405  ;;  %v6554_v49 = vadd.f32 %v6530_v27, %v6498_v26 }
 0x358   : > { %5474 = vst.msk [vmem:[#allocation3 + $0x70] sm:$0xf] %vm12811_vm0, %v5406_v36  ;;  %v6496_v1 = vld [vmem:[#allocation4 + $0x60] ss:$2 sm:$0xff]  ;;  %v6528_v45 = vld [vmem:[#allocation4 + $0x61] ss:$2 sm:$0xff] }
 0x359   : > { %v4732_v44 = vpop.permute.xlu1 %4731  ;;  %v6553_v61 = vadd.f32 %v6528_v45, %v6496_v1 }
 0x35a   : > { %4797 = vst.msk [vmem:[#allocation3 + $0x7c] sm:$0xf] %vm4765_vm12, %v4732_v44  ;;  %vm12815_vm12 = vmmov %vm12810_vm1 }
 0x35b   : > { %v5410_v13 = vpop.permute.xlu0 %5409  ;;  %v6566_v19 = vadd.f32 %v6554_v49, %v6553_v61  ;;  %vm12826_vm1 = vmmov %vm12816_vm2 }
 0x35c   : > { %5476 = vst.msk [vmem:[#allocation3 + $0x78] sm:$0xf] %vm12812_vm6, %v5410_v13  ;;  %vm12827_vm0 = vmmov %vm12826_vm1 }
 0x35d   : > { %v5215_v12 = vpop.permute.xlu1 %5214  ;;  %v6574_v23 = vmul.f32 0.25, %v6566_v19  ;;  %vm12828_vm6 = vmmov %vm12827_vm0 }
 0x35e   : > { %5282 = vst.msk [vmem:[#allocation3 + $0x74] sm:$0xf] %vm12813_vm15, %v5215_v12  ;;  %vm12829_vm15 = vmmov %vm12827_vm0 }
 0x35f   : > { %v5925_v22 = vpop.permute.xlu0 %5924  ;;  %v6580_v0 = vpack.c.bf16 %v6574_v23, %v6573_v8 }
 0x360   : > { %5993 = vst.msk [vmem:[#allocation3 + $0x70] sm:$0xf] %vm12814_vm5, %v5925_v22  ;;  %vm12830_vm5 = vmmov %vm12827_vm0 }
 0x361   : > { %v5219_v54 = vpop.permute.xlu1 %5218  ;;  %7332 = vmatmul.mubr.msk.bf16.vlgmr.msra.gmra.mxu0 %vm12816_vm2, %v6580_v0  ;;  %vm12832_vm2 = vmmov %vm12827_vm0 }
 0x362   : > { %5284 = vst.msk [vmem:[#allocation3 + $0x7c] sm:$0xf] %vm12815_vm12, %v5219_v54  ;;  %vm12831_vm12 = vmmov %vm12827_vm0 }
 0x363   : > { %v5929_v28 = vpop.permute.xlu0 %5928 }
 0x364   : > { %5995 = vst.msk [vmem:[#allocation3 + $0x78] sm:$0xf] %vm12817_vm7, %v5929_v28  ;;  %vm12833_vm7 = vmmov %vm12827_vm0 }
 0x365   : > { %v5408_v42 = vpop.permute.xlu1 %5407 }
 0x366   : > { %5475 = vst.msk [vmem:[#allocation3 + $0x74] sm:$0xf] %vm12818_vm8, %v5408_v42  ;;  %vm12834_vm8 = vmmov %vm12827_vm0 }
 0x369   : > { %v5412_v32 = vpop.permute.xlu1 %5411 }
 0x36a   : > { %5477 = vst.msk [vmem:[#allocation3 + $0x7c] sm:$0xf] %vm12819_vm14, %v5412_v32  ;;  %vm12835_vm14 = vmmov %vm12827_vm0 }
 0x36d   : > { %v5927_v37 = vpop.permute.xlu1 %5926 }
 0x36e   : > { %5994 = vst.msk [vmem:[#allocation3 + $0x74] sm:$0xf] %vm12820_vm13, %v5927_v37  ;;  %vm12836_vm13 = vmmov %vm12827_vm0 }
 0x371   : > { %v5931_v5 = vpop.permute.xlu1 %5930 }
 0x372   : > { %5996 = vst.msk [vmem:[#allocation3 + $0x7c] sm:$0xf] %vm12821_vm3, %v5931_v5  ;;  %v6780_v5 = vld [vmem:[#allocation5 + $0xb0] ss:$2 sm:$0xff]  ;;  %vm12837_vm3 = vmmov %vm12827_vm0 }
 0x373   : > { %v6832_v30 = vadd.f32 %v6812_v50, %v6780_v5 }
 0x375   : > { %v7404_v47 = vld [vmem:[#allocation3 + $0x70] sm:$0xff]  }
 0x376   : > { %7325 = vmatprep.mubr.msk.bf16.mxu1 %vm12822_vm4, %v7404_v47  ;;  %v6829_v47 = vadd.f32 %v6806_v21, %v6774_v2  ;;  %vm12838_vm4 = vmmov %vm12827_vm0 }
 0x379   : > { %v7405_v18 = vld [vmem:[#allocation3 + $0x78] sm:$0xff]  }
 0x37a   : > { %7326 = vmatmul.mubr.msk.bf16.gmra.mxu1 %vm12823_vm11, %v7405_v18  ;;  %v6784_v18 = vld [vmem:[#allocation5 + $0xd0] ss:$2 sm:$0xff]  ;;  %vm12839_vm11 = vmmov %vm12827_vm0 }
 0x37b   : > { %7341 = vmatprep.mubr.msk.bf16.mxu1 %vm12824_vm10, %v6853_v40  ;;  %v6782_v40 = vld [vmem:[#allocation5 + $0xc0] ss:$2 sm:$0xff]  ;;  %vm12840_vm10 = vmmov %vm12827_vm0 }
 0x37e   : > { %v7315_v57 = vpop.f32.mrf.mxu1 }
 0x37f   : > { %v6367_v36 = vmul.f32 %v12041_v34, %v7315_v57  ;;  %v6786_v57 = vld [vmem:[#allocation5 + $0xe0] ss:$2 sm:$0xff] }
 0x380   : > { %v6279_v41 = vpop.f32.mrf.mxu1 }
 0x381   : > { %v6406_v16 = vadd.f32 %v12047_v33, %v6367_v36  ;;  %v6365_v44 = vmul.f32 %v12041_v34, %v6279_v41  ;;  %v6814_v36 = vld [vmem:[#allocation5 + $0xc1] ss:$2 sm:$0xff]  ;;  %v6841_v41 = vadd.f32 %v6830_v31, %v6829_v47 }
 0x382   : > { %v7316_v26 = vpop.f32.mrf.mxu1  ;;  %7342 = vmatmul.mubr.msk.bf16.vlgmr.msra.gmra.mxu1 %vm12825_vm9, %v6854_v25  ;;  %v6788_v25 = vld [vmem:[#allocation5 + $0xf0] ss:$2 sm:$0xff]  ;;  %vm12841_vm9 = vmmov %vm12827_vm0 }
 0x383   : > { %v6438_v27 = vmax.f32 %v6406_v16, 0.0  ;;  %v6404_v55 = vadd.f32 %v12047_v33, %v6365_v44  ;;  %v6368_v13 = vmul.f32 %v12041_v34, %v7316_v26  ;;  %v6816_v16 = vld [vmem:[#allocation5 + $0xd1] ss:$2 sm:$0xff]  ;;  %v6818_v44 = vld [vmem:[#allocation5 + $0xe1] ss:$2 sm:$0xff] }
 0x384   : > { %v6282_v1 = vpop.f32.mrf.mxu1  ;;  %v6820_v26 = vld [vmem:[#allocation5 + $0xf1] ss:$2 sm:$0xff] }
 0x385   : > { %6470 = vst.msk [vmem:[#allocation4 + $0x90] sm:$0xff] %vm12826_vm1, %v6438_v27  ;;  %v6436_v45 = vmax.f32 %v6404_v55, 0.0  ;;  %v6407_v61 = vadd.f32 %v12047_v33, %v6368_v13  ;;  %v6366_v49 = vmul.f32 %v12041_v34, %v6282_v1  ;;  %v6833_v27 = vadd.f32 %v6814_v36, %v6782_v40  ;;  %vm12842_vm1 = vmmov %vm12827_vm0 }
 0x386   : > { %v6842_v13 = vadd.f32 %v6832_v30, %v6831_v6  ;;  %v6834_v1 = vadd.f32 %v6816_v16, %v6784_v18  ;;  %v12110_v6 = vld [vmem:[%s12187_s9] ss:$0 sm:$0xff] }
 0x387   : > { %6468 = vst.msk [vmem:[#allocation4 + $0x80] sm:$0xff] %vm12827_vm0, %v6436_v45  ;;  %v6439_v43 = vmax.f32 %v6407_v61, 0.0  ;;  %v6405_v12 = vadd.f32 %v12047_v33, %v6366_v49  ;;  %v6835_v45 = vadd.f32 %v6818_v44, %v6786_v57  ;;  %v6849_v61 = vmul.f32 0.25, %v6841_v41 }
 0x388   : > { %v6836_v49 = vadd.f32 %v6820_v26, %v6788_v25 }
 0x389   : > { %6471 = vst.msk [vmem:[#allocation4 + $0x98] sm:$0xff] %vm12828_vm6, %v6439_v43  ;;  %v6437_v19 = vmax.f32 %v6405_v12, 0.0  ;;  %v6850_v12 = vmul.f32 0.25, %v6842_v13  ;;  %vm12843_vm6 = vmmov %vm12827_vm0 }
 0x38b   : > { %6469 = vst.msk [vmem:[#allocation4 + $0x88] sm:$0xff] %vm12829_vm15, %v6437_v19  ;;  %v6843_v19 = vadd.f32 %v6834_v1, %v6833_v27  ;;  %vm6984_vm15 = vcmask 130048  }
 0x390   : > { %v6502_v7 = vld [vmem:[#allocation4 + $0x90] ss:$2 sm:$0xff]  ;;  %v6534_v51 = vld [vmem:[#allocation4 + $0x91] ss:$2 sm:$0xff] }
 0x391   : > { %v6556_v48 = vadd.f32 %v6534_v51, %v6502_v7 }
 0x392   : > { %v6500_v52 = vld [vmem:[#allocation4 + $0x80] ss:$2 sm:$0xff]  ;;  %v6532_v29 = vld [vmem:[#allocation4 + $0x81] ss:$2 sm:$0xff] }
 0x393   : > { %v6555_v63 = vadd.f32 %v6532_v29, %v6500_v52 }
 0x395   : > { %v6567_v46 = vadd.f32 %v6556_v48, %v6555_v63 }
 0x397   : > { %v6575_v58 = vmul.f32 0.25, %v6567_v46 }
 0x3ba   : > { %v7319_v22 = vpop.f32.mrf.mxu1 }
 0x3bb   : > { %v6371_v8 = vmul.f32 %v12041_v34, %v7319_v22  ;;  %v6844_v22 = vadd.f32 %v6836_v49, %v6835_v45 }
 0x3bc   : > { %v6295_v23 = vpop.f32.mrf.mxu1 }
 0x3bd   : > { %v6410_v54 = vadd.f32 %v12047_v33, %v6371_v8  ;;  %v6369_v0 = vmul.f32 %v12041_v34, %v6295_v23  ;;  %v6855_v8 = vpack.c.bf16 %v6850_v12, %v6849_v61  ;;  %v6851_v23 = vmul.f32 0.25, %v6843_v19 }
 0x3be   : > { %v7320_v28 = vpop.f32.mrf.mxu1 }
 0x3bf   : > { %v6442_v42 = vmax.f32 %v6410_v54, 0.0  ;;  %v6408_v62 = vadd.f32 %v12047_v33, %v6369_v0  ;;  %v6372_v56 = vmul.f32 %v12041_v34, %v7320_v28  ;;  %v6852_v54 = vmul.f32 0.25, %v6844_v22  ;;  %7345 = vmatprep.mubr.msk.bf16.mxu1 %vm12835_vm14, %v6855_v8 }
 0x3c0   : > { %v6298_v59 = vpop.f32.mrf.mxu1 }
 0x3c1   : > { %6474 = vst.msk [vmem:[#allocation4 + $0xb0] sm:$0xff] %vm12830_vm5, %v6442_v42  ;;  %v6440_v17 = vmax.f32 %v6408_v62, 0.0  ;;  %v6411_v24 = vadd.f32 %v12047_v33, %v6372_v56  ;;  %v6370_v32 = vmul.f32 %v12041_v34, %v6298_v59  ;;  %v6856_v0 = vpack.c.bf16 %v6852_v54, %v6851_v23  ;;  %vm12844_vm5 = vmmov %vm12827_vm0 }
 0x3c3   : > { %6472 = vst.msk [vmem:[#allocation4 + $0xa0] sm:$0xff] %vm12831_vm12, %v6440_v17  ;;  %v6443_v10 = vmax.f32 %v6411_v24, 0.0  ;;  %v6409_v35 = vadd.f32 %v12047_v33, %v6370_v32  ;;  %7346 = vmatmul.mubr.msk.bf16.gmra.mxu1 %vm12836_vm13, %v6856_v0 }
 0x3c5   : > { %6475 = vst.msk [vmem:[#allocation4 + $0xb8] sm:$0xff] %vm12832_vm2, %v6443_v10  ;;  %v6441_v37 = vmax.f32 %v6409_v35, 0.0 }
 0x3c7   : > { %6473 = vst.msk [vmem:[#allocation4 + $0xa8] sm:$0xff] %vm12833_vm7, %v6441_v37 }
 0x3cc   : > { %v6506_v11 = vld [vmem:[#allocation4 + $0xb0] ss:$2 sm:$0xff]  ;;  %v6538_v53 = vld [vmem:[#allocation4 + $0xb1] ss:$2 sm:$0xff] }
 0x3cd   : > { %v6558_v9 = vadd.f32 %v6538_v53, %v6506_v11 }
 0x3ce   : > { %v6504_v3 = vld [vmem:[#allocation4 + $0xa0] ss:$2 sm:$0xff]  ;;  %v6536_v15 = vld [vmem:[#allocation4 + $0xa1] ss:$2 sm:$0xff] }
 0x3cf   : > { %v6557_v20 = vadd.f32 %v6536_v15, %v6504_v3 }
 0x3d1   : > { %v6568_v60 = vadd.f32 %v6558_v9, %v6557_v20 }
 0x3d3   : > { %v6576_v55 = vmul.f32 0.25, %v6568_v60  ;;  %v12116_v60 = vld [vmem:[%s12190_s12] ss:$0 sm:$0xff] }
 0x3d5   : > { %v6581_v43 = vpack.c.bf16 %v6576_v55, %v6575_v58 }
 0x3d7   : > { %7335 = vmatprep.mubr.msk.bf16.mxu0 %vm12834_vm8, %v6581_v43 }
 0x3fa   : > { %v7323_v28 = vpop.f32.mrf.mxu1 }
 0x3fb   : > { %v6375_v42 = vmul.f32 %v12041_v34, %v7323_v28 }
 0x3fc   : > { %v6311_v62 = vpop.f32.mrf.mxu1 }
 0x3fd   : > { %v6414_v56 = vadd.f32 %v12047_v33, %v6375_v42  ;;  %v6373_v59 = vmul.f32 %v12041_v34, %v6311_v62 }
 0x3fe   : > { %v7324_v17 = vpop.f32.mrf.mxu1 }
 0x3ff   : > { %v6446_v24 = vmax.f32 %v6414_v56, 0.0  ;;  %v6412_v32 = vadd.f32 %v12047_v33, %v6373_v59  ;;  %v6376_v52 = vmul.f32 %v12041_v34, %v7324_v17 }
 0x400   : > { %v6314_v29 = vpop.f32.mrf.mxu1 }
 0x401   : > { %6478 = vst.msk [vmem:[#allocation4 + $0xd0] sm:$0xff] %vm12837_vm3, %v6446_v24  ;;  %v6444_v10 = vmax.f32 %v6412_v32, 0.0  ;;  %v6415_v35 = vadd.f32 %v12047_v33, %v6376_v52  ;;  %v6374_v7 = vmul.f32 %v12041_v34, %v6314_v29 }
 0x403   : > { %6476 = vst.msk [vmem:[#allocation4 + $0xc0] sm:$0xff] %vm12838_vm4, %v6444_v10  ;;  %v6447_v51 = vmax.f32 %v6415_v35, 0.0  ;;  %v6413_v63 = vadd.f32 %v12047_v33, %v6374_v7 }
 0x405   : > { %6479 = vst.msk [vmem:[#allocation4 + $0xd8] sm:$0xff] %vm12839_vm11, %v6447_v51  ;;  %v6445_v37 = vmax.f32 %v6413_v63, 0.0 }
 0x407   : > { %6477 = vst.msk [vmem:[#allocation4 + $0xc8] sm:$0xff] %vm12840_vm10, %v6445_v37 }
 0x40c   : > { %v6510_v0 = vld [vmem:[#allocation4 + $0xd0] ss:$2 sm:$0xff]  ;;  %v6542_v28 = vld [vmem:[#allocation4 + $0xd1] ss:$2 sm:$0xff] }
 0x40d   : > { %v6560_v10 = vadd.f32 %v6542_v28, %v6510_v0 }
 0x40e   : > { %v6508_v49 = vld [vmem:[#allocation4 + $0xc0] ss:$2 sm:$0xff]  ;;  %v6540_v43 = vld [vmem:[#allocation4 + $0xc1] ss:$2 sm:$0xff] }
 0x40f   : > { %v6559_v42 = vadd.f32 %v6540_v43, %v6508_v49 }
 0x421   : > { %v7333_v48 = vpop.f32.mrf.mxu0 }
 0x422   : > { %v6673_v38 = vmul.f32 %v7333_v48, %v12094_v39  ;;  %v6569_v48 = vadd.f32 %v6560_v10, %v6559_v42 }
 0x423   : > { %v6633_v53 = vpop.f32.mrf.mxu0 }
 0x424   : > { %v6671_v40 = vmul.f32 %v12094_v39, %v6633_v53  ;;  %v6688_v16 = vadd.f32 %v12110_v6, %v6673_v38 }
 0x425   : > { %v7334_v9 = vpop.f32.mrf.mxu0 }
 0x426   : > { %v6674_v25 = vmul.f32 %v7334_v9, %v12094_v39  ;;  %v6686_v55 = vadd.f32 %v12110_v6, %v6671_v40 }
 0x427   : > { %v6636_v36 = vpop.f32.mrf.mxu0 }
 0x428   : > { %v6689_v12 = vadd.f32 %v12110_v6, %v6674_v25 }
 0x43a   : > { %v7327_v46 = vpop.f32.mrf.mxu1 }
 0x43b   : > { %v6379_v11 = vmul.f32 %v12041_v34, %v7327_v46 }
 0x43c   : > { %v6327_v58 = vpop.f32.mrf.mxu1 }
 0x43d   : > { %v6418_v2 = vadd.f32 %v12047_v33, %v6379_v11  ;;  %v6377_v4 = vmul.f32 %v12041_v34, %v6327_v58  ;;  %v6577_v11 = vmul.f32 0.25, %v6569_v48 }
 0x43e   : > { %v7328_v3 = vpop.f32.mrf.mxu1 }
 0x43f   : > { %v6450_v15 = vmax.f32 %v6418_v2, 0.0  ;;  %v6416_v5 = vadd.f32 %v12047_v33, %v6377_v4  ;;  %v6380_v20 = vmul.f32 %v12041_v34, %v7328_v3 }
 0x440   : > { %v6330_v21 = vpop.f32.mrf.mxu1 }
 0x441   : > { %6482 = vst.msk [vmem:[#allocation4 + $0xf0] sm:$0xff] %vm12841_vm9, %v6450_v15  ;;  %v6448_v50 = vmax.f32 %v6416_v5, 0.0  ;;  %v6419_v47 = vadd.f32 %v12047_v33, %v6380_v20  ;;  %v6378_v31 = vmul.f32 %v12041_v34, %v6330_v21 }
 0x442   : > { %v7343_v18 = vpop.f32.mrf.mxu1 }
 0x443   : > { %6480 = vst.msk [vmem:[#allocation4 + $0xe0] sm:$0xff] %vm12842_vm1, %v6448_v50  ;;  %v6451_v30 = vmax.f32 %v6419_v47, 0.0  ;;  %v6417_v57 = vadd.f32 %v12047_v33, %v6378_v31  ;;  %v6947_v34 = vmul.f32 %v7343_v18, %v12101_v14  ;;  %v6672_v33 = vmul.f32 %v12094_v39, %v6636_v36 }
 0x444   : > { %v6907_v41 = vpop.f32.mrf.mxu1 }
 0x445   : > { %6483 = vst.msk [vmem:[#allocation4 + $0xf8] sm:$0xff] %vm12827_vm0, %v6451_v30  ;;  %v6449_v44 = vmax.f32 %v6417_v57, 0.0  ;;  %v6962_v26 = vadd.f32 %v12116_v60, %v6947_v34  ;;  %v6945_v27 = vmul.f32 %v12101_v14, %v6907_v41  ;;  %v6687_v62 = vadd.f32 %v12110_v6, %v6672_v33 }
 0x446   : > { %v7344_v13 = vpop.f32.mrf.mxu1 }
 0x447   : > { %6481 = vst.msk [vmem:[#allocation4 + $0xe8] sm:$0xff] %vm12843_vm6, %v6449_v44  ;;  %v6970_v1 = vadd.f32 %v6962_v26, %v6688_v16  ;;  %v6960_v45 = vadd.f32 %v12116_v60, %v6945_v27  ;;  %v6948_v61 = vmul.f32 %v7344_v13, %v12101_v14 }
 0x448   : > { %v6910_v19 = vpop.f32.mrf.mxu1 }
 0x449   : > { %v6978_v22 = vmax.f32 %v6970_v1, 0.0  ;;  %v6968_v8 = vadd.f32 %v6960_v45, %v6686_v55  ;;  %v6963_v23 = vadd.f32 %v12116_v60, %v6948_v61  ;;  %v6946_v54 = vmul.f32 %v12101_v14, %v6910_v19 }
 0x44b   : > { %6987 = vst.msk [vmem:[%s12136_s23 + $0x10] sm:$0xff] %vm6984_vm15, %v6978_v22  ;;  %v6976_v56 = vmax.f32 %v6968_v8, 0.0  ;;  %v6971_v59 = vadd.f32 %v6963_v23, %v6689_v12  ;;  %v6961_v17 = vadd.f32 %v12116_v60, %v6946_v54 }
 0x44c   : > { %v6514_v24 = vld [vmem:[#allocation4 + $0xf0] ss:$2 sm:$0xff]  ;;  %v6546_v32 = vld [vmem:[#allocation4 + $0xf1] ss:$2 sm:$0xff] }
 0x44d   : > { %6985 = vst.msk [vmem:[%s12136_s23] sm:$0xff] %vm6984_vm15, %v6976_v56  ;;  %v6979_v52 = vmax.f32 %v6971_v59, 0.0  ;;  %v6969_v29 = vadd.f32 %v6961_v17, %v6687_v62  ;;  %v6562_v37 = vadd.f32 %v6546_v32, %v6514_v24 }
 0x44e   : > { %v6512_v35 = vld [vmem:[#allocation4 + $0xe0] ss:$2 sm:$0xff]  ;;  %v6544_v7 = vld [vmem:[#allocation4 + $0xe1] ss:$2 sm:$0xff] }
 0x44f   : > { %6988 = vst.msk [vmem:[%s12136_s23 + $0x18] sm:$0xff] %vm6984_vm15, %v6979_v52  ;;  %v6977_v51 = vmax.f32 %v6969_v29, 0.0  ;;  %v6561_v63 = vadd.f32 %v6544_v7, %v6512_v35 }
 0x451   : > { %6986 = vst.msk [vmem:[%s12136_s23 + $0x8] sm:$0xff] %vm6984_vm15, %v6977_v51  ;;  %v6570_v46 = vadd.f32 %v6562_v37, %v6561_v63 }
 0x453   : > { %v6578_v53 = vmul.f32 0.25, %v6570_v46 }
 0x455   : > { %v6582_v58 = vpack.c.bf16 %v6578_v53, %v6577_v11 }
 0x457   : > { %7336 = vmatmul.mubr.msk.bf16.gmra.mxu0 %vm12844_vm5, %v6582_v58 }
 0x483   : > { %v7347_v2 = vpop.f32.mrf.mxu1 }
 0x484   : > { %v6951_v3 = vmul.f32 %v7347_v2, %v12101_v14 }
 0x485   : > { %v6923_v4 = vpop.f32.mrf.mxu1 }
 0x486   : > { %v6949_v5 = vmul.f32 %v12101_v14, %v6923_v4  ;;  %v6966_v9 = vadd.f32 %v12116_v60, %v6951_v3 }
 0x487   : > { %v7348_v15 = vpop.f32.mrf.mxu1 }
 0x488   : > { %v6952_v38 = vmul.f32 %v7348_v15, %v12101_v14  ;;  %v6964_v18 = vadd.f32 %v12116_v60, %v6949_v5 }
 0x489   : > { %v6926_v50 = vpop.f32.mrf.mxu1 }
 0x48a   : > { %v6950_v34 = vmul.f32 %v12101_v14, %v6926_v50  ;;  %v6967_v41 = vadd.f32 %v12116_v60, %v6952_v38 }
 0x48c   : > { %v6965_v13 = vadd.f32 %v12116_v60, %v6950_v34 }
 0x517   : > { %v7337_v20 = vpop.f32.mrf.mxu0 }
 0x518   : > { %v6677_v21 = vmul.f32 %v7337_v20, %v12094_v39 }
 0x519   : > { %v6649_v47 = vpop.f32.mrf.mxu0 }
 0x51a   : > { %v6692_v31 = vadd.f32 %v12110_v6, %v6677_v21  ;;  %v6675_v40 = vmul.f32 %v12094_v39, %v6649_v47 }
 0x51b   : > { %v7338_v30 = vpop.f32.mrf.mxu0 }
 0x51c   : > { %v6974_v57 = vadd.f32 %v6966_v9, %v6692_v31  ;;  %v6690_v25 = vadd.f32 %v12110_v6, %v6675_v40  ;;  %v6678_v36 = vmul.f32 %v7338_v30, %v12094_v39 }
 0x51d   : > { %v6652_v16 = vpop.f32.mrf.mxu0 }
 0x51e   : > { %v6982_v44 = vmax.f32 %v6974_v57, 0.0  ;;  %v6972_v26 = vadd.f32 %v6964_v18, %v6690_v25  ;;  %v6693_v27 = vadd.f32 %v12110_v6, %v6678_v36  ;;  %v6676_v55 = vmul.f32 %v12094_v39, %v6652_v16 }
 0x520   : > { %6991 = vst.msk [vmem:[%s12136_s23 + $0x30] sm:$0xff] %vm6984_vm15, %v6982_v44  ;;  %v6980_v14 = vmax.f32 %v6972_v26, 0.0  ;;  %v6975_v33 = vadd.f32 %v6967_v41, %v6693_v27  ;;  %v6691_v1 = vadd.f32 %v12110_v6, %v6676_v55 }
 0x522   : > { %6989 = vst.msk [vmem:[%s12136_s23 + $0x20] sm:$0xff] %vm6984_vm15, %v6980_v14  ;;  %v6983_v45 = vmax.f32 %v6975_v33, 0.0  ;;  %v6973_v61 = vadd.f32 %v6965_v13, %v6691_v1 }
 0x524   : > { %6992 = vst.msk [vmem:[%s12136_s23 + $0x38] sm:$0xff] %vm6984_vm15, %v6983_v45  ;;  %v6981_v49 = vmax.f32 %v6973_v61, 0.0 }
 0x526   : > { %6990 = vst.msk [vmem:[%s12136_s23 + $0x28] sm:$0xff] %vm6984_vm15, %v6981_v49 }
 0x527 PF: > { %s23_s25 = sadd.s32 1, %s7437_s25  }
 0x528   : > { %p20_p4 = scmp.ge.s32.totalorder %s23_s25, 4  }
 0x52a   :  { %22 = sbr.rel (!%p20_p4) target bundleno = 1 (0x1), region = 164 }

</bundles_post_ra>
